<compile_context>
chip_gen: v6e
topology: v6e:2x2x1
jax: 0.10.0
libtpu: 0.0.40
codegen_flags: <defaults>
</compile_context>

<pallas_src>
import jax
import jax.numpy as jnp
import numpy as np
from jax import lax
from jax.experimental import pallas as pl
from jax.experimental.pallas import tpu as pltpu

EPS = 1e-5

_VMEM = pl.BlockSpec(memory_space=pltpu.MemorySpace.VMEM)


# ----------------------------------------------------------------------------
# The fused Pallas kernel
# ----------------------------------------------------------------------------
def _fused_kernel(x_ref, t_ref, w1_ref, b1_ref, w2_ref, b2_ref, w3_ref, b3_ref,
                  sel_ref, wf1_ref, bf1_ref, wf2_ref, bf2_ref, o_ref):
    f32 = jnp.float32
    x0 = x_ref[...]                                    # [B*64, 1]

    # --- 3x3 "same" conv + folded BN + ReLU, as 9 accumulated taps ----------
    # t_ref[t] is a precomputed [B*64, B*64] 0/1 spatial-shift matrix
    # (block-diagonal over batch, zero rows implement the padding).
    def conv(xin, w_ref_l, b_ref_l, mxu):
        acc = None
        for t in range(9):
            xs = jnp.dot(t_ref[t], xin, preferred_element_type=f32)
            if mxu:
                term = jnp.dot(xs, w_ref_l[t], preferred_element_type=f32)
            else:
                # Cin == 1: broadcast FMA on the VPU instead of a K=1 MXU dot.
                term = xs * w_ref_l[t]                 # [B*64,1] * [1,Cout]
            acc = term if acc is None else acc + term
        return jnp.maximum(acc + b_ref_l[...], 0.0)

    y = conv(x0, w1_ref, b1_ref, mxu=False)            # [B*64, 16]
    y = conv(y, w2_ref, b2_ref, mxu=True)              # [B*64, 32]
    y = conv(y, w3_ref, b3_ref, mxu=True)              # [B*64, 64]

    # --- 2x2 maxpool: 4 selection matmuls + elementwise max -----------------
    # sel_ref[k] maps conv3 rows (b,h,w) to pooled rows (hw*SP + b); unused
    # padding rows (b >= B) are all-zero so slices below stay 8-row aligned.
    pooled = None
    for k in range(4):
        pk = jnp.dot(sel_ref[k], y, preferred_element_type=f32)  # [16*SP, 64]
        pooled = pk if pooled is None else jnp.maximum(pooled, pk)

    # --- fc1 + ReLU: accumulate over the 16 pooled spatial positions --------
    # wf1_ref[hw] is fc1 weight pre-permuted so no activation flatten/transpose
    # is needed (matches torch's NCHW x.view(B, -1) ordering).
    sp = sel_ref.shape[1] // 16                        # padded batch stride
    h = None
    for hw in range(16):
        rows = pooled[hw * sp:(hw + 1) * sp, :]        # [SP, 64] (8-aligned)
        term = jnp.dot(rows, wf1_ref[hw], preferred_element_type=f32)
        h = term if h is None else h + term
    h = jnp.maximum(h + bf1_ref[...], 0.0)             # [SP, 256]

    # --- fc2 (out_features == 1): broadcast-multiply + lane reduction -------
    out = jnp.sum(h * wf2_ref[...], axis=-1, keepdims=True) + bf2_ref[...]
    o_ref[...] = out[: o_ref.shape[0], :]              # drop padding rows


def energy_predictor_pallas(x_nchw, fused):
    """Fused forward. x_nchw: [B, 1, 8, 8]; fused: prepare_fused_params(...)"""
    B = x_nchw.shape[0]
    # C == 1, so NCHW row order (b, h, w) equals NHWC row order: pure reshape.
    x2d = x_nchw.reshape(B * 64, 1).astype(jnp.float32)
    args = (x2d, fused["T"],
            fused["w1"], fused["b1"], fused["w2"], fused["b2"],
            fused["w3"], fused["b3"], fused["sel"],
            fused["wf1"], fused["bf1"], fused["wf2"], fused["bf2"])
    return pl.pallas_call(
        _fused_kernel,
        out_shape=jax.ShapeDtypeStruct((B, 1), jnp.float32),
        in_specs=[_VMEM] * len(args),
        out_specs=_VMEM,
    )(*args)


# ----------------------------------------------------------------------------
# One-time parameter / constant preparation (hoisted out of the forward)
# ----------------------------------------------------------------------------
def _build_shift_matrices(B):
    """T[t] implements the spatial shift of conv tap t (with zero padding)."""
    T = np.zeros((9, B * 64, B * 64), np.float32)
    for t in range(9):
        dh, dw = t // 3 - 1, t % 3 - 1
        for b in range(B):
            for h in range(8):
                for w in range(8):
                    ih, iw = h + dh, w + dw
                    if 0 <= ih < 8 and 0 <= iw < 8:
                        T[t, b * 64 + h * 8 + w, b * 64 + ih * 8 + iw] = 1.0
    return T


def _build_pool_matrices(B, SP):
    """sel[k] gathers pooling-window position k into rows ordered (hw*SP + b)."""
    S = np.zeros((4, 16 * SP, B * 64), np.float32)
    for k in range(4):
        dh, dw = k // 2, k % 2
        for hw in range(16):
            ho, wo = hw // 4, hw % 4
            ih, iw = 2 * ho + dh, 2 * wo + dw
            for b in range(B):
                S[k, hw * SP + b, b * 64 + ih * 8 + iw] = 1.0
    return S


def prepare_fused_params(params, batch):
    SP = ((batch + 7) // 8) * 8   # pad per-position row group to sublane multiple

    def fold(w, b, gamma, beta, mean, var):
        # Fold conv bias + eval-mode BN into per-output-channel scale/shift.
        s = gamma / jnp.sqrt(var + EPS)
        cout, cin = w.shape[0], w.shape[1]
        wt = jnp.transpose(w, (2, 3, 1, 0)).reshape(9, cin, cout) * s  # [9,Cin,Cout]
        be = (b * s + beta - mean * s).reshape(1, cout)
        return wt.astype(jnp.float32), be.astype(jnp.float32)

    w1, b1 = fold(*params["block1"])      # [9, 1, 16], [1, 16]
    w2, b2 = fold(*params["block2"])      # [9, 16, 32], [1, 32]
    w3, b3 = fold(*params["block3"])      # [9, 32, 64], [1, 64]

    fc1_w, fc1_b, fc2_w, fc2_b = params["fc"]
    # Torch flatten order on NCHW is j = c*16 + (ho*4 + wo); pre-permute so the
    # kernel contracts the pooled (hw, c) layout directly: wf1[hw, c, n].
    wf1 = jnp.transpose(fc1_w.T.reshape(64, 16, 256), (1, 0, 2)).astype(jnp.float32)
    bf1 = fc1_b.reshape(1, 256).astype(jnp.float32)
    wf2 = fc2_w.reshape(1, 256).astype(jnp.float32)
    bf2 = fc2_b.reshape(1, 1).astype(jnp.float32)

    return {
        "T": jnp.asarray(_build_shift_matrices(batch)),
        "sel": jnp.asarray(_build_pool_matrices(batch, SP)),
        "w1": w1, "b1": b1, "w2": w2, "b2": b2, "w3": w3, "b3": b3,
        "wf1": wf1, "bf1": bf1, "wf2": wf2, "bf2": bf2,
    }


# ----------------------------------------------------------------------------
# Pure-JAX reference (for correctness check)
# ----------------------------------------------------------------------------
def _conv_bn_relu_ref(x_nchw, w, b, gamma, beta, mean, var):
    y = lax.conv_general_dilated(
        x_nchw, w, window_strides=(1, 1), padding=((1, 1), (1, 1)),
        dimension_numbers=("NCHW", "OIHW", "NCHW"),
    )
    y = y + b[None, :, None, None]
    s = gamma / jnp.sqrt(var + EPS)
    y = (y - mean[None, :, None, None]) * s[None, :, None, None] + beta[None, :, None, None]
    return jnp.maximum(y, 0.0)


def energy_predictor_ref(x_nchw, params):
    x = _conv_bn_relu_ref(x_nchw, *params["block1"])
    x = _conv_bn_relu_ref(x, *params["block2"])
    x = _conv_bn_relu_ref(x, *params["block3"])
    B, C, H, W = x.shape
    x = x.reshape(B, C, H // 2, 2, W // 2, 2).max(axis=(3, 5))  # maxpool 2x2
    flat = x.reshape(B, -1)
    fc1_w, fc1_b, fc2_w, fc2_b = params["fc"]
    h = jnp.maximum(flat @ fc1_w.T + fc1_b, 0.0)
    return h @ fc2_w.T + fc2_b


# ----------------------------------------------------------------------------
# Deterministic parameter construction
# ----------------------------------------------------------------------------
def make_params(key):
    keys = iter(jax.random.split(key, 32))

    def conv_block(cin, cout):
        w = jax.random.normal(next(keys), (cout, cin, 3, 3), jnp.float32) * 0.1
        b = jax.random.normal(next(keys), (cout,), jnp.float32) * 0.05
        gamma = 1.0 + 0.1 * jax.random.normal(next(keys), (cout,), jnp.float32)
        beta = 0.1 * jax.random.normal(next(keys), (cout,), jnp.float32)
        mean = 0.1 * jax.random.normal(next(keys), (cout,), jnp.float32)
        var = jax.random.uniform(next(keys), (cout,), jnp.float32, 0.5, 1.5)
        return (w, b, gamma, beta, mean, var)

    fc1_w = jax.random.normal(next(keys), (256, 64 * 4 * 4), jnp.float32) * 0.02
    fc1_b = jax.random.normal(next(keys), (256,), jnp.float32) * 0.02
    fc2_w = jax.random.normal(next(keys), (1, 256), jnp.float32) * 0.05
    fc2_b = jax.random.normal(next(keys), (1,), jnp.float32) * 0.05

    return {
        "block1": conv_block(1, 16),
        "block2": conv_block(16, 32),
        "block3": conv_block(32, 64),
        "fc": (fc1_w, fc1_b, fc2_w, fc2_b),
    }


# ----------------------------------------------------------------------------
if __name__ == "__main__":
    key = jax.random.PRNGKey(0)
    pkey, xkey = jax.random.split(key)
    params = make_params(pkey)

    # Input matching the PyTorch module: NCHW, 1 channel, 8x8 spatial.
    x = jax.random.normal(xkey, (2, 1, 8, 8), jnp.float32)

    fused = prepare_fused_params(params, batch=x.shape[0])   # one-time prep
    fwd = jax.jit(energy_predictor_pallas)

    out = jax.block_until_ready(fwd(x, fused))
    ref = jax.block_until_ready(energy_predictor_ref(x, params))

    np.testing.assert_allclose(np.asarray(out), np.asarray(ref), rtol=1e-3, atol=1e-3)
    assert out.shape == (2, 1)
    print("KERNEL_OK")
</pallas_src>

<mosaic_0001>
module attributes {stable_mosaic.version = 11 : i64} {
  func.func @_fused_kernel(%arg0: memref<128x1xf32, #tpu.memory_space<vmem>>, %arg1: memref<9x128x128xf32, #tpu.memory_space<vmem>>, %arg2: memref<9x1x16xf32, #tpu.memory_space<vmem>>, %arg3: memref<1x16xf32, #tpu.memory_space<vmem>>, %arg4: memref<9x16x32xf32, #tpu.memory_space<vmem>>, %arg5: memref<1x32xf32, #tpu.memory_space<vmem>>, %arg6: memref<9x32x64xf32, #tpu.memory_space<vmem>>, %arg7: memref<1x64xf32, #tpu.memory_space<vmem>>, %arg8: memref<4x128x128xf32, #tpu.memory_space<vmem>>, %arg9: memref<16x64x256xf32, #tpu.memory_space<vmem>>, %arg10: memref<1x256xf32, #tpu.memory_space<vmem>>, %arg11: memref<1x256xf32, #tpu.memory_space<vmem>>, %arg12: memref<1x1xf32, #tpu.memory_space<vmem>>, %arg13: memref<2x1xf32, #tpu.memory_space<vmem>>) attributes {dimension_semantics = [], scalar_prefetch = 0 : i64, scratch_operands = 0 : i64, tpu.core_type = #tpu.core_type<tc>} {
    %c0 = arith.constant 0 : index
    %c0_0 = arith.constant 0 : index
    %0 = vector.load %arg0[%c0, %c0_0] : memref<128x1xf32, #tpu.memory_space<vmem>>, vector<128x1xf32>
    %c0_1 = arith.constant 0 : index
    %c0_2 = arith.constant 0 : index
    %c0_3 = arith.constant 0 : index
    %1 = vector.load %arg1[%c0_1, %c0_2, %c0_3] : memref<9x128x128xf32, #tpu.memory_space<vmem>>, vector<1x128x128xf32>
    %2 = vector.shape_cast %1 : vector<1x128x128xf32> to vector<128x128xf32>
    %cst = arith.constant dense<0.000000e+00> : vector<128x1xf32>
    %3 = tpu.matmul %2, %0, %cst {dimension_numbers = #tpu.dot_dimension_numbers<[1], [0], [0], [1], [0, 0, 1, 1], [], []>} : vector<128x128xf32>, vector<128x1xf32>, vector<128x1xf32> -> vector<128x1xf32>
    %c0_4 = arith.constant 0 : index
    %c0_5 = arith.constant 0 : index
    %c0_6 = arith.constant 0 : index
    %4 = vector.load %arg2[%c0_4, %c0_5, %c0_6] : memref<9x1x16xf32, #tpu.memory_space<vmem>>, vector<1x1x16xf32>
    %5 = vector.shape_cast %4 : vector<1x1x16xf32> to vector<1x16xf32>
    %6 = vector.broadcast %3 : vector<128x1xf32> to vector<128x16xf32>
    %7 = vector.broadcast %5 : vector<1x16xf32> to vector<128x16xf32>
    %8 = arith.mulf %6, %7 : vector<128x16xf32>
    %c1 = arith.constant 1 : index
    %c0_7 = arith.constant 0 : index
    %c0_8 = arith.constant 0 : index
    %9 = vector.load %arg1[%c1, %c0_7, %c0_8] : memref<9x128x128xf32, #tpu.memory_space<vmem>>, vector<1x128x128xf32>
    %10 = vector.shape_cast %9 : vector<1x128x128xf32> to vector<128x128xf32>
    %cst_9 = arith.constant dense<0.000000e+00> : vector<128x1xf32>
    %11 = tpu.matmul %10, %0, %cst_9 {dimension_numbers = #tpu.dot_dimension_numbers<[1], [0], [0], [1], [0, 0, 1, 1], [], []>} : vector<128x128xf32>, vector<128x1xf32>, vector<128x1xf32> -> vector<128x1xf32>
    %c1_10 = arith.constant 1 : index
    %c0_11 = arith.constant 0 : index
    %c0_12 = arith.constant 0 : index
    %12 = vector.load %arg2[%c1_10, %c0_11, %c0_12] : memref<9x1x16xf32, #tpu.memory_space<vmem>>, vector<1x1x16xf32>
    %13 = vector.shape_cast %12 : vector<1x1x16xf32> to vector<1x16xf32>
    %14 = vector.broadcast %11 : vector<128x1xf32> to vector<128x16xf32>
    %15 = vector.broadcast %13 : vector<1x16xf32> to vector<128x16xf32>
    %16 = arith.mulf %14, %15 : vector<128x16xf32>
    %17 = arith.addf %8, %16 : vector<128x16xf32>
    %c2 = arith.constant 2 : index
    %c0_13 = arith.constant 0 : index
    %c0_14 = arith.constant 0 : index
    %18 = vector.load %arg1[%c2, %c0_13, %c0_14] : memref<9x128x128xf32, #tpu.memory_space<vmem>>, vector<1x128x128xf32>
    %19 = vector.shape_cast %18 : vector<1x128x128xf32> to vector<128x128xf32>
    %cst_15 = arith.constant dense<0.000000e+00> : vector<128x1xf32>
    %20 = tpu.matmul %19, %0, %cst_15 {dimension_numbers = #tpu.dot_dimension_numbers<[1], [0], [0], [1], [0, 0, 1, 1], [], []>} : vector<128x128xf32>, vector<128x1xf32>, vector<128x1xf32> -> vector<128x1xf32>
    %c2_16 = arith.constant 2 : index
    %c0_17 = arith.constant 0 : index
    %c0_18 = arith.constant 0 : index
    %21 = vector.load %arg2[%c2_16, %c0_17, %c0_18] : memref<9x1x16xf32, #tpu.memory_space<vmem>>, vector<1x1x16xf32>
    %22 = vector.shape_cast %21 : vector<1x1x16xf32> to vector<1x16xf32>
    %23 = vector.broadcast %20 : vector<128x1xf32> to vector<128x16xf32>
    %24 = vector.broadcast %22 : vector<1x16xf32> to vector<128x16xf32>
    %25 = arith.mulf %23, %24 : vector<128x16xf32>
    %26 = arith.addf %17, %25 : vector<128x16xf32>
    %c3 = arith.constant 3 : index
    %c0_19 = arith.constant 0 : index
    %c0_20 = arith.constant 0 : index
    %27 = vector.load %arg1[%c3, %c0_19, %c0_20] : memref<9x128x128xf32, #tpu.memory_space<vmem>>, vector<1x128x128xf32>
    %28 = vector.shape_cast %27 : vector<1x128x128xf32> to vector<128x128xf32>
    %cst_21 = arith.constant dense<0.000000e+00> : vector<128x1xf32>
    %29 = tpu.matmul %28, %0, %cst_21 {dimension_numbers = #tpu.dot_dimension_numbers<[1], [0], [0], [1], [0, 0, 1, 1], [], []>} : vector<128x128xf32>, vector<128x1xf32>, vector<128x1xf32> -> vector<128x1xf32>
    %c3_22 = arith.constant 3 : index
    %c0_23 = arith.constant 0 : index
    %c0_24 = arith.constant 0 : index
    %30 = vector.load %arg2[%c3_22, %c0_23, %c0_24] : memref<9x1x16xf32, #tpu.memory_space<vmem>>, vector<1x1x16xf32>
    %31 = vector.shape_cast %30 : vector<1x1x16xf32> to vector<1x16xf32>
    %32 = vector.broadcast %29 : vector<128x1xf32> to vector<128x16xf32>
    %33 = vector.broadcast %31 : vector<1x16xf32> to vector<128x16xf32>
    %34 = arith.mulf %32, %33 : vector<128x16xf32>
    %35 = arith.addf %26, %34 : vector<128x16xf32>
    %c4 = arith.constant 4 : index
    %c0_25 = arith.constant 0 : index
    %c0_26 = arith.constant 0 : index
    %36 = vector.load %arg1[%c4, %c0_25, %c0_26] : memref<9x128x128xf32, #tpu.memory_space<vmem>>, vector<1x128x128xf32>
    %37 = vector.shape_cast %36 : vector<1x128x128xf32> to vector<128x128xf32>
    %cst_27 = arith.constant dense<0.000000e+00> : vector<128x1xf32>
    %38 = tpu.matmul %37, %0, %cst_27 {dimension_numbers = #tpu.dot_dimension_numbers<[1], [0], [0], [1], [0, 0, 1, 1], [], []>} : vector<128x128xf32>, vector<128x1xf32>, vector<128x1xf32> -> vector<128x1xf32>
    %c4_28 = arith.constant 4 : index
    %c0_29 = arith.constant 0 : index
    %c0_30 = arith.constant 0 : index
    %39 = vector.load %arg2[%c4_28, %c0_29, %c0_30] : memref<9x1x16xf32, #tpu.memory_space<vmem>>, vector<1x1x16xf32>
    %40 = vector.shape_cast %39 : vector<1x1x16xf32> to vector<1x16xf32>
    %41 = vector.broadcast %38 : vector<128x1xf32> to vector<128x16xf32>
    %42 = vector.broadcast %40 : vector<1x16xf32> to vector<128x16xf32>
    %43 = arith.mulf %41, %42 : vector<128x16xf32>
    %44 = arith.addf %35, %43 : vector<128x16xf32>
    %c5 = arith.constant 5 : index
    %c0_31 = arith.constant 0 : index
    %c0_32 = arith.constant 0 : index
    %45 = vector.load %arg1[%c5, %c0_31, %c0_32] : memref<9x128x128xf32, #tpu.memory_space<vmem>>, vector<1x128x128xf32>
    %46 = vector.shape_cast %45 : vector<1x128x128xf32> to vector<128x128xf32>
    %cst_33 = arith.constant dense<0.000000e+00> : vector<128x1xf32>
    %47 = tpu.matmul %46, %0, %cst_33 {dimension_numbers = #tpu.dot_dimension_numbers<[1], [0], [0], [1], [0, 0, 1, 1], [], []>} : vector<128x128xf32>, vector<128x1xf32>, vector<128x1xf32> -> vector<128x1xf32>
    %c5_34 = arith.constant 5 : index
    %c0_35 = arith.constant 0 : index
    %c0_36 = arith.constant 0 : index
    %48 = vector.load %arg2[%c5_34, %c0_35, %c0_36] : memref<9x1x16xf32, #tpu.memory_space<vmem>>, vector<1x1x16xf32>
    %49 = vector.shape_cast %48 : vector<1x1x16xf32> to vector<1x16xf32>
    %50 = vector.broadcast %47 : vector<128x1xf32> to vector<128x16xf32>
    %51 = vector.broadcast %49 : vector<1x16xf32> to vector<128x16xf32>
    %52 = arith.mulf %50, %51 : vector<128x16xf32>
    %53 = arith.addf %44, %52 : vector<128x16xf32>
    %c6 = arith.constant 6 : index
    %c0_37 = arith.constant 0 : index
    %c0_38 = arith.constant 0 : index
    %54 = vector.load %arg1[%c6, %c0_37, %c0_38] : memref<9x128x128xf32, #tpu.memory_space<vmem>>, vector<1x128x128xf32>
    %55 = vector.shape_cast %54 : vector<1x128x128xf32> to vector<128x128xf32>
    %cst_39 = arith.constant dense<0.000000e+00> : vector<128x1xf32>
    %56 = tpu.matmul %55, %0, %cst_39 {dimension_numbers = #tpu.dot_dimension_numbers<[1], [0], [0], [1], [0, 0, 1, 1], [], []>} : vector<128x128xf32>, vector<128x1xf32>, vector<128x1xf32> -> vector<128x1xf32>
    %c6_40 = arith.constant 6 : index
    %c0_41 = arith.constant 0 : index
    %c0_42 = arith.constant 0 : index
    %57 = vector.load %arg2[%c6_40, %c0_41, %c0_42] : memref<9x1x16xf32, #tpu.memory_space<vmem>>, vector<1x1x16xf32>
    %58 = vector.shape_cast %57 : vector<1x1x16xf32> to vector<1x16xf32>
    %59 = vector.broadcast %56 : vector<128x1xf32> to vector<128x16xf32>
    %60 = vector.broadcast %58 : vector<1x16xf32> to vector<128x16xf32>
    %61 = arith.mulf %59, %60 : vector<128x16xf32>
    %62 = arith.addf %53, %61 : vector<128x16xf32>
    %c7 = arith.constant 7 : index
    %c0_43 = arith.constant 0 : index
    %c0_44 = arith.constant 0 : index
    %63 = vector.load %arg1[%c7, %c0_43, %c0_44] : memref<9x128x128xf32, #tpu.memory_space<vmem>>, vector<1x128x128xf32>
    %64 = vector.shape_cast %63 : vector<1x128x128xf32> to vector<128x128xf32>
    %cst_45 = arith.constant dense<0.000000e+00> : vector<128x1xf32>
    %65 = tpu.matmul %64, %0, %cst_45 {dimension_numbers = #tpu.dot_dimension_numbers<[1], [0], [0], [1], [0, 0, 1, 1], [], []>} : vector<128x128xf32>, vector<128x1xf32>, vector<128x1xf32> -> vector<128x1xf32>
    %c7_46 = arith.constant 7 : index
    %c0_47 = arith.constant 0 : index
    %c0_48 = arith.constant 0 : index
    %66 = vector.load %arg2[%c7_46, %c0_47, %c0_48] : memref<9x1x16xf32, #tpu.memory_space<vmem>>, vector<1x1x16xf32>
    %67 = vector.shape_cast %66 : vector<1x1x16xf32> to vector<1x16xf32>
    %68 = vector.broadcast %65 : vector<128x1xf32> to vector<128x16xf32>
    %69 = vector.broadcast %67 : vector<1x16xf32> to vector<128x16xf32>
    %70 = arith.mulf %68, %69 : vector<128x16xf32>
    %71 = arith.addf %62, %70 : vector<128x16xf32>
    %c8 = arith.constant 8 : index
    %c0_49 = arith.constant 0 : index
    %c0_50 = arith.constant 0 : index
    %72 = vector.load %arg1[%c8, %c0_49, %c0_50] : memref<9x128x128xf32, #tpu.memory_space<vmem>>, vector<1x128x128xf32>
    %73 = vector.shape_cast %72 : vector<1x128x128xf32> to vector<128x128xf32>
    %cst_51 = arith.constant dense<0.000000e+00> : vector<128x1xf32>
    %74 = tpu.matmul %73, %0, %cst_51 {dimension_numbers = #tpu.dot_dimension_numbers<[1], [0], [0], [1], [0, 0, 1, 1], [], []>} : vector<128x128xf32>, vector<128x1xf32>, vector<128x1xf32> -> vector<128x1xf32>
    %c8_52 = arith.constant 8 : index
    %c0_53 = arith.constant 0 : index
    %c0_54 = arith.constant 0 : index
    %75 = vector.load %arg2[%c8_52, %c0_53, %c0_54] : memref<9x1x16xf32, #tpu.memory_space<vmem>>, vector<1x1x16xf32>
    %76 = vector.shape_cast %75 : vector<1x1x16xf32> to vector<1x16xf32>
    %77 = vector.broadcast %74 : vector<128x1xf32> to vector<128x16xf32>
    %78 = vector.broadcast %76 : vector<1x16xf32> to vector<128x16xf32>
    %79 = arith.mulf %77, %78 : vector<128x16xf32>
    %80 = arith.addf %71, %79 : vector<128x16xf32>
    %c0_55 = arith.constant 0 : index
    %c0_56 = arith.constant 0 : index
    %81 = vector.load %arg3[%c0_55, %c0_56] : memref<1x16xf32, #tpu.memory_space<vmem>>, vector<1x16xf32>
    %82 = vector.broadcast %81 : vector<1x16xf32> to vector<128x16xf32>
    %83 = arith.addf %80, %82 : vector<128x16xf32>
    %cst_57 = arith.constant 0.000000e+00 : f32
    %84 = vector.broadcast %cst_57 : f32 to vector<128x16xf32>
    %85 = arith.maximumf %83, %84 : vector<128x16xf32>
    %c0_58 = arith.constant 0 : index
    %c0_59 = arith.constant 0 : index
    %c0_60 = arith.constant 0 : index
    %86 = vector.load %arg1[%c0_58, %c0_59, %c0_60] : memref<9x128x128xf32, #tpu.memory_space<vmem>>, vector<1x128x128xf32>
    %87 = vector.shape_cast %86 : vector<1x128x128xf32> to vector<128x128xf32>
    %cst_61 = arith.constant dense<0.000000e+00> : vector<128x16xf32>
    %88 = tpu.matmul %87, %85, %cst_61 {dimension_numbers = #tpu.dot_dimension_numbers<[1], [0], [0], [1], [0, 0, 1, 1], [], []>} : vector<128x128xf32>, vector<128x16xf32>, vector<128x16xf32> -> vector<128x16xf32>
    %c0_62 = arith.constant 0 : index
    %c0_63 = arith.constant 0 : index
    %c0_64 = arith.constant 0 : index
    %89 = vector.load %arg4[%c0_62, %c0_63, %c0_64] : memref<9x16x32xf32, #tpu.memory_space<vmem>>, vector<1x16x32xf32>
    %90 = vector.shape_cast %89 : vector<1x16x32xf32> to vector<16x32xf32>
    %cst_65 = arith.constant dense<0.000000e+00> : vector<128x32xf32>
    %91 = tpu.matmul %88, %90, %cst_65 {dimension_numbers = #tpu.dot_dimension_numbers<[1], [0], [0], [1], [0, 0, 1, 1], [], []>} : vector<128x16xf32>, vector<16x32xf32>, vector<128x32xf32> -> vector<128x32xf32>
    %c1_66 = arith.constant 1 : index
    %c0_67 = arith.constant 0 : index
    %c0_68 = arith.constant 0 : index
    %92 = vector.load %arg1[%c1_66, %c0_67, %c0_68] : memref<9x128x128xf32, #tpu.memory_space<vmem>>, vector<1x128x128xf32>
    %93 = vector.shape_cast %92 : vector<1x128x128xf32> to vector<128x128xf32>
    %cst_69 = arith.constant dense<0.000000e+00> : vector<128x16xf32>
    %94 = tpu.matmul %93, %85, %cst_69 {dimension_numbers = #tpu.dot_dimension_numbers<[1], [0], [0], [1], [0, 0, 1, 1], [], []>} : vector<128x128xf32>, vector<128x16xf32>, vector<128x16xf32> -> vector<128x16xf32>
    %c1_70 = arith.constant 1 : index
    %c0_71 = arith.constant 0 : index
    %c0_72 = arith.constant 0 : index
    %95 = vector.load %arg4[%c1_70, %c0_71, %c0_72] : memref<9x16x32xf32, #tpu.memory_space<vmem>>, vector<1x16x32xf32>
    %96 = vector.shape_cast %95 : vector<1x16x32xf32> to vector<16x32xf32>
    %cst_73 = arith.constant dense<0.000000e+00> : vector<128x32xf32>
    %97 = tpu.matmul %94, %96, %cst_73 {dimension_numbers = #tpu.dot_dimension_numbers<[1], [0], [0], [1], [0, 0, 1, 1], [], []>} : vector<128x16xf32>, vector<16x32xf32>, vector<128x32xf32> -> vector<128x32xf32>
    %98 = arith.addf %91, %97 : vector<128x32xf32>
    %c2_74 = arith.constant 2 : index
    %c0_75 = arith.constant 0 : index
    %c0_76 = arith.constant 0 : index
    %99 = vector.load %arg1[%c2_74, %c0_75, %c0_76] : memref<9x128x128xf32, #tpu.memory_space<vmem>>, vector<1x128x128xf32>
    %100 = vector.shape_cast %99 : vector<1x128x128xf32> to vector<128x128xf32>
    %cst_77 = arith.constant dense<0.000000e+00> : vector<128x16xf32>
    %101 = tpu.matmul %100, %85, %cst_77 {dimension_numbers = #tpu.dot_dimension_numbers<[1], [0], [0], [1], [0, 0, 1, 1], [], []>} : vector<128x128xf32>, vector<128x16xf32>, vector<128x16xf32> -> vector<128x16xf32>
    %c2_78 = arith.constant 2 : index
    %c0_79 = arith.constant 0 : index
    %c0_80 = arith.constant 0 : index
    %102 = vector.load %arg4[%c2_78, %c0_79, %c0_80] : memref<9x16x32xf32, #tpu.memory_space<vmem>>, vector<1x16x32xf32>
    %103 = vector.shape_cast %102 : vector<1x16x32xf32> to vector<16x32xf32>
    %cst_81 = arith.constant dense<0.000000e+00> : vector<128x32xf32>
    %104 = tpu.matmul %101, %103, %cst_81 {dimension_numbers = #tpu.dot_dimension_numbers<[1], [0], [0], [1], [0, 0, 1, 1], [], []>} : vector<128x16xf32>, vector<16x32xf32>, vector<128x32xf32> -> vector<128x32xf32>
    %105 = arith.addf %98, %104 : vector<128x32xf32>
    %c3_82 = arith.constant 3 : index
    %c0_83 = arith.constant 0 : index
    %c0_84 = arith.constant 0 : index
    %106 = vector.load %arg1[%c3_82, %c0_83, %c0_84] : memref<9x128x128xf32, #tpu.memory_space<vmem>>, vector<1x128x128xf32>
    %107 = vector.shape_cast %106 : vector<1x128x128xf32> to vector<128x128xf32>
    %cst_85 = arith.constant dense<0.000000e+00> : vector<128x16xf32>
    %108 = tpu.matmul %107, %85, %cst_85 {dimension_numbers = #tpu.dot_dimension_numbers<[1], [0], [0], [1], [0, 0, 1, 1], [], []>} : vector<128x128xf32>, vector<128x16xf32>, vector<128x16xf32> -> vector<128x16xf32>
    %c3_86 = arith.constant 3 : index
    %c0_87 = arith.constant 0 : index
    %c0_88 = arith.constant 0 : index
    %109 = vector.load %arg4[%c3_86, %c0_87, %c0_88] : memref<9x16x32xf32, #tpu.memory_space<vmem>>, vector<1x16x32xf32>
    %110 = vector.shape_cast %109 : vector<1x16x32xf32> to vector<16x32xf32>
    %cst_89 = arith.constant dense<0.000000e+00> : vector<128x32xf32>
    %111 = tpu.matmul %108, %110, %cst_89 {dimension_numbers = #tpu.dot_dimension_numbers<[1], [0], [0], [1], [0, 0, 1, 1], [], []>} : vector<128x16xf32>, vector<16x32xf32>, vector<128x32xf32> -> vector<128x32xf32>
    %112 = arith.addf %105, %111 : vector<128x32xf32>
    %c4_90 = arith.constant 4 : index
    %c0_91 = arith.constant 0 : index
    %c0_92 = arith.constant 0 : index
    %113 = vector.load %arg1[%c4_90, %c0_91, %c0_92] : memref<9x128x128xf32, #tpu.memory_space<vmem>>, vector<1x128x128xf32>
    %114 = vector.shape_cast %113 : vector<1x128x128xf32> to vector<128x128xf32>
    %cst_93 = arith.constant dense<0.000000e+00> : vector<128x16xf32>
    %115 = tpu.matmul %114, %85, %cst_93 {dimension_numbers = #tpu.dot_dimension_numbers<[1], [0], [0], [1], [0, 0, 1, 1], [], []>} : vector<128x128xf32>, vector<128x16xf32>, vector<128x16xf32> -> vector<128x16xf32>
    %c4_94 = arith.constant 4 : index
    %c0_95 = arith.constant 0 : index
    %c0_96 = arith.constant 0 : index
    %116 = vector.load %arg4[%c4_94, %c0_95, %c0_96] : memref<9x16x32xf32, #tpu.memory_space<vmem>>, vector<1x16x32xf32>
    %117 = vector.shape_cast %116 : vector<1x16x32xf32> to vector<16x32xf32>
    %cst_97 = arith.constant dense<0.000000e+00> : vector<128x32xf32>
    %118 = tpu.matmul %115, %117, %cst_97 {dimension_numbers = #tpu.dot_dimension_numbers<[1], [0], [0], [1], [0, 0, 1, 1], [], []>} : vector<128x16xf32>, vector<16x32xf32>, vector<128x32xf32> -> vector<128x32xf32>
    %119 = arith.addf %112, %118 : vector<128x32xf32>
    %c5_98 = arith.constant 5 : index
    %c0_99 = arith.constant 0 : index
    %c0_100 = arith.constant 0 : index
    %120 = vector.load %arg1[%c5_98, %c0_99, %c0_100] : memref<9x128x128xf32, #tpu.memory_space<vmem>>, vector<1x128x128xf32>
    %121 = vector.shape_cast %120 : vector<1x128x128xf32> to vector<128x128xf32>
    %cst_101 = arith.constant dense<0.000000e+00> : vector<128x16xf32>
    %122 = tpu.matmul %121, %85, %cst_101 {dimension_numbers = #tpu.dot_dimension_numbers<[1], [0], [0], [1], [0, 0, 1, 1], [], []>} : vector<128x128xf32>, vector<128x16xf32>, vector<128x16xf32> -> vector<128x16xf32>
    %c5_102 = arith.constant 5 : index
    %c0_103 = arith.constant 0 : index
    %c0_104 = arith.constant 0 : index
    %123 = vector.load %arg4[%c5_102, %c0_103, %c0_104] : memref<9x16x32xf32, #tpu.memory_space<vmem>>, vector<1x16x32xf32>
    %124 = vector.shape_cast %123 : vector<1x16x32xf32> to vector<16x32xf32>
    %cst_105 = arith.constant dense<0.000000e+00> : vector<128x32xf32>
    %125 = tpu.matmul %122, %124, %cst_105 {dimension_numbers = #tpu.dot_dimension_numbers<[1], [0], [0], [1], [0, 0, 1, 1], [], []>} : vector<128x16xf32>, vector<16x32xf32>, vector<128x32xf32> -> vector<128x32xf32>
    %126 = arith.addf %119, %125 : vector<128x32xf32>
    %c6_106 = arith.constant 6 : index
    %c0_107 = arith.constant 0 : index
    %c0_108 = arith.constant 0 : index
    %127 = vector.load %arg1[%c6_106, %c0_107, %c0_108] : memref<9x128x128xf32, #tpu.memory_space<vmem>>, vector<1x128x128xf32>
    %128 = vector.shape_cast %127 : vector<1x128x128xf32> to vector<128x128xf32>
    %cst_109 = arith.constant dense<0.000000e+00> : vector<128x16xf32>
    %129 = tpu.matmul %128, %85, %cst_109 {dimension_numbers = #tpu.dot_dimension_numbers<[1], [0], [0], [1], [0, 0, 1, 1], [], []>} : vector<128x128xf32>, vector<128x16xf32>, vector<128x16xf32> -> vector<128x16xf32>
    %c6_110 = arith.constant 6 : index
    %c0_111 = arith.constant 0 : index
    %c0_112 = arith.constant 0 : index
    %130 = vector.load %arg4[%c6_110, %c0_111, %c0_112] : memref<9x16x32xf32, #tpu.memory_space<vmem>>, vector<1x16x32xf32>
    %131 = vector.shape_cast %130 : vector<1x16x32xf32> to vector<16x32xf32>
    %cst_113 = arith.constant dense<0.000000e+00> : vector<128x32xf32>
    %132 = tpu.matmul %129, %131, %cst_113 {dimension_numbers = #tpu.dot_dimension_numbers<[1], [0], [0], [1], [0, 0, 1, 1], [], []>} : vector<128x16xf32>, vector<16x32xf32>, vector<128x32xf32> -> vector<128x32xf32>
    %133 = arith.addf %126, %132 : vector<128x32xf32>
    %c7_114 = arith.constant 7 : index
    %c0_115 = arith.constant 0 : index
    %c0_116 = arith.constant 0 : index
    %134 = vector.load %arg1[%c7_114, %c0_115, %c0_116] : memref<9x128x128xf32, #tpu.memory_space<vmem>>, vector<1x128x128xf32>
    %135 = vector.shape_cast %134 : vector<1x128x128xf32> to vector<128x128xf32>
    %cst_117 = arith.constant dense<0.000000e+00> : vector<128x16xf32>
    %136 = tpu.matmul %135, %85, %cst_117 {dimension_numbers = #tpu.dot_dimension_numbers<[1], [0], [0], [1], [0, 0, 1, 1], [], []>} : vector<128x128xf32>, vector<128x16xf32>, vector<128x16xf32> -> vector<128x16xf32>
    %c7_118 = arith.constant 7 : index
    %c0_119 = arith.constant 0 : index
    %c0_120 = arith.constant 0 : index
    %137 = vector.load %arg4[%c7_118, %c0_119, %c0_120] : memref<9x16x32xf32, #tpu.memory_space<vmem>>, vector<1x16x32xf32>
    %138 = vector.shape_cast %137 : vector<1x16x32xf32> to vector<16x32xf32>
    %cst_121 = arith.constant dense<0.000000e+00> : vector<128x32xf32>
    %139 = tpu.matmul %136, %138, %cst_121 {dimension_numbers = #tpu.dot_dimension_numbers<[1], [0], [0], [1], [0, 0, 1, 1], [], []>} : vector<128x16xf32>, vector<16x32xf32>, vector<128x32xf32> -> vector<128x32xf32>
    %140 = arith.addf %133, %139 : vector<128x32xf32>
    %c8_122 = arith.constant 8 : index
    %c0_123 = arith.constant 0 : index
    %c0_124 = arith.constant 0 : index
    %141 = vector.load %arg1[%c8_122, %c0_123, %c0_124] : memref<9x128x128xf32, #tpu.memory_space<vmem>>, vector<1x128x128xf32>
    %142 = vector.shape_cast %141 : vector<1x128x128xf32> to vector<128x128xf32>
    %cst_125 = arith.constant dense<0.000000e+00> : vector<128x16xf32>
    %143 = tpu.matmul %142, %85, %cst_125 {dimension_numbers = #tpu.dot_dimension_numbers<[1], [0], [0], [1], [0, 0, 1, 1], [], []>} : vector<128x128xf32>, vector<128x16xf32>, vector<128x16xf32> -> vector<128x16xf32>
    %c8_126 = arith.constant 8 : index
    %c0_127 = arith.constant 0 : index
    %c0_128 = arith.constant 0 : index
    %144 = vector.load %arg4[%c8_126, %c0_127, %c0_128] : memref<9x16x32xf32, #tpu.memory_space<vmem>>, vector<1x16x32xf32>
    %145 = vector.shape_cast %144 : vector<1x16x32xf32> to vector<16x32xf32>
    %cst_129 = arith.constant dense<0.000000e+00> : vector<128x32xf32>
    %146 = tpu.matmul %143, %145, %cst_129 {dimension_numbers = #tpu.dot_dimension_numbers<[1], [0], [0], [1], [0, 0, 1, 1], [], []>} : vector<128x16xf32>, vector<16x32xf32>, vector<128x32xf32> -> vector<128x32xf32>
    %147 = arith.addf %140, %146 : vector<128x32xf32>
    %c0_130 = arith.constant 0 : index
    %c0_131 = arith.constant 0 : index
    %148 = vector.load %arg5[%c0_130, %c0_131] : memref<1x32xf32, #tpu.memory_space<vmem>>, vector<1x32xf32>
    %149 = vector.broadcast %148 : vector<1x32xf32> to vector<128x32xf32>
    %150 = arith.addf %147, %149 : vector<128x32xf32>
    %cst_132 = arith.constant 0.000000e+00 : f32
    %151 = vector.broadcast %cst_132 : f32 to vector<128x32xf32>
    %152 = arith.maximumf %150, %151 : vector<128x32xf32>
    %c0_133 = arith.constant 0 : index
    %c0_134 = arith.constant 0 : index
    %c0_135 = arith.constant 0 : index
    %153 = vector.load %arg1[%c0_133, %c0_134, %c0_135] : memref<9x128x128xf32, #tpu.memory_space<vmem>>, vector<1x128x128xf32>
    %154 = vector.shape_cast %153 : vector<1x128x128xf32> to vector<128x128xf32>
    %cst_136 = arith.constant dense<0.000000e+00> : vector<128x32xf32>
    %155 = tpu.matmul %154, %152, %cst_136 {dimension_numbers = #tpu.dot_dimension_numbers<[1], [0], [0], [1], [0, 0, 1, 1], [], []>} : vector<128x128xf32>, vector<128x32xf32>, vector<128x32xf32> -> vector<128x32xf32>
    %c0_137 = arith.constant 0 : index
    %c0_138 = arith.constant 0 : index
    %c0_139 = arith.constant 0 : index
    %156 = vector.load %arg6[%c0_137, %c0_138, %c0_139] : memref<9x32x64xf32, #tpu.memory_space<vmem>>, vector<1x32x64xf32>
    %157 = vector.shape_cast %156 : vector<1x32x64xf32> to vector<32x64xf32>
    %cst_140 = arith.constant dense<0.000000e+00> : vector<128x64xf32>
    %158 = tpu.matmul %155, %157, %cst_140 {dimension_numbers = #tpu.dot_dimension_numbers<[1], [0], [0], [1], [0, 0, 1, 1], [], []>} : vector<128x32xf32>, vector<32x64xf32>, vector<128x64xf32> -> vector<128x64xf32>
    %c1_141 = arith.constant 1 : index
    %c0_142 = arith.constant 0 : index
    %c0_143 = arith.constant 0 : index
    %159 = vector.load %arg1[%c1_141, %c0_142, %c0_143] : memref<9x128x128xf32, #tpu.memory_space<vmem>>, vector<1x128x128xf32>
    %160 = vector.shape_cast %159 : vector<1x128x128xf32> to vector<128x128xf32>
    %cst_144 = arith.constant dense<0.000000e+00> : vector<128x32xf32>
    %161 = tpu.matmul %160, %152, %cst_144 {dimension_numbers = #tpu.dot_dimension_numbers<[1], [0], [0], [1], [0, 0, 1, 1], [], []>} : vector<128x128xf32>, vector<128x32xf32>, vector<128x32xf32> -> vector<128x32xf32>
    %c1_145 = arith.constant 1 : index
    %c0_146 = arith.constant 0 : index
    %c0_147 = arith.constant 0 : index
    %162 = vector.load %arg6[%c1_145, %c0_146, %c0_147] : memref<9x32x64xf32, #tpu.memory_space<vmem>>, vector<1x32x64xf32>
    %163 = vector.shape_cast %162 : vector<1x32x64xf32> to vector<32x64xf32>
    %cst_148 = arith.constant dense<0.000000e+00> : vector<128x64xf32>
    %164 = tpu.matmul %161, %163, %cst_148 {dimension_numbers = #tpu.dot_dimension_numbers<[1], [0], [0], [1], [0, 0, 1, 1], [], []>} : vector<128x32xf32>, vector<32x64xf32>, vector<128x64xf32> -> vector<128x64xf32>
    %165 = arith.addf %158, %164 : vector<128x64xf32>
    %c2_149 = arith.constant 2 : index
    %c0_150 = arith.constant 0 : index
    %c0_151 = arith.constant 0 : index
    %166 = vector.load %arg1[%c2_149, %c0_150, %c0_151] : memref<9x128x128xf32, #tpu.memory_space<vmem>>, vector<1x128x128xf32>
    %167 = vector.shape_cast %166 : vector<1x128x128xf32> to vector<128x128xf32>
    %cst_152 = arith.constant dense<0.000000e+00> : vector<128x32xf32>
    %168 = tpu.matmul %167, %152, %cst_152 {dimension_numbers = #tpu.dot_dimension_numbers<[1], [0], [0], [1], [0, 0, 1, 1], [], []>} : vector<128x128xf32>, vector<128x32xf32>, vector<128x32xf32> -> vector<128x32xf32>
    %c2_153 = arith.constant 2 : index
    %c0_154 = arith.constant 0 : index
    %c0_155 = arith.constant 0 : index
    %169 = vector.load %arg6[%c2_153, %c0_154, %c0_155] : memref<9x32x64xf32, #tpu.memory_space<vmem>>, vector<1x32x64xf32>
    %170 = vector.shape_cast %169 : vector<1x32x64xf32> to vector<32x64xf32>
    %cst_156 = arith.constant dense<0.000000e+00> : vector<128x64xf32>
    %171 = tpu.matmul %168, %170, %cst_156 {dimension_numbers = #tpu.dot_dimension_numbers<[1], [0], [0], [1], [0, 0, 1, 1], [], []>} : vector<128x32xf32>, vector<32x64xf32>, vector<128x64xf32> -> vector<128x64xf32>
    %172 = arith.addf %165, %171 : vector<128x64xf32>
    %c3_157 = arith.constant 3 : index
    %c0_158 = arith.constant 0 : index
    %c0_159 = arith.constant 0 : index
    %173 = vector.load %arg1[%c3_157, %c0_158, %c0_159] : memref<9x128x128xf32, #tpu.memory_space<vmem>>, vector<1x128x128xf32>
    %174 = vector.shape_cast %173 : vector<1x128x128xf32> to vector<128x128xf32>
    %cst_160 = arith.constant dense<0.000000e+00> : vector<128x32xf32>
    %175 = tpu.matmul %174, %152, %cst_160 {dimension_numbers = #tpu.dot_dimension_numbers<[1], [0], [0], [1], [0, 0, 1, 1], [], []>} : vector<128x128xf32>, vector<128x32xf32>, vector<128x32xf32> -> vector<128x32xf32>
    %c3_161 = arith.constant 3 : index
    %c0_162 = arith.constant 0 : index
    %c0_163 = arith.constant 0 : index
    %176 = vector.load %arg6[%c3_161, %c0_162, %c0_163] : memref<9x32x64xf32, #tpu.memory_space<vmem>>, vector<1x32x64xf32>
    %177 = vector.shape_cast %176 : vector<1x32x64xf32> to vector<32x64xf32>
    %cst_164 = arith.constant dense<0.000000e+00> : vector<128x64xf32>
    %178 = tpu.matmul %175, %177, %cst_164 {dimension_numbers = #tpu.dot_dimension_numbers<[1], [0], [0], [1], [0, 0, 1, 1], [], []>} : vector<128x32xf32>, vector<32x64xf32>, vector<128x64xf32> -> vector<128x64xf32>
    %179 = arith.addf %172, %178 : vector<128x64xf32>
    %c4_165 = arith.constant 4 : index
    %c0_166 = arith.constant 0 : index
    %c0_167 = arith.constant 0 : index
    %180 = vector.load %arg1[%c4_165, %c0_166, %c0_167] : memref<9x128x128xf32, #tpu.memory_space<vmem>>, vector<1x128x128xf32>
    %181 = vector.shape_cast %180 : vector<1x128x128xf32> to vector<128x128xf32>
    %cst_168 = arith.constant dense<0.000000e+00> : vector<128x32xf32>
    %182 = tpu.matmul %181, %152, %cst_168 {dimension_numbers = #tpu.dot_dimension_numbers<[1], [0], [0], [1], [0, 0, 1, 1], [], []>} : vector<128x128xf32>, vector<128x32xf32>, vector<128x32xf32> -> vector<128x32xf32>
    %c4_169 = arith.constant 4 : index
    %c0_170 = arith.constant 0 : index
    %c0_171 = arith.constant 0 : index
    %183 = vector.load %arg6[%c4_169, %c0_170, %c0_171] : memref<9x32x64xf32, #tpu.memory_space<vmem>>, vector<1x32x64xf32>
    %184 = vector.shape_cast %183 : vector<1x32x64xf32> to vector<32x64xf32>
    %cst_172 = arith.constant dense<0.000000e+00> : vector<128x64xf32>
    %185 = tpu.matmul %182, %184, %cst_172 {dimension_numbers = #tpu.dot_dimension_numbers<[1], [0], [0], [1], [0, 0, 1, 1], [], []>} : vector<128x32xf32>, vector<32x64xf32>, vector<128x64xf32> -> vector<128x64xf32>
    %186 = arith.addf %179, %185 : vector<128x64xf32>
    %c5_173 = arith.constant 5 : index
    %c0_174 = arith.constant 0 : index
    %c0_175 = arith.constant 0 : index
    %187 = vector.load %arg1[%c5_173, %c0_174, %c0_175] : memref<9x128x128xf32, #tpu.memory_space<vmem>>, vector<1x128x128xf32>
    %188 = vector.shape_cast %187 : vector<1x128x128xf32> to vector<128x128xf32>
    %cst_176 = arith.constant dense<0.000000e+00> : vector<128x32xf32>
    %189 = tpu.matmul %188, %152, %cst_176 {dimension_numbers = #tpu.dot_dimension_numbers<[1], [0], [0], [1], [0, 0, 1, 1], [], []>} : vector<128x128xf32>, vector<128x32xf32>, vector<128x32xf32> -> vector<128x32xf32>
    %c5_177 = arith.constant 5 : index
    %c0_178 = arith.constant 0 : index
    %c0_179 = arith.constant 0 : index
    %190 = vector.load %arg6[%c5_177, %c0_178, %c0_179] : memref<9x32x64xf32, #tpu.memory_space<vmem>>, vector<1x32x64xf32>
    %191 = vector.shape_cast %190 : vector<1x32x64xf32> to vector<32x64xf32>
    %cst_180 = arith.constant dense<0.000000e+00> : vector<128x64xf32>
    %192 = tpu.matmul %189, %191, %cst_180 {dimension_numbers = #tpu.dot_dimension_numbers<[1], [0], [0], [1], [0, 0, 1, 1], [], []>} : vector<128x32xf32>, vector<32x64xf32>, vector<128x64xf32> -> vector<128x64xf32>
    %193 = arith.addf %186, %192 : vector<128x64xf32>
    %c6_181 = arith.constant 6 : index
    %c0_182 = arith.constant 0 : index
    %c0_183 = arith.constant 0 : index
    %194 = vector.load %arg1[%c6_181, %c0_182, %c0_183] : memref<9x128x128xf32, #tpu.memory_space<vmem>>, vector<1x128x128xf32>
    %195 = vector.shape_cast %194 : vector<1x128x128xf32> to vector<128x128xf32>
    %cst_184 = arith.constant dense<0.000000e+00> : vector<128x32xf32>
    %196 = tpu.matmul %195, %152, %cst_184 {dimension_numbers = #tpu.dot_dimension_numbers<[1], [0], [0], [1], [0, 0, 1, 1], [], []>} : vector<128x128xf32>, vector<128x32xf32>, vector<128x32xf32> -> vector<128x32xf32>
    %c6_185 = arith.constant 6 : index
    %c0_186 = arith.constant 0 : index
    %c0_187 = arith.constant 0 : index
    %197 = vector.load %arg6[%c6_185, %c0_186, %c0_187] : memref<9x32x64xf32, #tpu.memory_space<vmem>>, vector<1x32x64xf32>
    %198 = vector.shape_cast %197 : vector<1x32x64xf32> to vector<32x64xf32>
    %cst_188 = arith.constant dense<0.000000e+00> : vector<128x64xf32>
    %199 = tpu.matmul %196, %198, %cst_188 {dimension_numbers = #tpu.dot_dimension_numbers<[1], [0], [0], [1], [0, 0, 1, 1], [], []>} : vector<128x32xf32>, vector<32x64xf32>, vector<128x64xf32> -> vector<128x64xf32>
    %200 = arith.addf %193, %199 : vector<128x64xf32>
    %c7_189 = arith.constant 7 : index
    %c0_190 = arith.constant 0 : index
    %c0_191 = arith.constant 0 : index
    %201 = vector.load %arg1[%c7_189, %c0_190, %c0_191] : memref<9x128x128xf32, #tpu.memory_space<vmem>>, vector<1x128x128xf32>
    %202 = vector.shape_cast %201 : vector<1x128x128xf32> to vector<128x128xf32>
    %cst_192 = arith.constant dense<0.000000e+00> : vector<128x32xf32>
    %203 = tpu.matmul %202, %152, %cst_192 {dimension_numbers = #tpu.dot_dimension_numbers<[1], [0], [0], [1], [0, 0, 1, 1], [], []>} : vector<128x128xf32>, vector<128x32xf32>, vector<128x32xf32> -> vector<128x32xf32>
    %c7_193 = arith.constant 7 : index
    %c0_194 = arith.constant 0 : index
    %c0_195 = arith.constant 0 : index
    %204 = vector.load %arg6[%c7_193, %c0_194, %c0_195] : memref<9x32x64xf32, #tpu.memory_space<vmem>>, vector<1x32x64xf32>
    %205 = vector.shape_cast %204 : vector<1x32x64xf32> to vector<32x64xf32>
    %cst_196 = arith.constant dense<0.000000e+00> : vector<128x64xf32>
    %206 = tpu.matmul %203, %205, %cst_196 {dimension_numbers = #tpu.dot_dimension_numbers<[1], [0], [0], [1], [0, 0, 1, 1], [], []>} : vector<128x32xf32>, vector<32x64xf32>, vector<128x64xf32> -> vector<128x64xf32>
    %207 = arith.addf %200, %206 : vector<128x64xf32>
    %c8_197 = arith.constant 8 : index
    %c0_198 = arith.constant 0 : index
    %c0_199 = arith.constant 0 : index
    %208 = vector.load %arg1[%c8_197, %c0_198, %c0_199] : memref<9x128x128xf32, #tpu.memory_space<vmem>>, vector<1x128x128xf32>
    %209 = vector.shape_cast %208 : vector<1x128x128xf32> to vector<128x128xf32>
    %cst_200 = arith.constant dense<0.000000e+00> : vector<128x32xf32>
    %210 = tpu.matmul %209, %152, %cst_200 {dimension_numbers = #tpu.dot_dimension_numbers<[1], [0], [0], [1], [0, 0, 1, 1], [], []>} : vector<128x128xf32>, vector<128x32xf32>, vector<128x32xf32> -> vector<128x32xf32>
    %c8_201 = arith.constant 8 : index
    %c0_202 = arith.constant 0 : index
    %c0_203 = arith.constant 0 : index
    %211 = vector.load %arg6[%c8_201, %c0_202, %c0_203] : memref<9x32x64xf32, #tpu.memory_space<vmem>>, vector<1x32x64xf32>
    %212 = vector.shape_cast %211 : vector<1x32x64xf32> to vector<32x64xf32>
    %cst_204 = arith.constant dense<0.000000e+00> : vector<128x64xf32>
    %213 = tpu.matmul %210, %212, %cst_204 {dimension_numbers = #tpu.dot_dimension_numbers<[1], [0], [0], [1], [0, 0, 1, 1], [], []>} : vector<128x32xf32>, vector<32x64xf32>, vector<128x64xf32> -> vector<128x64xf32>
    %214 = arith.addf %207, %213 : vector<128x64xf32>
    %c0_205 = arith.constant 0 : index
    %c0_206 = arith.constant 0 : index
    %215 = vector.load %arg7[%c0_205, %c0_206] : memref<1x64xf32, #tpu.memory_space<vmem>>, vector<1x64xf32>
    %216 = vector.broadcast %215 : vector<1x64xf32> to vector<128x64xf32>
    %217 = arith.addf %214, %216 : vector<128x64xf32>
    %cst_207 = arith.constant 0.000000e+00 : f32
    %218 = vector.broadcast %cst_207 : f32 to vector<128x64xf32>
    %219 = arith.maximumf %217, %218 : vector<128x64xf32>
    %c0_208 = arith.constant 0 : index
    %c0_209 = arith.constant 0 : index
    %c0_210 = arith.constant 0 : index
    %220 = vector.load %arg8[%c0_208, %c0_209, %c0_210] : memref<4x128x128xf32, #tpu.memory_space<vmem>>, vector<1x128x128xf32>
    %221 = vector.shape_cast %220 : vector<1x128x128xf32> to vector<128x128xf32>
    %cst_211 = arith.constant dense<0.000000e+00> : vector<128x64xf32>
    %222 = tpu.matmul %221, %219, %cst_211 {dimension_numbers = #tpu.dot_dimension_numbers<[1], [0], [0], [1], [0, 0, 1, 1], [], []>} : vector<128x128xf32>, vector<128x64xf32>, vector<128x64xf32> -> vector<128x64xf32>
    %c1_212 = arith.constant 1 : index
    %c0_213 = arith.constant 0 : index
    %c0_214 = arith.constant 0 : index
    %223 = vector.load %arg8[%c1_212, %c0_213, %c0_214] : memref<4x128x128xf32, #tpu.memory_space<vmem>>, vector<1x128x128xf32>
    %224 = vector.shape_cast %223 : vector<1x128x128xf32> to vector<128x128xf32>
    %cst_215 = arith.constant dense<0.000000e+00> : vector<128x64xf32>
    %225 = tpu.matmul %224, %219, %cst_215 {dimension_numbers = #tpu.dot_dimension_numbers<[1], [0], [0], [1], [0, 0, 1, 1], [], []>} : vector<128x128xf32>, vector<128x64xf32>, vector<128x64xf32> -> vector<128x64xf32>
    %226 = arith.maximumf %222, %225 : vector<128x64xf32>
    %c2_216 = arith.constant 2 : index
    %c0_217 = arith.constant 0 : index
    %c0_218 = arith.constant 0 : index
    %227 = vector.load %arg8[%c2_216, %c0_217, %c0_218] : memref<4x128x128xf32, #tpu.memory_space<vmem>>, vector<1x128x128xf32>
    %228 = vector.shape_cast %227 : vector<1x128x128xf32> to vector<128x128xf32>
    %cst_219 = arith.constant dense<0.000000e+00> : vector<128x64xf32>
    %229 = tpu.matmul %228, %219, %cst_219 {dimension_numbers = #tpu.dot_dimension_numbers<[1], [0], [0], [1], [0, 0, 1, 1], [], []>} : vector<128x128xf32>, vector<128x64xf32>, vector<128x64xf32> -> vector<128x64xf32>
    %230 = arith.maximumf %226, %229 : vector<128x64xf32>
    %c3_220 = arith.constant 3 : index
    %c0_221 = arith.constant 0 : index
    %c0_222 = arith.constant 0 : index
    %231 = vector.load %arg8[%c3_220, %c0_221, %c0_222] : memref<4x128x128xf32, #tpu.memory_space<vmem>>, vector<1x128x128xf32>
    %232 = vector.shape_cast %231 : vector<1x128x128xf32> to vector<128x128xf32>
    %cst_223 = arith.constant dense<0.000000e+00> : vector<128x64xf32>
    %233 = tpu.matmul %232, %219, %cst_223 {dimension_numbers = #tpu.dot_dimension_numbers<[1], [0], [0], [1], [0, 0, 1, 1], [], []>} : vector<128x128xf32>, vector<128x64xf32>, vector<128x64xf32> -> vector<128x64xf32>
    %234 = arith.maximumf %230, %233 : vector<128x64xf32>
    %235 = vector.extract_strided_slice %234 {offsets = [0, 0], sizes = [8, 64], strides = [1, 1]} : vector<128x64xf32> to vector<8x64xf32>
    %c0_224 = arith.constant 0 : index
    %c0_225 = arith.constant 0 : index
    %c0_226 = arith.constant 0 : index
    %236 = vector.load %arg9[%c0_224, %c0_225, %c0_226] : memref<16x64x256xf32, #tpu.memory_space<vmem>>, vector<1x64x256xf32>
    %237 = vector.shape_cast %236 : vector<1x64x256xf32> to vector<64x256xf32>
    %cst_227 = arith.constant dense<0.000000e+00> : vector<8x256xf32>
    %238 = tpu.matmul %235, %237, %cst_227 {dimension_numbers = #tpu.dot_dimension_numbers<[1], [0], [0], [1], [0, 0, 1, 1], [], []>} : vector<8x64xf32>, vector<64x256xf32>, vector<8x256xf32> -> vector<8x256xf32>
    %239 = vector.extract_strided_slice %234 {offsets = [8, 0], sizes = [8, 64], strides = [1, 1]} : vector<128x64xf32> to vector<8x64xf32>
    %c1_228 = arith.constant 1 : index
    %c0_229 = arith.constant 0 : index
    %c0_230 = arith.constant 0 : index
    %240 = vector.load %arg9[%c1_228, %c0_229, %c0_230] : memref<16x64x256xf32, #tpu.memory_space<vmem>>, vector<1x64x256xf32>
    %241 = vector.shape_cast %240 : vector<1x64x256xf32> to vector<64x256xf32>
    %cst_231 = arith.constant dense<0.000000e+00> : vector<8x256xf32>
    %242 = tpu.matmul %239, %241, %cst_231 {dimension_numbers = #tpu.dot_dimension_numbers<[1], [0], [0], [1], [0, 0, 1, 1], [], []>} : vector<8x64xf32>, vector<64x256xf32>, vector<8x256xf32> -> vector<8x256xf32>
    %243 = arith.addf %238, %242 : vector<8x256xf32>
    %244 = vector.extract_strided_slice %234 {offsets = [16, 0], sizes = [8, 64], strides = [1, 1]} : vector<128x64xf32> to vector<8x64xf32>
    %c2_232 = arith.constant 2 : index
    %c0_233 = arith.constant 0 : index
    %c0_234 = arith.constant 0 : index
    %245 = vector.load %arg9[%c2_232, %c0_233, %c0_234] : memref<16x64x256xf32, #tpu.memory_space<vmem>>, vector<1x64x256xf32>
    %246 = vector.shape_cast %245 : vector<1x64x256xf32> to vector<64x256xf32>
    %cst_235 = arith.constant dense<0.000000e+00> : vector<8x256xf32>
    %247 = tpu.matmul %244, %246, %cst_235 {dimension_numbers = #tpu.dot_dimension_numbers<[1], [0], [0], [1], [0, 0, 1, 1], [], []>} : vector<8x64xf32>, vector<64x256xf32>, vector<8x256xf32> -> vector<8x256xf32>
    %248 = arith.addf %243, %247 : vector<8x256xf32>
    %249 = vector.extract_strided_slice %234 {offsets = [24, 0], sizes = [8, 64], strides = [1, 1]} : vector<128x64xf32> to vector<8x64xf32>
    %c3_236 = arith.constant 3 : index
    %c0_237 = arith.constant 0 : index
    %c0_238 = arith.constant 0 : index
    %250 = vector.load %arg9[%c3_236, %c0_237, %c0_238] : memref<16x64x256xf32, #tpu.memory_space<vmem>>, vector<1x64x256xf32>
    %251 = vector.shape_cast %250 : vector<1x64x256xf32> to vector<64x256xf32>
    %cst_239 = arith.constant dense<0.000000e+00> : vector<8x256xf32>
    %252 = tpu.matmul %249, %251, %cst_239 {dimension_numbers = #tpu.dot_dimension_numbers<[1], [0], [0], [1], [0, 0, 1, 1], [], []>} : vector<8x64xf32>, vector<64x256xf32>, vector<8x256xf32> -> vector<8x256xf32>
    %253 = arith.addf %248, %252 : vector<8x256xf32>
    %254 = vector.extract_strided_slice %234 {offsets = [32, 0], sizes = [8, 64], strides = [1, 1]} : vector<128x64xf32> to vector<8x64xf32>
    %c4_240 = arith.constant 4 : index
    %c0_241 = arith.constant 0 : index
    %c0_242 = arith.constant 0 : index
    %255 = vector.load %arg9[%c4_240, %c0_241, %c0_242] : memref<16x64x256xf32, #tpu.memory_space<vmem>>, vector<1x64x256xf32>
    %256 = vector.shape_cast %255 : vector<1x64x256xf32> to vector<64x256xf32>
    %cst_243 = arith.constant dense<0.000000e+00> : vector<8x256xf32>
    %257 = tpu.matmul %254, %256, %cst_243 {dimension_numbers = #tpu.dot_dimension_numbers<[1], [0], [0], [1], [0, 0, 1, 1], [], []>} : vector<8x64xf32>, vector<64x256xf32>, vector<8x256xf32> -> vector<8x256xf32>
    %258 = arith.addf %253, %257 : vector<8x256xf32>
    %259 = vector.extract_strided_slice %234 {offsets = [40, 0], sizes = [8, 64], strides = [1, 1]} : vector<128x64xf32> to vector<8x64xf32>
    %c5_244 = arith.constant 5 : index
    %c0_245 = arith.constant 0 : index
    %c0_246 = arith.constant 0 : index
    %260 = vector.load %arg9[%c5_244, %c0_245, %c0_246] : memref<16x64x256xf32, #tpu.memory_space<vmem>>, vector<1x64x256xf32>
    %261 = vector.shape_cast %260 : vector<1x64x256xf32> to vector<64x256xf32>
    %cst_247 = arith.constant dense<0.000000e+00> : vector<8x256xf32>
    %262 = tpu.matmul %259, %261, %cst_247 {dimension_numbers = #tpu.dot_dimension_numbers<[1], [0], [0], [1], [0, 0, 1, 1], [], []>} : vector<8x64xf32>, vector<64x256xf32>, vector<8x256xf32> -> vector<8x256xf32>
    %263 = arith.addf %258, %262 : vector<8x256xf32>
    %264 = vector.extract_strided_slice %234 {offsets = [48, 0], sizes = [8, 64], strides = [1, 1]} : vector<128x64xf32> to vector<8x64xf32>
    %c6_248 = arith.constant 6 : index
    %c0_249 = arith.constant 0 : index
    %c0_250 = arith.constant 0 : index
    %265 = vector.load %arg9[%c6_248, %c0_249, %c0_250] : memref<16x64x256xf32, #tpu.memory_space<vmem>>, vector<1x64x256xf32>
    %266 = vector.shape_cast %265 : vector<1x64x256xf32> to vector<64x256xf32>
    %cst_251 = arith.constant dense<0.000000e+00> : vector<8x256xf32>
    %267 = tpu.matmul %264, %266, %cst_251 {dimension_numbers = #tpu.dot_dimension_numbers<[1], [0], [0], [1], [0, 0, 1, 1], [], []>} : vector<8x64xf32>, vector<64x256xf32>, vector<8x256xf32> -> vector<8x256xf32>
    %268 = arith.addf %263, %267 : vector<8x256xf32>
    %269 = vector.extract_strided_slice %234 {offsets = [56, 0], sizes = [8, 64], strides = [1, 1]} : vector<128x64xf32> to vector<8x64xf32>
    %c7_252 = arith.constant 7 : index
    %c0_253 = arith.constant 0 : index
    %c0_254 = arith.constant 0 : index
    %270 = vector.load %arg9[%c7_252, %c0_253, %c0_254] : memref<16x64x256xf32, #tpu.memory_space<vmem>>, vector<1x64x256xf32>
    %271 = vector.shape_cast %270 : vector<1x64x256xf32> to vector<64x256xf32>
    %cst_255 = arith.constant dense<0.000000e+00> : vector<8x256xf32>
    %272 = tpu.matmul %269, %271, %cst_255 {dimension_numbers = #tpu.dot_dimension_numbers<[1], [0], [0], [1], [0, 0, 1, 1], [], []>} : vector<8x64xf32>, vector<64x256xf32>, vector<8x256xf32> -> vector<8x256xf32>
    %273 = arith.addf %268, %272 : vector<8x256xf32>
    %274 = vector.extract_strided_slice %234 {offsets = [64, 0], sizes = [8, 64], strides = [1, 1]} : vector<128x64xf32> to vector<8x64xf32>
    %c8_256 = arith.constant 8 : index
    %c0_257 = arith.constant 0 : index
    %c0_258 = arith.constant 0 : index
    %275 = vector.load %arg9[%c8_256, %c0_257, %c0_258] : memref<16x64x256xf32, #tpu.memory_space<vmem>>, vector<1x64x256xf32>
    %276 = vector.shape_cast %275 : vector<1x64x256xf32> to vector<64x256xf32>
    %cst_259 = arith.constant dense<0.000000e+00> : vector<8x256xf32>
    %277 = tpu.matmul %274, %276, %cst_259 {dimension_numbers = #tpu.dot_dimension_numbers<[1], [0], [0], [1], [0, 0, 1, 1], [], []>} : vector<8x64xf32>, vector<64x256xf32>, vector<8x256xf32> -> vector<8x256xf32>
    %278 = arith.addf %273, %277 : vector<8x256xf32>
    %279 = vector.extract_strided_slice %234 {offsets = [72, 0], sizes = [8, 64], strides = [1, 1]} : vector<128x64xf32> to vector<8x64xf32>
    %c9 = arith.constant 9 : index
    %c0_260 = arith.constant 0 : index
    %c0_261 = arith.constant 0 : index
    %280 = vector.load %arg9[%c9, %c0_260, %c0_261] : memref<16x64x256xf32, #tpu.memory_space<vmem>>, vector<1x64x256xf32>
    %281 = vector.shape_cast %280 : vector<1x64x256xf32> to vector<64x256xf32>
    %cst_262 = arith.constant dense<0.000000e+00> : vector<8x256xf32>
    %282 = tpu.matmul %279, %281, %cst_262 {dimension_numbers = #tpu.dot_dimension_numbers<[1], [0], [0], [1], [0, 0, 1, 1], [], []>} : vector<8x64xf32>, vector<64x256xf32>, vector<8x256xf32> -> vector<8x256xf32>
    %283 = arith.addf %278, %282 : vector<8x256xf32>
    %284 = vector.extract_strided_slice %234 {offsets = [80, 0], sizes = [8, 64], strides = [1, 1]} : vector<128x64xf32> to vector<8x64xf32>
    %c10 = arith.constant 10 : index
    %c0_263 = arith.constant 0 : index
    %c0_264 = arith.constant 0 : index
    %285 = vector.load %arg9[%c10, %c0_263, %c0_264] : memref<16x64x256xf32, #tpu.memory_space<vmem>>, vector<1x64x256xf32>
    %286 = vector.shape_cast %285 : vector<1x64x256xf32> to vector<64x256xf32>
    %cst_265 = arith.constant dense<0.000000e+00> : vector<8x256xf32>
    %287 = tpu.matmul %284, %286, %cst_265 {dimension_numbers = #tpu.dot_dimension_numbers<[1], [0], [0], [1], [0, 0, 1, 1], [], []>} : vector<8x64xf32>, vector<64x256xf32>, vector<8x256xf32> -> vector<8x256xf32>
    %288 = arith.addf %283, %287 : vector<8x256xf32>
    %289 = vector.extract_strided_slice %234 {offsets = [88, 0], sizes = [8, 64], strides = [1, 1]} : vector<128x64xf32> to vector<8x64xf32>
    %c11 = arith.constant 11 : index
    %c0_266 = arith.constant 0 : index
    %c0_267 = arith.constant 0 : index
    %290 = vector.load %arg9[%c11, %c0_266, %c0_267] : memref<16x64x256xf32, #tpu.memory_space<vmem>>, vector<1x64x256xf32>
    %291 = vector.shape_cast %290 : vector<1x64x256xf32> to vector<64x256xf32>
    %cst_268 = arith.constant dense<0.000000e+00> : vector<8x256xf32>
    %292 = tpu.matmul %289, %291, %cst_268 {dimension_numbers = #tpu.dot_dimension_numbers<[1], [0], [0], [1], [0, 0, 1, 1], [], []>} : vector<8x64xf32>, vector<64x256xf32>, vector<8x256xf32> -> vector<8x256xf32>
    %293 = arith.addf %288, %292 : vector<8x256xf32>
    %294 = vector.extract_strided_slice %234 {offsets = [96, 0], sizes = [8, 64], strides = [1, 1]} : vector<128x64xf32> to vector<8x64xf32>
    %c12 = arith.constant 12 : index
    %c0_269 = arith.constant 0 : index
    %c0_270 = arith.constant 0 : index
    %295 = vector.load %arg9[%c12, %c0_269, %c0_270] : memref<16x64x256xf32, #tpu.memory_space<vmem>>, vector<1x64x256xf32>
    %296 = vector.shape_cast %295 : vector<1x64x256xf32> to vector<64x256xf32>
    %cst_271 = arith.constant dense<0.000000e+00> : vector<8x256xf32>
    %297 = tpu.matmul %294, %296, %cst_271 {dimension_numbers = #tpu.dot_dimension_numbers<[1], [0], [0], [1], [0, 0, 1, 1], [], []>} : vector<8x64xf32>, vector<64x256xf32>, vector<8x256xf32> -> vector<8x256xf32>
    %298 = arith.addf %293, %297 : vector<8x256xf32>
    %299 = vector.extract_strided_slice %234 {offsets = [104, 0], sizes = [8, 64], strides = [1, 1]} : vector<128x64xf32> to vector<8x64xf32>
    %c13 = arith.constant 13 : index
    %c0_272 = arith.constant 0 : index
    %c0_273 = arith.constant 0 : index
    %300 = vector.load %arg9[%c13, %c0_272, %c0_273] : memref<16x64x256xf32, #tpu.memory_space<vmem>>, vector<1x64x256xf32>
    %301 = vector.shape_cast %300 : vector<1x64x256xf32> to vector<64x256xf32>
    %cst_274 = arith.constant dense<0.000000e+00> : vector<8x256xf32>
    %302 = tpu.matmul %299, %301, %cst_274 {dimension_numbers = #tpu.dot_dimension_numbers<[1], [0], [0], [1], [0, 0, 1, 1], [], []>} : vector<8x64xf32>, vector<64x256xf32>, vector<8x256xf32> -> vector<8x256xf32>
    %303 = arith.addf %298, %302 : vector<8x256xf32>
    %304 = vector.extract_strided_slice %234 {offsets = [112, 0], sizes = [8, 64], strides = [1, 1]} : vector<128x64xf32> to vector<8x64xf32>
    %c14 = arith.constant 14 : index
    %c0_275 = arith.constant 0 : index
    %c0_276 = arith.constant 0 : index
    %305 = vector.load %arg9[%c14, %c0_275, %c0_276] : memref<16x64x256xf32, #tpu.memory_space<vmem>>, vector<1x64x256xf32>
    %306 = vector.shape_cast %305 : vector<1x64x256xf32> to vector<64x256xf32>
    %cst_277 = arith.constant dense<0.000000e+00> : vector<8x256xf32>
    %307 = tpu.matmul %304, %306, %cst_277 {dimension_numbers = #tpu.dot_dimension_numbers<[1], [0], [0], [1], [0, 0, 1, 1], [], []>} : vector<8x64xf32>, vector<64x256xf32>, vector<8x256xf32> -> vector<8x256xf32>
    %308 = arith.addf %303, %307 : vector<8x256xf32>
    %309 = vector.extract_strided_slice %234 {offsets = [120, 0], sizes = [8, 64], strides = [1, 1]} : vector<128x64xf32> to vector<8x64xf32>
    %c15 = arith.constant 15 : index
    %c0_278 = arith.constant 0 : index
    %c0_279 = arith.constant 0 : index
    %310 = vector.load %arg9[%c15, %c0_278, %c0_279] : memref<16x64x256xf32, #tpu.memory_space<vmem>>, vector<1x64x256xf32>
    %311 = vector.shape_cast %310 : vector<1x64x256xf32> to vector<64x256xf32>
    %cst_280 = arith.constant dense<0.000000e+00> : vector<8x256xf32>
    %312 = tpu.matmul %309, %311, %cst_280 {dimension_numbers = #tpu.dot_dimension_numbers<[1], [0], [0], [1], [0, 0, 1, 1], [], []>} : vector<8x64xf32>, vector<64x256xf32>, vector<8x256xf32> -> vector<8x256xf32>
    %313 = arith.addf %308, %312 : vector<8x256xf32>
    %c0_281 = arith.constant 0 : index
    %c0_282 = arith.constant 0 : index
    %314 = vector.load %arg10[%c0_281, %c0_282] : memref<1x256xf32, #tpu.memory_space<vmem>>, vector<1x256xf32>
    %315 = vector.broadcast %314 : vector<1x256xf32> to vector<8x256xf32>
    %316 = arith.addf %313, %315 : vector<8x256xf32>
    %cst_283 = arith.constant 0.000000e+00 : f32
    %317 = vector.broadcast %cst_283 : f32 to vector<8x256xf32>
    %318 = arith.maximumf %316, %317 : vector<8x256xf32>
    %c0_284 = arith.constant 0 : index
    %c0_285 = arith.constant 0 : index
    %319 = vector.load %arg11[%c0_284, %c0_285] : memref<1x256xf32, #tpu.memory_space<vmem>>, vector<1x256xf32>
    %320 = vector.broadcast %319 : vector<1x256xf32> to vector<8x256xf32>
    %321 = arith.mulf %318, %320 : vector<8x256xf32>
    %cst_286 = arith.constant dense<0.000000e+00> : vector<8xf32>
    %322 = vector.multi_reduction <add>, %321, %cst_286 [1] : vector<8x256xf32> to vector<8xf32>
    %323 = vector.shape_cast %322 : vector<8xf32> to vector<8x1xf32>
    %c0_287 = arith.constant 0 : index
    %c0_288 = arith.constant 0 : index
    %324 = vector.load %arg12[%c0_287, %c0_288] : memref<1x1xf32, #tpu.memory_space<vmem>>, vector<1x1xf32>
    %325 = vector.broadcast %324 : vector<1x1xf32> to vector<8x1xf32>
    %326 = arith.addf %323, %325 : vector<8x1xf32>
    %327 = vector.extract_strided_slice %326 {offsets = [0, 0], sizes = [2, 1], strides = [1, 1]} : vector<8x1xf32> to vector<2x1xf32>
    %c0_289 = arith.constant 0 : index
    %c0_290 = arith.constant 0 : index
    %328 = vector.load %arg13[%c0_289, %c0_290] : memref<2x1xf32, #tpu.memory_space<vmem>>, vector<2x1xf32>
    tpu.vector_store %arg13[%c0_289, %c0_290], %327 {strides = array<i32>} : memref<2x1xf32, #tpu.memory_space<vmem>>, vector<2x1xf32>,
    return
  }
}

</mosaic_0001>

<bundles_post_ra>
// kernel: energy_predictor_pallas.1
= control target key start
LH: loop header
LB: loop body
LE: loop exit
PB: predicated region body
PF: predicated region fallthrough
CT: control target
= control target key end

     0   :  { %s18518_s0 = inlined_call_operand.vmem [shape: f32[128,1], index: 0, kind: input, shape index: {}]   ;;  %s18519_s1 = inlined_call_operand.hbm [shape: f32[9,128,128], index: 1, kind: input, shape index: {}]   ;;  %s18520_s2 = inlined_call_operand.vmem [shape: f32[9,1,16], index: 2, kind: input, shape index: {}]   ;;  %s18521_s3 = inlined_call_operand.vmem [shape: f32[1,16], index: 3, kind: input, shape index: {}]   ;;  %s18522_s4 = inlined_call_operand.vmem [shape: f32[9,16,32], index: 4, kind: input, shape index: {}]   ;;  %s18523_s5 = inlined_call_operand.vmem [shape: f32[1,32], index: 5, kind: input, shape index: {}]   ;;  %s18524_s6 = inlined_call_operand.hbm [shape: f32[9,32,64], index: 6, kind: input, shape index: {}]   ;;  %s18525_s7 = inlined_call_operand.vmem [shape: f32[1,64], index: 7, kind: input, shape index: {}]   ;;  %s18526_s8 = inlined_call_operand.hbm [shape: f32[4,128,128], index: 8, kind: input, shape index: {}]   ;;  %s18527_s9 = inlined_call_operand.hbm [shape: f32[16,64,256], index: 9, kind: input, shape index: {}]   ;;  %s18528_s10 = inlined_call_operand.vmem [shape: f32[1,256], index: 10, kind: input, shape index: {}]   ;;  %s18529_s11 = inlined_call_operand.vmem [shape: f32[1,256], index: 11, kind: input, shape index: {}]   ;;  %s18530_s12 = inlined_call_operand.<no memory space> [shape: f32[1,1], index: 12, kind: input, shape index: {}]   ;;  %s18531_s13 = inlined_call_operand.vmem [shape: f32[2,1], index: 13, kind: output, shape index: {}]  }
   0x1   :  { %v18_v0 = vstv %s18530_s12 }
   0x2   :  { %19 = vst [vmem:[#allocation2] sm:$0x1] %v18_v0 }
   0x3   :  { %20 = vsyncpa [#allocation4], 0 }
   0x4   :  { %21 = vsyncpa [#allocation6], 0 }
   0x5   :  { %22 = vsyncpa [#allocation9], 0  ;;  %s15699_s27 = smov [#allocation5]   ;;  %s15700_s29 = smov [#allocation3]  }
   0x6   :  { %s50_s28 = sshll.u32 %s15699_s27, 4  ;;  %s30_s30 = sshll.u32 %s15700_s29, 4  ;;  %s51_s28 = int_to_ptr.vmem [resolvable:$true] %s50_s28  ;;  %s31_s30 = int_to_ptr.vmem [resolvable:$true] %s30_s30 }
   0x7   :  { %s15621_s14 = scalar_lea.vmem %s51_s28, 4608  ;;  %p15626_p1 = scmp.lt.s32.totalorder %s51_s28, %s51_s28 }
   0x8   :  { %p15622_p0 = scmp.ne.s32.totalorder %s51_s28, %s15621_s14  ;;  %p15627_p2 = scmp.lt.s32.totalorder %s15621_s14, %s15621_s14 }
   0xa   :  { %p15628_p3 = por %p15627_p2, %p15626_p1 }
   0xc   :  { %p15629_p4 = pnand %p15628_p3, %p15622_p0 }
   0xe   :  { %15632 = shalt.err (!%p15629_p4)
}
   0xf   :  { %s15701_s15 = smov 128   ;;  %s15702_s16 = smov 8  }
  0x10   :  { %56 = dma.hbm_to_vmem [thread:$0]  %s18524_s6, 4608, %s51_s28, [#allocation6], %s15701_s15, %s15701_s15, %s15702_s16  }
  0x11   :  { %s15641_s18 = scalar_lea.vmem %s31_s30, 18432  ;;  %p15646_p6 = scmp.lt.s32.totalorder %s31_s30, %s31_s30 }
  0x12   :  { %p15642_p5 = scmp.ne.s32.totalorder %s31_s30, %s15641_s18  ;;  %p15647_p7 = scmp.lt.s32.totalorder %s15641_s18, %s15641_s18 }
  0x14   :  { %p15648_p8 = por %p15647_p7, %p15646_p6 }
  0x16   :  { %p15649_p9 = pnand %p15648_p8, %p15642_p5 }
  0x18   :  { %15652 = shalt.err (!%p15649_p9)
}
  0x19   :  { %36 = dma.hbm_to_vmem [thread:$0]  %s18519_s1, 18432, %s31_s30, [#allocation4], %s15701_s15, %s15701_s15, %s15702_s16  }
  0x1a   :  { %s15703_s21 = smov [#allocation7]   ;;  %s15704_s23 = smov [#allocation8]  }
  0x1b   :  { %s64_s22 = sshll.u32 %s15703_s21, 4  ;;  %s76_s24 = sshll.u32 %s15704_s23, 4  ;;  %s65_s22 = int_to_ptr.vmem [resolvable:$true] %s64_s22  ;;  %s77_s24 = int_to_ptr.vmem [resolvable:$true] %s76_s24 }
  0x1c   :  { %s15661_s25 = scalar_lea.vmem %s65_s22, 8192  ;;  %p15666_p11 = scmp.lt.s32.totalorder %s65_s22, %s65_s22 }
  0x1d   :  { %p15662_p10 = scmp.ne.s32.totalorder %s65_s22, %s15661_s25  ;;  %p15667_p12 = scmp.lt.s32.totalorder %s15661_s25, %s15661_s25 }
  0x1f   :  { %p15668_p13 = por %p15667_p12, %p15666_p11 }
  0x21   :  { %p15669_p0 = pnand %p15668_p13, %p15662_p10 }
  0x23   :  { %15672 = shalt.err (!%p15669_p0)
}
  0x24   :  { %70 = dma.hbm_to_vmem [thread:$0]  %s18526_s8, 8192, %s65_s22, [#allocation6], %s15701_s15, %s15701_s15, %s15702_s16  }
  0x25   :  { %s15681_s27 = scalar_lea.vmem %s77_s24, 32768  ;;  %p15686_p2 = scmp.lt.s32.totalorder %s77_s24, %s77_s24 }
  0x26   :  { %p15682_p1 = scmp.ne.s32.totalorder %s77_s24, %s15681_s27  ;;  %p15687_p3 = scmp.lt.s32.totalorder %s15681_s27, %s15681_s27 }
  0x28   :  { %p15688_p4 = por %p15687_p3, %p15686_p2 }
  0x2a   :  { %p15689_p5 = pnand %p15688_p4, %p15682_p1 }
  0x2c   :  { %15692 = shalt.err (!%p15689_p5)
}
  0x2d   :  { %s15705_s1 = smov 256   ;;  %s15706_s28 = smov 16  }
  0x2e   :  { %82 = dma.hbm_to_vmem [thread:$0]  %s18527_s9, 32768, %s77_s24, [#allocation9], %s15705_s1, %s15705_s1, %s15706_s28  }
  0x2f   :  { %15693 = dma.done.wait [#allocation4], 18432  }
  0x30   :  { %15694 = vsyncadd [#allocation4], 4294948864 }
  0x31   :  { %15695 = dma.done.wait [#allocation6], 12800  }
  0x32   :  { %15696 = vsyncadd [#allocation6], 4294954496 }
  0x33   :  { %15697 = dma.done.wait [#allocation9], 32768  }
  0x34   :  { %15698 = vsyncadd [#allocation9], 4294934528  ;;  %v15797_v1 = vld [vmem:[%s18518_s0 + $0x78] sm:$0xff]  ;;  %v15802_v2 = vld [vmem:[%s18518_s0 + $0x70] sm:$0xff]  ;;  %vm2971_vm0 = vcmask 130048   ;;  %vm6195_vm1 = vcmask 261120  }
  0x35   :  { %13038 = vmatprep.subr.mxu0 %v15797_v1  ;;  %13094 = vmatprep.subr.mxu1 %v15797_v1  ;;  %v15811_v3 = vld [vmem:[%s18518_s0 + $0x68] sm:$0xff]  ;;  %v15820_v4 = vld [vmem:[%s18518_s0 + $0x60] sm:$0xff]  ;;  %v15829_v5 = vld [vmem:[%s18518_s0 + $0x58] sm:$0xff]  ;;  %vm9862_vm2 = vcmask 523264   ;;  %vm11354_vm3 = vcmask 1024  }
  0x36   :  { %13039 = vmatpush3.msra.mxu0 %v15797_v1  ;;  %13095 = vmatpush3.msra.mxu1 %v15797_v1  ;;  %v15838_v6 = vld [vmem:[%s18518_s0 + $0x50] sm:$0xff]  ;;  %v15847_v7 = vld [vmem:[%s18518_s0 + $0x48] sm:$0xff]  ;;  %v15856_v8 = vld [vmem:[%s18518_s0 + $0x40] sm:$0xff] }
  0x37   :  { %13040 = vmatprep.subr.mxu0 %v15802_v2  ;;  %13096 = vmatprep.subr.mxu1 %v15802_v2  ;;  %v15865_v9 = vld [vmem:[%s18518_s0 + $0x38] sm:$0xff]  ;;  %v15874_v10 = vld [vmem:[%s18518_s0 + $0x30] sm:$0xff]  ;;  %v15883_v11 = vld [vmem:[%s18518_s0 + $0x28] sm:$0xff] }
  0x38   :  { %13041 = vmatpush3.msra.mxu0 %v15802_v2  ;;  %13097 = vmatpush3.msra.mxu1 %v15802_v2  ;;  %v15892_v12 = vld [vmem:[%s18518_s0 + $0x20] sm:$0xff]  ;;  %v15901_v13 = vld [vmem:[%s18518_s0 + $0x18] sm:$0xff]  ;;  %v15910_v14 = vld [vmem:[%s18518_s0 + $0x10] sm:$0xff] }
  0x39   :  { %13042 = vmatprep.subr.mxu0 %v15811_v3  ;;  %13098 = vmatprep.subr.mxu1 %v15811_v3  ;;  %v15919_v15 = vld [vmem:[%s18518_s0 + $0x8] sm:$0xff]  ;;  %v15928_v16 = vld [vmem:[%s18518_s0] sm:$0xff]  ;;  %v119_v21 = vld [vmem:[#allocation3 + $0x10] sm:$0xff] }
  0x3a   :  { %13043 = vmatpush3.msra.mxu0 %v15811_v3  ;;  %13099 = vmatpush3.msra.mxu1 %v15811_v3  ;;  %v15932_v17 = vld [vmem:[#allocation3] sm:$0xff]  ;;  %v118_v19 = vld [vmem:[#allocation3 + $0x8] sm:$0xff]  ;;  %v384_v22 = vld [vmem:[#allocation3 + $0x90] sm:$0xff] }
  0x3b   :  { %13044 = vmatprep.subr.mxu0 %v15820_v4  ;;  %13100 = vmatprep.subr.mxu1 %v15820_v4  ;;  %v382_v18 = vld [vmem:[#allocation3 + $0x80] sm:$0xff]  ;;  %v383_v20 = vld [vmem:[#allocation3 + $0x88] sm:$0xff]  ;;  %v120_v23 = vld [vmem:[#allocation3 + $0x18] sm:$0xff] }
  0x3c   :  { %13045 = vmatpush3.msra.mxu0 %v15820_v4  ;;  %13101 = vmatpush3.msra.mxu1 %v15820_v4  ;;  %v385_v24 = vld [vmem:[#allocation3 + $0x98] sm:$0xff]  ;;  %v121_v25 = vld [vmem:[#allocation3 + $0x20] sm:$0xff]  ;;  %v122_v27 = vld [vmem:[#allocation3 + $0x28] sm:$0xff] }
  0x3d   :  { %13046 = vmatprep.subr.mxu0 %v15829_v5  ;;  %13102 = vmatprep.subr.mxu1 %v15829_v5  ;;  %v386_v26 = vld [vmem:[#allocation3 + $0xa0] sm:$0xff]  ;;  %v387_v28 = vld [vmem:[#allocation3 + $0xa8] sm:$0xff]  ;;  %v123_v29 = vld [vmem:[#allocation3 + $0x30] sm:$0xff] }
  0x3e   :  { %13047 = vmatpush3.msra.mxu0 %v15829_v5  ;;  %13103 = vmatpush3.msra.mxu1 %v15829_v5  ;;  %v388_v30 = vld [vmem:[#allocation3 + $0xb0] sm:$0xff]  ;;  %v124_v31 = vld [vmem:[#allocation3 + $0x38] sm:$0xff]  ;;  %v390_v33 = vld [vmem:[#allocation3 + $0xc0] sm:$0xff] }
  0x3f   :  { %13048 = vmatprep.subr.mxu0 %v15838_v6  ;;  %13104 = vmatprep.subr.mxu1 %v15838_v6  ;;  %v389_v32 = vld [vmem:[#allocation3 + $0xb8] sm:$0xff]  ;;  %v125_v34 = vld [vmem:[#allocation3 + $0x40] sm:$0xff]  ;;  %v391_v35 = vld [vmem:[#allocation3 + $0xc8] sm:$0xff] }
  0x40   :  { %13049 = vmatpush3.msra.mxu0 %v15838_v6  ;;  %13105 = vmatpush3.msra.mxu1 %v15838_v6  ;;  %v126_v36 = vld [vmem:[#allocation3 + $0x48] sm:$0xff]  ;;  %v127_v37 = vld [vmem:[#allocation3 + $0x50] sm:$0xff]  ;;  %v128_v39 = vld [vmem:[#allocation3 + $0x58] sm:$0xff] }
  0x41   :  { %13050 = vmatprep.subr.mxu0 %v15847_v7  ;;  %13106 = vmatprep.subr.mxu1 %v15847_v7  ;;  %v392_v38 = vld [vmem:[#allocation3 + $0xd0] sm:$0xff]  ;;  %v393_v40 = vld [vmem:[#allocation3 + $0xd8] sm:$0xff]  ;;  %v394_v41 = vld [vmem:[#allocation3 + $0xe0] sm:$0xff] }
  0x42   :  { %13051 = vmatpush3.msra.mxu0 %v15847_v7  ;;  %13107 = vmatpush3.msra.mxu1 %v15847_v7  ;;  %v395_v42 = vld [vmem:[#allocation3 + $0xe8] sm:$0xff]  ;;  %v129_v43 = vld [vmem:[#allocation3 + $0x60] sm:$0xff]  ;;  %v131_v45 = vld [vmem:[#allocation3 + $0x70] sm:$0xff] }
  0x43   :  { %13052 = vmatprep.subr.mxu0 %v15856_v8  ;;  %13108 = vmatprep.subr.mxu1 %v15856_v8  ;;  %v130_v44 = vld [vmem:[#allocation3 + $0x68] sm:$0xff]  ;;  %v132_v46 = vld [vmem:[#allocation3 + $0x78] sm:$0xff]  ;;  %v396_v47 = vld [vmem:[#allocation3 + $0xf0] sm:$0xff] }
  0x44   :  { %13053 = vmatpush3.msra.mxu0 %v15856_v8  ;;  %13109 = vmatpush3.msra.mxu1 %v15856_v8  ;;  %v397_v48 = vld [vmem:[#allocation3 + $0xf8] sm:$0xff]  ;;  %v664_v49 = vld [vmem:[#allocation3 + $0x100] sm:$0xff]  ;;  %v665_v50 = vld [vmem:[#allocation3 + $0x108] sm:$0xff] }
  0x45   :  { %13054 = vmatprep.subr.mxu0 %v15865_v9  ;;  %13110 = vmatprep.subr.mxu1 %v15865_v9  ;;  %v666_v51 = vld [vmem:[#allocation3 + $0x110] sm:$0xff]  ;;  %v946_v52 = vld [vmem:[#allocation3 + $0x180] sm:$0xff]  ;;  %v667_v53 = vld [vmem:[#allocation3 + $0x118] sm:$0xff] }
  0x46   :  { %13055 = vmatpush3.msra.mxu0 %v15865_v9  ;;  %13111 = vmatpush3.msra.mxu1 %v15865_v9  ;;  %v947_v54 = vld [vmem:[#allocation3 + $0x188] sm:$0xff]  ;;  %v668_v55 = vld [vmem:[#allocation3 + $0x120] sm:$0xff]  ;;  %v948_v56 = vld [vmem:[#allocation3 + $0x190] sm:$0xff] }
  0x47   :  { %13056 = vmatprep.subr.mxu0 %v15874_v10  ;;  %13112 = vmatprep.subr.mxu1 %v15874_v10  ;;  %v669_v57 = vld [vmem:[#allocation3 + $0x128] sm:$0xff]  ;;  %v949_v58 = vld [vmem:[#allocation3 + $0x198] sm:$0xff]  ;;  %v670_v59 = vld [vmem:[#allocation3 + $0x130] sm:$0xff] }
  0x48   :  { %13057 = vmatpush3.msra.mxu0 %v15874_v10  ;;  %13113 = vmatpush3.msra.mxu1 %v15874_v10  ;;  %v950_v60 = vld [vmem:[#allocation3 + $0x1a0] sm:$0xff]  ;;  %v671_v61 = vld [vmem:[#allocation3 + $0x138] sm:$0xff]  ;;  %v951_v62 = vld [vmem:[#allocation3 + $0x1a8] sm:$0xff] }
  0x49   :  { %13058 = vmatprep.subr.mxu0 %v15883_v11  ;;  %13114 = vmatprep.subr.mxu1 %v15883_v11  ;;  %v672_v63 = vld [vmem:[#allocation3 + $0x140] sm:$0xff]  ;;  %v952_v0 = vld [vmem:[#allocation3 + $0x1b0] sm:$0xff] }
  0x4a   :  { %13059 = vmatpush3.msra.mxu0 %v15883_v11  ;;  %13115 = vmatpush3.msra.mxu1 %v15883_v11 }
  0x4b   :  { %13060 = vmatprep.subr.mxu0 %v15892_v12  ;;  %13116 = vmatprep.subr.mxu1 %v15892_v12 }
  0x4c   :  { %13061 = vmatpush3.msra.mxu0 %v15892_v12  ;;  %13117 = vmatpush3.msra.mxu1 %v15892_v12 }
  0x4d   :  { %13062 = vmatprep.subr.mxu0 %v15901_v13  ;;  %13118 = vmatprep.subr.mxu1 %v15901_v13 }
  0x4e   :  { %13063 = vmatpush3.msra.mxu0 %v15901_v13  ;;  %13119 = vmatpush3.msra.mxu1 %v15901_v13 }
  0x4f   :  { %13064 = vmatprep.subr.mxu0 %v15910_v14  ;;  %13120 = vmatprep.subr.mxu1 %v15910_v14 }
  0x50   :  { %13065 = vmatpush3.msra.mxu0 %v15910_v14  ;;  %13121 = vmatpush3.msra.mxu1 %v15910_v14 }
  0x51   :  { %13066 = vmatprep.subr.mxu0 %v15919_v15  ;;  %13122 = vmatprep.subr.mxu1 %v15919_v15 }
  0x52   :  { %13067 = vmatpush3.msra.mxu0 %v15919_v15  ;;  %13123 = vmatpush3.msra.mxu1 %v15919_v15 }
  0x53   :  { %13068 = vmatprep.subr.mxu0 %v15928_v16  ;;  %13124 = vmatprep.subr.mxu1 %v15928_v16 }
  0x54   :  { %13069 = vmatpush3.msra.mxu0 %v15928_v16  ;;  %13070 = vmatprep.mubr.f32.mxu0 %v15932_v17 }
  0x55   :  { %13125 = vmatpush3.msra.mxu1 %v15928_v16  ;;  %13126 = vmatprep.mubr.f32.mxu1 %v382_v18  ;;  %v673_v18 = vld [vmem:[#allocation3 + $0x148] sm:$0xff] }
  0x56   :  { %13071 = vmatmul.mubr.f32.vlgmr.msra.gmra.mxu0 %v118_v19  ;;  %13127 = vmatmul.mubr.f32.vlgmr.msra.gmra.mxu1 %v383_v20  ;;  %v953_v19 = vld [vmem:[#allocation3 + $0x1b8] sm:$0xff]  ;;  %v674_v20 = vld [vmem:[#allocation3 + $0x150] sm:$0xff] }
  0x57   :  { %13073 = vmatprep.mubr.f32.mxu0 %v119_v21  ;;  %13129 = vmatprep.mubr.f32.mxu1 %v384_v22  ;;  %v954_v21 = vld [vmem:[#allocation3 + $0x1c0] sm:$0xff]  ;;  %v675_v22 = vld [vmem:[#allocation3 + $0x158] sm:$0xff] }
  0x58   :  { %13150 = vmatprep.subr.mxu0 %v15797_v1  ;;  %13206 = vmatprep.subr.mxu1 %v15797_v1 }
  0x59   :  { %13151 = vmatpush3.msra.mxu0 %v15797_v1  ;;  %13207 = vmatpush3.msra.mxu1 %v15797_v1 }
  0x5a   :  { %13074 = vmatmul.mubr.f32.gmra.mxu0 %v120_v23  ;;  %13130 = vmatmul.mubr.f32.gmra.mxu1 %v385_v24  ;;  %v955_v23 = vld [vmem:[#allocation3 + $0x1c8] sm:$0xff]  ;;  %v956_v24 = vld [vmem:[#allocation3 + $0x1d0] sm:$0xff] }
  0x5b   :  { %13076 = vmatprep.mubr.f32.mxu0 %v121_v25  ;;  %13132 = vmatprep.mubr.f32.mxu1 %v386_v26  ;;  %v957_v25 = vld [vmem:[#allocation3 + $0x1d8] sm:$0xff]  ;;  %v676_v26 = vld [vmem:[#allocation3 + $0x160] sm:$0xff] }
  0x5c   :  { %13152 = vmatprep.subr.mxu0 %v15802_v2  ;;  %13208 = vmatprep.subr.mxu1 %v15802_v2 }
  0x5d   :  { %13153 = vmatpush3.msra.mxu0 %v15802_v2  ;;  %13209 = vmatpush3.msra.mxu1 %v15802_v2 }
  0x5e   :  { %13077 = vmatmul.mubr.f32.gmra.mxu0 %v122_v27  ;;  %13133 = vmatmul.mubr.f32.gmra.mxu1 %v387_v28  ;;  %v677_v27 = vld [vmem:[#allocation3 + $0x168] sm:$0xff]  ;;  %v678_v28 = vld [vmem:[#allocation3 + $0x170] sm:$0xff] }
  0x5f   :  { %13079 = vmatprep.mubr.f32.mxu0 %v123_v29  ;;  %13135 = vmatprep.mubr.f32.mxu1 %v388_v30  ;;  %v958_v29 = vld [vmem:[#allocation3 + $0x1e0] sm:$0xff]  ;;  %v679_v30 = vld [vmem:[#allocation3 + $0x178] sm:$0xff] }
  0x60   :  { %13154 = vmatprep.subr.mxu0 %v15811_v3  ;;  %13210 = vmatprep.subr.mxu1 %v15811_v3 }
  0x61   :  { %13155 = vmatpush3.msra.mxu0 %v15811_v3  ;;  %13211 = vmatpush3.msra.mxu1 %v15811_v3 }
  0x62   :  { %13080 = vmatmul.mubr.f32.gmra.mxu0 %v124_v31  ;;  %13136 = vmatmul.mubr.f32.gmra.mxu1 %v389_v32  ;;  %v959_v31 = vld [vmem:[#allocation3 + $0x1e8] sm:$0xff]  ;;  %v960_v32 = vld [vmem:[#allocation3 + $0x1f0] sm:$0xff] }
  0x63   :  { %13138 = vmatprep.mubr.f32.mxu1 %v390_v33  ;;  %13082 = vmatprep.mubr.f32.mxu0 %v125_v34  ;;  %v961_v33 = vld [vmem:[#allocation3 + $0x1f8] sm:$0xff]  ;;  %v1228_v34 = vld [vmem:[#allocation3 + $0x200] sm:$0xff] }
  0x64   :  { %13156 = vmatprep.subr.mxu0 %v15820_v4  ;;  %13212 = vmatprep.subr.mxu1 %v15820_v4 }
  0x65   :  { %13157 = vmatpush3.msra.mxu0 %v15820_v4  ;;  %13213 = vmatpush3.msra.mxu1 %v15820_v4 }
  0x66   :  { %13139 = vmatmul.mubr.f32.gmra.mxu1 %v391_v35  ;;  %13083 = vmatmul.mubr.f32.gmra.mxu0 %v126_v36  ;;  %v1229_v35 = vld [vmem:[#allocation3 + $0x208] sm:$0xff]  ;;  %v1230_v36 = vld [vmem:[#allocation3 + $0x210] sm:$0xff] }
  0x67   :  { %13158 = vmatprep.subr.mxu0 %v15829_v5  ;;  %13085 = vmatprep.mubr.f32.mxu0 %v127_v37  ;;  %v1510_v37 = vld [vmem:[#allocation3 + $0x280] sm:$0xff] }
  0x68   :  { %13159 = vmatpush3.msra.mxu0 %v15829_v5  ;;  %13141 = vmatprep.mubr.f32.mxu1 %v392_v38  ;;  %v1231_v38 = vld [vmem:[#allocation3 + $0x218] sm:$0xff] }
  0x69   :  { %13160 = vmatprep.subr.mxu0 %v15838_v6  ;;  %13214 = vmatprep.subr.mxu1 %v15829_v5 }
  0x6a   :  { %13086 = vmatmul.mubr.f32.gmra.mxu0 %v128_v39  ;;  %13142 = vmatmul.mubr.f32.gmra.mxu1 %v393_v40  ;;  %v1511_v39 = vld [vmem:[#allocation3 + $0x288] sm:$0xff]  ;;  %v1232_v40 = vld [vmem:[#allocation3 + $0x220] sm:$0xff] }
  0x6b   :  { %13161 = vmatpush3.msra.mxu0 %v15838_v6  ;;  %13215 = vmatpush3.msra.mxu1 %v15829_v5 }
  0x6c   :  { %13162 = vmatprep.subr.mxu0 %v15847_v7  ;;  %13216 = vmatprep.subr.mxu1 %v15838_v6 }
  0x6d   :  { %13163 = vmatpush3.msra.mxu0 %v15847_v7  ;;  %13217 = vmatpush3.msra.mxu1 %v15838_v6 }
  0x6e   :  { %13164 = vmatprep.subr.mxu0 %v15856_v8  ;;  %13218 = vmatprep.subr.mxu1 %v15847_v7 }
  0x6f   :  { %13165 = vmatpush3.msra.mxu0 %v15856_v8  ;;  %13144 = vmatprep.mubr.f32.mxu1 %v394_v41  ;;  %v1512_v41 = vld [vmem:[#allocation3 + $0x290] sm:$0xff] }
  0x70   :  { %13166 = vmatprep.subr.mxu0 %v15865_v9  ;;  %13219 = vmatpush3.msra.mxu1 %v15847_v7 }
  0x71   :  { %13167 = vmatpush3.msra.mxu0 %v15865_v9  ;;  %13145 = vmatmul.mubr.f32.gmra.mxu1 %v395_v42  ;;  %v1233_v42 = vld [vmem:[#allocation3 + $0x228] sm:$0xff] }
  0x72   :  { %13168 = vmatprep.subr.mxu0 %v15874_v10  ;;  %13220 = vmatprep.subr.mxu1 %v15856_v8 }
  0x73   :  { %13088 = vmatprep.mubr.f32.mxu0 %v129_v43  ;;  %13169 = vmatpush3.msra.mxu0 %v15874_v10  ;;  %v1513_v43 = vld [vmem:[#allocation3 + $0x298] sm:$0xff] }
  0x74   :  { %13221 = vmatpush3.msra.mxu1 %v15856_v8  ;;  %13089 = vmatmul.mubr.f32.gmra.mxu0 %v130_v44  ;;  %v1234_v44 = vld [vmem:[#allocation3 + $0x230] sm:$0xff] }
  0x75   :  { %13170 = vmatprep.subr.mxu0 %v15883_v11  ;;  %13222 = vmatprep.subr.mxu1 %v15865_v9 }
  0x76   :  { %13171 = vmatpush3.msra.mxu0 %v15883_v11  ;;  %13223 = vmatpush3.msra.mxu1 %v15865_v9 }
  0x77   :  { %13172 = vmatprep.subr.mxu0 %v15892_v12  ;;  %13224 = vmatprep.subr.mxu1 %v15874_v10 }
  0x78   :  { %13173 = vmatpush3.msra.mxu0 %v15892_v12  ;;  %13225 = vmatpush3.msra.mxu1 %v15874_v10 }
  0x79   :  { %13174 = vmatprep.subr.mxu0 %v15901_v13  ;;  %13226 = vmatprep.subr.mxu1 %v15883_v11 }
  0x7a   :  { %13091 = vmatprep.mubr.f32.mxu0 %v131_v45  ;;  %13175 = vmatpush3.msra.mxu0 %v15901_v13  ;;  %v1514_v45 = vld [vmem:[#allocation3 + $0x2a0] sm:$0xff] }
  0x7b   :  { %13227 = vmatpush3.msra.mxu1 %v15883_v11  ;;  %13092 = vmatmul.mubr.f32.gmra.mxu0 %v132_v46  ;;  %v1235_v46 = vld [vmem:[#allocation3 + $0x238] sm:$0xff] }
  0x7c   :  { %13176 = vmatprep.subr.mxu0 %v15910_v14  ;;  %13228 = vmatprep.subr.mxu1 %v15892_v12 }
  0x7d   :  { %13177 = vmatpush3.msra.mxu0 %v15910_v14  ;;  %13229 = vmatpush3.msra.mxu1 %v15892_v12 }
  0x7e   :  { %13178 = vmatprep.subr.mxu0 %v15919_v15  ;;  %13230 = vmatprep.subr.mxu1 %v15901_v13 }
  0x7f   :  { %13147 = vmatprep.mubr.f32.mxu1 %v396_v47  ;;  %13179 = vmatpush3.msra.mxu0 %v15919_v15  ;;  %v1515_v47 = vld [vmem:[#allocation3 + $0x2a8] sm:$0xff] }
  0x80   :  { %13231 = vmatpush3.msra.mxu1 %v15901_v13  ;;  %13180 = vmatprep.subr.mxu0 %v15928_v16 }
  0x81   :  { %13148 = vmatmul.mubr.f32.gmra.mxu1 %v397_v48  ;;  %13232 = vmatprep.subr.mxu1 %v15910_v14  ;;  %v1236_v48 = vld [vmem:[#allocation3 + $0x240] sm:$0xff] }
  0x82   :  { %13181 = vmatpush3.msra.mxu0 %v15928_v16  ;;  %13182 = vmatprep.mubr.f32.mxu0 %v664_v49  ;;  %v1516_v49 = vld [vmem:[#allocation3 + $0x2b0] sm:$0xff] }
  0x83   :  { %13233 = vmatpush3.msra.mxu1 %v15910_v14  ;;  %13183 = vmatmul.mubr.f32.vlgmr.msra.gmra.mxu0 %v665_v50  ;;  %v1237_v50 = vld [vmem:[#allocation3 + $0x248] sm:$0xff] }
  0x84   :  { %13234 = vmatprep.subr.mxu1 %v15919_v15  ;;  %13185 = vmatprep.mubr.f32.mxu0 %v666_v51  ;;  %v1517_v51 = vld [vmem:[#allocation3 + $0x2b8] sm:$0xff] }
  0x85   :  { %13235 = vmatpush3.msra.mxu1 %v15919_v15  ;;  %13238 = vmatprep.mubr.f32.mxu1 %v946_v52  ;;  %v1518_v52 = vld [vmem:[#allocation3 + $0x2c0] sm:$0xff] }
  0x86   :  { %13236 = vmatprep.subr.mxu1 %v15928_v16  ;;  %13262 = vmatprep.subr.mxu0 %v15797_v1 }
  0x87   :  { %13237 = vmatpush3.msra.mxu1 %v15928_v16  ;;  %13186 = vmatmul.mubr.f32.gmra.mxu0 %v667_v53  ;;  %v1238_v53 = vld [vmem:[#allocation3 + $0x250] sm:$0xff] }
  0x88   :  { %13239 = vmatmul.mubr.f32.vlgmr.msra.gmra.mxu1 %v947_v54  ;;  %13188 = vmatprep.mubr.f32.mxu0 %v668_v55  ;;  %v1519_v54 = vld [vmem:[#allocation3 + $0x2c8] sm:$0xff]  ;;  %v1239_v55 = vld [vmem:[#allocation3 + $0x258] sm:$0xff] }
  0x89   :  { %13241 = vmatprep.mubr.f32.mxu1 %v948_v56  ;;  %13263 = vmatpush3.msra.mxu0 %v15797_v1  ;;  %v1520_v56 = vld [vmem:[#allocation3 + $0x2d0] sm:$0xff] }
  0x8a   :  { %13264 = vmatprep.subr.mxu0 %v15802_v2  ;;  %13318 = vmatprep.subr.mxu1 %v15797_v1 }
  0x8b   :  { %13189 = vmatmul.mubr.f32.gmra.mxu0 %v669_v57  ;;  %13319 = vmatpush3.msra.mxu1 %v15797_v1  ;;  %v1521_v57 = vld [vmem:[#allocation3 + $0x2d8] sm:$0xff] }
  0x8c   :  { %13242 = vmatmul.mubr.f32.gmra.mxu1 %v949_v58  ;;  %13191 = vmatprep.mubr.f32.mxu0 %v670_v59  ;;  %v1240_v58 = vld [vmem:[#allocation3 + $0x260] sm:$0xff]  ;;  %v1241_v59 = vld [vmem:[#allocation3 + $0x268] sm:$0xff] }
  0x8d   :  { %13244 = vmatprep.mubr.f32.mxu1 %v950_v60  ;;  %13265 = vmatpush3.msra.mxu0 %v15802_v2  ;;  %v1522_v60 = vld [vmem:[#allocation3 + $0x2e0] sm:$0xff] }
  0x8e   :  { %13266 = vmatprep.subr.mxu0 %v15811_v3  ;;  %13320 = vmatprep.subr.mxu1 %v15802_v2 }
  0x8f   :  { %13192 = vmatmul.mubr.f32.gmra.mxu0 %v671_v61  ;;  %13321 = vmatpush3.msra.mxu1 %v15802_v2  ;;  %v1523_v61 = vld [vmem:[#allocation3 + $0x2e8] sm:$0xff] }
  0x90   :  { %13245 = vmatmul.mubr.f32.gmra.mxu1 %v951_v62  ;;  %13194 = vmatprep.mubr.f32.mxu0 %v672_v63  ;;  %v1242_v62 = vld [vmem:[#allocation3 + $0x270] sm:$0xff]  ;;  %v1243_v63 = vld [vmem:[#allocation3 + $0x278] sm:$0xff] }
  0x91   :  { %13247 = vmatprep.mubr.f32.mxu1 %v952_v0  ;;  %13267 = vmatpush3.msra.mxu0 %v15811_v3  ;;  %v1524_v0 = vld [vmem:[#allocation3 + $0x2f0] sm:$0xff] }
  0x92   :  { %13268 = vmatprep.subr.mxu0 %v15820_v4  ;;  %13322 = vmatprep.subr.mxu1 %v15811_v3 }
  0x93   :  { %13195 = vmatmul.mubr.f32.gmra.mxu0 %v673_v18  ;;  %13323 = vmatpush3.msra.mxu1 %v15811_v3  ;;  %v1792_v18 = vld [vmem:[#allocation3 + $0x300] sm:$0xff] }
  0x94   :  { %13248 = vmatmul.mubr.f32.gmra.mxu1 %v953_v19  ;;  %13197 = vmatprep.mubr.f32.mxu0 %v674_v20  ;;  %v1525_v19 = vld [vmem:[#allocation3 + $0x2f8] sm:$0xff]  ;;  %v1793_v20 = vld [vmem:[#allocation3 + $0x308] sm:$0xff] }
  0x95   :  { %13250 = vmatprep.mubr.f32.mxu1 %v954_v21  ;;  %13269 = vmatpush3.msra.mxu0 %v15820_v4  ;;  %v1794_v21 = vld [vmem:[#allocation3 + $0x310] sm:$0xff] }
  0x96   :  { %13270 = vmatprep.subr.mxu0 %v15829_v5  ;;  %13324 = vmatprep.subr.mxu1 %v15820_v4 }
  0x97   :  { %13198 = vmatmul.mubr.f32.gmra.mxu0 %v675_v22  ;;  %13325 = vmatpush3.msra.mxu1 %v15820_v4  ;;  %v2074_v22 = vld [vmem:[#allocation3 + $0x380] sm:$0xff] }
  0x98   :  { %13251 = vmatmul.mubr.f32.gmra.mxu1 %v955_v23  ;;  %13271 = vmatpush3.msra.mxu0 %v15829_v5  ;;  %v1795_v23 = vld [vmem:[#allocation3 + $0x318] sm:$0xff] }
  0x99   :  { %13253 = vmatprep.mubr.f32.mxu1 %v956_v24  ;;  %13272 = vmatprep.subr.mxu0 %v15838_v6  ;;  %v2075_v24 = vld [vmem:[#allocation3 + $0x388] sm:$0xff] }
  0x9a   :  { %13273 = vmatpush3.msra.mxu0 %v15838_v6  ;;  %13326 = vmatprep.subr.mxu1 %v15829_v5 }
  0x9b   :  { %13274 = vmatprep.subr.mxu0 %v15847_v7  ;;  %13327 = vmatpush3.msra.mxu1 %v15829_v5 }
  0x9c   :  { %13254 = vmatmul.mubr.f32.gmra.mxu1 %v957_v25  ;;  %13275 = vmatpush3.msra.mxu0 %v15847_v7  ;;  %v1796_v25 = vld [vmem:[#allocation3 + $0x320] sm:$0xff] }
  0x9d   :  { %13276 = vmatprep.subr.mxu0 %v15856_v8  ;;  %13328 = vmatprep.subr.mxu1 %v15838_v6 }
  0x9e   :  { %13200 = vmatprep.mubr.f32.mxu0 %v676_v26  ;;  %13277 = vmatpush3.msra.mxu0 %v15856_v8  ;;  %v2076_v26 = vld [vmem:[#allocation3 + $0x390] sm:$0xff] }
  0x9f   :  { %13329 = vmatpush3.msra.mxu1 %v15838_v6  ;;  %13201 = vmatmul.mubr.f32.gmra.mxu0 %v677_v27  ;;  %v15707_v27 = vmov 0  }
  0xa0   :  { %13278 = vmatprep.subr.mxu0 %v15865_v9  ;;  %13330 = vmatprep.subr.mxu1 %v15847_v7 }
  0xa1   :  { %13279 = vmatpush3.msra.mxu0 %v15865_v9  ;;  %13331 = vmatpush3.msra.mxu1 %v15847_v7 }
  0xa2   :  { %13280 = vmatprep.subr.mxu0 %v15874_v10  ;;  %13332 = vmatprep.subr.mxu1 %v15856_v8 }
  0xa3   :  { %13281 = vmatpush3.msra.mxu0 %v15874_v10  ;;  %13333 = vmatpush3.msra.mxu1 %v15856_v8 }
  0xa4   :  { %13282 = vmatprep.subr.mxu0 %v15883_v11  ;;  %13334 = vmatprep.subr.mxu1 %v15865_v9 }
  0xa5   :  { %13203 = vmatprep.mubr.f32.mxu0 %v678_v28  ;;  %13256 = vmatprep.mubr.f32.mxu1 %v958_v29  ;;  %v1797_v28 = vld [vmem:[#allocation3 + $0x328] sm:$0xff]  ;;  %v2077_v29 = vld [vmem:[#allocation3 + $0x398] sm:$0xff] }
  0xa6   :  { %13283 = vmatpush3.msra.mxu0 %v15883_v11  ;;  %13335 = vmatpush3.msra.mxu1 %v15865_v9 }
  0xa7   :  { %13204 = vmatmul.mubr.f32.gmra.mxu0 %v679_v30  ;;  %13257 = vmatmul.mubr.f32.gmra.mxu1 %v959_v31  ;;  %v1798_v30 = vld [vmem:[#allocation3 + $0x330] sm:$0xff]  ;;  %v2078_v31 = vld [vmem:[#allocation3 + $0x3a0] sm:$0xff] }
  0xa8   :  { %13284 = vmatprep.subr.mxu0 %v15892_v12  ;;  %13336 = vmatprep.subr.mxu1 %v15874_v10 }
  0xa9   :  { %13285 = vmatpush3.msra.mxu0 %v15892_v12  ;;  %13337 = vmatpush3.msra.mxu1 %v15874_v10 }
  0xaa   :  { %13286 = vmatprep.subr.mxu0 %v15901_v13  ;;  %13338 = vmatprep.subr.mxu1 %v15883_v11 }
  0xab   :  { %13259 = vmatprep.mubr.f32.mxu1 %v960_v32  ;;  %13287 = vmatpush3.msra.mxu0 %v15901_v13  ;;  %v1799_v32 = vld [vmem:[#allocation3 + $0x338] sm:$0xff] }
  0xac   :  { %13339 = vmatpush3.msra.mxu1 %v15883_v11  ;;  %13288 = vmatprep.subr.mxu0 %v15910_v14 }
  0xad   :  { %13260 = vmatmul.mubr.f32.gmra.mxu1 %v961_v33  ;;  %13340 = vmatprep.subr.mxu1 %v15892_v12  ;;  %v2079_v33 = vld [vmem:[#allocation3 + $0x3a8] sm:$0xff] }
  0xae   :  { %13289 = vmatpush3.msra.mxu0 %v15910_v14  ;;  %13341 = vmatpush3.msra.mxu1 %v15892_v12 }
  0xaf   :  { %13290 = vmatprep.subr.mxu0 %v15919_v15  ;;  %13342 = vmatprep.subr.mxu1 %v15901_v13 }
  0xb0   :  { %13291 = vmatpush3.msra.mxu0 %v15919_v15  ;;  %13343 = vmatpush3.msra.mxu1 %v15901_v13 }
  0xb1   :  { %13292 = vmatprep.subr.mxu0 %v15928_v16  ;;  %13344 = vmatprep.subr.mxu1 %v15910_v14 }
  0xb2   :  { %13293 = vmatpush3.msra.mxu0 %v15928_v16  ;;  %13294 = vmatprep.mubr.f32.mxu0 %v1228_v34  ;;  %v1800_v34 = vld [vmem:[#allocation3 + $0x340] sm:$0xff] }
  0xb3   :  { %13345 = vmatpush3.msra.mxu1 %v15910_v14  ;;  %13295 = vmatmul.mubr.f32.vlgmr.msra.gmra.mxu0 %v1229_v35  ;;  %v2080_v35 = vld [vmem:[#allocation3 + $0x3b0] sm:$0xff] }
  0xb4   :  { %13346 = vmatprep.subr.mxu1 %v15919_v15  ;;  %13297 = vmatprep.mubr.f32.mxu0 %v1230_v36  ;;  %v1801_v36 = vld [vmem:[#allocation3 + $0x348] sm:$0xff] }
  0xb5   :  { %13347 = vmatpush3.msra.mxu1 %v15919_v15  ;;  %13350 = vmatprep.mubr.f32.mxu1 %v1510_v37  ;;  %v2081_v37 = vld [vmem:[#allocation3 + $0x3b8] sm:$0xff] }
  0xb6   :  { %13348 = vmatprep.subr.mxu1 %v15928_v16  ;;  %13374 = vmatprep.subr.mxu0 %v15797_v1 }
  0xb7   :  { %13349 = vmatpush3.msra.mxu1 %v15928_v16  ;;  %13298 = vmatmul.mubr.f32.gmra.mxu0 %v1231_v38  ;;  %v2082_v38 = vld [vmem:[#allocation3 + $0x3c0] sm:$0xff] }
  0xb8   :  { %13351 = vmatmul.mubr.f32.vlgmr.msra.gmra.mxu1 %v1511_v39  ;;  %13300 = vmatprep.mubr.f32.mxu0 %v1232_v40  ;;  %v1802_v39 = vld [vmem:[#allocation3 + $0x350] sm:$0xff]  ;;  %v2083_v40 = vld [vmem:[#allocation3 + $0x3c8] sm:$0xff] }
  0xb9   :  { %13353 = vmatprep.mubr.f32.mxu1 %v1512_v41  ;;  %13375 = vmatpush3.msra.mxu0 %v15797_v1  ;;  %v2084_v41 = vld [vmem:[#allocation3 + $0x3d0] sm:$0xff] }
  0xba   :  { %13376 = vmatprep.subr.mxu0 %v15802_v2  ;;  %13430 = vmatprep.subr.mxu1 %v15797_v1 }
  0xbb   :  { %13301 = vmatmul.mubr.f32.gmra.mxu0 %v1233_v42  ;;  %13431 = vmatpush3.msra.mxu1 %v15797_v1  ;;  %v1805_v42 = vld [vmem:[#allocation3 + $0x368] sm:$0xff] }
  0xbc   :  { %13354 = vmatmul.mubr.f32.gmra.mxu1 %v1513_v43  ;;  %13303 = vmatprep.mubr.f32.mxu0 %v1234_v44  ;;  %v2086_v43 = vld [vmem:[#allocation3 + $0x3e0] sm:$0xff]  ;;  %v1807_v44 = vld [vmem:[#allocation3 + $0x378] sm:$0xff] }
  0xbd   :  { %13356 = vmatprep.mubr.f32.mxu1 %v1514_v45  ;;  %13377 = vmatpush3.msra.mxu0 %v15802_v2  ;;  %v2356_v45 = vld [vmem:[#allocation3 + $0x400] sm:$0xff] }
  0xbe   :  { %13378 = vmatprep.subr.mxu0 %v15811_v3  ;;  %13432 = vmatprep.subr.mxu1 %v15802_v2 }
  0xbf   :  { %13304 = vmatmul.mubr.f32.gmra.mxu0 %v1235_v46  ;;  %13433 = vmatpush3.msra.mxu1 %v15802_v2 }
  0xc0   :  { %13357 = vmatmul.mubr.f32.gmra.mxu1 %v1515_v47  ;;  %13306 = vmatprep.mubr.f32.mxu0 %v1236_v48 }
  0xc1   :  { %13359 = vmatprep.mubr.f32.mxu1 %v1516_v49  ;;  %13379 = vmatpush3.msra.mxu0 %v15811_v3  ;;  %v2364_v49 = vld [vmem:[#allocation3 + $0x440] sm:$0xff] }
  0xc2   :  { %13380 = vmatprep.subr.mxu0 %v15820_v4  ;;  %13434 = vmatprep.subr.mxu1 %v15811_v3 }
  0xc3   :  { %13307 = vmatmul.mubr.f32.gmra.mxu0 %v1237_v50  ;;  %13435 = vmatpush3.msra.mxu1 %v15811_v3 }
  0xc4   :  { %13360 = vmatmul.mubr.f32.gmra.mxu1 %v1517_v51  ;;  %13381 = vmatpush3.msra.mxu0 %v15820_v4  ;;  %v2365_v51 = vld [vmem:[#allocation3 + $0x448] sm:$0xff] }
  0xc5   :  { %13362 = vmatprep.mubr.f32.mxu1 %v1518_v52  ;;  %13382 = vmatprep.subr.mxu0 %v15829_v5  ;;  %v2366_v52 = vld [vmem:[#allocation3 + $0x450] sm:$0xff] }
  0xc6   :  { %13383 = vmatpush3.msra.mxu0 %v15829_v5  ;;  %13436 = vmatprep.subr.mxu1 %v15820_v4 }
  0xc7   :  { %13384 = vmatprep.subr.mxu0 %v15838_v6  ;;  %13309 = vmatprep.mubr.f32.mxu0 %v1238_v53 }
  0xc8   :  { %13363 = vmatmul.mubr.f32.gmra.mxu1 %v1519_v54  ;;  %13385 = vmatpush3.msra.mxu0 %v15838_v6  ;;  %v2367_v54 = vld [vmem:[#allocation3 + $0x458] sm:$0xff] }
  0xc9   :  { %13437 = vmatpush3.msra.mxu1 %v15820_v4  ;;  %13310 = vmatmul.mubr.f32.gmra.mxu0 %v1239_v55 }
  0xca   :  { %13386 = vmatprep.subr.mxu0 %v15847_v7  ;;  %13438 = vmatprep.subr.mxu1 %v15829_v5 }
  0xcb   :  { %13387 = vmatpush3.msra.mxu0 %v15847_v7  ;;  %13439 = vmatpush3.msra.mxu1 %v15829_v5 }
  0xcc   :  { %13388 = vmatprep.subr.mxu0 %v15856_v8  ;;  %13440 = vmatprep.subr.mxu1 %v15838_v6 }
  0xcd   :  { %13365 = vmatprep.mubr.f32.mxu1 %v1520_v56  ;;  %13389 = vmatpush3.msra.mxu0 %v15856_v8  ;;  %v2368_v56 = vld [vmem:[#allocation3 + $0x460] sm:$0xff] }
  0xce   :  { %13441 = vmatpush3.msra.mxu1 %v15838_v6  ;;  %13390 = vmatprep.subr.mxu0 %v15865_v9 }
  0xcf   :  { %13366 = vmatmul.mubr.f32.gmra.mxu1 %v1521_v57  ;;  %13442 = vmatprep.subr.mxu1 %v15847_v7 }
  0xd0   :  { %13391 = vmatpush3.msra.mxu0 %v15865_v9  ;;  %13443 = vmatpush3.msra.mxu1 %v15847_v7 }
  0xd1   :  { %13392 = vmatprep.subr.mxu0 %v15874_v10  ;;  %13444 = vmatprep.subr.mxu1 %v15856_v8 }
  0xd2   :  { %13393 = vmatpush3.msra.mxu0 %v15874_v10  ;;  %13445 = vmatpush3.msra.mxu1 %v15856_v8 }
  0xd3   :  { %13394 = vmatprep.subr.mxu0 %v15883_v11  ;;  %13446 = vmatprep.subr.mxu1 %v15865_v9 }
  0xd4   :  { %13312 = vmatprep.mubr.f32.mxu0 %v1240_v58  ;;  %13395 = vmatpush3.msra.mxu0 %v15883_v11 }
  0xd5   :  { %13447 = vmatpush3.msra.mxu1 %v15865_v9  ;;  %13313 = vmatmul.mubr.f32.gmra.mxu0 %v1241_v59 }
  0xd6   :  { %13396 = vmatprep.subr.mxu0 %v15892_v12  ;;  %13448 = vmatprep.subr.mxu1 %v15874_v10 }
  0xd7   :  { %13397 = vmatpush3.msra.mxu0 %v15892_v12  ;;  %13449 = vmatpush3.msra.mxu1 %v15874_v10 }
  0xd8   :  { %13398 = vmatprep.subr.mxu0 %v15901_v13  ;;  %13450 = vmatprep.subr.mxu1 %v15883_v11 }
  0xd9   :  { %13368 = vmatprep.mubr.f32.mxu1 %v1522_v60  ;;  %13399 = vmatpush3.msra.mxu0 %v15901_v13  ;;  %v2369_v60 = vld [vmem:[#allocation3 + $0x468] sm:$0xff] }
  0xda   :  { %13451 = vmatpush3.msra.mxu1 %v15883_v11  ;;  %13400 = vmatprep.subr.mxu0 %v15910_v14 }
  0xdb   :  { %13369 = vmatmul.mubr.f32.gmra.mxu1 %v1523_v61  ;;  %13452 = vmatprep.subr.mxu1 %v15892_v12  ;;  %v2370_v61 = vld [vmem:[#allocation3 + $0x470] sm:$0xff] }
  0xdc   :  { %13315 = vmatprep.mubr.f32.mxu0 %v1242_v62  ;;  %13401 = vmatpush3.msra.mxu0 %v15910_v14 }
  0xdd   :  { %13453 = vmatpush3.msra.mxu1 %v15892_v12  ;;  %13316 = vmatmul.mubr.f32.gmra.mxu0 %v1243_v63  ;;  %v2371_v63 = vld [vmem:[#allocation3 + $0x478] sm:$0xff] }
  0xde   :  { %13402 = vmatprep.subr.mxu0 %v15919_v15  ;;  %13454 = vmatprep.subr.mxu1 %v15901_v13 }
  0xdf   :  { %13403 = vmatpush3.msra.mxu0 %v15919_v15  ;;  %13455 = vmatpush3.msra.mxu1 %v15901_v13 }
  0xe0   :  { %13404 = vmatprep.subr.mxu0 %v15928_v16  ;;  %13456 = vmatprep.subr.mxu1 %v15910_v14 }
  0xe1   :  { %13371 = vmatprep.mubr.f32.mxu1 %v1524_v0  ;;  %13405 = vmatpush3.msra.mxu0 %v15928_v16 }
  0xe2   :  { %13406 = vmatprep.mubr.f32.mxu0 %v1792_v18  ;;  %13457 = vmatpush3.msra.mxu1 %v15910_v14 }
  0xe3   :  { %13372 = vmatmul.mubr.f32.gmra.mxu1 %v1525_v19  ;;  %13407 = vmatmul.mubr.f32.vlgmr.msra.gmra.mxu0 %v1793_v20  ;;  %v15326_v20 = vld [vmem:[#allocation3 + $0x80] sm:$0xff] }
  0xe4   :  { %13458 = vmatprep.subr.mxu1 %v15919_v15  ;;  %13409 = vmatprep.mubr.f32.mxu0 %v1794_v21 }
  0xe5   :  { %13459 = vmatpush3.msra.mxu1 %v15919_v15  ;;  %13462 = vmatprep.mubr.f32.mxu1 %v2074_v22 }
  0xe6   :  { %13460 = vmatprep.subr.mxu1 %v15928_v16  ;;  %15325 = vset.pattern.permute.xlu1 %v15707_v27 }
  0xe7   :  { %13461 = vmatpush3.msra.mxu1 %v15928_v16  ;;  %13410 = vmatmul.mubr.f32.gmra.mxu0 %v1795_v23 }
  0xe8   :  { %13463 = vmatmul.mubr.f32.vlgmr.msra.gmra.mxu1 %v2075_v24  ;;  %13412 = vmatprep.mubr.f32.mxu0 %v1796_v25 }
  0xe9   :  { %13465 = vmatprep.mubr.f32.mxu1 %v2076_v26  ;;  %15324 = vset.pattern.permute.xlu0 %v15707_v27 }
  0xea   :  { %13486 = vmatprep.subr.mxu0 %v15797_v1 }
  0xeb   :  { %13413 = vmatmul.mubr.f32.gmra.mxu0 %v1797_v28 }
  0xec   :  { %13466 = vmatmul.mubr.f32.gmra.mxu1 %v2077_v29  ;;  %13415 = vmatprep.mubr.f32.mxu0 %v1798_v30 }
  0xed   :  { %13468 = vmatprep.mubr.f32.mxu1 %v2078_v31  ;;  %13487 = vmatpush3.msra.mxu0 %v15797_v1  ;;  %v1803_v1 = vld [vmem:[#allocation3 + $0x358] sm:$0xff] }
  0xee   :  { %13488 = vmatprep.subr.mxu0 %v15802_v2 }
  0xef   :  { %13416 = vmatmul.mubr.f32.gmra.mxu0 %v1799_v32 }
  0xf0   :  { %13469 = vmatmul.mubr.f32.gmra.mxu1 %v2079_v33  ;;  %13418 = vmatprep.mubr.f32.mxu0 %v1800_v34 }
  0xf1   :  { %13471 = vmatprep.mubr.f32.mxu1 %v2080_v35  ;;  %13489 = vmatpush3.msra.mxu0 %v15802_v2  ;;  %v1804_v2 = vld [vmem:[#allocation3 + $0x360] sm:$0xff] }
  0xf2   :  { %13490 = vmatprep.subr.mxu0 %v15811_v3 }
  0xf3   :  { %13419 = vmatmul.mubr.f32.gmra.mxu0 %v1801_v36 }
  0xf4   :  { %13472 = vmatmul.mubr.f32.gmra.mxu1 %v2081_v37  ;;  %13491 = vmatpush3.msra.mxu0 %v15811_v3  ;;  %v2085_v3 = vld [vmem:[#allocation3 + $0x3d8] sm:$0xff] }
  0xf5   :  { %13492 = vmatprep.subr.mxu0 %v15820_v4  ;;  %13474 = vmatprep.mubr.f32.mxu1 %v2082_v38 }
  0xf6   :  { %13493 = vmatpush3.msra.mxu0 %v15820_v4  ;;  %13421 = vmatprep.mubr.f32.mxu0 %v1802_v39  ;;  %v1806_v4 = vld [vmem:[#allocation3 + $0x370] sm:$0xff] }
  0xf7   :  { %13494 = vmatprep.subr.mxu0 %v15829_v5  ;;  %13422 = vmatmul.mubr.f32.gmra.mxu0 %v1803_v1 }
  0xf8   :  { %13475 = vmatmul.mubr.f32.gmra.mxu1 %v2083_v40  ;;  %13495 = vmatpush3.msra.mxu0 %v15829_v5  ;;  %v2087_v5 = vld [vmem:[#allocation3 + $0x3e8] sm:$0xff] }
  0xf9   :  { %13496 = vmatprep.subr.mxu0 %v15838_v6  ;;  %13477 = vmatprep.mubr.f32.mxu1 %v2084_v41 }
  0xfa   :  { %13497 = vmatpush3.msra.mxu0 %v15838_v6  ;;  %13424 = vmatprep.mubr.f32.mxu0 %v1804_v2  ;;  %v2088_v6 = vld [vmem:[#allocation3 + $0x3f0] sm:$0xff] }
  0xfb   :  { %13498 = vmatprep.subr.mxu0 %v15847_v7  ;;  %13425 = vmatmul.mubr.f32.gmra.mxu0 %v1805_v42 }
  0xfc   :  { %13499 = vmatpush3.msra.mxu0 %v15847_v7  ;;  %13478 = vmatmul.mubr.f32.gmra.mxu1 %v2085_v3  ;;  %v2089_v7 = vld [vmem:[#allocation3 + $0x3f8] sm:$0xff] }
  0xfd   :  { %13500 = vmatprep.subr.mxu0 %v15856_v8  ;;  %13480 = vmatprep.mubr.f32.mxu1 %v2086_v43 }
  0xfe   :  { %13501 = vmatpush3.msra.mxu0 %v15856_v8  ;;  %13427 = vmatprep.mubr.f32.mxu0 %v1806_v4  ;;  %v2357_v8 = vld [vmem:[#allocation3 + $0x408] sm:$0xff] }
  0xff   :  { %13502 = vmatprep.subr.mxu0 %v15865_v9  ;;  %13428 = vmatmul.mubr.f32.gmra.mxu0 %v1807_v44 }
 0x100   :  { %13503 = vmatpush3.msra.mxu0 %v15865_v9  ;;  %13481 = vmatmul.mubr.f32.gmra.mxu1 %v2087_v5  ;;  %v2358_v9 = vld [vmem:[#allocation3 + $0x410] sm:$0xff] }
 0x101   :  { %13504 = vmatprep.subr.mxu0 %v15874_v10  ;;  %13518 = vmatprep.mubr.f32.mxu0 %v2356_v45 }
 0x102   :  { %13505 = vmatpush3.msra.mxu0 %v15874_v10  ;;  %13483 = vmatprep.mubr.f32.mxu1 %v2088_v6  ;;  %v2359_v10 = vld [vmem:[#allocation3 + $0x418] sm:$0xff] }
 0x103   :  { %13506 = vmatprep.subr.mxu0 %v15883_v11 }
 0x104   :  { %13507 = vmatpush3.msra.mxu0 %v15883_v11  ;;  %13484 = vmatmul.mubr.f32.gmra.mxu1 %v2089_v7  ;;  %v2360_v11 = vld [vmem:[#allocation3 + $0x420] sm:$0xff] }
 0x105   :  { %13508 = vmatprep.subr.mxu0 %v15892_v12  ;;  %13574 = vmatprep.mubr.f32.mxu1 %v15932_v17 }
 0x106   :  { %13509 = vmatpush3.msra.mxu0 %v15892_v12  ;;  %v2361_v12 = vld [vmem:[#allocation3 + $0x428] sm:$0xff] }
 0x107   :  { %13510 = vmatprep.subr.mxu0 %v15901_v13 }
 0x108   :  { %13511 = vmatpush3.msra.mxu0 %v15901_v13 }
 0x109   :  { %13512 = vmatprep.subr.mxu0 %v15910_v14 }
 0x10a   :  { %13513 = vmatpush3.msra.mxu0 %v15910_v14  ;;  %v2362_v14 = vld [vmem:[#allocation3 + $0x430] sm:$0xff] }
 0x10b   :  { %13514 = vmatprep.subr.mxu0 %v15919_v15 }
 0x10c   :  { %13515 = vmatpush3.msra.mxu0 %v15919_v15  ;;  %v2363_v15 = vld [vmem:[#allocation3 + $0x438] sm:$0xff] }
 0x10d   :  { %13516 = vmatprep.subr.mxu0 %v15928_v16 }
 0x10e   :  { %13517 = vmatpush3.msra.mxu0 %v15928_v16 }
 0x10f   :  { %13519 = vmatmul.mubr.f32.vlgmr.msra.gmra.mxu0 %v2357_v8 }
 0x110   :  { %13521 = vmatprep.mubr.f32.mxu0 %v2358_v9 }
 0x113   :  { %13522 = vmatmul.mubr.f32.gmra.mxu0 %v2359_v10 }
 0x114   :  { %13524 = vmatprep.mubr.f32.mxu0 %v2360_v11 }
 0x116   :  { %v13072_v13 = vpop.f32.mrf.mxu0  ;;  %v13128_v17 = vpop.f32.mrf.mxu1 }
 0x117   :  { %552 = vperm.xlu1 %15325, %v13128_v17   ;;  %286 = vperm.xlu0 %15324, %v13072_v13  }
 0x118   :  { %v199_v46 = vpop.f32.mrf.mxu0  ;;  %13525 = vmatmul.mubr.f32.gmra.mxu0 %v2361_v12  ;;  %v464_v47 = vpop.f32.mrf.mxu1 }
 0x119   :  { %13527 = vmatprep.mubr.f32.mxu0 %v2362_v14 }
 0x11a   :  { %v13075_v48 = vpop.f32.mrf.mxu0  ;;  %v13131_v16 = vpop.f32.mrf.mxu1 }
 0x11b   :  { %547 = vperm.xlu0 %15324, %v464_v47   ;;  %281 = vperm.xlu1 %15325, %v199_v46  }
 0x11c   :  { %13528 = vmatmul.mubr.f32.gmra.mxu0 %v2363_v15  ;;  %v209_v50 = vpop.f32.mrf.mxu0  ;;  %v474_v55 = vpop.f32.mrf.mxu1 }
 0x11d   :  { %13530 = vmatprep.mubr.f32.mxu0 %v2364_v49 }
 0x11e   :  { %v13078_v53 = vpop.f32.mrf.mxu0  ;;  %v13134_v58 = vpop.f32.mrf.mxu1 }
 0x11f   :  { %562 = vperm.xlu1 %15325, %v13131_v16   ;;  %296 = vperm.xlu0 %15324, %v13075_v48  }
 0x120   :  { %13531 = vmatmul.mubr.f32.gmra.mxu0 %v2365_v51  ;;  %v219_v57 = vpop.f32.mrf.mxu0  ;;  %v484_v0 = vpop.f32.mrf.mxu1 }
 0x121   :  { %13533 = vmatprep.mubr.f32.mxu0 %v2366_v52 }
 0x122   :  { %v13081_v59 = vpop.f32.mrf.mxu0  ;;  %v13137_v19 = vpop.f32.mrf.mxu1 }
 0x123   :  { %557 = vperm.xlu0 %15324, %v474_v55   ;;  %291 = vperm.xlu1 %15325, %v209_v50  }
 0x124   :  { %13534 = vmatmul.mubr.f32.gmra.mxu0 %v2367_v54  ;;  %v229_v62 = vpop.f32.mrf.mxu0  ;;  %v494_v23 = vpop.f32.mrf.mxu1 }
 0x125   :  { %13536 = vmatprep.mubr.f32.mxu0 %v2368_v56 }
 0x126   :  { %v13084_v18 = vpop.f32.mrf.mxu0  ;;  %v13140_v25 = vpop.f32.mrf.mxu1 }
 0x127   :  { %572 = vperm.xlu1 %15325, %v13134_v58   ;;  %306 = vperm.xlu0 %15324, %v13078_v53  }
 0x128   :  { %13537 = vmatmul.mubr.f32.gmra.mxu0 %v2369_v60  ;;  %v239_v21 = vpop.f32.mrf.mxu0  ;;  %v504_v27 = vpop.f32.mrf.mxu1 }
 0x129   :  { %13539 = vmatprep.mubr.f32.mxu0 %v2370_v61 }
 0x12a   :  { %v13087_v22 = vpop.f32.mrf.mxu0  ;;  %v13143_v29 = vpop.f32.mrf.mxu1 }
 0x12b   :  { %567 = vperm.xlu0 %15324, %v484_v0   ;;  %301 = vperm.xlu1 %15325, %v219_v57  }
 0x12c   :  { %13540 = vmatmul.mubr.f32.gmra.mxu0 %v2371_v63  ;;  %v249_v24 = vpop.f32.mrf.mxu0  ;;  %v514_v32 = vpop.f32.mrf.mxu1 }
 0x12d   :  { %13630 = vmatprep.mubr.f32.mxu0 %v15326_v20 }
 0x12f   :  { %582 = vperm.xlu1 %15325, %v13137_v19   ;;  %316 = vperm.xlu0 %15324, %v13081_v59  }
 0x131   :  { %v13146_v35 = vpop.f32.mrf.mxu1 }
 0x133   :  { %577 = vperm.xlu0 %15324, %v494_v23   ;;  %311 = vperm.xlu1 %15325, %v229_v62   ;;  %v524_v37 = vpop.f32.mrf.mxu1 }
 0x134   :  { %v13090_v26 = vpop.f32.mrf.mxu0 }
 0x136   :  { %v259_v28 = vpop.f32.mrf.mxu0 }
 0x137   :  { %592 = vperm.xlu0 %15324, %v13140_v25   ;;  %326 = vperm.xlu1 %15325, %v13084_v18  }
 0x13b   :  { %587 = vperm.xlu0 %15324, %v504_v27   ;;  %321 = vperm.xlu1 %15325, %v239_v21   ;;  %v13093_v30 = vpop.f32.mrf.mxu0 }
 0x13d   :  { %v269_v31 = vpop.f32.mrf.mxu0 }
 0x13f   :  { %602 = vperm.xlu1 %15325, %v13143_v29   ;;  %336 = vperm.xlu0 %15324, %v13087_v22  }
 0x141   :  { %v13149_v38 = vpop.f32.mrf.mxu1 }
 0x143   :  { %597 = vperm.xlu1 %15325, %v514_v32   ;;  %331 = vperm.xlu0 %15324, %v249_v24   ;;  %v13184_v33 = vpop.f32.mrf.mxu0  ;;  %v534_v40 = vpop.f32.mrf.mxu1 }
 0x145   :  { %v746_v34 = vpop.f32.mrf.mxu0 }
 0x147   :  { %612 = vperm.xlu0 %15324, %v13146_v35   ;;  %346 = vperm.xlu1 %15325, %v13090_v26   ;;  %v13187_v36 = vpop.f32.mrf.mxu0 }
 0x148   :  { %v13240_v41 = vpop.f32.mrf.mxu1 }
 0x149   :  { %v756_v39 = vpop.f32.mrf.mxu0 }
 0x14a   :  { %v1028_v3 = vpop.f32.mrf.mxu1 }
 0x14b   :  { %607 = vperm.xlu0 %15324, %v524_v37   ;;  %341 = vperm.xlu1 %15325, %v259_v28   ;;  %v13190_v1 = vpop.f32.mrf.mxu0 }
 0x14c   :  { %v13243_v4 = vpop.f32.mrf.mxu1 }
 0x14d   :  { %v766_v2 = vpop.f32.mrf.mxu0 }
 0x14e   :  { %v1038_v5 = vpop.f32.mrf.mxu1 }
 0x14f   :  { %356 = vperm.xlu0 %15324, %v13093_v30   ;;  %351 = vperm.xlu1 %15325, %v269_v31   ;;  %v13193_v42 = vpop.f32.mrf.mxu0 }
 0x150   :  { %v13246_v6 = vpop.f32.mrf.mxu1 }
 0x151   :  { %v776_v43 = vpop.f32.mrf.mxu0 }
 0x152   :  { %v1048_v8 = vpop.f32.mrf.mxu1 }
 0x153   :  { %622 = vperm.xlu0 %15324, %v13149_v38   ;;  %617 = vperm.xlu1 %15325, %v534_v40   ;;  %v13196_v44 = vpop.f32.mrf.mxu0 }
 0x154   :  { %v13249_v10 = vpop.f32.mrf.mxu1 }
 0x155   :  { %v786_v45 = vpop.f32.mrf.mxu0 }
 0x156   :  { %v1058_v12 = vpop.f32.mrf.mxu1 }
 0x157   :  { %834 = vperm.xlu1 %15325, %v13184_v33   ;;  %829 = vperm.xlu0 %15324, %v746_v34   ;;  %v13199_v7 = vpop.f32.mrf.mxu0 }
 0x158   :  { %v13252_v17 = vpop.f32.mrf.mxu1 }
 0x159   :  { %v796_v9 = vpop.f32.mrf.mxu0 }
 0x15a   :  { %v1068_v46 = vpop.f32.mrf.mxu1 }
 0x15b   :  { %1116 = vperm.xlu1 %15325, %v13240_v41   ;;  %839 = vperm.xlu0 %15324, %v756_v39  }
 0x15c   :  { %v13255_v47 = vpop.f32.mrf.mxu1 }
 0x15e   :  { %v1078_v16 = vpop.f32.mrf.mxu1 }
 0x15f   :  { %1111 = vperm.xlu1 %15325, %v1028_v3   ;;  %1121 = vperm.xlu0 %15324, %v1038_v5   ;;  %v13202_v11 = vpop.f32.mrf.mxu0 }
 0x161   :  { %v806_v13 = vpop.f32.mrf.mxu0 }
 0x163   :  { %844 = vperm.xlu1 %15325, %v13187_v36   ;;  %849 = vperm.xlu0 %15324, %v766_v2  }
 0x167   :  { %1126 = vperm.xlu1 %15325, %v13243_v4   ;;  %1131 = vperm.xlu0 %15324, %v1048_v8   ;;  %v13205_v14 = vpop.f32.mrf.mxu0  ;;  %v13258_v51 = vpop.f32.mrf.mxu1 }
 0x169   :  { %v816_v15 = vpop.f32.mrf.mxu0  ;;  %v1088_v53 = vpop.f32.mrf.mxu1 }
 0x16b   :  { %854 = vperm.xlu1 %15325, %v13190_v1   ;;  %859 = vperm.xlu0 %15324, %v776_v43  }
 0x16d   :  { %v13261_v55 = vpop.f32.mrf.mxu1 }
 0x16f   :  { %1136 = vperm.xlu1 %15325, %v13246_v6   ;;  %1141 = vperm.xlu0 %15324, %v1058_v12   ;;  %v1098_v57 = vpop.f32.mrf.mxu1 }
 0x173   :  { %864 = vperm.xlu1 %15325, %v13193_v42   ;;  %869 = vperm.xlu0 %15324, %v786_v45   ;;  %v13296_v48 = vpop.f32.mrf.mxu0 }
 0x175   :  { %v16166_v49 = vpop.f32.mrf.mxu0 }
 0x177   :  { %1146 = vperm.xlu1 %15325, %v13249_v10   ;;  %1151 = vperm.xlu0 %15324, %v1068_v46   ;;  %v13299_v50 = vpop.f32.mrf.mxu0 }
 0x178   :  { %v16168_v59 = vpop.f32.mrf.mxu1 }
 0x179   :  { %v1320_v52 = vpop.f32.mrf.mxu0 }
 0x17a   :  { %v16170_v61 = vpop.f32.mrf.mxu1 }
 0x17b   :  { %874 = vperm.xlu1 %15325, %v13196_v44   ;;  %884 = vperm.xlu0 %15324, %v13199_v7   ;;  %v13302_v54 = vpop.f32.mrf.mxu0  ;;  %18532 = vst [vmem:[#allocation13_spill] sm:$0xff] %v16170_v61 }
 0x17c   :  { %v13355_v63 = vpop.f32.mrf.mxu1 }
 0x17d   :  { %v1330_v56 = vpop.f32.mrf.mxu0 }
 0x17e   :  { %v1602_v21 = vpop.f32.mrf.mxu1 }
 0x17f   :  { %1156 = vperm.xlu1 %15325, %v13252_v17   ;;  %1166 = vperm.xlu0 %15324, %v13255_v47   ;;  %v13305_v58 = vpop.f32.mrf.mxu0 }
 0x180   :  { %v13358_v25 = vpop.f32.mrf.mxu1 }
 0x181   :  { %v1340_v60 = vpop.f32.mrf.mxu0 }
 0x182   :  { %v1612_v29 = vpop.f32.mrf.mxu1 }
 0x183   :  { %1161 = vperm.xlu0 %15324, %v1078_v16   ;;  %879 = vperm.xlu1 %15325, %v796_v9   ;;  %v13308_v62 = vpop.f32.mrf.mxu0 }
 0x184   :  { %v13361_v31 = vpop.f32.mrf.mxu1 }
 0x185   :  { %v1350_v0 = vpop.f32.mrf.mxu0 }
 0x186   :  { %v1622_v36 = vpop.f32.mrf.mxu1 }
 0x187   :  { %894 = vperm.xlu1 %15325, %v13202_v11   ;;  %889 = vperm.xlu0 %15324, %v806_v13  }
 0x188   :  { %v13364_v39 = vpop.f32.mrf.mxu1 }
 0x189   :  { %v16172_v18 = vpop.f32.mrf.mxu0 }
 0x18a   :  { %v1632_v42 = vpop.f32.mrf.mxu1 }
 0x18b   :  { %1176 = vperm.xlu1 %15325, %v13258_v51   ;;  %904 = vperm.xlu0 %15324, %v13205_v14   ;;  %v1360_v22 = vpop.f32.mrf.mxu0 }
 0x18f   :  { %1171 = vperm.xlu1 %15325, %v1088_v53   ;;  %1186 = vperm.xlu0 %15324, %v13261_v55   ;;  %v13367_v43 = vpop.f32.mrf.mxu1 }
 0x191   :  { %v1642_v45 = vpop.f32.mrf.mxu1 }
 0x192   :  { %v16174_v19 = vpop.permute.xlu1 %552  ;;  %v16176_v20 = vpop.permute.xlu0 %286 }
 0x193   :  { %18533 = vst [vmem:[#allocation14_spill] sm:$0xff] %v16174_v19  ;;  %18534 = vst [vmem:[#allocation15_spill] sm:$0xff] %v16176_v20  ;;  %1181 = vperm.xlu0 %15324, %v1098_v57   ;;  %899 = vperm.xlu1 %15325, %v816_v15  }
 0x195   :  { %v16182_v26 = vpop.f32.mrf.mxu0 }
 0x196   :  { %v16178_v23 = vpop.permute.xlu0 %547  ;;  %v16180_v24 = vpop.permute.xlu1 %281 }
 0x197   :  { %18535 = vst [vmem:[#allocation16_spill] sm:$0xff] %v16178_v23  ;;  %18536 = vst [vmem:[#allocation17_spill] sm:$0xff] %v16180_v24  ;;  %1398 = vperm.xlu0 %15324, %v13296_v48   ;;  %1408 = vperm.xlu1 %15325, %v13299_v50   ;;  %v16188_v30 = vpop.f32.mrf.mxu0 }
 0x19a   :  { %v16184_v27 = vpop.permute.xlu1 %562  ;;  %v16186_v28 = vpop.permute.xlu0 %296 }
 0x19b   :  { %1690 = vperm.xlu1 %15325, %v13355_v63   ;;  %1403 = vperm.xlu0 %15324, %v1320_v52   ;;  %v13370_v8 = vpop.f32.mrf.mxu1 }
 0x19d   :  { %v16190_v32 = vpop.f32.mrf.mxu0  ;;  %v1652_v12 = vpop.f32.mrf.mxu1 }
 0x19e   :  { %v16192_v33 = vpop.permute.xlu0 %557  ;;  %v16194_v34 = vpop.permute.xlu1 %291 }
 0x19f   :  { %1685 = vperm.xlu1 %15325, %v1602_v21   ;;  %1413 = vperm.xlu0 %15324, %v1330_v56   ;;  %v16196_v35 = vpop.f32.mrf.mxu0 }
 0x1a2   :  { %v16198_v37 = vpop.permute.xlu1 %572  ;;  %v16200_v38 = vpop.permute.xlu0 %306 }
 0x1a3   :  { %1418 = vperm.xlu1 %15325, %v13302_v54   ;;  %1695 = vperm.xlu0 %15324, %v1612_v29   ;;  %v16202_v1 = vpop.f32.mrf.mxu0  ;;  %v13373_v17 = vpop.f32.mrf.mxu1 }
 0x1a4   :  { %18537 = vst [vmem:[#allocation18_spill] sm:$0xff] %v16202_v1 }
 0x1a5   :  { %v16204_v40 = vpop.f32.mrf.mxu0  ;;  %v1662_v47 = vpop.f32.mrf.mxu1 }
 0x1a6   :  { %18538 = vst [vmem:[#allocation19_spill] sm:$0xff] %v16204_v40  ;;  %v16206_v41 = vpop.permute.xlu0 %567  ;;  %v16208_v2 = vpop.permute.xlu1 %301 }
 0x1a7   :  { %1700 = vperm.xlu1 %15325, %v13358_v25   ;;  %1423 = vperm.xlu0 %15324, %v1340_v60   ;;  %v13411_v3 = vpop.f32.mrf.mxu0 }
 0x1a8   :  { %v16233_v51 = vpop.f32.mrf.mxu1 }
 0x1a9   :  { %v16214_v5 = vpop.f32.mrf.mxu0  ;;  %18541 = vst [vmem:[#allocation22_spill] sm:$0xff] %v16233_v51 }
 0x1aa   :  { %v16210_v4 = vpop.permute.xlu1 %582  ;;  %v16212_v44 = vpop.permute.xlu0 %316 }
 0x1ab   :  { %1428 = vperm.xlu1 %15325, %v13305_v58   ;;  %1705 = vperm.xlu0 %15324, %v1622_v36   ;;  %v13414_v9 = vpop.f32.mrf.mxu0  ;;  %v16242_v55 = vpop.f32.mrf.mxu1 }
 0x1ac   :  { %18542 = vst [vmem:[#allocation23_spill] sm:$0xff] %v16242_v55 }
 0x1ad   :  { %v1894_v13 = vpop.f32.mrf.mxu0 }
 0x1ae   :  { %v16216_v6 = vpop.permute.xlu0 %577  ;;  %v16218_v7 = vpop.permute.xlu1 %311 }
 0x1af   :  { %1710 = vperm.xlu1 %15325, %v13361_v31   ;;  %1433 = vperm.xlu0 %15324, %v1350_v0   ;;  %v13417_v15 = vpop.f32.mrf.mxu0 }
 0x1b1   :  { %v1904_v50 = vpop.f32.mrf.mxu0 }
 0x1b2   :  { %v16220_v10 = vpop.permute.xlu0 %592  ;;  %v16222_v11 = vpop.permute.xlu1 %326 }
 0x1b3   :  { %1438 = vperm.xlu1 %15325, %v13308_v62   ;;  %1715 = vperm.xlu0 %15324, %v1632_v42   ;;  %v16235_v52 = vpop.f32.mrf.mxu0  ;;  %v16251_v62 = vpop.f32.mrf.mxu1 }
 0x1b5   :  { %v1914_v56 = vpop.f32.mrf.mxu0  ;;  %v16258_v21 = vpop.f32.mrf.mxu1 }
 0x1b6   :  { %v16224_v14 = vpop.permute.xlu0 %587  ;;  %v16226_v46 = vpop.permute.xlu1 %321  ;;  %18543 = vst [vmem:[#allocation24_spill] sm:$0xff] %v16258_v21 }
 0x1b7   :  { %18539 = vst [vmem:[#allocation20_spill] sm:$0xff] %v16224_v14  ;;  %18540 = vst [vmem:[#allocation21_spill] sm:$0xff] %v16226_v46  ;;  %1720 = vperm.xlu1 %15325, %v13364_v39   ;;  %1443 = vperm.xlu0 %15324, %v1360_v22   ;;  %v16249_v60 = vpop.f32.mrf.mxu0  ;;  %v13470_v29 = vpop.f32.mrf.mxu1 }
 0x1b9   :  { %v2176_v39 = vpop.f32.mrf.mxu1 }
 0x1ba   :  { %v16228_v48 = vpop.permute.xlu1 %602  ;;  %v16230_v16 = vpop.permute.xlu0 %336 }
 0x1bb   :  { %1448 = vperm.xlu1 %15325, %v16172_v18   ;;  %1725 = vperm.xlu0 %15324, %v1642_v45   ;;  %v1924_v18 = vpop.f32.mrf.mxu0 }
 0x1bd   :  { %v16260_v22 = vpop.f32.mrf.mxu0 }
 0x1be   :  { %v16237_v53 = vpop.permute.xlu1 %597  ;;  %v16239_v54 = vpop.permute.xlu0 %331 }
 0x1bf   :  { %1730 = vperm.xlu1 %15325, %v13367_v43   ;;  %1458 = vperm.xlu0 %15324, %v16182_v26  }
 0x1c2   :  { %v16244_v57 = vpop.permute.xlu0 %612  ;;  %v16246_v58 = vpop.permute.xlu1 %346 }
 0x1c3   :  { %1740 = vperm.xlu0 %15324, %v13370_v8   ;;  %1453 = vperm.xlu1 %15325, %v16188_v30   ;;  %v1934_v30 = vpop.f32.mrf.mxu0 }
 0x1c6   :  { %v16253_v63 = vpop.permute.xlu0 %607  ;;  %v16255_v0 = vpop.permute.xlu1 %341 }
 0x1c7   :  { %1735 = vperm.xlu0 %15324, %v1652_v12   ;;  %1468 = vperm.xlu1 %15325, %v16190_v32   ;;  %v16271_v32 = vpop.f32.mrf.mxu0 }
 0x1c9   :  { %v16277_v45 = vpop.f32.mrf.mxu0 }
 0x1ca   :  { %v16262_v25 = vpop.permute.xlu0 %356  ;;  %v16264_v26 = vpop.permute.xlu1 %351 }
 0x1cb   :  { %1750 = vperm.xlu1 %15325, %v13373_v17   ;;  %1463 = vperm.xlu0 %15324, %v16196_v35   ;;  %v13473_v35 = vpop.f32.mrf.mxu1 }
 0x1ce   :  { %v16267_v31 = vpop.permute.xlu0 %622  ;;  %v16269_v36 = vpop.permute.xlu1 %617 }
 0x1cf   :  { %1745 = vperm.xlu1 %15325, %v1662_v47   ;;  %1972 = vperm.xlu0 %15324, %v13411_v3   ;;  %v16283_v17 = vpop.f32.mrf.mxu0  ;;  %v2186_v3 = vpop.f32.mrf.mxu1 }
 0x1d0   :  { %18547 = vst [vmem:[#allocation28_spill] sm:$0xff] %v16283_v17 }
 0x1d2   :  { %v16273_v42 = vpop.permute.xlu1 %834  ;;  %v16275_v43 = vpop.permute.xlu0 %829 }
 0x1d3   :  { %18544 = vst [vmem:[#allocation25_spill] sm:$0xff] %v16273_v42  ;;  %18545 = vst [vmem:[#allocation26_spill] sm:$0xff] %v16275_v43  ;;  %1982 = vperm.xlu1 %15325, %v13414_v9   ;;  %1977 = vperm.xlu0 %15324, %v1894_v13   ;;  %v16289_v9 = vpop.f32.mrf.mxu0  ;;  %v13476_v13 = vpop.f32.mrf.mxu1 }
 0x1d4   :  { %18549 = vst [vmem:[#allocation30_spill] sm:$0xff] %v16289_v9 }
 0x1d6   :  { %v16279_v8 = vpop.permute.xlu1 %1116  ;;  %v16281_v12 = vpop.permute.xlu0 %839 }
 0x1d7   :  { %18546 = vst [vmem:[#allocation27_spill] sm:$0xff] %v16279_v8  ;;  %2264 = vperm.xlu1 %15325, %v13470_v29   ;;  %1987 = vperm.xlu0 %15324, %v1904_v50   ;;  %v16295_v29 = vpop.f32.mrf.mxu0  ;;  %v2196_v50 = vpop.f32.mrf.mxu1 }
 0x1d8   :  { %18550 = vst [vmem:[#allocation31_spill] sm:$0xff] %v16295_v29 }
 0x1da   :  { %v16285_v47 = vpop.permute.xlu1 %1111  ;;  %v16287_v24 = vpop.permute.xlu0 %1121 }
 0x1db   :  { %18548 = vst [vmem:[#allocation29_spill] sm:$0xff] %v16285_v47  ;;  %2259 = vperm.xlu1 %15325, %v2176_v39   ;;  %2269 = vperm.xlu0 %15324, %v2186_v3   ;;  %v16301_v39 = vpop.f32.mrf.mxu0  ;;  %v13479_v3 = vpop.f32.mrf.mxu1 }
 0x1dc   :  { %18551 = vst [vmem:[#allocation32_spill] sm:$0xff] %v16301_v39 }
 0x1de   :  { %v16291_v43 = vpop.permute.xlu1 %844  ;;  %v16293_v42 = vpop.permute.xlu0 %849 }
 0x1df   :  { %1992 = vperm.xlu1 %15325, %v13417_v15   ;;  %1997 = vperm.xlu0 %15324, %v1914_v56   ;;  %v16308_v15 = vpop.f32.mrf.mxu0  ;;  %v2206_v56 = vpop.f32.mrf.mxu1 }
 0x1e2   :  { %v16297_v8 = vpop.permute.xlu1 %1126  ;;  %v16299_v23 = vpop.permute.xlu0 %1131 }
 0x1e3   :  { %2274 = vperm.xlu1 %15325, %v13473_v35   ;;  %2279 = vperm.xlu0 %15324, %v2196_v50   ;;  %v16317_v35 = vld [vmem:[%s18520_s2 + $0x1] ss:$0 sm:$0xff]  ;;  %v16322_v50 = vld [vmem:[%s18520_s2] ss:$0 sm:$0xff] }
 0x1e4   :  { %v372_v9 = vmul.f32 %v16322_v50, %v16212_v44  ;;  %v16342_v44 = vld [vmem:[%s18520_s2 + $0x3] ss:$0 sm:$0xff] }
 0x1e6   :  { %v16303_v47 = vpop.permute.xlu1 %854  ;;  %v16305_v20 = vpop.permute.xlu0 %859 }
 0x1e7   :  { %2002 = vperm.xlu1 %15325, %v16235_v52   ;;  %2007 = vperm.xlu0 %15324, %v1924_v18   ;;  %v16324_v52 = vpop.f32.mrf.mxu0  ;;  %v638_v18 = vmul.f32 %v16317_v35, %v16210_v4 }
 0x1e9   :  { %v13529_v51 = vpop.f32.mrf.mxu0  ;;  %v654_v21 = vadd.f32 %v638_v18, %v372_v9  ;;  %v376_v18 = vmul.f32 %v16322_v50, %v16230_v16 }
 0x1ea   :  { %v16310_v19 = vpop.permute.xlu1 %1136  ;;  %v16312_v17 = vpop.permute.xlu0 %1141 }
 0x1eb   :  { %2284 = vperm.xlu1 %15325, %v13476_v13   ;;  %2289 = vperm.xlu0 %15324, %v2206_v56   ;;  %v13482_v13 = vpop.f32.mrf.mxu1  ;;  %v16333_v56 = vld [vmem:[%s18520_s2 + $0x2] ss:$0 sm:$0xff]  ;;  %v2468_v9 = vpop.f32.mrf.mxu0 }
 0x1ed   :  { %v2216_v4 = vpop.f32.mrf.mxu1 }
 0x1ee   :  { %v865_v39 = vpop.permute.xlu1 %864  ;;  %v16335_v55 = vpop.permute.xlu0 %869 }
 0x1ef   :  { %18552 = vst [vmem:[#allocation33_spill] sm:$0xff] %v16335_v55  ;;  %v920_v40 = vmul.f32 %v16333_v56, %v865_v39  ;;  %2012 = vperm.xlu1 %15325, %v16249_v60   ;;  %2017 = vperm.xlu0 %15324, %v1934_v30   ;;  %v640_v60 = vmul.f32 %v16317_v35, %v16220_v10 }
 0x1f0   :  { %v374_v30 = vmul.f32 %v16322_v50, %v16222_v11  ;;  %v642_v39 = vmul.f32 %v16317_v35, %v16228_v48  ;;  %v13532_v11 = vpop.f32.mrf.mxu0  ;;  %v641_v48 = vmul.f32 %v16317_v35, %v16237_v53 }
 0x1f1   :  { %v936_v1 = vadd.f32 %v920_v40, %v654_v21 }
 0x1f2   :  { %v1147_v29 = vpop.permute.xlu1 %1146  ;;  %v16344_v61 = vpop.permute.xlu0 %1151  ;;  %v656_v10 = vadd.f32 %v640_v60, %v374_v30 }
 0x1f3   :  { %18553 = vst [vmem:[#allocation34_spill] sm:$0xff] %v16344_v61  ;;  %v1202_v46 = vmul.f32 %v16342_v44, %v1147_v29  ;;  %2294 = vperm.xlu1 %15325, %v13479_v3   ;;  %2299 = vperm.xlu0 %15324, %v2216_v4   ;;  %v658_v4 = vadd.f32 %v642_v39, %v376_v18  ;;  %v13485_v61 = vpop.f32.mrf.mxu1 }
 0x1f5   :  { %v16355_v55 = vadd.f32 %v1202_v46, %v936_v1  ;;  %v375_v1 = vmul.f32 %v16322_v50, %v16239_v54  ;;  %v2226_v60 = vpop.f32.mrf.mxu1 }
 0x1f6   :  { %v875_v40 = vpop.permute.xlu1 %874  ;;  %v885_v21 = vpop.permute.xlu0 %884 }
 0x1f7   :  { %18554 = vst [vmem:[#allocation35_spill] sm:$0xff] %v16355_v55  ;;  %v922_v29 = vmul.f32 %v16333_v56, %v875_v40  ;;  %v924_v3 = vmul.f32 %v16333_v56, %v885_v21  ;;  %2022 = vperm.xlu1 %15325, %v16260_v22   ;;  %2032 = vperm.xlu0 %15324, %v16271_v32   ;;  %v2478_v32 = vpop.f32.mrf.mxu0 }
 0x1f8   :  { %v657_v14 = vadd.f32 %v641_v48, %v375_v1 }
 0x1f9   :  { %v938_v46 = vadd.f32 %v922_v29, %v656_v10  ;;  %v940_v40 = vadd.f32 %v924_v3, %v658_v4  ;;  %v13535_v29 = vpop.f32.mrf.mxu0 }
 0x1fa   :  { %v1157_v16 = vpop.permute.xlu1 %1156  ;;  %v1167_v55 = vpop.permute.xlu0 %1166 }
 0x1fb   :  { %v1204_v21 = vmul.f32 %v16342_v44, %v1157_v16  ;;  %v1206_v22 = vmul.f32 %v16342_v44, %v1167_v55  ;;  %2304 = vperm.xlu1 %15325, %v13482_v13   ;;  %2314 = vperm.xlu0 %15324, %v13485_v61   ;;  %v644_v55 = vmul.f32 %v16317_v35, %v16244_v57  ;;  %v2488_v1 = vpop.f32.mrf.mxu0 }
 0x1fc   :  { %v378_v61 = vmul.f32 %v16322_v50, %v16246_v58  ;;  %v377_v57 = vmul.f32 %v16322_v50, %v16255_v0  ;;  %v380_v16 = vmul.f32 %v16322_v50, %v16262_v25 }
 0x1fd   :  { %v16367_v30 = vadd.f32 %v1204_v21, %v938_v46  ;;  %v16369_v39 = vadd.f32 %v1206_v22, %v940_v40 }
 0x1fe   :  { %v1162_v53 = vpop.permute.xlu0 %1161  ;;  %v880_v18 = vpop.permute.xlu1 %879  ;;  %v660_v58 = vadd.f32 %v644_v55, %v378_v61 }
 0x1ff   :  { %v923_v54 = vmul.f32 %v16333_v56, %v880_v18  ;;  %2309 = vperm.xlu0 %15324, %v2226_v60   ;;  %2027 = vperm.xlu1 %15325, %v16277_v45   ;;  %v1205_v13 = vmul.f32 %v16342_v44, %v1162_v53  ;;  %v643_v45 = vmul.f32 %v16317_v35, %v16253_v63  ;;  %v13538_v60 = vpop.f32.mrf.mxu0 }
 0x201   :  { %v939_v3 = vadd.f32 %v923_v54, %v657_v14  ;;  %v646_v14 = vmul.f32 %v16317_v35, %v16267_v31  ;;  %v659_v0 = vadd.f32 %v643_v45, %v377_v57  ;;  %v645_v31 = vmul.f32 %v16317_v35, %v16269_v36 }
 0x202   :  { %v895_v10 = vpop.permute.xlu1 %894  ;;  %v890_v4 = vpop.permute.xlu0 %889  ;;  %v379_v36 = vmul.f32 %v16322_v50, %v16264_v26  ;;  %v16419_v26 = vld [vmem:[%s18520_s2 + $0x4] ss:$0 sm:$0xff] }
 0x203   :  { %v926_v46 = vmul.f32 %v16333_v56, %v895_v10  ;;  %2546 = vperm.xlu0 %15324, %v16308_v15   ;;  %2556 = vperm.xlu1 %15325, %v13529_v51   ;;  %v16380_v48 = vadd.f32 %v1205_v13, %v939_v3  ;;  %v925_v40 = vmul.f32 %v16333_v56, %v890_v4 }
 0x204   :  { %v662_v53 = vadd.f32 %v646_v14, %v380_v16  ;;  %v368_v10 = vmul.f32 %v16322_v50, %v16186_v28  ;;  %v367_v28 = vmul.f32 %v16322_v50, %v16194_v34 }
 0x205   :  { %v942_v21 = vadd.f32 %v926_v46, %v660_v58  ;;  %v941_v25 = vadd.f32 %v925_v40, %v659_v0  ;;  %v661_v58 = vadd.f32 %v645_v31, %v379_v36  ;;  %v369_v0 = vmul.f32 %v16322_v50, %v16208_v2 }
 0x206   :  { %v1177_v15 = vpop.permute.xlu1 %1176  ;;  %v905_v51 = vpop.permute.xlu0 %904 }
 0x207   :  { %v1208_v22 = vmul.f32 %v16342_v44, %v1177_v15  ;;  %v928_v63 = vmul.f32 %v16333_v56, %v905_v51  ;;  %2551 = vperm.xlu0 %15324, %v2468_v9   ;;  %2566 = vperm.xlu1 %15325, %v13532_v11   ;;  %v634_v9 = vmul.f32 %v16317_v35, %v16184_v27  ;;  %v2498_v11 = vpop.f32.mrf.mxu0 }
 0x208   :  { %v633_v27 = vmul.f32 %v16317_v35, %v16192_v33  ;;  %v915_v15 = vmul.f32 %v16333_v56, %v16281_v12  ;;  %v16438_v12 = vld [vmem:[%s18520_s2 + $0x5] ss:$0 sm:$0xff] }
 0x209   :  { %v16393_v18 = vadd.f32 %v1208_v22, %v942_v21  ;;  %v944_v61 = vadd.f32 %v928_v63, %v662_v53  ;;  %v13541_v14 = vpop.f32.mrf.mxu0  ;;  %v650_v16 = vadd.f32 %v634_v9, %v368_v10 }
 0x20a   :  { %v1172_v54 = vpop.permute.xlu1 %1171  ;;  %v1187_v55 = vpop.permute.xlu0 %1186  ;;  %v649_v63 = vadd.f32 %v633_v27, %v367_v28 }
 0x20b   :  { %v1207_v13 = vmul.f32 %v16342_v44, %v1172_v54  ;;  %v1210_v3 = vmul.f32 %v16342_v44, %v1187_v55  ;;  %2561 = vperm.xlu0 %15324, %v2478_v32   ;;  %2576 = vperm.xlu1 %15325, %v13535_v29   ;;  %v916_v32 = vmul.f32 %v16333_v56, %v16291_v43  ;;  %v2508_v31 = vpop.f32.mrf.mxu0 }
 0x20c   :  { %v1198_v43 = vmul.f32 %v16342_v44, %v16297_v8  ;;  %v635_v8 = vmul.f32 %v16317_v35, %v16206_v41  ;;  %v917_v54 = vmul.f32 %v16333_v56, %v16293_v42  ;;  %v1199_v42 = vmul.f32 %v16342_v44, %v16299_v23 }
 0x20d   :  { %v16405_v4 = vadd.f32 %v1207_v13, %v941_v25  ;;  %v16407_v46 = vadd.f32 %v1210_v3, %v944_v61  ;;  %v932_v34 = vadd.f32 %v916_v32, %v650_v16  ;;  %v931_v25 = vadd.f32 %v915_v15, %v649_v63 }
 0x20e   :  { %v1182_v45 = vpop.permute.xlu0 %1181  ;;  %v900_v57 = vpop.permute.xlu1 %899  ;;  %v636_v3 = vmul.f32 %v16317_v35, %v16198_v37  ;;  %v651_v9 = vadd.f32 %v635_v8, %v369_v0  ;;  %v637_v23 = vmul.f32 %v16317_v35, %v16216_v6  ;;  %v919_v16 = vmul.f32 %v16333_v56, %v16305_v20 }
 0x20f   :  { %v927_v29 = vmul.f32 %v16333_v56, %v900_v57  ;;  %2571 = vperm.xlu0 %15324, %v2488_v1   ;;  %2586 = vperm.xlu1 %15325, %v13538_v60   ;;  %v1209_v40 = vmul.f32 %v16342_v44, %v1182_v45  ;;  %v1197_v60 = vmul.f32 %v16342_v44, %v16287_v24 }
 0x210   :  { %v1214_v53 = vadd.f32 %v1198_v43, %v932_v34  ;;  %v370_v24 = vmul.f32 %v16322_v50, %v16200_v38  ;;  %v933_v36 = vadd.f32 %v917_v54, %v651_v9  ;;  %v918_v45 = vmul.f32 %v16333_v56, %v16303_v47  ;;  %v18556_v34 = vld [vmem:[#allocation21_spill] sm:$0xff] }
 0x211   :  { %v943_v1 = vadd.f32 %v927_v29, %v661_v58  ;;  %v371_v29 = vmul.f32 %v16322_v50, %v16218_v7  ;;  %v1200_v47 = vmul.f32 %v16342_v44, %v16310_v19  ;;  %v1201_v19 = vmul.f32 %v16342_v44, %v16312_v17 }
 0x212   :  { %v16426_v33 = vpop.permute.xlu0 %1398  ;;  %v1409_v51 = vpop.permute.xlu1 %1408  ;;  %v652_v38 = vadd.f32 %v636_v3, %v370_v24  ;;  %v1215_v27 = vadd.f32 %v1199_v42, %v933_v36  ;;  %v18561_v42 = vld [vmem:[#allocation31_spill] sm:$0xff]  ;;  %v18562_v36 = vld [vmem:[#allocation24_spill] sm:$0xff] }
 0x213   :  { %v1480_v21 = vmul.f32 %v16419_v26, %v1409_v51  ;;  %2581 = vperm.xlu0 %15324, %v2498_v11   ;;  %2596 = vperm.xlu1 %15325, %v13541_v14   ;;  %v16429_v22 = vadd.f32 %v1209_v40, %v943_v1  ;;  %v1213_v11 = vadd.f32 %v1197_v60, %v931_v25  ;;  %v18555_v51 = vld [vmem:[#allocation20_spill] sm:$0xff]  ;;  %v18559_v25 = vld [vmem:[#allocation33_spill] sm:$0xff] }
 0x214   :  { %v934_v14 = vadd.f32 %v918_v45, %v652_v38  ;;  %v653_v7 = vadd.f32 %v637_v23, %v371_v29  ;;  %v639_v20 = vmul.f32 %v16317_v35, %v18555_v51  ;;  %v921_v54 = vmul.f32 %v16333_v56, %v18559_v25 }
 0x215   :  { %v1496_v41 = vadd.f32 %v1480_v21, %v1214_v53  ;;  %v373_v21 = vmul.f32 %v16322_v50, %v18556_v34  ;;  %v18557_v53 = vld [vmem:[#allocation18_spill] sm:$0xff] }
 0x216   :  { %v1691_v55 = vpop.permute.xlu1 %1690  ;;  %v1404_v61 = vpop.permute.xlu0 %1403  ;;  %v1216_v1 = vadd.f32 %v1200_v47, %v934_v14  ;;  %v935_v63 = vadd.f32 %v919_v16, %v653_v7  ;;  %v18565_v47 = vld [vmem:[#allocation19_spill] sm:$0xff]  ;;  %v18567_v7 = vld [vmem:[#allocation32_spill] sm:$0xff] }
 0x217   :  { %v1762_v13 = vmul.f32 %v16438_v12, %v1691_v55  ;;  %v1479_v2 = vmul.f32 %v16419_v26, %v1404_v61  ;;  %1393 = vperm.xlu1 %15325, %v16166_v49   ;;  %2591 = vperm.xlu0 %15324, %v2508_v31   ;;  %v18558_v31 = vld [vmem:[#allocation13_spill] sm:$0xff]  ;;  %v655_v61 = vadd.f32 %v639_v20, %v373_v21 }
 0x218   :  { %v1217_v17 = vadd.f32 %v1201_v19, %v935_v63  ;;  %v18568_v63 = vld [vmem:[#allocation30_spill] sm:$0xff] }
 0x219   :  { %v16453_v10 = vadd.f32 %v1762_v13, %v1496_v41  ;;  %v1495_v58 = vadd.f32 %v1479_v2, %v1213_v11  ;;  %v18560_v41 = vld [vmem:[#allocation34_spill] sm:$0xff]  ;;  %v937_v45 = vadd.f32 %v921_v54, %v655_v61 }
 0x21a   :  { %v1686_v57 = vpop.permute.xlu1 %1685  ;;  %v1414_v49 = vpop.permute.xlu0 %1413  ;;  %v1203_v13 = vmul.f32 %v16342_v44, %v18560_v41 }
 0x21b   :  { %v1761_v32 = vmul.f32 %v16438_v12, %v1686_v57  ;;  %v1481_v37 = vmul.f32 %v16419_v26, %v1414_v49  ;;  %1967 = vperm.xlu1 %15325, %v16214_v5   ;;  %1680 = vperm.xlu0 %15324, %v16168_v59   ;;  %v18563_v57 = vld [vmem:[#allocation35_spill] sm:$0xff] }
 0x21c   :  { %v1219_v38 = vadd.f32 %v1203_v13, %v937_v45 }
 0x21d   :  { %v16467_v28 = vadd.f32 %v1761_v32, %v1495_v58  ;;  %v1497_v59 = vadd.f32 %v1481_v37, %v1215_v27  ;;  %v18564_v27 = vld [vmem:[#allocation22_spill] sm:$0xff] }
 0x21e   :  { %v1419_v5 = vpop.permute.xlu1 %1418  ;;  %v1696_v43 = vpop.permute.xlu0 %1695 }
 0x21f   :  { %v1482_v40 = vmul.f32 %v16419_v26, %v1419_v5  ;;  %v1763_v6 = vmul.f32 %v16438_v12, %v1696_v43  ;;  %2541 = vperm.xlu1 %15325, %v16324_v52   ;;  %2254 = vperm.xlu0 %15324, %v16251_v62  }
 0x221   :  { %v16477_v15 = vadd.f32 %v1763_v6, %v1497_v59  ;;  %v1498_v60 = vadd.f32 %v1482_v40, %v1216_v1  ;;  %v18566_v6 = vld [vmem:[#allocation23_spill] sm:$0xff] }
 0x222   :  { %v1701_v8 = vpop.permute.xlu1 %1700  ;;  %v1424_v0 = vpop.permute.xlu0 %1423 }
 0x223   :  { %v1764_v52 = vmul.f32 %v16438_v12, %v1701_v8  ;;  %v1483_v62 = vmul.f32 %v16419_v26, %v1424_v0  ;;  %1962 = vperm.xlu1 %15325, %v18557_v53   ;;  %1675 = vperm.xlu0 %15324, %v18558_v31   ;;  %v18569_v8 = vld [vmem:[#allocation28_spill] sm:$0xff] }
 0x225   :  { %v16489_v55 = vadd.f32 %v1764_v52, %v1498_v60  ;;  %v1499_v24 = vadd.f32 %v1483_v62, %v1217_v17 }
 0x226   :  { %v1429_v2 = vpop.permute.xlu1 %1428  ;;  %v1706_v3 = vpop.permute.xlu0 %1705 }
 0x227   :  { %v1484_v9 = vmul.f32 %v16419_v26, %v1429_v2  ;;  %v1765_v11 = vmul.f32 %v16438_v12, %v1706_v3  ;;  %2536 = vperm.xlu1 %15325, %v18561_v42   ;;  %2249 = vperm.xlu0 %15324, %v18562_v36  }
 0x229   :  { %v1500_v49 = vadd.f32 %v1484_v9, %v18563_v57  ;;  %v16498_v58 = vadd.f32 %v1765_v11, %v1499_v24 }
 0x22a   :  { %v1711_v32 = vpop.permute.xlu1 %1710  ;;  %v1434_v37 = vpop.permute.xlu0 %1433 }
 0x22b   :  { %v1766_v23 = vmul.f32 %v16438_v12, %v1711_v32  ;;  %v1485_v29 = vmul.f32 %v16419_v26, %v1434_v37  ;;  %2244 = vperm.xlu1 %15325, %v18564_v27   ;;  %1957 = vperm.xlu0 %15324, %v18565_v47  }
 0x22d   :  { %v16504_v14 = vadd.f32 %v1766_v23, %v1500_v49  ;;  %v1501_v16 = vadd.f32 %v1485_v29, %v1219_v38 }
 0x22e   :  { %v1439_v5 = vpop.permute.xlu1 %1438  ;;  %v1716_v43 = vpop.permute.xlu0 %1715 }
 0x22f   :  { %v1486_v59 = vmul.f32 %v16419_v26, %v1439_v5  ;;  %v1767_v40 = vmul.f32 %v16438_v12, %v1716_v43  ;;  %2239 = vperm.xlu1 %15325, %v18566_v6   ;;  %2531 = vperm.xlu0 %15324, %v18567_v7  }
 0x231   :  { %v1502_v1 = vadd.f32 %v1486_v59, %v16367_v30  ;;  %v16511_v19 = vadd.f32 %v1767_v40, %v1501_v16 }
 0x232   :  { %v1721_v51 = vpop.permute.xlu1 %1720  ;;  %v1444_v20 = vpop.permute.xlu0 %1443 }
 0x233   :  { %v1768_v34 = vmul.f32 %v16438_v12, %v1721_v51  ;;  %v1487_v21 = vmul.f32 %v16419_v26, %v1444_v20  ;;  %2521 = vperm.xlu1 %15325, %v18568_v63   ;;  %2526 = vperm.xlu0 %15324, %v18569_v8  }
 0x235   :  { %v16517_v0 = vadd.f32 %v1768_v34, %v1502_v1  ;;  %v1503_v60 = vadd.f32 %v1487_v21, %v16380_v48 }
 0x236   :  { %v1449_v52 = vpop.permute.xlu1 %1448  ;;  %v1726_v62 = vpop.permute.xlu0 %1725 }
 0x237   :  { %v1488_v30 = vmul.f32 %v16419_v26, %v1449_v52  ;;  %v1769_v53 = vmul.f32 %v16438_v12, %v1726_v62 }
 0x239   :  { %v1504_v31 = vadd.f32 %v1488_v30, %v16369_v39  ;;  %v16523_v17 = vadd.f32 %v1769_v53, %v1503_v60 }
 0x23a   :  { %v1731_v25 = vpop.permute.xlu1 %1730  ;;  %v1459_v54 = vpop.permute.xlu0 %1458 }
 0x23b   :  { %v1770_v61 = vmul.f32 %v16438_v12, %v1731_v25  ;;  %v1490_v41 = vmul.f32 %v16419_v26, %v1459_v54 }
 0x23d   :  { %v16527_v13 = vadd.f32 %v1770_v61, %v1504_v31  ;;  %v1506_v48 = vadd.f32 %v1490_v41, %v16393_v18 }
 0x23e   :  { %v1741_v2 = vpop.permute.xlu0 %1740  ;;  %v1454_v3 = vpop.permute.xlu1 %1453 }
 0x23f   :  { %v1772_v24 = vmul.f32 %v16438_v12, %v1741_v2  ;;  %v1489_v9 = vmul.f32 %v16419_v26, %v1454_v3 }
 0x241   :  { %v16532_v11 = vadd.f32 %v1772_v24, %v1506_v48  ;;  %v1505_v39 = vadd.f32 %v1489_v9, %v16405_v4  ;;  %v16545_v4 = vld [vmem:[%s18520_s2 + $0x6] ss:$0 sm:$0xff] }
 0x242   :  { %v1736_v42 = vpop.permute.xlu0 %1735  ;;  %v1469_v36 = vpop.permute.xlu1 %1468 }
 0x243   :  { %v1771_v45 = vmul.f32 %v16438_v12, %v1736_v42  ;;  %v1492_v57 = vmul.f32 %v16419_v26, %v1469_v36 }
 0x245   :  { %v16537_v49 = vadd.f32 %v1771_v45, %v1505_v39  ;;  %v1508_v18 = vadd.f32 %v1492_v57, %v16407_v46 }
 0x246   :  { %v1751_v32 = vpop.permute.xlu1 %1750  ;;  %v1464_v37 = vpop.permute.xlu0 %1463 }
 0x247   :  { %v1774_v38 = vmul.f32 %v16438_v12, %v1751_v32  ;;  %v1491_v23 = vmul.f32 %v16419_v26, %v1464_v37 }
 0x249   :  { %v16547_v29 = vadd.f32 %v1774_v38, %v1508_v18  ;;  %v1507_v27 = vadd.f32 %v1491_v23, %v16429_v22  ;;  %v16560_v22 = vld [vmem:[%s18520_s2 + $0x7] ss:$0 sm:$0xff] }
 0x24a   :  { %v1746_v47 = vpop.permute.xlu1 %1745  ;;  %v1973_v16 = vpop.permute.xlu0 %1972 }
 0x24b   :  { %v1773_v5 = vmul.f32 %v16438_v12, %v1746_v47  ;;  %v2044_v46 = vmul.f32 %v16545_v4, %v1973_v16 }
 0x24d   :  { %v1789_v43 = vadd.f32 %v1773_v5, %v1507_v27  ;;  %v16553_v59 = vadd.f32 %v2044_v46, %v16453_v10 }
 0x24e   :  { %v1983_v40 = vpop.permute.xlu1 %1982  ;;  %v1978_v6 = vpop.permute.xlu0 %1977 }
 0x24f   :  { %v2046_v7 = vmul.f32 %v16545_v4, %v1983_v40  ;;  %v2045_v1 = vmul.f32 %v16545_v4, %v1978_v6 }
 0x251   :  { %v2062_v51 = vadd.f32 %v2046_v7, %v16489_v55  ;;  %v2061_v20 = vadd.f32 %v2045_v1, %v16477_v15 }
 0x252   :  { %v2265_v34 = vpop.permute.xlu1 %2264  ;;  %v1988_v21 = vpop.permute.xlu0 %1987 }
 0x253   :  { %v2328_v10 = vmul.f32 %v16560_v22, %v2265_v34  ;;  %v2047_v63 = vmul.f32 %v16545_v4, %v1988_v21 }
 0x255   :  { %v16566_v8 = vadd.f32 %v2328_v10, %v2062_v51  ;;  %v2063_v60 = vadd.f32 %v2047_v63, %v16498_v58 }
 0x256   :  { %v2260_v52 = vpop.permute.xlu1 %2259  ;;  %v2270_v62 = vpop.permute.xlu0 %2269 }
 0x257   :  { %v2327_v30 = vmul.f32 %v16560_v22, %v2260_v52  ;;  %v2329_v53 = vmul.f32 %v16560_v22, %v2270_v62 }
 0x259   :  { %v16571_v31 = vadd.f32 %v2327_v30, %v2061_v20  ;;  %v16573_v55 = vadd.f32 %v2329_v53, %v2063_v60  ;;  %v16606_v53 = vld [vmem:[%s18520_s2 + $0x8] ss:$0 sm:$0xff] }
 0x25a   :  { %v1993_v15 = vpop.permute.xlu1 %1992  ;;  %v1998_v25 = vpop.permute.xlu0 %1997 }
 0x25b   :  { %v2048_v54 = vmul.f32 %v16545_v4, %v1993_v15  ;;  %v2049_v61 = vmul.f32 %v16545_v4, %v1998_v25 }
 0x25d   :  { %v2064_v41 = vadd.f32 %v2048_v54, %v16504_v14  ;;  %v16579_v58 = vadd.f32 %v2049_v61, %v16511_v19 }
 0x25e   :  { %v2275_v48 = vpop.permute.xlu1 %2274  ;;  %v16581_v2 = vpop.permute.xlu0 %2279 }
 0x25f   :  { %v2330_v3 = vmul.f32 %v16560_v22, %v2275_v48 }
 0x261   :  { %v16584_v24 = vadd.f32 %v2330_v3, %v2064_v41 }
 0x262   :  { %v2003_v9 = vpop.permute.xlu1 %2002  ;;  %v2008_v39 = vpop.permute.xlu0 %2007 }
 0x263   :  { %v2051_v48 = vmul.f32 %v16545_v4, %v2008_v39  ;;  %v16622_v39 = vld [vmem:[%s18521_s3] ss:$0 sm:$0xff] }
 0x266   :  { %v2285_v42 = vpop.permute.xlu1 %2284  ;;  %v2290_v36 = vpop.permute.xlu0 %2289 }
 0x26a   :  { %v2013_v45 = vpop.permute.xlu1 %2012  ;;  %v2018_v57 = vpop.permute.xlu0 %2017 }
 0x26b   :  { %v2053_v10 = vmul.f32 %v16545_v4, %v2018_v57  ;;  %v2052_v52 = vmul.f32 %v16545_v4, %v2013_v45  ;;  %v2050_v57 = vmul.f32 %v16545_v4, %v2003_v9 }
 0x26d   :  { %v2069_v3 = vadd.f32 %v2053_v10, %v16537_v49 }
 0x26e   :  { %v2295_v18 = vpop.permute.xlu1 %2294  ;;  %v2300_v32 = vpop.permute.xlu0 %2299 }
 0x26f   :  { %v2335_v62 = vmul.f32 %v16560_v22, %v2300_v32 }
 0x272   :  { %v2023_v37 = vpop.permute.xlu1 %2022  ;;  %v2033_v14 = vpop.permute.xlu0 %2032 }
 0x273   :  { %v2056_v7 = vmul.f32 %v16545_v4, %v2033_v14  ;;  %v2054_v34 = vmul.f32 %v16545_v4, %v2023_v37 }
 0x275   :  { %v2072_v63 = vadd.f32 %v2056_v7, %v16547_v29  ;;  %v2070_v54 = vadd.f32 %v2054_v34, %v16532_v11  ;;  %v2333_v11 = vmul.f32 %v16560_v22, %v2290_v36  ;;  %v2067_v36 = vadd.f32 %v2051_v48, %v16523_v17 }
 0x276   :  { %v2305_v38 = vpop.permute.xlu1 %2304  ;;  %v2315_v19 = vpop.permute.xlu0 %2314 }
 0x277   :  { %v2338_v21 = vmul.f32 %v16560_v22, %v2315_v19  ;;  %v2336_v60 = vmul.f32 %v16560_v22, %v2305_v38  ;;  %v2068_v38 = vadd.f32 %v2052_v52, %v16527_v13  ;;  %v2351_v19 = vadd.f32 %v2335_v62, %v2069_v3  ;;  %v18572_v3 = vld [vmem:[#allocation16_spill] sm:$0xff] }
 0x278   :  { %v2332_v13 = vmul.f32 %v16560_v22, %v2285_v42  ;;  %v2349_v52 = vadd.f32 %v2333_v11, %v2067_v36  ;;  %v18576_v36 = vld [vmem:[#allocation27_spill] sm:$0xff] }
 0x279   :  { %v2354_v61 = vadd.f32 %v2338_v21, %v2072_v63  ;;  %v2352_v32 = vadd.f32 %v2336_v60, %v2070_v54  ;;  %v2331_v60 = vmul.f32 %v16560_v22, %v16581_v2 }
 0x27a   :  { %v2310_v23 = vpop.permute.xlu0 %2309  ;;  %v2028_v27 = vpop.permute.xlu1 %2027 }
 0x27b   :  { %v2055_v1 = vmul.f32 %v16545_v4, %v2028_v27  ;;  %v2337_v45 = vmul.f32 %v16560_v22, %v2310_v23 }
 0x27d   :  { %v2071_v30 = vadd.f32 %v2055_v1, %v1789_v43  ;;  %v2334_v43 = vmul.f32 %v16560_v22, %v2295_v18 }
 0x27e   :  { %v16586_v47 = vpop.permute.xlu0 %2546  ;;  %v16588_v16 = vpop.permute.xlu1 %2556 }
 0x27f   :  { %v2353_v18 = vadd.f32 %v2337_v45, %v2071_v30  ;;  %v18573_v45 = vld [vmem:[#allocation17_spill] sm:$0xff] }
 0x282   :  { %v16590_v5 = vpop.permute.xlu0 %2551  ;;  %v2567_v46 = vpop.permute.xlu1 %2566 }
 0x283   :  { %v2614_v62 = vmul.f32 %v16606_v53, %v2567_v46 }
 0x286   :  { %v16592_v40 = vpop.permute.xlu0 %2561  ;;  %v2577_v6 = vpop.permute.xlu1 %2576 }
 0x287   :  { %v2616_v9 = vmul.f32 %v16606_v53, %v2577_v6  ;;  %v2066_v6 = vadd.f32 %v2050_v57, %v16517_v0  ;;  %v18571_v0 = vld [vmem:[#allocation15_spill] sm:$0xff]  ;;  %v365_v57 = vmul.f32 %v16322_v50, %v18573_v45 }
 0x288   :  { %v366_v54 = vmul.f32 %v16322_v50, %v18571_v0 }
 0x289   :  { %v2348_v46 = vadd.f32 %v2332_v13, %v2066_v6 }
 0x28a   :  { %v2572_v51 = vpop.permute.xlu0 %2571  ;;  %v2587_v20 = vpop.permute.xlu1 %2586 }
 0x28b   :  { %v2618_v41 = vmul.f32 %v16606_v53, %v2587_v20  ;;  %v2350_v20 = vadd.f32 %v2334_v43, %v2068_v38  ;;  %v2615_v34 = vmul.f32 %v16606_v53, %v2572_v51  ;;  %v631_v43 = vmul.f32 %v16317_v35, %v18572_v3 }
 0x28d   :  { %v2634_v27 = vadd.f32 %v2618_v41, %v2352_v32  ;;  %v2632_v42 = vadd.f32 %v2616_v9, %v2350_v20  ;;  %v2631_v41 = vadd.f32 %v2615_v34, %v2349_v52  ;;  %v18574_v32 = vld [vmem:[#allocation25_spill] sm:$0xff] }
 0x28e   :  { %v2582_v15 = vpop.permute.xlu0 %2581  ;;  %v2597_v25 = vpop.permute.xlu1 %2596  ;;  %v18577_v52 = vld [vmem:[#allocation29_spill] sm:$0xff] }
 0x28f   :  { %v2620_v29 = vmul.f32 %v16606_v53, %v2597_v25  ;;  %v2617_v37 = vmul.f32 %v16606_v53, %v2582_v15  ;;  %v2657_v15 = vadd.f32 %v16622_v39, %v2634_v27  ;;  %v18570_v25 = vld [vmem:[#allocation14_spill] sm:$0xff]  ;;  %v2654_v27 = vadd.f32 %v16622_v39, %v2631_v41 }
 0x290   :  { %v632_v2 = vmul.f32 %v16317_v35, %v18570_v25  ;;  %v18575_v35 = vld [vmem:[#allocation26_spill] sm:$0xff] }
 0x291   :  { %v2636_v14 = vadd.f32 %v2620_v29, %v2354_v61  ;;  %v2633_v21 = vadd.f32 %v2617_v37, %v2351_v19  ;;  %v2613_v61 = vmul.f32 %v16606_v53, %v16592_v40  ;;  %v914_v37 = vmul.f32 %v16333_v56, %v18574_v32 }
 0x292   :  { %v16624_v49 = vpop.permute.xlu1 %1393  ;;  %v2592_v23 = vpop.permute.xlu0 %2591  ;;  %v2612_v40 = vmul.f32 %v16606_v53, %v16588_v16  ;;  %v2630_v19 = vadd.f32 %v2614_v62, %v2348_v46  ;;  %v913_v50 = vmul.f32 %v16333_v56, %v18575_v35  ;;  %v648_v16 = vadd.f32 %v632_v2, %v366_v54 }
 0x293   :  { %v2659_v7 = vadd.f32 %v16622_v39, %v2636_v14  ;;  %v2619_v1 = vmul.f32 %v16606_v53, %v2592_v23  ;;  %v2656_v29 = vadd.f32 %v16622_v39, %v2633_v21  ;;  %v2347_v14 = vadd.f32 %v2331_v60, %v16579_v58 }
 0x294   :  { %v16667_v23 = vmax.f32 %v2657_v15, 0.0  ;;  %v2611_v58 = vmul.f32 %v16606_v53, %v16590_v5  ;;  %v1196_v56 = vmul.f32 %v16342_v44, %v18576_v36  ;;  %v2610_v5 = vmul.f32 %v16606_v53, %v16586_v47 }
 0x295   :  { %v16632_v10 = vmax.f32 %v2659_v7, 0.0  ;;  %v2635_v63 = vadd.f32 %v2619_v1, %v2353_v18  ;;  %v2655_v18 = vadd.f32 %v16622_v39, %v2632_v42  ;;  %v2629_v9 = vadd.f32 %v2613_v61, %v2347_v14 }
 0x296   :  { %v16638_v30 = vpop.permute.xlu1 %1967  ;;  %v16640_v17 = vpop.permute.xlu0 %1680  ;;  %v16678_v7 = vmax.f32 %v2656_v29, 0.0  ;;  %v647_v1 = vadd.f32 %v631_v43, %v365_v57  ;;  %v930_v34 = vadd.f32 %v914_v37, %v648_v16  ;;  %v2628_v21 = vadd.f32 %v2612_v40, %v16584_v24 }
 0x297   :  { %v2658_v51 = vadd.f32 %v16622_v39, %v2635_v63  ;;  %13542 = vmatprep.subr.mxu1 %v16632_v10  ;;  %13598 = vmatprep.subr.mxu0 %v16632_v10  ;;  %v2653_v63 = vadd.f32 %v16622_v39, %v2630_v19  ;;  %v16690_v60 = vmax.f32 %v2655_v18, 0.0  ;;  %v1195_v47 = vmul.f32 %v16342_v44, %v18577_v52 }
 0x298   :  { %13543 = vmatpush3.msra.mxu1 %v16632_v10  ;;  %13599 = vmatpush3.msra.mxu0 %v16632_v10  ;;  %v929_v6 = vadd.f32 %v913_v50, %v647_v1  ;;  %v2627_v62 = vadd.f32 %v2611_v58, %v16573_v55  ;;  %v2652_v24 = vadd.f32 %v16622_v39, %v2629_v9  ;;  %v16700_v42 = vmax.f32 %v2654_v27, 0.0 }
 0x299   :  { %v16655_v48 = vmax.f32 %v2658_v51, 0.0  ;;  %v1212_v25 = vadd.f32 %v1196_v56, %v930_v34  ;;  %v1478_v44 = vmul.f32 %v16419_v26, %v16426_v33  ;;  %v2626_v55 = vadd.f32 %v2610_v5, %v16566_v8 }
 0x29a   :  { %v2542_v11 = vpop.permute.xlu1 %2541  ;;  %v2255_v38 = vpop.permute.xlu0 %2254  ;;  %v2651_v54 = vadd.f32 %v16622_v39, %v2628_v21  ;;  %v16712_v46 = vmax.f32 %v2653_v63, 0.0  ;;  %v1477_v61 = vmul.f32 %v16419_v26, %v16624_v49  ;;  %v1211_v33 = vadd.f32 %v1195_v47, %v929_v6 }
 0x29b   :  { %13544 = vmatprep.subr.mxu1 %v16655_v48  ;;  %13600 = vmatprep.subr.mxu0 %v16655_v48  ;;  %v2609_v15 = vmul.f32 %v16606_v53, %v2542_v11  ;;  %v2326_v51 = vmul.f32 %v16560_v22, %v2255_v38  ;;  %v2650_v8 = vadd.f32 %v16622_v39, %v2627_v62  ;;  %v16724_v3 = vmax.f32 %v2652_v24, 0.0 }
 0x29c   :  { %13545 = vmatpush3.msra.mxu1 %v16655_v48  ;;  %13601 = vmatpush3.msra.mxu0 %v16655_v48  ;;  %v2043_v29 = vmul.f32 %v16545_v4, %v16638_v30  ;;  %v1760_v26 = vmul.f32 %v16438_v12, %v16640_v17  ;;  %v1494_v45 = vadd.f32 %v1478_v44, %v1212_v25 }
 0x29d   :  { %13546 = vmatprep.subr.mxu1 %v16667_v23  ;;  %13602 = vmatprep.subr.mxu0 %v16667_v23  ;;  %v2625_v49 = vadd.f32 %v2609_v15, %v16571_v31  ;;  %v2342_v43 = vadd.f32 %v2326_v51, %v16553_v59  ;;  %v2649_v17 = vadd.f32 %v16622_v39, %v2626_v55  ;;  %v16737_v31 = vmax.f32 %v2651_v54, 0.0  ;;  %v15327_v55 = vld [vmem:[#allocation3 + $0x8] sm:$0xff]  ;;  %v15329_v54 = vld [vmem:[#allocation3 + $0x10] sm:$0xff] }
 0x29e   :  { %v1963_v13 = vpop.permute.xlu1 %1962  ;;  %13547 = vmatpush3.msra.mxu1 %v16667_v23  ;;  %13603 = vmatpush3.msra.mxu0 %v16667_v23  ;;  %v1676_v20 = vpop.permute.xlu0 %1675  ;;  %v1493_v59 = vadd.f32 %v1477_v61, %v1211_v33  ;;  %v16746_v40 = vmax.f32 %v2650_v8, 0.0  ;;  %v1776_v19 = vadd.f32 %v1760_v26, %v1494_v45  ;;  %v15330_v61 = vld [vmem:[#allocation3 + $0x90] sm:$0xff]  ;;  %v15332_v33 = vld [vmem:[#allocation3 + $0x18] sm:$0xff]  ;;  %v15333_v8 = vld [vmem:[#allocation3 + $0x20] sm:$0xff] }
 0x29f   :  { %13548 = vmatprep.subr.mxu1 %v16678_v7  ;;  %13604 = vmatprep.subr.mxu0 %v16678_v7  ;;  %v1759_v30 = vmul.f32 %v16438_v12, %v1676_v20  ;;  %v2059_v12 = vadd.f32 %v2043_v29, %v16467_v28  ;;  %v2042_v11 = vmul.f32 %v16545_v4, %v1963_v13  ;;  %v16754_v16 = vmax.f32 %v2649_v17, 0.0  ;;  %v15334_v29 = vld [vmem:[#allocation3 + $0xa0] sm:$0xff]  ;;  %v15335_v26 = vld [vmem:[#allocation3 + $0xa8] sm:$0xff]  ;;  %v15338_v45 = vld [vmem:[#allocation3 + $0x30] sm:$0xff] }
 0x2a0   :  { %13549 = vmatpush3.msra.mxu1 %v16678_v7  ;;  %13605 = vmatpush3.msra.mxu0 %v16678_v7  ;;  %v2648_v18 = vadd.f32 %v16622_v39, %v2625_v49  ;;  %v15336_v49 = vld [vmem:[#allocation3 + $0x28] sm:$0xff] }
 0x2a1   :  { %13550 = vmatprep.subr.mxu1 %v16690_v60  ;;  %13606 = vmatprep.subr.mxu0 %v16690_v60  ;;  %v1775_v35 = vadd.f32 %v1759_v30, %v1493_v59  ;;  %v2058_v36 = vadd.f32 %v2042_v11, %v1776_v19  ;;  %v15339_v30 = vld [vmem:[#allocation3 + $0xb8] sm:$0xff]  ;;  %v15343_v17 = vld [vmem:[#allocation3 + $0xc8] sm:$0xff]  ;;  %v15349_v19 = vld [vmem:[#allocation3 + $0xe0] sm:$0xff] }
 0x2a2   :  { %v2537_v2 = vpop.permute.xlu1 %2536  ;;  %13551 = vmatpush3.msra.mxu1 %v16690_v60  ;;  %13607 = vmatpush3.msra.mxu0 %v16690_v60  ;;  %v2250_v0 = vpop.permute.xlu0 %2249  ;;  %v16763_v5 = vmax.f32 %v2648_v18, 0.0  ;;  %v15344_v59 = vld [vmem:[#allocation3 + $0x48] sm:$0xff]  ;;  %v15347_v11 = vld [vmem:[#allocation3 + $0xd8] sm:$0xff]  ;;  %v15350_v18 = vld [vmem:[#allocation3 + $0x60] sm:$0xff] }
 0x2a3   :  { %v2608_v41 = vmul.f32 %v16606_v53, %v2537_v2  ;;  %13552 = vmatprep.subr.mxu1 %v16700_v42  ;;  %13608 = vmatprep.subr.mxu0 %v16700_v42  ;;  %v2325_v57 = vmul.f32 %v16560_v22, %v2250_v0  ;;  %v15328_v2 = vld [vmem:[#allocation3 + $0x88] sm:$0xff] }
 0x2a4   :  { %13553 = vmatpush3.msra.mxu1 %v16700_v42  ;;  %13609 = vmatpush3.msra.mxu0 %v16700_v42  ;;  %v11381_v0 = vld [vmem:[%s18522_s4 + $0x10] sm:$0xff] }
 0x2a5   :  { %13554 = vmatprep.subr.mxu1 %v16712_v46  ;;  %13610 = vmatprep.subr.mxu0 %v16712_v46  ;;  %v2624_v14 = vadd.f32 %v2608_v41, %v2342_v43  ;;  %v2341_v50 = vadd.f32 %v2325_v57, %v2059_v12  ;;  %v15331_v41 = vld [vmem:[#allocation3 + $0x98] sm:$0xff]  ;;  %v15337_v43 = vld [vmem:[#allocation3 + $0xb0] sm:$0xff] }
 0x2a6   :  { %v2245_v32 = vpop.permute.xlu1 %2244  ;;  %13555 = vmatpush3.msra.mxu1 %v16712_v46  ;;  %13611 = vmatpush3.msra.mxu0 %v16712_v46  ;;  %v1958_v37 = vpop.permute.xlu0 %1957  ;;  %v15340_v57 = vld [vmem:[#allocation3 + $0x38] sm:$0xff]  ;;  %v15346_v12 = vld [vmem:[#allocation3 + $0x50] sm:$0xff] }
 0x2a7   :  { %13556 = vmatprep.subr.mxu1 %v16724_v3  ;;  %13612 = vmatprep.subr.mxu0 %v16724_v3  ;;  %v2041_v38 = vmul.f32 %v16545_v4, %v1958_v37  ;;  %v2324_v28 = vmul.f32 %v16560_v22, %v2245_v32  ;;  %v2647_v9 = vadd.f32 %v16622_v39, %v2624_v14  ;;  %v15341_v32 = vld [vmem:[#allocation3 + $0xc0] sm:$0xff]  ;;  %v15345_v14 = vld [vmem:[#allocation3 + $0xd0] sm:$0xff] }
 0x2a8   :  { %13557 = vmatpush3.msra.mxu1 %v16724_v3  ;;  %13613 = vmatpush3.msra.mxu0 %v16724_v3  ;;  %v15342_v37 = vld [vmem:[#allocation3 + $0x40] sm:$0xff] }
 0x2a9   :  { %13558 = vmatprep.subr.mxu1 %v16737_v31  ;;  %13614 = vmatprep.subr.mxu0 %v16737_v31  ;;  %v2057_v56 = vadd.f32 %v2041_v38, %v1775_v35  ;;  %v16769_v63 = vmax.f32 %v2647_v9, 0.0  ;;  %v15348_v38 = vld [vmem:[#allocation3 + $0x58] sm:$0xff]  ;;  %v15351_v35 = vld [vmem:[#allocation3 + $0xe8] sm:$0xff] }
 0x2aa   :  { %v2240_v58 = vpop.permute.xlu1 %2239  ;;  %13559 = vmatpush3.msra.mxu1 %v16737_v31  ;;  %13615 = vmatpush3.msra.mxu0 %v16737_v31  ;;  %v2532_v4 = vpop.permute.xlu0 %2531  ;;  %v15356_v9 = vld [vmem:[#allocation3 + $0x78] sm:$0xff] }
 0x2ab   :  { %v2323_v27 = vmul.f32 %v16560_v22, %v2240_v58  ;;  %v2607_v1 = vmul.f32 %v16606_v53, %v2532_v4  ;;  %13560 = vmatprep.subr.mxu1 %v16746_v40  ;;  %13616 = vmatprep.subr.mxu0 %v16746_v40  ;;  %v2340_v22 = vadd.f32 %v2324_v28, %v2058_v36  ;;  %v15353_v28 = vld [vmem:[#allocation3 + $0xf0] sm:$0xff]  ;;  %v15355_v4 = vld [vmem:[#allocation3 + $0xf8] sm:$0xff] }
 0x2ac   :  { %13561 = vmatpush3.msra.mxu1 %v16746_v40  ;;  %13617 = vmatpush3.msra.mxu0 %v16746_v40  ;;  %v15354_v58 = vld [vmem:[#allocation3 + $0x70] sm:$0xff] }
 0x2ad   :  { %v2623_v13 = vadd.f32 %v2607_v1, %v2341_v50  ;;  %13562 = vmatprep.subr.mxu1 %v16754_v16  ;;  %13618 = vmatprep.subr.mxu0 %v16754_v16  ;;  %v2339_v20 = vadd.f32 %v2323_v27, %v2057_v56  ;;  %v15352_v50 = vld [vmem:[#allocation3 + $0x68] sm:$0xff]  ;;  %v2821_v1 = vld [vmem:[%s18522_s4] sm:$0xff] }
 0x2ae   :  { %v2522_v34 = vpop.permute.xlu1 %2521  ;;  %13563 = vmatpush3.msra.mxu1 %v16754_v16  ;;  %13619 = vmatpush3.msra.mxu0 %v16754_v16  ;;  %v2527_v21 = vpop.permute.xlu0 %2526  ;;  %v2822_v27 = vld [vmem:[%s18522_s4 + $0x8] sm:$0xff] }
 0x2af   :  { %v2646_v6 = vadd.f32 %v16622_v39, %v2623_v13  ;;  %v2605_v52 = vmul.f32 %v16606_v53, %v2522_v34  ;;  %v2606_v47 = vmul.f32 %v16606_v53, %v2527_v21  ;;  %13564 = vmatprep.subr.mxu1 %v16763_v5  ;;  %13620 = vmatprep.subr.mxu0 %v16763_v5 }
 0x2b0   :  { %13565 = vmatpush3.msra.mxu1 %v16763_v5  ;;  %13621 = vmatpush3.msra.mxu0 %v16763_v5 }
 0x2b1   :  { %v16778_v62 = vmax.f32 %v2646_v6, 0.0  ;;  %v2621_v24 = vadd.f32 %v2605_v52, %v2339_v20  ;;  %v2622_v15 = vadd.f32 %v2606_v47, %v2340_v22  ;;  %13566 = vmatprep.subr.mxu1 %v16769_v63  ;;  %13622 = vmatprep.subr.mxu0 %v16769_v63 }
 0x2b2   :  { %13567 = vmatpush3.msra.mxu1 %v16769_v63  ;;  %13623 = vmatpush3.msra.mxu0 %v16769_v63 }
 0x2b3   :  { %v2644_v53 = vadd.f32 %v16622_v39, %v2621_v24  ;;  %v2645_v51 = vadd.f32 %v16622_v39, %v2622_v15  ;;  %13568 = vmatprep.subr.mxu1 %v16778_v62  ;;  %13624 = vmatprep.subr.mxu0 %v16778_v62  ;;  %v11382_v39 = vld [vmem:[%s18522_s4 + $0x18] sm:$0xff] }
 0x2b4   :  { %13569 = vmatpush3.msra.mxu1 %v16778_v62  ;;  %13625 = vmatpush3.msra.mxu0 %v16778_v62 }
 0x2b5   :  { %v16790_v25 = vmax.f32 %v2645_v51, 0.0  ;;  %v16792_v44 = vmax.f32 %v2644_v53, 0.0 }
 0x2b7   :  { %13570 = vmatprep.subr.mxu1 %v16790_v25  ;;  %13626 = vmatprep.subr.mxu0 %v16790_v25 }
 0x2b8   :  { %13571 = vmatpush3.msra.mxu1 %v16790_v25  ;;  %13627 = vmatpush3.msra.mxu0 %v16790_v25 }
 0x2b9   :  { %13572 = vmatprep.subr.mxu1 %v16792_v44  ;;  %13628 = vmatprep.subr.mxu0 %v16792_v44 }
 0x2ba   :  { %13573 = vmatpush3.msra.mxu1 %v16792_v44  ;;  %13629 = vmatpush3.msra.mxu0 %v16792_v44 }
 0x2bb   :  { %13575 = vmatmul.mubr.f32.vlgmr.msra.gmra.mxu1 %v15327_v55  ;;  %13631 = vmatmul.mubr.f32.vlgmr.msra.gmra.mxu0 %v15328_v2 }
 0x2bc   :  { %13654 = vmatprep.subr.mxu1 %v11382_v39  ;;  %13577 = vmatprep.mubr.f32.mxu1 %v15329_v54 }
 0x2bd   :  { %13655 = vmatpush3.msra.mxu1 %v11382_v39  ;;  %13633 = vmatprep.mubr.f32.mxu0 %v15330_v61 }
 0x2be   :  { %13656 = vmatprep.subr.mxu1 %v11381_v0  ;;  %13682 = vmatprep.subr.mxu0 %v2822_v27 }
 0x2bf   :  { %13657 = vmatpush3.msra.mxu1 %v11381_v0  ;;  %13634 = vmatmul.mubr.f32.gmra.mxu0 %v15331_v41 }
 0x2c0   :  { %13578 = vmatmul.mubr.f32.gmra.mxu1 %v15332_v33  ;;  %13710 = vmatprep.subr.mxu1 %v16632_v10 }
 0x2c1   :  { %13580 = vmatprep.mubr.f32.mxu1 %v15333_v8  ;;  %13636 = vmatprep.mubr.f32.mxu0 %v15334_v29 }
 0x2c2   :  { %13683 = vmatpush3.msra.mxu0 %v2822_v27  ;;  %v15371_v27 = vld [vmem:[#allocation3 + $0x170] sm:$0xff] }
 0x2c3   :  { %13637 = vmatmul.mubr.f32.gmra.mxu0 %v15335_v26  ;;  %13684 = vmatprep.subr.mxu0 %v2821_v1 }
 0x2c4   :  { %13581 = vmatmul.mubr.f32.gmra.mxu1 %v15336_v49  ;;  %13639 = vmatprep.mubr.f32.mxu0 %v15337_v43 }
 0x2c5   :  { %13583 = vmatprep.mubr.f32.mxu1 %v15338_v45  ;;  %13685 = vmatpush3.msra.mxu0 %v2821_v1  ;;  %v15372_v1 = vld [vmem:[#allocation3 + $0x178] sm:$0xff] }
 0x2c7   :  { %13640 = vmatmul.mubr.f32.gmra.mxu0 %v15339_v30 }
 0x2c8   :  { %13584 = vmatmul.mubr.f32.gmra.mxu1 %v15340_v57  ;;  %13642 = vmatprep.mubr.f32.mxu0 %v15341_v32 }
 0x2c9   :  { %13586 = vmatprep.mubr.f32.mxu1 %v15342_v37 }
 0x2cb   :  { %13643 = vmatmul.mubr.f32.gmra.mxu0 %v15343_v17  ;;  %v15357_v17 = vld [vmem:[#allocation3 + $0x100] sm:$0xff] }
 0x2cc   :  { %13587 = vmatmul.mubr.f32.gmra.mxu1 %v15344_v59  ;;  %13645 = vmatprep.mubr.f32.mxu0 %v15345_v14  ;;  %v15358_v59 = vld [vmem:[#allocation3 + $0x108] sm:$0xff]  ;;  %v15359_v14 = vld [vmem:[#allocation3 + $0x110] sm:$0xff] }
 0x2cd   :  { %13589 = vmatprep.mubr.f32.mxu1 %v15346_v12  ;;  %v15360_v12 = vld [vmem:[#allocation3 + $0x118] sm:$0xff] }
 0x2cf   :  { %13646 = vmatmul.mubr.f32.gmra.mxu0 %v15347_v11  ;;  %v15361_v11 = vld [vmem:[#allocation3 + $0x120] sm:$0xff] }
 0x2d0   :  { %13590 = vmatmul.mubr.f32.gmra.mxu1 %v15348_v38  ;;  %13648 = vmatprep.mubr.f32.mxu0 %v15349_v19  ;;  %v15362_v38 = vld [vmem:[#allocation3 + $0x128] sm:$0xff]  ;;  %v15363_v19 = vld [vmem:[#allocation3 + $0x130] sm:$0xff] }
 0x2d1   :  { %13592 = vmatprep.mubr.f32.mxu1 %v15350_v18  ;;  %v15364_v18 = vld [vmem:[#allocation3 + $0x138] sm:$0xff] }
 0x2d3   :  { %13649 = vmatmul.mubr.f32.gmra.mxu0 %v15351_v35  ;;  %v15365_v35 = vld [vmem:[#allocation3 + $0x140] sm:$0xff] }
 0x2d4   :  { %13593 = vmatmul.mubr.f32.gmra.mxu1 %v15352_v50  ;;  %13651 = vmatprep.mubr.f32.mxu0 %v15353_v28  ;;  %v15366_v50 = vld [vmem:[#allocation3 + $0x148] sm:$0xff]  ;;  %v15367_v28 = vld [vmem:[#allocation3 + $0x150] sm:$0xff] }
 0x2d5   :  { %13595 = vmatprep.mubr.f32.mxu1 %v15354_v58  ;;  %v15368_v58 = vld [vmem:[#allocation3 + $0x158] sm:$0xff] }
 0x2d7   :  { %13652 = vmatmul.mubr.f32.gmra.mxu0 %v15355_v4  ;;  %v15369_v4 = vld [vmem:[#allocation3 + $0x160] sm:$0xff] }
 0x2d8   :  { %13596 = vmatmul.mubr.f32.gmra.mxu1 %v15356_v9  ;;  %v15370_v9 = vld [vmem:[#allocation3 + $0x168] sm:$0xff] }
 0x37b   :  { %v13576_v36 = vpop.f32.mrf.mxu1  ;;  %v13632_v56 = vpop.f32.mrf.mxu0 }
 0x37d   :  { %v2742_v13 = vpop.f32.mrf.mxu1  ;;  %v2889_v22 = vpop.f32.mrf.mxu0 }
 0x37e   :  { %13658 = vmatprep.mubr.msk.f32.mxu1 %vm2971_vm0, %v2889_v22  ;;  %13686 = vmatprep.mubr.msk.f32.mxu0 %vm2971_vm0, %v2742_v13  ;;  %v15375_v13 = vld [vmem:[#allocation3 + $0x190] sm:$0xff]  ;;  %v15376_v22 = vld [vmem:[#allocation3 + $0x198] sm:$0xff] }
 0x37f   :  { %v13635_v20 = vpop.f32.mrf.mxu0  ;;  %13659 = vmatmul.mubr.msk.f32.vlgmr.msra.gmra.mxu1 %vm2971_vm0, %v13632_v56  ;;  %13687 = vmatmul.mubr.msk.f32.vlgmr.msra.gmra.mxu0 %vm2971_vm0, %v13576_v36  ;;  %v15373_v36 = vld [vmem:[#allocation3 + $0x180] sm:$0xff]  ;;  %v15374_v56 = vld [vmem:[#allocation3 + $0x188] sm:$0xff] }
 0x380   :  { %v13579_v34 = vpop.f32.mrf.mxu1  ;;  %13711 = vmatpush3.msra.mxu1 %v16632_v10 }
 0x381   :  { %13712 = vmatprep.subr.mxu1 %v16655_v48  ;;  %v2899_v21 = vpop.f32.mrf.mxu0 }
 0x382   :  { %v2752_v6 = vpop.f32.mrf.mxu1  ;;  %13713 = vmatpush3.msra.mxu1 %v16655_v48  ;;  %13661 = vmatprep.mubr.msk.f32.mxu1 %vm2971_vm0, %v2899_v21  ;;  %v15378_v21 = vld [vmem:[#allocation3 + $0x1a8] sm:$0xff] }
 0x383   :  { %13689 = vmatprep.mubr.msk.f32.mxu0 %vm2971_vm0, %v2752_v6  ;;  %13714 = vmatprep.subr.mxu1 %v16667_v23  ;;  %v13638_v52 = vpop.f32.mrf.mxu0  ;;  %v15379_v6 = vld [vmem:[#allocation3 + $0x1b0] sm:$0xff] }
 0x384   :  { %v13582_v47 = vpop.f32.mrf.mxu1  ;;  %13662 = vmatmul.mubr.msk.f32.gmra.mxu1 %vm2971_vm0, %v13635_v20  ;;  %13690 = vmatmul.mubr.msk.f32.gmra.mxu0 %vm2971_vm0, %v13579_v34  ;;  %v15377_v20 = vld [vmem:[#allocation3 + $0x1a0] sm:$0xff] }
 0x385   :  { %13715 = vmatpush3.msra.mxu1 %v16667_v23  ;;  %v2909_v24 = vpop.f32.mrf.mxu0  ;;  %v11416_v34 = vld [vmem:[%s18522_s4 + $0x28] sm:$0xff] }
 0x386   :  { %13716 = vmatprep.subr.mxu1 %v16678_v7  ;;  %v2762_v15 = vpop.f32.mrf.mxu1  ;;  %13664 = vmatprep.mubr.msk.f32.mxu1 %vm2971_vm0, %v2909_v24  ;;  %v15382_v24 = vld [vmem:[#allocation3 + $0x1c8] sm:$0xff] }
 0x387   :  { %13717 = vmatpush3.msra.mxu1 %v16678_v7  ;;  %13692 = vmatprep.mubr.msk.f32.mxu0 %vm2971_vm0, %v2762_v15  ;;  %v13641_v53 = vpop.f32.mrf.mxu0  ;;  %v15383_v15 = vld [vmem:[#allocation3 + $0x1d0] sm:$0xff] }
 0x388   :  { %13718 = vmatprep.subr.mxu1 %v16690_v60  ;;  %v13585_v51 = vpop.f32.mrf.mxu1  ;;  %13665 = vmatmul.mubr.msk.f32.gmra.mxu1 %vm2971_vm0, %v13638_v52  ;;  %v15380_v52 = vld [vmem:[#allocation3 + $0x1b8] sm:$0xff] }
 0x389   :  { %13693 = vmatmul.mubr.msk.f32.gmra.mxu0 %vm2971_vm0, %v13582_v47  ;;  %13719 = vmatpush3.msra.mxu1 %v16690_v60  ;;  %v2919_v39 = vpop.f32.mrf.mxu0  ;;  %v15381_v47 = vld [vmem:[#allocation3 + $0x1c0] sm:$0xff] }
 0x38a   :  { %13720 = vmatprep.subr.mxu1 %v16700_v42  ;;  %v2772_v55 = vpop.f32.mrf.mxu1  ;;  %13667 = vmatprep.mubr.msk.f32.mxu1 %vm2971_vm0, %v2919_v39  ;;  %v11415_v39 = vld [vmem:[%s18522_s4 + $0x20] sm:$0xff] }
 0x38b   :  { %13721 = vmatpush3.msra.mxu1 %v16700_v42  ;;  %13695 = vmatprep.mubr.msk.f32.mxu0 %vm2971_vm0, %v2772_v55  ;;  %v13644_v2 = vpop.f32.mrf.mxu0  ;;  %v15386_v55 = vld [vmem:[#allocation3 + $0x1e8] sm:$0xff] }
 0x38c   :  { %13722 = vmatprep.subr.mxu1 %v16712_v46  ;;  %v13588_v0 = vpop.f32.mrf.mxu1  ;;  %13668 = vmatmul.mubr.msk.f32.gmra.mxu1 %vm2971_vm0, %v13641_v53  ;;  %v15384_v53 = vld [vmem:[#allocation3 + $0x1d8] sm:$0xff] }
 0x38d   :  { %13696 = vmatmul.mubr.msk.f32.gmra.mxu0 %vm2971_vm0, %v13585_v51  ;;  %13723 = vmatpush3.msra.mxu1 %v16712_v46  ;;  %v2929_v54 = vpop.f32.mrf.mxu0  ;;  %v15385_v51 = vld [vmem:[#allocation3 + $0x1e0] sm:$0xff] }
 0x38e   :  { %13724 = vmatprep.subr.mxu1 %v16724_v3  ;;  %v2782_v61 = vpop.f32.mrf.mxu1  ;;  %13670 = vmatprep.mubr.msk.f32.mxu1 %vm2971_vm0, %v2929_v54  ;;  %v15389_v54 = vld [vmem:[#allocation3 + $0x200] sm:$0xff] }
 0x38f   :  { %13725 = vmatpush3.msra.mxu1 %v16724_v3  ;;  %13698 = vmatprep.mubr.msk.f32.mxu0 %vm2971_vm0, %v2782_v61  ;;  %v13647_v41 = vpop.f32.mrf.mxu0  ;;  %v15390_v61 = vld [vmem:[#allocation3 + $0x208] sm:$0xff] }
 0x390   :  { %13726 = vmatprep.subr.mxu1 %v16737_v31  ;;  %v13591_v33 = vpop.f32.mrf.mxu1  ;;  %13671 = vmatmul.mubr.msk.f32.gmra.mxu1 %vm2971_vm0, %v13644_v2  ;;  %v15387_v2 = vld [vmem:[#allocation3 + $0x1f0] sm:$0xff] }
 0x391   :  { %13699 = vmatmul.mubr.msk.f32.gmra.mxu0 %vm2971_vm0, %v13588_v0  ;;  %13727 = vmatpush3.msra.mxu1 %v16737_v31  ;;  %v2939_v8 = vpop.f32.mrf.mxu0  ;;  %v15388_v0 = vld [vmem:[#allocation3 + $0x1f8] sm:$0xff] }
 0x392   :  { %13728 = vmatprep.subr.mxu1 %v16746_v40  ;;  %v2792_v29 = vpop.f32.mrf.mxu1  ;;  %13673 = vmatprep.mubr.msk.f32.mxu1 %vm2971_vm0, %v2939_v8  ;;  %v16956_v8 = vld [vmem:[%s18522_s4 + $0x38] sm:$0xff] }
 0x393   :  { %13729 = vmatpush3.msra.mxu1 %v16746_v40  ;;  %13701 = vmatprep.mubr.msk.f32.mxu0 %vm2971_vm0, %v2792_v29  ;;  %v13650_v26 = vpop.f32.mrf.mxu0  ;;  %v15393_v29 = vld [vmem:[#allocation3 + $0x220] sm:$0xff] }
 0x394   :  { %13730 = vmatprep.subr.mxu1 %v16754_v16  ;;  %v13594_v49 = vpop.f32.mrf.mxu1  ;;  %13674 = vmatmul.mubr.msk.f32.gmra.mxu1 %vm2971_vm0, %v13647_v41  ;;  %v15391_v41 = vld [vmem:[#allocation3 + $0x210] sm:$0xff] }
 0x395   :  { %13702 = vmatmul.mubr.msk.f32.gmra.mxu0 %vm2971_vm0, %v13591_v33  ;;  %13731 = vmatpush3.msra.mxu1 %v16754_v16  ;;  %v2949_v43 = vpop.f32.mrf.mxu0  ;;  %v15392_v33 = vld [vmem:[#allocation3 + $0x218] sm:$0xff] }
 0x396   :  { %13732 = vmatprep.subr.mxu1 %v16763_v5  ;;  %v2802_v45 = vpop.f32.mrf.mxu1  ;;  %13676 = vmatprep.mubr.msk.f32.mxu1 %vm2971_vm0, %v2949_v43  ;;  %v15396_v43 = vld [vmem:[#allocation3 + $0x238] sm:$0xff] }
 0x397   :  { %13733 = vmatpush3.msra.mxu1 %v16763_v5  ;;  %13704 = vmatprep.mubr.msk.f32.mxu0 %vm2971_vm0, %v2802_v45  ;;  %v13653_v30 = vpop.f32.mrf.mxu0  ;;  %v15397_v45 = vld [vmem:[#allocation3 + $0x240] sm:$0xff] }
 0x398   :  { %13734 = vmatprep.subr.mxu1 %v16769_v63  ;;  %v13597_v57 = vpop.f32.mrf.mxu1  ;;  %13677 = vmatmul.mubr.msk.f32.gmra.mxu1 %vm2971_vm0, %v13650_v26  ;;  %v15394_v26 = vld [vmem:[#allocation3 + $0x228] sm:$0xff] }
 0x399   :  { %13705 = vmatmul.mubr.msk.f32.gmra.mxu0 %vm2971_vm0, %v13594_v49  ;;  %13735 = vmatpush3.msra.mxu1 %v16769_v63  ;;  %v2959_v32 = vpop.f32.mrf.mxu0  ;;  %v15395_v49 = vld [vmem:[#allocation3 + $0x230] sm:$0xff] }
 0x39a   :  { %13736 = vmatprep.subr.mxu1 %v16778_v62  ;;  %v2812_v37 = vpop.f32.mrf.mxu1  ;;  %13679 = vmatprep.mubr.msk.f32.mxu1 %vm2971_vm0, %v2959_v32  ;;  %v15400_v32 = vld [vmem:[#allocation3 + $0x258] sm:$0xff] }
 0x39b   :  { %13737 = vmatpush3.msra.mxu1 %v16778_v62  ;;  %13707 = vmatprep.mubr.msk.f32.mxu0 %vm2971_vm0, %v2812_v37  ;;  %v15401_v37 = vld [vmem:[#allocation3 + $0x260] sm:$0xff] }
 0x39c   :  { %13738 = vmatprep.subr.mxu1 %v16790_v25  ;;  %13680 = vmatmul.mubr.msk.f32.gmra.mxu1 %vm2971_vm0, %v13653_v30  ;;  %v15398_v30 = vld [vmem:[#allocation3 + $0x248] sm:$0xff] }
 0x39d   :  { %13708 = vmatmul.mubr.msk.f32.gmra.mxu0 %vm2971_vm0, %v13597_v57  ;;  %13739 = vmatpush3.msra.mxu1 %v16790_v25  ;;  %v15399_v57 = vld [vmem:[#allocation3 + $0x250] sm:$0xff] }
 0x39e   :  { %13740 = vmatprep.subr.mxu1 %v16792_v44  ;;  %13742 = vmatprep.mubr.f32.mxu1 %v15357_v17  ;;  %v15402_v17 = vld [vmem:[#allocation3 + $0x268] sm:$0xff] }
 0x39f   :  { %13741 = vmatpush3.msra.mxu1 %v16792_v44  ;;  %13766 = vmatprep.subr.mxu0 %v11416_v34 }
 0x3a0   :  { %13794 = vmatprep.subr.mxu1 %v16632_v10  ;;  %13743 = vmatmul.mubr.f32.vlgmr.msra.gmra.mxu1 %v15358_v59  ;;  %v15403_v59 = vld [vmem:[#allocation3 + $0x270] sm:$0xff] }
 0x3a1   :  { %13795 = vmatpush3.msra.mxu1 %v16632_v10  ;;  %13745 = vmatprep.mubr.f32.mxu1 %v15359_v14  ;;  %v15404_v14 = vld [vmem:[#allocation3 + $0x278] sm:$0xff] }
 0x3a2   :  { %13796 = vmatprep.subr.mxu1 %v16655_v48  ;;  %13767 = vmatpush3.msra.mxu0 %v11416_v34  ;;  %v15423_v34 = vld [vmem:[#allocation3 + $0x310] sm:$0xff] }
 0x3a3   :  { %13797 = vmatpush3.msra.mxu1 %v16655_v48  ;;  %13768 = vmatprep.subr.mxu0 %v11415_v39 }
 0x3a4   :  { %13798 = vmatprep.subr.mxu1 %v16667_v23  ;;  %13746 = vmatmul.mubr.f32.gmra.mxu1 %v15360_v12  ;;  %v15405_v12 = vld [vmem:[#allocation3 + $0x280] sm:$0xff] }
 0x3a5   :  { %13799 = vmatpush3.msra.mxu1 %v16667_v23  ;;  %13748 = vmatprep.mubr.f32.mxu1 %v15361_v11  ;;  %v15406_v11 = vld [vmem:[#allocation3 + $0x288] sm:$0xff] }
 0x3a6   :  { %13800 = vmatprep.subr.mxu1 %v16678_v7  ;;  %13769 = vmatpush3.msra.mxu0 %v11415_v39  ;;  %v15432_v39 = vld [vmem:[#allocation3 + $0x358] sm:$0xff] }
 0x3a7   :  { %13801 = vmatpush3.msra.mxu1 %v16678_v7  ;;  %13850 = vmatprep.subr.mxu0 %v16956_v8 }
 0x3a8   :  { %13802 = vmatprep.subr.mxu1 %v16690_v60  ;;  %13749 = vmatmul.mubr.f32.gmra.mxu1 %v15362_v38  ;;  %v15407_v38 = vld [vmem:[#allocation3 + $0x290] sm:$0xff] }
 0x3a9   :  { %13803 = vmatpush3.msra.mxu1 %v16690_v60  ;;  %13751 = vmatprep.mubr.f32.mxu1 %v15363_v19  ;;  %v15408_v19 = vld [vmem:[#allocation3 + $0x298] sm:$0xff] }
 0x3aa   :  { %13804 = vmatprep.subr.mxu1 %v16700_v42 }
 0x3ab   :  { %13805 = vmatpush3.msra.mxu1 %v16700_v42 }
 0x3ac   :  { %13806 = vmatprep.subr.mxu1 %v16712_v46  ;;  %13752 = vmatmul.mubr.f32.gmra.mxu1 %v15364_v18  ;;  %v15409_v18 = vld [vmem:[#allocation3 + $0x2a0] sm:$0xff] }
 0x3ad   :  { %13807 = vmatpush3.msra.mxu1 %v16712_v46  ;;  %13754 = vmatprep.mubr.f32.mxu1 %v15365_v35  ;;  %v15410_v35 = vld [vmem:[#allocation3 + $0x2a8] sm:$0xff] }
 0x3ae   :  { %13808 = vmatprep.subr.mxu1 %v16724_v3 }
 0x3af   :  { %13809 = vmatpush3.msra.mxu1 %v16724_v3 }
 0x3b0   :  { %13810 = vmatprep.subr.mxu1 %v16737_v31  ;;  %13755 = vmatmul.mubr.f32.gmra.mxu1 %v15366_v50  ;;  %v15411_v50 = vld [vmem:[#allocation3 + $0x2b0] sm:$0xff] }
 0x3b1   :  { %13811 = vmatpush3.msra.mxu1 %v16737_v31  ;;  %13757 = vmatprep.mubr.f32.mxu1 %v15367_v28  ;;  %v15412_v28 = vld [vmem:[#allocation3 + $0x2b8] sm:$0xff] }
 0x3b2   :  { %13812 = vmatprep.subr.mxu1 %v16746_v40 }
 0x3b3   :  { %13813 = vmatpush3.msra.mxu1 %v16746_v40 }
 0x3b4   :  { %13814 = vmatprep.subr.mxu1 %v16754_v16  ;;  %13758 = vmatmul.mubr.f32.gmra.mxu1 %v15368_v58  ;;  %v15413_v58 = vld [vmem:[#allocation3 + $0x2c0] sm:$0xff] }
 0x3b5   :  { %13815 = vmatpush3.msra.mxu1 %v16754_v16  ;;  %13760 = vmatprep.mubr.f32.mxu1 %v15369_v4  ;;  %v15414_v4 = vld [vmem:[#allocation3 + $0x2c8] sm:$0xff] }
 0x3b6   :  { %13816 = vmatprep.subr.mxu1 %v16763_v5 }
 0x3b7   :  { %13817 = vmatpush3.msra.mxu1 %v16763_v5 }
 0x3b8   :  { %13818 = vmatprep.subr.mxu1 %v16769_v63  ;;  %13761 = vmatmul.mubr.f32.gmra.mxu1 %v15370_v9  ;;  %v15415_v9 = vld [vmem:[#allocation3 + $0x2d0] sm:$0xff] }
 0x3b9   :  { %13819 = vmatpush3.msra.mxu1 %v16769_v63  ;;  %13763 = vmatprep.mubr.f32.mxu1 %v15371_v27  ;;  %v15416_v27 = vld [vmem:[#allocation3 + $0x2d8] sm:$0xff] }
 0x3ba   :  { %13820 = vmatprep.subr.mxu1 %v16778_v62 }
 0x3bb   :  { %13821 = vmatpush3.msra.mxu1 %v16778_v62 }
 0x3bc   :  { %13822 = vmatprep.subr.mxu1 %v16790_v25  ;;  %13764 = vmatmul.mubr.f32.gmra.mxu1 %v15372_v1  ;;  %v15417_v1 = vld [vmem:[#allocation3 + $0x2e0] sm:$0xff] }
 0x3bd   :  { %13823 = vmatpush3.msra.mxu1 %v16790_v25  ;;  %13826 = vmatprep.mubr.f32.mxu1 %v15373_v36  ;;  %v15418_v36 = vld [vmem:[#allocation3 + $0x2e8] sm:$0xff] }
 0x3be   :  { %13824 = vmatprep.subr.mxu1 %v16792_v44 }
 0x3bf   :  { %13825 = vmatpush3.msra.mxu1 %v16792_v44 }
 0x3c0   :  { %13878 = vmatprep.subr.mxu1 %v16632_v10  ;;  %13827 = vmatmul.mubr.f32.vlgmr.msra.gmra.mxu1 %v15374_v56  ;;  %v15419_v56 = vld [vmem:[#allocation3 + $0x2f0] sm:$0xff] }
 0x3c1   :  { %13879 = vmatpush3.msra.mxu1 %v16632_v10  ;;  %13829 = vmatprep.mubr.f32.mxu1 %v15375_v13  ;;  %v15420_v13 = vld [vmem:[#allocation3 + $0x2f8] sm:$0xff] }
 0x3c2   :  { %13880 = vmatprep.subr.mxu1 %v16655_v48 }
 0x3c3   :  { %13881 = vmatpush3.msra.mxu1 %v16655_v48 }
 0x3c4   :  { %13882 = vmatprep.subr.mxu1 %v16667_v23  ;;  %13830 = vmatmul.mubr.f32.gmra.mxu1 %v15376_v22  ;;  %v15421_v22 = vld [vmem:[#allocation3 + $0x300] sm:$0xff] }
 0x3c5   :  { %13883 = vmatpush3.msra.mxu1 %v16667_v23  ;;  %13832 = vmatprep.mubr.f32.mxu1 %v15377_v20  ;;  %v15422_v20 = vld [vmem:[#allocation3 + $0x308] sm:$0xff] }
 0x3c6   :  { %13884 = vmatprep.subr.mxu1 %v16678_v7 }
 0x3c7   :  { %13885 = vmatpush3.msra.mxu1 %v16678_v7 }
 0x3c8   :  { %13886 = vmatprep.subr.mxu1 %v16690_v60  ;;  %13833 = vmatmul.mubr.f32.gmra.mxu1 %v15378_v21  ;;  %v15424_v21 = vld [vmem:[#allocation3 + $0x318] sm:$0xff] }
 0x3c9   :  { %13887 = vmatpush3.msra.mxu1 %v16690_v60  ;;  %13835 = vmatprep.mubr.f32.mxu1 %v15379_v6  ;;  %v15425_v6 = vld [vmem:[#allocation3 + $0x320] sm:$0xff] }
 0x3ca   :  { %13888 = vmatprep.subr.mxu1 %v16700_v42 }
 0x3cb   :  { %13889 = vmatpush3.msra.mxu1 %v16700_v42 }
 0x3cc   :  { %13890 = vmatprep.subr.mxu1 %v16712_v46  ;;  %13836 = vmatmul.mubr.f32.gmra.mxu1 %v15380_v52  ;;  %v15426_v52 = vld [vmem:[#allocation3 + $0x328] sm:$0xff] }
 0x3cd   :  { %13891 = vmatpush3.msra.mxu1 %v16712_v46  ;;  %13838 = vmatprep.mubr.f32.mxu1 %v15381_v47  ;;  %v15427_v47 = vld [vmem:[#allocation3 + $0x330] sm:$0xff] }
 0x3ce   :  { %13892 = vmatprep.subr.mxu1 %v16724_v3 }
 0x3cf   :  { %13893 = vmatpush3.msra.mxu1 %v16724_v3 }
 0x3d0   :  { %13894 = vmatprep.subr.mxu1 %v16737_v31  ;;  %13839 = vmatmul.mubr.f32.gmra.mxu1 %v15382_v24  ;;  %v15428_v24 = vld [vmem:[#allocation3 + $0x338] sm:$0xff] }
 0x3d1   :  { %13895 = vmatpush3.msra.mxu1 %v16737_v31  ;;  %13841 = vmatprep.mubr.f32.mxu1 %v15383_v15  ;;  %v15429_v15 = vld [vmem:[#allocation3 + $0x340] sm:$0xff] }
 0x3d2   :  { %13896 = vmatprep.subr.mxu1 %v16746_v40 }
 0x3d3   :  { %13897 = vmatpush3.msra.mxu1 %v16746_v40 }
 0x3d4   :  { %13898 = vmatprep.subr.mxu1 %v16754_v16  ;;  %13842 = vmatmul.mubr.f32.gmra.mxu1 %v15384_v53  ;;  %v15430_v53 = vld [vmem:[#allocation3 + $0x348] sm:$0xff] }
 0x3d5   :  { %13899 = vmatpush3.msra.mxu1 %v16754_v16  ;;  %13844 = vmatprep.mubr.f32.mxu1 %v15385_v51  ;;  %v15431_v51 = vld [vmem:[#allocation3 + $0x350] sm:$0xff] }
 0x3d6   :  { %13900 = vmatprep.subr.mxu1 %v16763_v5 }
 0x3d7   :  { %13901 = vmatpush3.msra.mxu1 %v16763_v5 }
 0x3d8   :  { %13902 = vmatprep.subr.mxu1 %v16769_v63  ;;  %13845 = vmatmul.mubr.f32.gmra.mxu1 %v15386_v55  ;;  %v15433_v55 = vld [vmem:[#allocation3 + $0x360] sm:$0xff] }
 0x3d9   :  { %13903 = vmatpush3.msra.mxu1 %v16769_v63  ;;  %13847 = vmatprep.mubr.f32.mxu1 %v15387_v2  ;;  %v15434_v2 = vld [vmem:[#allocation3 + $0x368] sm:$0xff] }
 0x3da   :  { %13904 = vmatprep.subr.mxu1 %v16778_v62 }
 0x3db   :  { %13905 = vmatpush3.msra.mxu1 %v16778_v62 }
 0x3dc   :  { %13906 = vmatprep.subr.mxu1 %v16790_v25  ;;  %13848 = vmatmul.mubr.f32.gmra.mxu1 %v15388_v0  ;;  %v15435_v0 = vld [vmem:[#allocation3 + $0x370] sm:$0xff] }
 0x3dd   :  { %13907 = vmatpush3.msra.mxu1 %v16790_v25  ;;  %13910 = vmatprep.mubr.f32.mxu1 %v15389_v54  ;;  %v15436_v54 = vld [vmem:[#allocation3 + $0x378] sm:$0xff] }
 0x3de   :  { %13908 = vmatprep.subr.mxu1 %v16792_v44 }
 0x3df   :  { %13909 = vmatpush3.msra.mxu1 %v16792_v44 }
 0x3e0   :  { %13962 = vmatprep.subr.mxu1 %v16632_v10  ;;  %13911 = vmatmul.mubr.f32.vlgmr.msra.gmra.mxu1 %v15390_v61  ;;  %v15437_v61 = vld [vmem:[#allocation3 + $0x380] sm:$0xff] }
 0x3e1   :  { %13963 = vmatpush3.msra.mxu1 %v16632_v10  ;;  %13913 = vmatprep.mubr.f32.mxu1 %v15391_v41 }
 0x3e2   :  { %13964 = vmatprep.subr.mxu1 %v16655_v48 }
 0x3e3   :  { %13965 = vmatpush3.msra.mxu1 %v16655_v48 }
 0x3e4   :  { %13966 = vmatprep.subr.mxu1 %v16667_v23  ;;  %13914 = vmatmul.mubr.f32.gmra.mxu1 %v15392_v33 }
 0x3e5   :  { %13967 = vmatpush3.msra.mxu1 %v16667_v23  ;;  %13916 = vmatprep.mubr.f32.mxu1 %v15393_v29 }
 0x3e6   :  { %13968 = vmatprep.subr.mxu1 %v16678_v7 }
 0x3e7   :  { %13969 = vmatpush3.msra.mxu1 %v16678_v7 }
 0x3e8   :  { %13970 = vmatprep.subr.mxu1 %v16690_v60  ;;  %13917 = vmatmul.mubr.f32.gmra.mxu1 %v15394_v26  ;;  %v15438_v26 = vld [vmem:[#allocation3 + $0x388] sm:$0xff] }
 0x3e9   :  { %13971 = vmatpush3.msra.mxu1 %v16690_v60  ;;  %13919 = vmatprep.mubr.f32.mxu1 %v15395_v49 }
 0x3ea   :  { %13972 = vmatprep.subr.mxu1 %v16700_v42 }
 0x3eb   :  { %13973 = vmatpush3.msra.mxu1 %v16700_v42 }
 0x3ec   :  { %13974 = vmatprep.subr.mxu1 %v16712_v46  ;;  %13920 = vmatmul.mubr.f32.gmra.mxu1 %v15396_v43 }
 0x3ed   :  { %13975 = vmatpush3.msra.mxu1 %v16712_v46  ;;  %13922 = vmatprep.mubr.f32.mxu1 %v15397_v45  ;;  %v15439_v45 = vld [vmem:[#allocation3 + $0x390] sm:$0xff] }
 0x3ee   :  { %13976 = vmatprep.subr.mxu1 %v16724_v3 }
 0x3ef   :  { %13977 = vmatpush3.msra.mxu1 %v16724_v3 }
 0x3f0   :  { %13978 = vmatprep.subr.mxu1 %v16737_v31  ;;  %13923 = vmatmul.mubr.f32.gmra.mxu1 %v15398_v30 }
 0x3f1   :  { %13979 = vmatpush3.msra.mxu1 %v16737_v31  ;;  %13925 = vmatprep.mubr.f32.mxu1 %v15399_v57 }
 0x3f2   :  { %13980 = vmatprep.subr.mxu1 %v16746_v40 }
 0x3f3   :  { %13981 = vmatpush3.msra.mxu1 %v16746_v40 }
 0x3f4   :  { %13982 = vmatprep.subr.mxu1 %v16754_v16  ;;  %13926 = vmatmul.mubr.f32.gmra.mxu1 %v15400_v32  ;;  %v15440_v32 = vld [vmem:[#allocation3 + $0x398] sm:$0xff] }
 0x3f5   :  { %13983 = vmatpush3.msra.mxu1 %v16754_v16  ;;  %13928 = vmatprep.mubr.f32.mxu1 %v15401_v37 }
 0x3f6   :  { %13984 = vmatprep.subr.mxu1 %v16763_v5 }
 0x3f7   :  { %13985 = vmatpush3.msra.mxu1 %v16763_v5 }
 0x3f8   :  { %13986 = vmatprep.subr.mxu1 %v16769_v63  ;;  %13929 = vmatmul.mubr.f32.gmra.mxu1 %v15402_v17 }
 0x3f9   :  { %13987 = vmatpush3.msra.mxu1 %v16769_v63  ;;  %13931 = vmatprep.mubr.f32.mxu1 %v15403_v59 }
 0x3fa   :  { %13988 = vmatprep.subr.mxu1 %v16778_v62 }
 0x3fb   :  { %13989 = vmatpush3.msra.mxu1 %v16778_v62 }
 0x3fc   :  { %13990 = vmatprep.subr.mxu1 %v16790_v25  ;;  %13932 = vmatmul.mubr.f32.gmra.mxu1 %v15404_v14  ;;  %v15442_v14 = vld [vmem:[#allocation3 + $0x3a8] sm:$0xff] }
 0x3fd   :  { %13991 = vmatpush3.msra.mxu1 %v16790_v25  ;;  %13994 = vmatprep.mubr.f32.mxu1 %v15405_v12 }
 0x3fe   :  { %13992 = vmatprep.subr.mxu1 %v16792_v44 }
 0x3ff   :  { %13993 = vmatpush3.msra.mxu1 %v16792_v44 }
 0x400   :  { %14046 = vmatprep.subr.mxu1 %v16632_v10  ;;  %13995 = vmatmul.mubr.f32.vlgmr.msra.gmra.mxu1 %v15406_v11  ;;  %v15443_v11 = vld [vmem:[#allocation3 + $0x3b0] sm:$0xff] }
 0x401   :  { %14047 = vmatpush3.msra.mxu1 %v16632_v10  ;;  %13997 = vmatprep.mubr.f32.mxu1 %v15407_v38 }
 0x402   :  { %14048 = vmatprep.subr.mxu1 %v16655_v48 }
 0x403   :  { %14049 = vmatpush3.msra.mxu1 %v16655_v48 }
 0x404   :  { %14050 = vmatprep.subr.mxu1 %v16667_v23  ;;  %13998 = vmatmul.mubr.f32.gmra.mxu1 %v15408_v19 }
 0x405   :  { %14051 = vmatpush3.msra.mxu1 %v16667_v23  ;;  %14000 = vmatprep.mubr.f32.mxu1 %v15409_v18  ;;  %v15444_v18 = vld [vmem:[#allocation3 + $0x3b8] sm:$0xff] }
 0x406   :  { %14052 = vmatprep.subr.mxu1 %v16678_v7 }
 0x407   :  { %14053 = vmatpush3.msra.mxu1 %v16678_v7 }
 0x408   :  { %14054 = vmatprep.subr.mxu1 %v16690_v60  ;;  %14001 = vmatmul.mubr.f32.gmra.mxu1 %v15410_v35 }
 0x409   :  { %14055 = vmatpush3.msra.mxu1 %v16690_v60  ;;  %14003 = vmatprep.mubr.f32.mxu1 %v15411_v50 }
 0x40a   :  { %14056 = vmatprep.subr.mxu1 %v16700_v42 }
 0x40b   :  { %14057 = vmatpush3.msra.mxu1 %v16700_v42 }
 0x40c   :  { %14058 = vmatprep.subr.mxu1 %v16712_v46  ;;  %14004 = vmatmul.mubr.f32.gmra.mxu1 %v15412_v28 }
 0x40d   :  { %14059 = vmatpush3.msra.mxu1 %v16712_v46  ;;  %14006 = vmatprep.mubr.f32.mxu1 %v15413_v58 }
 0x40e   :  { %14060 = vmatprep.subr.mxu1 %v16724_v3 }
 0x40f   :  { %14061 = vmatpush3.msra.mxu1 %v16724_v3 }
 0x410   :  { %14062 = vmatprep.subr.mxu1 %v16737_v31  ;;  %14007 = vmatmul.mubr.f32.gmra.mxu1 %v15414_v4  ;;  %v15446_v4 = vld [vmem:[#allocation3 + $0x3c8] sm:$0xff] }
 0x411   :  { %14063 = vmatpush3.msra.mxu1 %v16737_v31  ;;  %14009 = vmatprep.mubr.f32.mxu1 %v15415_v9 }
 0x412   :  { %14064 = vmatprep.subr.mxu1 %v16746_v40 }
 0x413   :  { %14065 = vmatpush3.msra.mxu1 %v16746_v40 }
 0x414   :  { %14066 = vmatprep.subr.mxu1 %v16754_v16  ;;  %14010 = vmatmul.mubr.f32.gmra.mxu1 %v15416_v27 }
 0x415   :  { %14067 = vmatpush3.msra.mxu1 %v16754_v16  ;;  %14012 = vmatprep.mubr.f32.mxu1 %v15417_v1 }
 0x416   :  { %14068 = vmatprep.subr.mxu1 %v16763_v5 }
 0x417   :  { %14069 = vmatpush3.msra.mxu1 %v16763_v5 }
 0x418   :  { %14070 = vmatprep.subr.mxu1 %v16769_v63  ;;  %14013 = vmatmul.mubr.f32.gmra.mxu1 %v15418_v36 }
 0x419   :  { %14071 = vmatpush3.msra.mxu1 %v16769_v63  ;;  %14015 = vmatprep.mubr.f32.mxu1 %v15419_v56  ;;  %v15448_v56 = vld [vmem:[#allocation3 + $0x3d8] sm:$0xff] }
 0x41a   :  { %14072 = vmatprep.subr.mxu1 %v16778_v62 }
 0x41b   :  { %14073 = vmatpush3.msra.mxu1 %v16778_v62 }
 0x41c   :  { %14074 = vmatprep.subr.mxu1 %v16790_v25  ;;  %14016 = vmatmul.mubr.f32.gmra.mxu1 %v15420_v13 }
 0x41d   :  { %14075 = vmatpush3.msra.mxu1 %v16790_v25  ;;  %14078 = vmatprep.mubr.f32.mxu1 %v15421_v22 }
 0x41e   :  { %14076 = vmatprep.subr.mxu1 %v16792_v44 }
 0x41f   :  { %14077 = vmatpush3.msra.mxu1 %v16792_v44 }
 0x420   :  { %14130 = vmatprep.subr.mxu1 %v16632_v10  ;;  %14079 = vmatmul.mubr.f32.vlgmr.msra.gmra.mxu1 %v15422_v20 }
 0x421   :  { %14131 = vmatpush3.msra.mxu1 %v16632_v10  ;;  %14081 = vmatprep.mubr.f32.mxu1 %v15423_v34 }
 0x422   :  { %14132 = vmatprep.subr.mxu1 %v16655_v48 }
 0x423   :  { %14133 = vmatpush3.msra.mxu1 %v16655_v48 }
 0x424   :  { %14134 = vmatprep.subr.mxu1 %v16667_v23  ;;  %14082 = vmatmul.mubr.f32.gmra.mxu1 %v15424_v21  ;;  %v15450_v21 = vld [vmem:[#allocation3 + $0x3e8] sm:$0xff] }
 0x425   :  { %14135 = vmatpush3.msra.mxu1 %v16667_v23  ;;  %14084 = vmatprep.mubr.f32.mxu1 %v15425_v6 }
 0x426   :  { %14136 = vmatprep.subr.mxu1 %v16678_v7 }
 0x427   :  { %14137 = vmatpush3.msra.mxu1 %v16678_v7 }
 0x428   :  { %14138 = vmatprep.subr.mxu1 %v16690_v60  ;;  %14085 = vmatmul.mubr.f32.gmra.mxu1 %v15426_v52 }
 0x429   :  { %14139 = vmatpush3.msra.mxu1 %v16690_v60  ;;  %14087 = vmatprep.mubr.f32.mxu1 %v15427_v47 }
 0x42a   :  { %14140 = vmatprep.subr.mxu1 %v16700_v42 }
 0x42b   :  { %14141 = vmatpush3.msra.mxu1 %v16700_v42 }
 0x42c   :  { %14142 = vmatprep.subr.mxu1 %v16712_v46  ;;  %14088 = vmatmul.mubr.f32.gmra.mxu1 %v15428_v24 }
 0x42d   :  { %14143 = vmatpush3.msra.mxu1 %v16712_v46  ;;  %14090 = vmatprep.mubr.f32.mxu1 %v15429_v15  ;;  %v15452_v15 = vld [vmem:[#allocation3 + $0x3f8] sm:$0xff] }
 0x42e   :  { %14144 = vmatprep.subr.mxu1 %v16724_v3 }
 0x42f   :  { %14145 = vmatpush3.msra.mxu1 %v16724_v3 }
 0x430   :  { %14146 = vmatprep.subr.mxu1 %v16737_v31  ;;  %14091 = vmatmul.mubr.f32.gmra.mxu1 %v15430_v53 }
 0x431   :  { %14147 = vmatpush3.msra.mxu1 %v16737_v31  ;;  %14093 = vmatprep.mubr.f32.mxu1 %v15431_v51 }
 0x432   :  { %14148 = vmatprep.subr.mxu1 %v16746_v40 }
 0x433   :  { %14149 = vmatpush3.msra.mxu1 %v16746_v40 }
 0x434   :  { %14150 = vmatprep.subr.mxu1 %v16754_v16  ;;  %14094 = vmatmul.mubr.f32.gmra.mxu1 %v15432_v39 }
 0x435   :  { %14151 = vmatpush3.msra.mxu1 %v16754_v16  ;;  %14096 = vmatprep.mubr.f32.mxu1 %v15433_v55 }
 0x436   :  { %14152 = vmatprep.subr.mxu1 %v16763_v5 }
 0x437   :  { %14153 = vmatpush3.msra.mxu1 %v16763_v5 }
 0x438   :  { %14154 = vmatprep.subr.mxu1 %v16769_v63  ;;  %14097 = vmatmul.mubr.f32.gmra.mxu1 %v15434_v2  ;;  %v15455_v2 = vld [vmem:[#allocation3 + $0x410] sm:$0xff] }
 0x439   :  { %14155 = vmatpush3.msra.mxu1 %v16769_v63  ;;  %14099 = vmatprep.mubr.f32.mxu1 %v15435_v0 }
 0x43a   :  { %14156 = vmatprep.subr.mxu1 %v16778_v62 }
 0x43b   :  { %14157 = vmatpush3.msra.mxu1 %v16778_v62 }
 0x43c   :  { %14158 = vmatprep.subr.mxu1 %v16790_v25  ;;  %14100 = vmatmul.mubr.f32.gmra.mxu1 %v15436_v54 }
 0x43d   :  { %14159 = vmatpush3.msra.mxu1 %v16790_v25  ;;  %14162 = vmatprep.mubr.f32.mxu1 %v15437_v61  ;;  %v15456_v61 = vld [vmem:[#allocation3 + $0x418] sm:$0xff] }
 0x43e   :  { %14160 = vmatprep.subr.mxu1 %v16792_v44 }
 0x43f   :  { %14161 = vmatpush3.msra.mxu1 %v16792_v44  ;;  %v13660_v41 = vpop.f32.mrf.mxu1  ;;  %v13688_v33 = vpop.f32.mrf.mxu0 }
 0x440   :  { %14214 = vmatprep.subr.mxu1 %v16632_v10  ;;  %v17051_v29 = vadd.f32 %v13688_v33, %v13660_v41  ;;  %14163 = vmatmul.mubr.f32.vlgmr.msra.gmra.mxu1 %v15438_v26  ;;  %v11452_v33 = vld [vmem:[%s18522_s4 + $0x48] sm:$0xff] }
 0x441   :  { %14215 = vmatpush3.msra.mxu1 %v16632_v10  ;;  %v17054_v49 = vpop.f32.mrf.mxu1  ;;  %v17056_v43 = vpop.f32.mrf.mxu0  ;;  %14165 = vmatprep.mubr.f32.mxu1 %v15439_v45  ;;  %v15441_v10 = vld [vmem:[#allocation3 + $0x3a0] sm:$0xff]  ;;  %v15458_v45 = vld [vmem:[#allocation3 + $0x428] sm:$0xff] }
 0x442   :  { %18578 = vst [vmem:[#allocation20_spill] sm:$0xff] %v17054_v49  ;;  %18579 = vst [vmem:[#allocation21_spill] sm:$0xff] %v17056_v43  ;;  %14216 = vmatprep.subr.mxu1 %v16655_v48 }
 0x443   :  { %14217 = vmatpush3.msra.mxu1 %v16655_v48 }
 0x444   :  { %14218 = vmatprep.subr.mxu1 %v16667_v23  ;;  %v13663_v30 = vpop.f32.mrf.mxu1  ;;  %v13691_v57 = vpop.f32.mrf.mxu0  ;;  %14166 = vmatmul.mubr.f32.gmra.mxu1 %v15440_v32  ;;  %v15460_v32 = vld [vmem:[#allocation3 + $0x438] sm:$0xff] }
 0x445   :  { %v17061_v37 = vadd.f32 %v13691_v57, %v13663_v30  ;;  %14219 = vmatpush3.msra.mxu1 %v16667_v23  ;;  %14168 = vmatprep.mubr.f32.mxu1 %v15441_v10  ;;  %v15459_v30 = vld [vmem:[#allocation3 + $0x430] sm:$0xff]  ;;  %v15461_v10 = vld [vmem:[#allocation3 + $0x440] sm:$0xff] }
 0x446   :  { %14220 = vmatprep.subr.mxu1 %v16678_v7  ;;  %v17065_v17 = vpop.f32.mrf.mxu1  ;;  %v17067_v59 = vpop.f32.mrf.mxu0 }
 0x447   :  { %14221 = vmatpush3.msra.mxu1 %v16678_v7 }
 0x448   :  { %14222 = vmatprep.subr.mxu1 %v16690_v60  ;;  %v13666_v48 = vpop.f32.mrf.mxu1  ;;  %14169 = vmatmul.mubr.f32.gmra.mxu1 %v15442_v14 }
 0x449   :  { %v13694_v12 = vpop.f32.mrf.mxu0  ;;  %14223 = vmatpush3.msra.mxu1 %v16690_v60  ;;  %14171 = vmatprep.mubr.f32.mxu1 %v15443_v11  ;;  %v15445_v60 = vld [vmem:[#allocation3 + $0x3c0] sm:$0xff]  ;;  %v15463_v11 = vld [vmem:[#allocation3 + $0x450] sm:$0xff] }
 0x44a   :  { %v17072_v23 = vadd.f32 %v13694_v12, %v13666_v48  ;;  %14224 = vmatprep.subr.mxu1 %v16700_v42  ;;  %v17075_v38 = vpop.f32.mrf.mxu1  ;;  %v15462_v12 = vld [vmem:[#allocation3 + $0x448] sm:$0xff] }
 0x44b   :  { %v17077_v19 = vpop.f32.mrf.mxu0  ;;  %14225 = vmatpush3.msra.mxu1 %v16700_v42 }
 0x44c   :  { %14226 = vmatprep.subr.mxu1 %v16712_v46  ;;  %v13669_v7 = vpop.f32.mrf.mxu1  ;;  %14172 = vmatmul.mubr.f32.gmra.mxu1 %v15444_v18 }
 0x44d   :  { %v13697_v35 = vpop.f32.mrf.mxu0  ;;  %14227 = vmatpush3.msra.mxu1 %v16712_v46  ;;  %14174 = vmatprep.mubr.f32.mxu1 %v15445_v60  ;;  %v15447_v46 = vld [vmem:[#allocation3 + $0x3d0] sm:$0xff]  ;;  %v15465_v60 = vld [vmem:[#allocation3 + $0x460] sm:$0xff] }
 0x44e   :  { %v17082_v50 = vadd.f32 %v13697_v35, %v13669_v7  ;;  %14228 = vmatprep.subr.mxu1 %v16724_v3  ;;  %v17085_v28 = vpop.f32.mrf.mxu1  ;;  %v15464_v35 = vld [vmem:[#allocation3 + $0x458] sm:$0xff] }
 0x44f   :  { %v17087_v58 = vpop.f32.mrf.mxu0  ;;  %14229 = vmatpush3.msra.mxu1 %v16724_v3 }
 0x450   :  { %14230 = vmatprep.subr.mxu1 %v16737_v31  ;;  %v13672_v42 = vpop.f32.mrf.mxu1  ;;  %14175 = vmatmul.mubr.f32.gmra.mxu1 %v15446_v4 }
 0x451   :  { %v13700_v9 = vpop.f32.mrf.mxu0  ;;  %14231 = vmatpush3.msra.mxu1 %v16737_v31  ;;  %14177 = vmatprep.mubr.f32.mxu1 %v15447_v46  ;;  %v15449_v31 = vld [vmem:[#allocation3 + $0x3e0] sm:$0xff]  ;;  %v15467_v46 = vld [vmem:[#allocation3 + $0x470] sm:$0xff] }
 0x452   :  { %v17092_v27 = vadd.f32 %v13700_v9, %v13672_v42  ;;  %14232 = vmatprep.subr.mxu1 %v16746_v40  ;;  %v17095_v1 = vpop.f32.mrf.mxu1  ;;  %v15466_v9 = vld [vmem:[#allocation3 + $0x468] sm:$0xff] }
 0x453   :  { %v17097_v36 = vpop.f32.mrf.mxu0  ;;  %14233 = vmatpush3.msra.mxu1 %v16746_v40 }
 0x454   :  { %14234 = vmatprep.subr.mxu1 %v16754_v16  ;;  %v13675_v3 = vpop.f32.mrf.mxu1  ;;  %14178 = vmatmul.mubr.f32.gmra.mxu1 %v15448_v56 }
 0x455   :  { %v13703_v13 = vpop.f32.mrf.mxu0  ;;  %14235 = vmatpush3.msra.mxu1 %v16754_v16  ;;  %14180 = vmatprep.mubr.f32.mxu1 %v15449_v31  ;;  %v15451_v16 = vld [vmem:[#allocation3 + $0x3f0] sm:$0xff]  ;;  %v15469_v31 = vld [vmem:[#allocation3] sm:$0xff] }
 0x456   :  { %v17102_v22 = vadd.f32 %v13703_v13, %v13675_v3  ;;  %14236 = vmatprep.subr.mxu1 %v16763_v5  ;;  %v17105_v20 = vpop.f32.mrf.mxu1  ;;  %v15468_v13 = vld [vmem:[#allocation3 + $0x478] sm:$0xff] }
 0x457   :  { %v17107_v34 = vpop.f32.mrf.mxu0  ;;  %14237 = vmatpush3.msra.mxu1 %v16763_v5 }
 0x458   :  { %14238 = vmatprep.subr.mxu1 %v16769_v63  ;;  %v13678_v40 = vpop.f32.mrf.mxu1  ;;  %14181 = vmatmul.mubr.f32.gmra.mxu1 %v15450_v21 }
 0x459   :  { %v13706_v6 = vpop.f32.mrf.mxu0  ;;  %14239 = vmatpush3.msra.mxu1 %v16769_v63  ;;  %14183 = vmatprep.mubr.f32.mxu1 %v15451_v16  ;;  %v15453_v63 = vld [vmem:[#allocation3 + $0x400] sm:$0xff] }
 0x45a   :  { %v17112_v52 = vadd.f32 %v13706_v6, %v13678_v40  ;;  %14240 = vmatprep.subr.mxu1 %v16778_v62  ;;  %v17115_v47 = vpop.f32.mrf.mxu1  ;;  %v11451_v16 = vld [vmem:[%s18522_s4 + $0x40] sm:$0xff] }
 0x45b   :  { %v17117_v24 = vpop.f32.mrf.mxu0  ;;  %14241 = vmatpush3.msra.mxu1 %v16778_v62  ;;  %v15454_v62 = vld [vmem:[#allocation3 + $0x408] sm:$0xff] }
 0x45c   :  { %14242 = vmatprep.subr.mxu1 %v16790_v25  ;;  %v13681_v5 = vpop.f32.mrf.mxu1  ;;  %14184 = vmatmul.mubr.f32.gmra.mxu1 %v15452_v15  ;;  %v11470_v15 = vld [vmem:[%s18522_s4 + $0x58] sm:$0xff] }
 0x45d   :  { %v13709_v53 = vpop.f32.mrf.mxu0  ;;  %14243 = vmatpush3.msra.mxu1 %v16790_v25  ;;  %14246 = vmatprep.mubr.f32.mxu1 %v15453_v63  ;;  %v11433_v25 = vld [vmem:[%s18522_s4 + $0x30] sm:$0xff] }
 0x45e   :  { %v17122_v51 = vadd.f32 %v13709_v53, %v13681_v5  ;;  %14244 = vmatprep.subr.mxu1 %v16792_v44  ;;  %v17125_v39 = vpop.f32.mrf.mxu1 }
 0x45f   :  { %14245 = vmatpush3.msra.mxu1 %v16792_v44  ;;  %v15457_v44 = vld [vmem:[#allocation3 + $0x420] sm:$0xff] }
 0x460   :  { %v13744_v55 = vpop.f32.mrf.mxu1  ;;  %14247 = vmatmul.mubr.f32.vlgmr.msra.gmra.mxu1 %v15454_v62 }
 0x461   :  { %14249 = vmatprep.mubr.f32.mxu1 %v15455_v2 }
 0x462   :  { %v3424_v0 = vpop.f32.mrf.mxu1 }
 0x463   :  { %13770 = vmatprep.mubr.msk.f32.mxu0 %vm2971_vm0, %v3424_v0 }
 0x464   :  { %v13747_v54 = vpop.f32.mrf.mxu1  ;;  %13771 = vmatmul.mubr.msk.f32.vlgmr.msra.gmra.mxu0 %vm2971_vm0, %v13744_v55  ;;  %14250 = vmatmul.mubr.f32.gmra.mxu1 %v15456_v61 }
 0x465   :  { %13851 = vmatpush3.msra.mxu0 %v16956_v8  ;;  %14252 = vmatprep.mubr.f32.mxu1 %v15457_v44 }
 0x466   :  { %v3434_v41 = vpop.f32.mrf.mxu1  ;;  %13852 = vmatprep.subr.mxu0 %v11433_v25 }
 0x467   :  { %13773 = vmatprep.mubr.msk.f32.mxu0 %vm2971_vm0, %v3434_v41  ;;  %13853 = vmatpush3.msra.mxu0 %v11433_v25 }
 0x468   :  { %v13750_v26 = vpop.f32.mrf.mxu1  ;;  %13774 = vmatmul.mubr.msk.f32.gmra.mxu0 %vm2971_vm0, %v13747_v54  ;;  %14253 = vmatmul.mubr.f32.gmra.mxu1 %v15458_v45 }
 0x469   :  { %14255 = vmatprep.mubr.f32.mxu1 %v15459_v30  ;;  %13934 = vmatprep.subr.mxu0 %v11452_v33 }
 0x46a   :  { %v3444_v8 = vpop.f32.mrf.mxu1 }
 0x46b   :  { %13776 = vmatprep.mubr.msk.f32.mxu0 %vm2971_vm0, %v3444_v8  ;;  %v11469_v8 = vld [vmem:[%s18522_s4 + $0x50] sm:$0xff] }
 0x46c   :  { %v13753_v57 = vpop.f32.mrf.mxu1  ;;  %13777 = vmatmul.mubr.msk.f32.gmra.mxu0 %vm2971_vm0, %v13750_v26  ;;  %14256 = vmatmul.mubr.f32.gmra.mxu1 %v15460_v32  ;;  %v11488_v32 = vld [vmem:[%s18522_s4 + $0x68] sm:$0xff] }
 0x46d   :  { %14258 = vmatprep.mubr.f32.mxu1 %v15461_v10 }
 0x46e   :  { %v3454_v48 = vpop.f32.mrf.mxu1 }
 0x46f   :  { %13779 = vmatprep.mubr.msk.f32.mxu0 %vm2971_vm0, %v3454_v48 }
 0x470   :  { %v13756_v14 = vpop.f32.mrf.mxu1  ;;  %13780 = vmatmul.mubr.msk.f32.gmra.mxu0 %vm2971_vm0, %v13753_v57  ;;  %14259 = vmatmul.mubr.f32.gmra.mxu1 %v15462_v12 }
 0x471   :  { %14261 = vmatprep.mubr.f32.mxu1 %v15463_v11 }
 0x472   :  { %v3464_v7 = vpop.f32.mrf.mxu1 }
 0x473   :  { %13782 = vmatprep.mubr.msk.f32.mxu0 %vm2971_vm0, %v3464_v7 }
 0x474   :  { %v13759_v18 = vpop.f32.mrf.mxu1  ;;  %13783 = vmatmul.mubr.msk.f32.gmra.mxu0 %vm2971_vm0, %v13756_v14  ;;  %14262 = vmatmul.mubr.f32.gmra.mxu1 %v15464_v35 }
 0x475   :  { %14264 = vmatprep.mubr.f32.mxu1 %v15465_v60 }
 0x476   :  { %v3474_v42 = vpop.f32.mrf.mxu1 }
 0x477   :  { %13785 = vmatprep.mubr.msk.f32.mxu0 %vm2971_vm0, %v3474_v42 }
 0x478   :  { %v13762_v4 = vpop.f32.mrf.mxu1  ;;  %13786 = vmatmul.mubr.msk.f32.gmra.mxu0 %vm2971_vm0, %v13759_v18  ;;  %14265 = vmatmul.mubr.f32.gmra.mxu1 %v15466_v9 }
 0x479   :  { %14267 = vmatprep.mubr.f32.mxu1 %v15467_v46 }
 0x47a   :  { %v3484_v3 = vpop.f32.mrf.mxu1 }
 0x47b   :  { %13788 = vmatprep.mubr.msk.f32.mxu0 %vm2971_vm0, %v3484_v3 }
 0x47c   :  { %v13765_v56 = vpop.f32.mrf.mxu1  ;;  %13789 = vmatmul.mubr.msk.f32.gmra.mxu0 %vm2971_vm0, %v13762_v4  ;;  %14268 = vmatmul.mubr.f32.gmra.mxu1 %v15468_v13  ;;  %v11487_v13 = vld [vmem:[%s18522_s4 + $0x60] sm:$0xff] }
 0x47d   :  { %14330 = vmatprep.mubr.f32.mxu1 %v15469_v31 }
 0x47e   :  { %v3494_v40 = vpop.f32.mrf.mxu1 }
 0x47f   :  { %13791 = vmatprep.mubr.msk.f32.mxu0 %vm2971_vm0, %v3494_v40  ;;  %v11506_v40 = vld [vmem:[%s18522_s4 + $0x78] sm:$0xff] }
 0x480   :  { %13792 = vmatmul.mubr.msk.f32.gmra.mxu0 %vm2971_vm0, %v13765_v56  ;;  %v13828_v21 = vpop.f32.mrf.mxu1 }
 0x482   :  { %v3781_v6 = vpop.f32.mrf.mxu1 }
 0x483   :  { %13854 = vmatprep.mubr.msk.f32.mxu0 %vm2971_vm0, %v3781_v6 }
 0x484   :  { %v13831_v5 = vpop.f32.mrf.mxu1  ;;  %13855 = vmatmul.mubr.msk.f32.vlgmr.msra.gmra.mxu0 %vm2971_vm0, %v13828_v21 }
 0x485   :  { %13935 = vmatpush3.msra.mxu0 %v11452_v33 }
 0x486   :  { %v3791_v53 = vpop.f32.mrf.mxu1  ;;  %13936 = vmatprep.subr.mxu0 %v11451_v16 }
 0x487   :  { %13857 = vmatprep.mubr.msk.f32.mxu0 %vm2971_vm0, %v3791_v53  ;;  %13937 = vmatpush3.msra.mxu0 %v11451_v16 }
 0x488   :  { %v13834_v63 = vpop.f32.mrf.mxu1  ;;  %13858 = vmatmul.mubr.msk.f32.gmra.mxu0 %vm2971_vm0, %v13831_v5  ;;  %14018 = vmatprep.subr.mxu0 %v11470_v15 }
 0x48a   :  { %v3801_v55 = vpop.f32.mrf.mxu1 }
 0x48b   :  { %13860 = vmatprep.mubr.msk.f32.mxu0 %vm2971_vm0, %v3801_v55 }
 0x48c   :  { %v13837_v62 = vpop.f32.mrf.mxu1  ;;  %13861 = vmatmul.mubr.msk.f32.gmra.mxu0 %vm2971_vm0, %v13834_v63 }
 0x48e   :  { %v3811_v2 = vpop.f32.mrf.mxu1 }
 0x48f   :  { %13863 = vmatprep.mubr.msk.f32.mxu0 %vm2971_vm0, %v3811_v2 }
 0x490   :  { %v13840_v0 = vpop.f32.mrf.mxu1  ;;  %13864 = vmatmul.mubr.msk.f32.gmra.mxu0 %vm2971_vm0, %v13837_v62 }
 0x492   :  { %v3821_v25 = vpop.f32.mrf.mxu1 }
 0x493   :  { %13866 = vmatprep.mubr.msk.f32.mxu0 %vm2971_vm0, %v3821_v25 }
 0x494   :  { %v13843_v54 = vpop.f32.mrf.mxu1  ;;  %13867 = vmatmul.mubr.msk.f32.gmra.mxu0 %vm2971_vm0, %v13840_v0 }
 0x496   :  { %v3831_v61 = vpop.f32.mrf.mxu1 }
 0x497   :  { %13869 = vmatprep.mubr.msk.f32.mxu0 %vm2971_vm0, %v3831_v61 }
 0x498   :  { %v13846_v44 = vpop.f32.mrf.mxu1  ;;  %13870 = vmatmul.mubr.msk.f32.gmra.mxu0 %vm2971_vm0, %v13843_v54 }
 0x49a   :  { %v3841_v41 = vpop.f32.mrf.mxu1 }
 0x49b   :  { %13872 = vmatprep.mubr.msk.f32.mxu0 %vm2971_vm0, %v3841_v41  ;;  %v11505_v41 = vld [vmem:[%s18522_s4 + $0x70] sm:$0xff] }
 0x49c   :  { %v13849_v33 = vpop.f32.mrf.mxu1  ;;  %13873 = vmatmul.mubr.msk.f32.gmra.mxu0 %vm2971_vm0, %v13846_v44 }
 0x49e   :  { %v3851_v26 = vpop.f32.mrf.mxu1 }
 0x49f   :  { %13875 = vmatprep.mubr.msk.f32.mxu0 %vm2971_vm0, %v3851_v26  ;;  %v11524_v26 = vld [vmem:[%s18522_s4 + $0x88] sm:$0xff] }
 0x4a0   :  { %13876 = vmatmul.mubr.msk.f32.gmra.mxu0 %vm2971_vm0, %v13849_v33  ;;  %v13912_v45 = vpop.f32.mrf.mxu1 }
 0x4a2   :  { %v4138_v30 = vpop.f32.mrf.mxu1 }
 0x4a3   :  { %13938 = vmatprep.mubr.msk.f32.mxu0 %vm2971_vm0, %v4138_v30 }
 0x4a4   :  { %v13915_v57 = vpop.f32.mrf.mxu1  ;;  %13939 = vmatmul.mubr.msk.f32.vlgmr.msra.gmra.mxu0 %vm2971_vm0, %v13912_v45 }
 0x4a5   :  { %14019 = vmatpush3.msra.mxu0 %v11470_v15 }
 0x4a6   :  { %v4148_v10 = vpop.f32.mrf.mxu1  ;;  %14020 = vmatprep.subr.mxu0 %v11469_v8 }
 0x4a7   :  { %13941 = vmatprep.mubr.msk.f32.mxu0 %vm2971_vm0, %v4148_v10  ;;  %14021 = vmatpush3.msra.mxu0 %v11469_v8 }
 0x4a8   :  { %v13918_v48 = vpop.f32.mrf.mxu1  ;;  %13942 = vmatmul.mubr.msk.f32.gmra.mxu0 %vm2971_vm0, %v13915_v57  ;;  %14102 = vmatprep.subr.mxu0 %v11488_v32 }
 0x4aa   :  { %v4158_v14 = vpop.f32.mrf.mxu1 }
 0x4ab   :  { %13944 = vmatprep.mubr.msk.f32.mxu0 %vm2971_vm0, %v4158_v14 }
 0x4ac   :  { %v13921_v12 = vpop.f32.mrf.mxu1  ;;  %13945 = vmatmul.mubr.msk.f32.gmra.mxu0 %vm2971_vm0, %v13918_v48 }
 0x4ae   :  { %v4168_v11 = vpop.f32.mrf.mxu1 }
 0x4af   :  { %13947 = vmatprep.mubr.msk.f32.mxu0 %vm2971_vm0, %v4168_v11 }
 0x4b0   :  { %v13924_v7 = vpop.f32.mrf.mxu1  ;;  %13948 = vmatmul.mubr.msk.f32.gmra.mxu0 %vm2971_vm0, %v13921_v12 }
 0x4b2   :  { %v4178_v18 = vpop.f32.mrf.mxu1 }
 0x4b3   :  { %13950 = vmatprep.mubr.msk.f32.mxu0 %vm2971_vm0, %v4178_v18 }
 0x4b4   :  { %v13927_v35 = vpop.f32.mrf.mxu1  ;;  %13951 = vmatmul.mubr.msk.f32.gmra.mxu0 %vm2971_vm0, %v13924_v7 }
 0x4b6   :  { %v4188_v60 = vpop.f32.mrf.mxu1 }
 0x4b7   :  { %13953 = vmatprep.mubr.msk.f32.mxu0 %vm2971_vm0, %v4188_v60 }
 0x4b8   :  { %v13930_v42 = vpop.f32.mrf.mxu1  ;;  %13954 = vmatmul.mubr.msk.f32.gmra.mxu0 %vm2971_vm0, %v13927_v35 }
 0x4ba   :  { %v4198_v4 = vpop.f32.mrf.mxu1 }
 0x4bb   :  { %13956 = vmatprep.mubr.msk.f32.mxu0 %vm2971_vm0, %v4198_v4  ;;  %v11523_v4 = vld [vmem:[%s18522_s4 + $0x80] sm:$0xff] }
 0x4bc   :  { %v13933_v9 = vpop.f32.mrf.mxu1  ;;  %13957 = vmatmul.mubr.msk.f32.gmra.mxu0 %vm2971_vm0, %v13930_v42 }
 0x4be   :  { %v4208_v46 = vpop.f32.mrf.mxu1 }
 0x4bf   :  { %13959 = vmatprep.mubr.msk.f32.mxu0 %vm2971_vm0, %v4208_v46 }
 0x4c0   :  { %13960 = vmatmul.mubr.msk.f32.gmra.mxu0 %vm2971_vm0, %v13933_v9  ;;  %v13996_v3 = vpop.f32.mrf.mxu1 }
 0x4c2   :  { %v4495_v56 = vpop.f32.mrf.mxu1 }
 0x4c3   :  { %14022 = vmatprep.mubr.msk.f32.mxu0 %vm2971_vm0, %v4495_v56 }
 0x4c4   :  { %v13999_v31 = vpop.f32.mrf.mxu1  ;;  %14023 = vmatmul.mubr.msk.f32.vlgmr.msra.gmra.mxu0 %vm2971_vm0, %v13996_v3 }
 0x4c5   :  { %14103 = vmatpush3.msra.mxu0 %v11488_v32 }
 0x4c6   :  { %v4505_v21 = vpop.f32.mrf.mxu1  ;;  %14104 = vmatprep.subr.mxu0 %v11487_v13 }
 0x4c7   :  { %14025 = vmatprep.mubr.msk.f32.mxu0 %vm2971_vm0, %v4505_v21  ;;  %14105 = vmatpush3.msra.mxu0 %v11487_v13 }
 0x4c8   :  { %v14002_v6 = vpop.f32.mrf.mxu1  ;;  %14026 = vmatmul.mubr.msk.f32.gmra.mxu0 %vm2971_vm0, %v13999_v31  ;;  %14186 = vmatprep.subr.mxu0 %v11506_v40 }
 0x4ca   :  { %v4515_v16 = vpop.f32.mrf.mxu1 }
 0x4cb   :  { %14028 = vmatprep.mubr.msk.f32.mxu0 %vm2971_vm0, %v4515_v16 }
 0x4cc   :  { %v14005_v5 = vpop.f32.mrf.mxu1  ;;  %14029 = vmatmul.mubr.msk.f32.gmra.mxu0 %vm2971_vm0, %v14002_v6 }
 0x4ce   :  { %v4525_v15 = vpop.f32.mrf.mxu1 }
 0x4cf   :  { %14031 = vmatprep.mubr.msk.f32.mxu0 %vm2971_vm0, %v4525_v15 }
 0x4d0   :  { %v14008_v53 = vpop.f32.mrf.mxu1  ;;  %14032 = vmatmul.mubr.msk.f32.gmra.mxu0 %vm2971_vm0, %v14005_v5 }
 0x4d2   :  { %v4535_v63 = vpop.f32.mrf.mxu1 }
 0x4d3   :  { %14034 = vmatprep.mubr.msk.f32.mxu0 %vm2971_vm0, %v4535_v63 }
 0x4d4   :  { %v14011_v55 = vpop.f32.mrf.mxu1  ;;  %14035 = vmatmul.mubr.msk.f32.gmra.mxu0 %vm2971_vm0, %v14008_v53 }
 0x4d6   :  { %v4545_v62 = vpop.f32.mrf.mxu1 }
 0x4d7   :  { %14037 = vmatprep.mubr.msk.f32.mxu0 %vm2971_vm0, %v4545_v62  ;;  %v17258_v62 = vpop.f32.mrf.mxu0 }
 0x4d8   :  { %v14014_v2 = vpop.f32.mrf.mxu1  ;;  %14038 = vmatmul.mubr.msk.f32.gmra.mxu0 %vm2971_vm0, %v14011_v55 }
 0x4da   :  { %v4555_v0 = vpop.f32.mrf.mxu1 }
 0x4db   :  { %14040 = vmatprep.mubr.msk.f32.mxu0 %vm2971_vm0, %v4555_v0 }
 0x4dc   :  { %v14017_v25 = vpop.f32.mrf.mxu1  ;;  %14041 = vmatmul.mubr.msk.f32.gmra.mxu0 %vm2971_vm0, %v14014_v2 }
 0x4de   :  { %v4565_v54 = vpop.f32.mrf.mxu1 }
 0x4df   :  { %14043 = vmatprep.mubr.msk.f32.mxu0 %vm2971_vm0, %v4565_v54 }
 0x4e0   :  { %14044 = vmatmul.mubr.msk.f32.gmra.mxu0 %vm2971_vm0, %v14017_v25  ;;  %v14080_v61 = vpop.f32.mrf.mxu1 }
 0x4e2   :  { %v4852_v44 = vpop.f32.mrf.mxu1 }
 0x4e3   :  { %14106 = vmatprep.mubr.msk.f32.mxu0 %vm2971_vm0, %v4852_v44 }
 0x4e4   :  { %v14083_v33 = vpop.f32.mrf.mxu1  ;;  %14107 = vmatmul.mubr.msk.f32.vlgmr.msra.gmra.mxu0 %vm2971_vm0, %v14080_v61 }
 0x4e5   :  { %14187 = vmatpush3.msra.mxu0 %v11506_v40 }
 0x4e6   :  { %v4862_v45 = vpop.f32.mrf.mxu1  ;;  %14188 = vmatprep.subr.mxu0 %v11505_v41 }
 0x4e7   :  { %14109 = vmatprep.mubr.msk.f32.mxu0 %vm2971_vm0, %v4862_v45  ;;  %14189 = vmatpush3.msra.mxu0 %v11505_v41 }
 0x4e8   :  { %v14086_v30 = vpop.f32.mrf.mxu1  ;;  %14110 = vmatmul.mubr.msk.f32.gmra.mxu0 %vm2971_vm0, %v14083_v33  ;;  %14270 = vmatprep.subr.mxu0 %v11524_v26 }
 0x4ea   :  { %v4872_v8 = vpop.f32.mrf.mxu1 }
 0x4eb   :  { %14112 = vmatprep.mubr.msk.f32.mxu0 %vm2971_vm0, %v4872_v8 }
 0x4ec   :  { %v14089_v57 = vpop.f32.mrf.mxu1  ;;  %14113 = vmatmul.mubr.msk.f32.gmra.mxu0 %vm2971_vm0, %v14086_v30 }
 0x4ee   :  { %v4882_v32 = vpop.f32.mrf.mxu1 }
 0x4ef   :  { %14115 = vmatprep.mubr.msk.f32.mxu0 %vm2971_vm0, %v4882_v32 }
 0x4f0   :  { %v14092_v10 = vpop.f32.mrf.mxu1  ;;  %14116 = vmatmul.mubr.msk.f32.gmra.mxu0 %vm2971_vm0, %v14089_v57 }
 0x4f2   :  { %v4892_v48 = vpop.f32.mrf.mxu1 }
 0x4f3   :  { %14118 = vmatprep.mubr.msk.f32.mxu0 %vm2971_vm0, %v4892_v48 }
 0x4f4   :  { %v14095_v14 = vpop.f32.mrf.mxu1  ;;  %14119 = vmatmul.mubr.msk.f32.gmra.mxu0 %vm2971_vm0, %v14092_v10 }
 0x4f6   :  { %v4902_v12 = vpop.f32.mrf.mxu1 }
 0x4f7   :  { %14121 = vmatprep.mubr.msk.f32.mxu0 %vm2971_vm0, %v4902_v12 }
 0x4f8   :  { %v14098_v11 = vpop.f32.mrf.mxu1  ;;  %14122 = vmatmul.mubr.msk.f32.gmra.mxu0 %vm2971_vm0, %v14095_v14 }
 0x4fa   :  { %v4912_v7 = vpop.f32.mrf.mxu1 }
 0x4fb   :  { %14124 = vmatprep.mubr.msk.f32.mxu0 %vm2971_vm0, %v4912_v7 }
 0x4fc   :  { %v14101_v18 = vpop.f32.mrf.mxu1  ;;  %14125 = vmatmul.mubr.msk.f32.gmra.mxu0 %vm2971_vm0, %v14098_v11 }
 0x4fe   :  { %v4922_v35 = vpop.f32.mrf.mxu1 }
 0x4ff   :  { %14127 = vmatprep.mubr.msk.f32.mxu0 %vm2971_vm0, %v4922_v35 }
 0x500   :  { %14128 = vmatmul.mubr.msk.f32.gmra.mxu0 %vm2971_vm0, %v14101_v18  ;;  %v14164_v60 = vpop.f32.mrf.mxu1 }
 0x502   :  { %v5209_v42 = vpop.f32.mrf.mxu1 }
 0x503   :  { %14190 = vmatprep.mubr.msk.f32.mxu0 %vm2971_vm0, %v5209_v42 }
 0x504   :  { %v14167_v9 = vpop.f32.mrf.mxu1  ;;  %14191 = vmatmul.mubr.msk.f32.vlgmr.msra.gmra.mxu0 %vm2971_vm0, %v14164_v60 }
 0x505   :  { %14271 = vmatpush3.msra.mxu0 %v11524_v26 }
 0x506   :  { %v5219_v46 = vpop.f32.mrf.mxu1  ;;  %14272 = vmatprep.subr.mxu0 %v11523_v4 }
 0x507   :  { %14193 = vmatprep.mubr.msk.f32.mxu0 %vm2971_vm0, %v5219_v46  ;;  %14273 = vmatpush3.msra.mxu0 %v11523_v4 }
 0x508   :  { %v14170_v3 = vpop.f32.mrf.mxu1  ;;  %14194 = vmatmul.mubr.msk.f32.gmra.mxu0 %vm2971_vm0, %v14167_v9 }
 0x50a   :  { %v5229_v56 = vpop.f32.mrf.mxu1 }
 0x50b   :  { %14196 = vmatprep.mubr.msk.f32.mxu0 %vm2971_vm0, %v5229_v56 }
 0x50c   :  { %v14173_v13 = vpop.f32.mrf.mxu1  ;;  %14197 = vmatmul.mubr.msk.f32.gmra.mxu0 %vm2971_vm0, %v14170_v3 }
 0x50e   :  { %v5239_v31 = vpop.f32.mrf.mxu1 }
 0x50f   :  { %14199 = vmatprep.mubr.msk.f32.mxu0 %vm2971_vm0, %v5239_v31 }
 0x510   :  { %v14176_v40 = vpop.f32.mrf.mxu1  ;;  %14200 = vmatmul.mubr.msk.f32.gmra.mxu0 %vm2971_vm0, %v14173_v13 }
 0x512   :  { %v5249_v21 = vpop.f32.mrf.mxu1 }
 0x513   :  { %14202 = vmatprep.mubr.msk.f32.mxu0 %vm2971_vm0, %v5249_v21  ;;  %v15470_v21 = vld [vmem:[#allocation3 + $0x80] sm:$0xff] }
 0x514   :  { %v14179_v6 = vpop.f32.mrf.mxu1  ;;  %14203 = vmatmul.mubr.msk.f32.gmra.mxu0 %vm2971_vm0, %v14176_v40 }
 0x516   :  { %v5259_v16 = vpop.f32.mrf.mxu1 }
 0x517   :  { %14205 = vmatprep.mubr.msk.f32.mxu0 %vm2971_vm0, %v5259_v16 }
 0x518   :  { %v14182_v5 = vpop.f32.mrf.mxu1  ;;  %14206 = vmatmul.mubr.msk.f32.gmra.mxu0 %vm2971_vm0, %v14179_v6 }
 0x51a   :  { %v5269_v15 = vpop.f32.mrf.mxu1 }
 0x51b   :  { %14208 = vmatprep.mubr.msk.f32.mxu0 %vm2971_vm0, %v5269_v15 }
 0x51c   :  { %v14185_v53 = vpop.f32.mrf.mxu1  ;;  %14209 = vmatmul.mubr.msk.f32.gmra.mxu0 %vm2971_vm0, %v14182_v5 }
 0x51e   :  { %v5279_v63 = vpop.f32.mrf.mxu1 }
 0x51f   :  { %14211 = vmatprep.mubr.msk.f32.mxu0 %vm2971_vm0, %v5279_v63 }
 0x520   :  { %14212 = vmatmul.mubr.msk.f32.gmra.mxu0 %vm2971_vm0, %v14185_v53  ;;  %v14248_v55 = vpop.f32.mrf.mxu1 }
 0x522   :  { %v5566_v2 = vpop.f32.mrf.mxu1 }
 0x523   :  { %14274 = vmatprep.mubr.msk.f32.mxu0 %vm2971_vm0, %v5566_v2 }
 0x524   :  { %v13772_v0 = vpop.f32.mrf.mxu0  ;;  %v14251_v25 = vpop.f32.mrf.mxu1  ;;  %14275 = vmatmul.mubr.msk.f32.vlgmr.msra.gmra.mxu0 %vm2971_vm0, %v14248_v55 }
 0x525   :  { %v3700_v54 = vadd.f32 %v13772_v0, %v17051_v29 }
 0x526   :  { %v17263_v61 = vpop.f32.mrf.mxu0  ;;  %v5576_v44 = vpop.f32.mrf.mxu1 }
 0x527   :  { %18580 = vst [vmem:[#allocation18_spill] sm:$0xff] %v17263_v61  ;;  %14277 = vmatprep.mubr.msk.f32.mxu0 %vm2971_vm0, %v5576_v44 }
 0x528   :  { %v13775_v41 = vpop.f32.mrf.mxu0  ;;  %v14254_v33 = vpop.f32.mrf.mxu1  ;;  %14278 = vmatmul.mubr.msk.f32.gmra.mxu0 %vm2971_vm0, %v14251_v25 }
 0x529   :  { %v3702_v26 = vadd.f32 %v13775_v41, %v17061_v37 }
 0x52a   :  { %v17268_v45 = vpop.f32.mrf.mxu0  ;;  %v5586_v30 = vpop.f32.mrf.mxu1 }
 0x52b   :  { %18581 = vst [vmem:[#allocation13_spill] sm:$0xff] %v17268_v45  ;;  %14280 = vmatprep.mubr.msk.f32.mxu0 %vm2971_vm0, %v5586_v30 }
 0x52c   :  { %v13778_v8 = vpop.f32.mrf.mxu0  ;;  %v14257_v57 = vpop.f32.mrf.mxu1  ;;  %14281 = vmatmul.mubr.msk.f32.gmra.mxu0 %vm2971_vm0, %v14254_v33 }
 0x52d   :  { %v3704_v29 = vadd.f32 %v13778_v8, %v17072_v23 }
 0x52e   :  { %v17273_v32 = vpop.f32.mrf.mxu0  ;;  %v5596_v10 = vpop.f32.mrf.mxu1 }
 0x52f   :  { %14283 = vmatprep.mubr.msk.f32.mxu0 %vm2971_vm0, %v5596_v10 }
 0x530   :  { %v13781_v48 = vpop.f32.mrf.mxu0  ;;  %v14260_v14 = vpop.f32.mrf.mxu1  ;;  %14284 = vmatmul.mubr.msk.f32.gmra.mxu0 %vm2971_vm0, %v14257_v57 }
 0x531   :  { %v3706_v37 = vadd.f32 %v13781_v48, %v17082_v50 }
 0x532   :  { %v17278_v12 = vpop.f32.mrf.mxu0  ;;  %v5606_v11 = vpop.f32.mrf.mxu1 }
 0x533   :  { %14286 = vmatprep.mubr.msk.f32.mxu0 %vm2971_vm0, %v5606_v11 }
 0x534   :  { %v13784_v7 = vpop.f32.mrf.mxu0  ;;  %v14263_v18 = vpop.f32.mrf.mxu1  ;;  %14287 = vmatmul.mubr.msk.f32.gmra.mxu0 %vm2971_vm0, %v14260_v14 }
 0x535   :  { %v3708_v23 = vadd.f32 %v13784_v7, %v17092_v27 }
 0x536   :  { %v17283_v35 = vpop.f32.mrf.mxu0  ;;  %v5616_v60 = vpop.f32.mrf.mxu1 }
 0x537   :  { %14289 = vmatprep.mubr.msk.f32.mxu0 %vm2971_vm0, %v5616_v60 }
 0x538   :  { %v13787_v42 = vpop.f32.mrf.mxu0  ;;  %v14266_v4 = vpop.f32.mrf.mxu1  ;;  %14290 = vmatmul.mubr.msk.f32.gmra.mxu0 %vm2971_vm0, %v14263_v18 }
 0x539   :  { %v3710_v50 = vadd.f32 %v13787_v42, %v17102_v22 }
 0x53a   :  { %v17288_v9 = vpop.f32.mrf.mxu0  ;;  %v5626_v46 = vpop.f32.mrf.mxu1 }
 0x53b   :  { %14292 = vmatprep.mubr.msk.f32.mxu0 %vm2971_vm0, %v5626_v46 }
 0x53c   :  { %v13790_v3 = vpop.f32.mrf.mxu0  ;;  %v14269_v56 = vpop.f32.mrf.mxu1  ;;  %14293 = vmatmul.mubr.msk.f32.gmra.mxu0 %vm2971_vm0, %v14266_v4 }
 0x53d   :  { %v3712_v27 = vadd.f32 %v13790_v3, %v17112_v52 }
 0x53e   :  { %v17293_v13 = vpop.f32.mrf.mxu0  ;;  %v5636_v31 = vpop.f32.mrf.mxu1 }
 0x53f   :  { %14295 = vmatprep.mubr.msk.f32.mxu0 %vm2971_vm0, %v5636_v31 }
 0x540   :  { %v13793_v40 = vpop.f32.mrf.mxu0  ;;  %14296 = vmatmul.mubr.msk.f32.gmra.mxu0 %vm2971_vm0, %v14269_v56 }
 0x541   :  { %v3714_v22 = vadd.f32 %v13793_v40, %v17122_v51  ;;  %14386 = vmatprep.mubr.f32.mxu0 %v15470_v21 }
 0x542   :  { %v17298_v6 = vpop.f32.mrf.mxu0 }
 0x544   :  { %v13856_v16 = vpop.f32.mrf.mxu0 }
 0x545   :  { %v4057_v5 = vadd.f32 %v13856_v16, %v3700_v54 }
 0x546   :  { %v17300_v15 = vpop.f32.mrf.mxu0 }
 0x547   :  { %18582 = vst [vmem:[#allocation33_spill] sm:$0xff] %v17300_v15 }
 0x548   :  { %v13859_v53 = vpop.f32.mrf.mxu0 }
 0x549   :  { %v4059_v52 = vadd.f32 %v13859_v53, %v3702_v26 }
 0x54a   :  { %v17302_v63 = vpop.f32.mrf.mxu0 }
 0x54b   :  { %18583 = vst [vmem:[#allocation34_spill] sm:$0xff] %v17302_v63 }
 0x54c   :  { %v13862_v55 = vpop.f32.mrf.mxu0 }
 0x54d   :  { %v4061_v2 = vadd.f32 %v13862_v55, %v3704_v29 }
 0x54e   :  { %v17304_v0 = vpop.f32.mrf.mxu0 }
 0x550   :  { %v13865_v25 = vpop.f32.mrf.mxu0 }
 0x551   :  { %v4063_v44 = vadd.f32 %v13865_v25, %v3706_v37 }
 0x552   :  { %v17306_v41 = vpop.f32.mrf.mxu0 }
 0x554   :  { %v13868_v51 = vpop.f32.mrf.mxu0 }
 0x555   :  { %v4065_v33 = vadd.f32 %v13868_v51, %v3708_v23 }
 0x556   :  { %v17308_v30 = vpop.f32.mrf.mxu0 }
 0x558   :  { %v13871_v8 = vpop.f32.mrf.mxu0 }
 0x559   :  { %v4067_v54 = vadd.f32 %v13871_v8, %v3710_v50 }
 0x55a   :  { %v17310_v57 = vpop.f32.mrf.mxu0 }
 0x55c   :  { %v13874_v10 = vpop.f32.mrf.mxu0 }
 0x55d   :  { %v4069_v26 = vadd.f32 %v13874_v10, %v3712_v27 }
 0x55e   :  { %v17312_v48 = vpop.f32.mrf.mxu0 }
 0x560   :  { %v13877_v14 = vpop.f32.mrf.mxu0 }
 0x561   :  { %v4071_v29 = vadd.f32 %v13877_v14, %v3714_v22 }
 0x562   :  { %v17314_v11 = vpop.f32.mrf.mxu0 }
 0x564   :  { %v13940_v7 = vpop.f32.mrf.mxu0 }
 0x565   :  { %v4414_v37 = vadd.f32 %v13940_v7, %v4057_v5 }
 0x566   :  { %v17316_v18 = vpop.f32.mrf.mxu0 }
 0x567   :  { %18584 = vst [vmem:[#allocation31_spill] sm:$0xff] %v17316_v18 }
 0x568   :  { %v13943_v60 = vpop.f32.mrf.mxu0 }
 0x569   :  { %v4416_v23 = vadd.f32 %v13943_v60, %v4059_v52 }
 0x56a   :  { %v17318_v42 = vpop.f32.mrf.mxu0 }
 0x56b   :  { %18585 = vst [vmem:[#allocation24_spill] sm:$0xff] %v17318_v42 }
 0x56c   :  { %v13946_v4 = vpop.f32.mrf.mxu0 }
 0x56d   :  { %v4418_v50 = vadd.f32 %v13946_v4, %v4061_v2 }
 0x56e   :  { %v17320_v46 = vpop.f32.mrf.mxu0 }
 0x56f   :  { %18586 = vst [vmem:[#allocation35_spill] sm:$0xff] %v17320_v46  ;;  %v3340_v46 = vadd.f32 %v17117_v24, %v17115_v47 }
 0x570   :  { %v13949_v3 = vpop.f32.mrf.mxu0 }
 0x571   :  { %v4420_v56 = vadd.f32 %v13949_v3, %v4063_v44 }
 0x572   :  { %v17322_v27 = vpop.f32.mrf.mxu0 }
 0x574   :  { %v13952_v31 = vpop.f32.mrf.mxu0 }
 0x575   :  { %v4422_v40 = vadd.f32 %v13952_v31, %v4065_v33 }
 0x576   :  { %v17324_v22 = vpop.f32.mrf.mxu0 }
 0x578   :  { %v13955_v21 = vpop.f32.mrf.mxu0 }
 0x579   :  { %v4424_v16 = vadd.f32 %v13955_v21, %v4067_v54 }
 0x57a   :  { %v17326_v5 = vpop.f32.mrf.mxu0 }
 0x57c   :  { %v13958_v53 = vpop.f32.mrf.mxu0 }
 0x57d   :  { %v4426_v52 = vadd.f32 %v13958_v53, %v4069_v26 }
 0x57e   :  { %v17328_v55 = vpop.f32.mrf.mxu0 }
 0x580   :  { %v13961_v25 = vpop.f32.mrf.mxu0 }
 0x581   :  { %v4428_v2 = vadd.f32 %v13961_v25, %v4071_v29 }
 0x582   :  { %v17330_v51 = vpop.f32.mrf.mxu0 }
 0x584   :  { %v14024_v8 = vpop.f32.mrf.mxu0 }
 0x585   :  { %v4771_v44 = vadd.f32 %v14024_v8, %v4414_v37 }
 0x586   :  { %v17332_v10 = vpop.f32.mrf.mxu0 }
 0x587   :  { %18587 = vst [vmem:[#allocation22_spill] sm:$0xff] %v17332_v10 }
 0x588   :  { %v14027_v14 = vpop.f32.mrf.mxu0 }
 0x589   :  { %v4773_v33 = vadd.f32 %v14027_v14, %v4416_v23 }
 0x58a   :  { %v17334_v7 = vpop.f32.mrf.mxu0 }
 0x58b   :  { %18588 = vst [vmem:[#allocation19_spill] sm:$0xff] %v17334_v7 }
 0x58c   :  { %v14030_v60 = vpop.f32.mrf.mxu0 }
 0x58d   :  { %v4775_v54 = vadd.f32 %v14030_v60, %v4418_v50 }
 0x58e   :  { %v17336_v4 = vpop.f32.mrf.mxu0 }
 0x58f   :  { %18589 = vst [vmem:[#allocation23_spill] sm:$0xff] %v17336_v4 }
 0x590   :  { %v14033_v3 = vpop.f32.mrf.mxu0 }
 0x591   :  { %v4777_v26 = vadd.f32 %v14033_v3, %v4420_v56 }
 0x592   :  { %v17338_v31 = vpop.f32.mrf.mxu0 }
 0x594   :  { %v14036_v21 = vpop.f32.mrf.mxu0 }
 0x595   :  { %v4779_v29 = vadd.f32 %v14036_v21, %v4422_v40 }
 0x596   :  { %v17340_v53 = vpop.f32.mrf.mxu0 }
 0x598   :  { %v14039_v25 = vpop.f32.mrf.mxu0 }
 0x599   :  { %v4781_v37 = vadd.f32 %v14039_v25, %v4424_v16 }
 0x59a   :  { %v17342_v8 = vpop.f32.mrf.mxu0 }
 0x59c   :  { %v14042_v10 = vpop.f32.mrf.mxu0 }
 0x59d   :  { %v4783_v23 = vadd.f32 %v14042_v10, %v4426_v52 }
 0x59e   :  { %v17344_v14 = vpop.f32.mrf.mxu0 }
 0x5a0   :  { %v14045_v18 = vpop.f32.mrf.mxu0 }
 0x5a1   :  { %v17346_v50 = vadd.f32 %v14045_v18, %v4428_v2 }
 0x5a2   :  { %v17348_v60 = vpop.f32.mrf.mxu0 }
 0x5a4   :  { %v14108_v56 = vpop.f32.mrf.mxu0 }
 0x5a5   :  { %v5128_v3 = vadd.f32 %v14108_v56, %v4771_v44 }
 0x5a6   :  { %v17350_v7 = vpop.f32.mrf.mxu0 }
 0x5a7   :  { %18590 = vst [vmem:[#allocation32_spill] sm:$0xff] %v17350_v7 }
 0x5a8   :  { %v14111_v40 = vpop.f32.mrf.mxu0 }
 0x5a9   :  { %v5130_v21 = vadd.f32 %v14111_v40, %v4773_v33 }
 0x5aa   :  { %v17352_v15 = vpop.f32.mrf.mxu0 }
 0x5ab   :  { %18591 = vst [vmem:[#allocation30_spill] sm:$0xff] %v17352_v15 }
 0x5ac   :  { %v14114_v16 = vpop.f32.mrf.mxu0 }
 0x5ad   :  { %v5132_v25 = vadd.f32 %v14114_v16, %v4775_v54 }
 0x5ae   :  { %v17354_v42 = vpop.f32.mrf.mxu0 }
 0x5af   :  { %18592 = vst [vmem:[#allocation28_spill] sm:$0xff] %v17354_v42 }
 0x5b0   :  { %v14117_v52 = vpop.f32.mrf.mxu0 }
 0x5b1   :  { %v17356_v10 = vadd.f32 %v14117_v52, %v4777_v26 }
 0x5b2   :  { %v17358_v61 = vpop.f32.mrf.mxu0 }
 0x5b3   :  { %18593 = vst [vmem:[#allocation14_spill] sm:$0xff] %v17356_v10  ;;  %18594 = vst [vmem:[#allocation15_spill] sm:$0xff] %v17358_v61 }
 0x5b4   :  { %v14120_v18 = vpop.f32.mrf.mxu0 }
 0x5b5   :  { %v17360_v2 = vadd.f32 %v14120_v18, %v4779_v29 }
 0x5b6   :  { %v17362_v4 = vpop.f32.mrf.mxu0 }
 0x5b8   :  { %v14123_v44 = vpop.f32.mrf.mxu0 }
 0x5b9   :  { %v17364_v56 = vadd.f32 %v14123_v44, %v4781_v37 }
 0x5ba   :  { %v17366_v33 = vpop.f32.mrf.mxu0 }
 0x5bc   :  { %v14126_v40 = vpop.f32.mrf.mxu0 }
 0x5bd   :  { %v5140_v7 = vadd.f32 %v14126_v40, %v4783_v23 }
 0x5be   :  { %v5108_v54 = vpop.f32.mrf.mxu0 }
 0x5c0   :  { %v14129_v16 = vpop.f32.mrf.mxu0 }
 0x5c2   :  { %v5118_v15 = vpop.f32.mrf.mxu0 }
 0x5c4   :  { %v14192_v42 = vpop.f32.mrf.mxu0 }
 0x5c5   :  { %v17368_v26 = vadd.f32 %v14192_v42, %v5128_v3 }
 0x5c6   :  { %v17370_v52 = vpop.f32.mrf.mxu0 }
 0x5c7   :  { %18595 = vst [vmem:[#allocation16_spill] sm:$0xff] %v17368_v26  ;;  %18596 = vst [vmem:[#allocation17_spill] sm:$0xff] %v17370_v52 }
 0x5c8   :  { %v14195_v63 = vpop.f32.mrf.mxu0 }
 0x5c9   :  { %v17372_v29 = vadd.f32 %v14195_v63, %v5130_v21 }
 0x5ca   :  { %v17374_v18 = vpop.f32.mrf.mxu0 }
 0x5cb   :  { %18597 = vst [vmem:[#allocation25_spill] sm:$0xff] %v17372_v29  ;;  %18598 = vst [vmem:[#allocation26_spill] sm:$0xff] %v17374_v18 }
 0x5cc   :  { %v14198_v43 = vpop.f32.mrf.mxu0 }
 0x5cd   :  { %v17376_v37 = vadd.f32 %v14198_v43, %v5132_v25 }
 0x5ce   :  { %v17378_v44 = vpop.f32.mrf.mxu0 }
 0x5cf   :  { %18599 = vst [vmem:[#allocation27_spill] sm:$0xff] %v17376_v37  ;;  %18600 = vst [vmem:[#allocation29_spill] sm:$0xff] %v17378_v44 }
 0x5d0   :  { %v17380_v49 = vpop.f32.mrf.mxu0 }
 0x5d1   :  { %18601 = vst [vmem:[#allocation36_spill] sm:$0xff] %v17380_v49 }
 0x5d2   :  { %v17382_v23 = vpop.f32.mrf.mxu0 }
 0x5d3   :  { %18602 = vst [vmem:[#allocation37_spill] sm:$0xff] %v17382_v23 }
 0x5d4   :  { %v17384_v40 = vpop.f32.mrf.mxu0 }
 0x5d6   :  { %v17386_v42 = vpop.f32.mrf.mxu0 }
 0x5d8   :  { %v14207_v3 = vpop.f32.mrf.mxu0 }
 0x5da   :  { %v5455_v26 = vpop.f32.mrf.mxu0 }
 0x5dc   :  { %v14210_v52 = vpop.f32.mrf.mxu0 }
 0x5de   :  { %v5465_v63 = vpop.f32.mrf.mxu0 }
 0x5e0   :  { %v14213_v21 = vpop.f32.mrf.mxu0 }
 0x5e2   :  { %v5475_v29 = vpop.f32.mrf.mxu0 }
 0x5e4   :  { %v17388_v18 = vpop.f32.mrf.mxu0 }
 0x5e5   :  { %18603 = vst [vmem:[#allocation38_spill] sm:$0xff] %v17388_v18 }
 0x5e6   :  { %v17390_v43 = vpop.f32.mrf.mxu0 }
 0x5e7   :  { %18604 = vst [vmem:[#allocation39_spill] sm:$0xff] %v17390_v43  ;;  %v3350_v43 = vadd.f32 %v17258_v62, %v17125_v39  ;;  %v3320_v62 = vadd.f32 %v17097_v36, %v17095_v1  ;;  %v3310_v1 = vadd.f32 %v17087_v58, %v17085_v28  ;;  %v5495_v58 = vadd.f32 %v14207_v3, %v17364_v56 }
 0x5e8   :  { %v17392_v25 = vpop.f32.mrf.mxu0 }
 0x5e9   :  { %18605 = vst [vmem:[#allocation40_spill] sm:$0xff] %v17392_v25  ;;  %v3713_v25 = vadd.f32 %v17298_v6, %v3350_v43  ;;  %v18613_v43 = vld [vmem:[#allocation15_spill] sm:$0xff] }
 0x5ea   :  { %v17394_v37 = vpop.f32.mrf.mxu0 }
 0x5eb   :  { %18606 = vst [vmem:[#allocation41_spill] sm:$0xff] %v17394_v37  ;;  %v3711_v37 = vadd.f32 %v17293_v13, %v3340_v46 }
 0x5ec   :  { %v17396_v44 = vpop.f32.mrf.mxu0 }
 0x5ed   :  { %18607 = vst [vmem:[#allocation42_spill] sm:$0xff] %v17396_v44 }
 0x5ee   :  { %v17398_v23 = vpop.f32.mrf.mxu0 }
 0x5ef   :  { %18608 = vst [vmem:[#allocation43_spill] sm:$0xff] %v17398_v23  ;;  %v3330_v23 = vadd.f32 %v17107_v34, %v17105_v20 }
 0x5f0   :  { %v17400_v49 = vpop.f32.mrf.mxu0 }
 0x5f1   :  { %18609 = vst [vmem:[#allocation44_spill] sm:$0xff] %v17400_v49  ;;  %v4070_v49 = vadd.f32 %v17314_v11, %v3713_v25  ;;  %v3709_v45 = vadd.f32 %v17288_v9, %v3330_v23  ;;  %v3707_v11 = vadd.f32 %v17283_v35, %v3320_v62  ;;  %v3705_v35 = vadd.f32 %v17278_v12, %v3310_v1  ;;  %v18622_v1 = vld [vmem:[#allocation18_spill] sm:$0xff] }
 0x5f2   :  { %v17402_v10 = vpop.f32.mrf.mxu0 }
 0x5f3   :  { %18610 = vst [vmem:[#allocation45_spill] sm:$0xff] %v17402_v10  ;;  %v4068_v10 = vadd.f32 %v17312_v48, %v3711_v37  ;;  %v4427_v39 = vadd.f32 %v17330_v51, %v4070_v49  ;;  %v4066_v13 = vadd.f32 %v17310_v57, %v3709_v45  ;;  %v5142_v48 = vadd.f32 %v14129_v16, %v17346_v50 }
 0x5f4   :  { %v17404_v61 = vpop.f32.mrf.mxu0  ;;  %v5497_v49 = vadd.f32 %v14210_v52, %v5140_v7  ;;  %v4064_v36 = vadd.f32 %v17308_v30, %v3707_v11  ;;  %v17439_v7 = vld [vmem:[%s18523_s5] ss:$0 sm:$0xff]  ;;  %v3300_v52 = vadd.f32 %v17077_v19, %v17075_v38  ;;  %v4062_v12 = vadd.f32 %v17306_v41, %v3705_v35  ;;  %v18619_v11 = vld [vmem:[#allocation23_spill] sm:$0xff] }
 0x5f5   :  { %v4425_v24 = vadd.f32 %v17328_v55, %v4068_v10  ;;  %v4784_v34 = vadd.f32 %v17348_v60, %v4427_v39  ;;  %v4423_v9 = vadd.f32 %v17326_v5, %v4066_v13  ;;  %v5499_v51 = vadd.f32 %v14213_v21, %v5142_v48  ;;  %v18616_v13 = vld [vmem:[#allocation20_spill] sm:$0xff] }
 0x5f6   :  { %v17410_v18 = vpop.f32.mrf.mxu0  ;;  %v4421_v5 = vadd.f32 %v17324_v22, %v4064_v36  ;;  %v3703_v56 = vadd.f32 %v17273_v32, %v3300_v52  ;;  %v4419_v3 = vadd.f32 %v17322_v27, %v4062_v12  ;;  %v5493_v38 = vadd.f32 %v17384_v40, %v17360_v2  ;;  %v18629_v52 = vld [vmem:[#allocation27_spill] sm:$0xff]  ;;  %v18630_v12 = vld [vmem:[#allocation42_spill] sm:$0xff] }
 0x5f7   :  { %v4782_v20 = vadd.f32 %v17344_v14, %v4425_v24  ;;  %v5141_v10 = vadd.f32 %v5118_v15, %v4784_v34  ;;  %v4780_v45 = vadd.f32 %v17342_v8, %v4423_v9  ;;  %v18618_v34 = vld [vmem:[#allocation34_spill] sm:$0xff] }
 0x5f8   :  { %v14291_v44 = vpop.f32.mrf.mxu0  ;;  %v4778_v22 = vadd.f32 %v17340_v53, %v4421_v5  ;;  %v4060_v32 = vadd.f32 %v17304_v0, %v3703_v56  ;;  %v4776_v27 = vadd.f32 %v17338_v31, %v4419_v3  ;;  %v5850_v2 = vadd.f32 %v17404_v61, %v5493_v38  ;;  %v18612_v0 = vld [vmem:[#allocation35_spill] sm:$0xff]  ;;  %v18615_v61 = vld [vmem:[#allocation36_spill] sm:$0xff]  ;;  %v18632_v56 = vld [vmem:[#allocation30_spill] sm:$0xff] }
 0x5f9   :  { %v5139_v55 = vadd.f32 %v5108_v54, %v4782_v20  ;;  %v5498_v60 = vadd.f32 %v5475_v29, %v5141_v10  ;;  %v5137_v15 = vadd.f32 %v17366_v33, %v4780_v45  ;;  %v5852_v29 = vadd.f32 %v14291_v44, %v5495_v58  ;;  %v18623_v45 = vld [vmem:[#allocation24_spill] sm:$0xff]  ;;  %v18627_v58 = vld [vmem:[#allocation19_spill] sm:$0xff] }
 0x5fa   :  { %v5812_v47 = vpop.f32.mrf.mxu0  ;;  %v5135_v21 = vadd.f32 %v17362_v4, %v4778_v22  ;;  %v4417_v31 = vadd.f32 %v18612_v0, %v4060_v32  ;;  %v5133_v25 = vadd.f32 %v18613_v43, %v4776_v27  ;;  %v5846_v22 = vadd.f32 %v18630_v12, %v18629_v52  ;;  %v18635_v27 = vld [vmem:[#allocation26_spill] sm:$0xff] }
 0x5fb   :  { %v5496_v14 = vadd.f32 %v5465_v63, %v5139_v55  ;;  %v5494_v33 = vadd.f32 %v5455_v26, %v5137_v15  ;;  %v3290_v26 = vadd.f32 %v17067_v59, %v17065_v17  ;;  %v5875_v44 = vadd.f32 %v17439_v7, %v5852_v29  ;;  %v18611_v17 = vld [vmem:[#allocation13_spill] sm:$0xff]  ;;  %v18621_v55 = vld [vmem:[#allocation44_spill] sm:$0xff]  ;;  %v15479_v52 = vld [vmem:[#allocation3 + $0xa8] sm:$0xff] }
 0x5fc   :  { %v14294_v6 = vpop.f32.mrf.mxu0  ;;  %v5492_v4 = vadd.f32 %v17386_v42, %v5135_v21  ;;  %v18614_v42 = vld [vmem:[#allocation14_spill] sm:$0xff]  ;;  %v4774_v9 = vadd.f32 %v18619_v11, %v4417_v31  ;;  %v18626_v15 = vld [vmem:[#allocation33_spill] sm:$0xff]  ;;  %v18633_v21 = vld [vmem:[#allocation43_spill] sm:$0xff] }
 0x5fd   :  { %v5854_v50 = vadd.f32 %v14294_v6, %v5497_v49  ;;  %v5851_v19 = vadd.f32 %v5812_v47, %v5494_v33  ;;  %v3701_v59 = vadd.f32 %v18611_v17, %v3290_v26  ;;  %v5491_v47 = vadd.f32 %v18615_v61, %v18614_v42  ;;  %v18617_v6 = vld [vmem:[#allocation21_spill] sm:$0xff]  ;;  %v18634_v26 = vld [vmem:[#allocation22_spill] sm:$0xff]  ;;  %v18638_v31 = vld [vmem:[#allocation32_spill] sm:$0xff] }
 0x5fe   :  { %v5822_v46 = vpop.f32.mrf.mxu0  ;;  %v5849_v24 = vadd.f32 %v17410_v18, %v5492_v4  ;;  %v3280_v20 = vadd.f32 %v18617_v6, %v18616_v13  ;;  %v18620_v18 = vld [vmem:[#allocation37_spill] sm:$0xff]  ;;  %v5873_v49 = vadd.f32 %v17439_v7, %v5850_v2  ;;  %v18641_v13 = vld [vmem:[#allocation16_spill] sm:$0xff]  ;;  %v18642_v6 = vld [vmem:[#allocation38_spill] sm:$0xff] }
 0x5ff   :  { %v5853_v30 = vadd.f32 %v5822_v46, %v5496_v14  ;;  %v5877_v37 = vadd.f32 %v17439_v7, %v5854_v50  ;;  %v5874_v39 = vadd.f32 %v17439_v7, %v5851_v19  ;;  %v4058_v48 = vadd.f32 %v18618_v34, %v3701_v59  ;;  %v18624_v14 = vld [vmem:[#allocation28_spill] sm:$0xff]  ;;  %v18625_v50 = vld [vmem:[#allocation45_spill] sm:$0xff]  ;;  %v18643_v11 = vld [vmem:[#allocation39_spill] sm:$0xff] }
 0x600   :  { %v14297_v57 = vpop.f32.mrf.mxu0  ;;  %v5490_v46 = vadd.f32 %v18620_v18, %v5133_v25  ;;  %v5848_v10 = vadd.f32 %v18621_v55, %v5491_v47  ;;  %v3699_v36 = vadd.f32 %v18622_v1, %v3280_v20  ;;  %v5872_v35 = vadd.f32 %v17439_v7, %v5849_v24  ;;  %v18636_v2 = vld [vmem:[#allocation25_spill] sm:$0xff]  ;;  %v15480_v12 = vld [vmem:[#allocation3 + $0x28] sm:$0xff] }
 0x601   :  { %v5856_v16 = vadd.f32 %v14297_v57, %v5499_v51  ;;  %v5876_v41 = vadd.f32 %v17439_v7, %v5853_v30  ;;  %v17470_v40 = vmax.f32 %v5877_v37, 0.0  ;;  %v17496_v51 = vmax.f32 %v5875_v44, 0.0  ;;  %v18631_v37 = vld [vmem:[#allocation31_spill] sm:$0xff]  ;;  %v18637_v44 = vld [vmem:[#allocation40_spill] sm:$0xff]  ;;  %v18639_v25 = vld [vmem:[#allocation41_spill] sm:$0xff] }
 0x602   :  { %v5832_v28 = vpop.f32.mrf.mxu0  ;;  %v4415_v57 = vadd.f32 %v18623_v45, %v4058_v48  ;;  %v17507_v5 = vmax.f32 %v5874_v39, 0.0  ;;  %v5871_v33 = vadd.f32 %v17439_v7, %v5848_v10  ;;  %v17519_v29 = vmax.f32 %v5873_v49, 0.0  ;;  %v18640_v24 = vld [vmem:[#allocation17_spill] sm:$0xff]  ;;  %v6194_v45 = vld [vmem:[#allocation5 + $0x38] sm:$0xff] }
 0x603   :  { %v5879_v8 = vadd.f32 %v17439_v7, %v5856_v16  ;;  %v5855_v54 = vadd.f32 %v5832_v28, %v5498_v60  ;;  %v17483_v62 = vmax.f32 %v5876_v41, 0.0  ;;  %v5131_v60 = vadd.f32 %v18624_v14, %v4774_v9  ;;  %v15472_v14 = vld [vmem:[#allocation3 + $0x88] sm:$0xff] }
 0x604   :  { %v5847_v16 = vadd.f32 %v18625_v50, %v5490_v46  ;;  %v4056_v28 = vadd.f32 %v18626_v15, %v3699_v36  ;;  %v4772_v30 = vadd.f32 %v18627_v58, %v4415_v57  ;;  %v17529_v41 = vmax.f32 %v5872_v35, 0.0  ;;  %v15471_v57 = vld [vmem:[#allocation3 + $0x8] sm:$0xff]  ;;  %v6044_v50 = vld [vmem:[#allocation5 + $0x18] sm:$0xff]  ;;  %v15474_v35 = vld [vmem:[#allocation3 + $0x90] sm:$0xff] }
 0x605   :  { %v17448_v23 = vmax.f32 %v5879_v8, 0.0  ;;  %v5878_v63 = vadd.f32 %v17439_v7, %v5855_v54  ;;  %v18628_v8 = vld [vmem:[#allocation29_spill] sm:$0xff]  ;;  %v5844_v17 = vadd.f32 %v18637_v44, %v18636_v2  ;;  %v5869_v59 = vadd.f32 %v17439_v7, %v5846_v22  ;;  %v6192_v15 = vld [vmem:[#allocation5 + $0x28] sm:$0xff]  ;;  %v6043_v22 = vld [vmem:[#allocation5 + $0x10] sm:$0xff] }
 0x606   :  { %v5488_v54 = vadd.f32 %v18628_v8, %v5131_v60  ;;  %v5129_v3 = vadd.f32 %v18632_v56, %v4772_v30  ;;  %v5870_v19 = vadd.f32 %v17439_v7, %v5847_v16  ;;  %v17540_v0 = vmax.f32 %v5871_v33, 0.0  ;;  %v6193_v60 = vld [vmem:[#allocation5 + $0x30] sm:$0xff]  ;;  %v6191_v58 = vld [vmem:[#allocation5 + $0x20] sm:$0xff]  ;;  %v15476_v30 = vld [vmem:[#allocation3 + $0x18] sm:$0xff] }
 0x607   :  { %v17457_v53 = vmax.f32 %v5878_v63, 0.0  ;;  %14298 = vmatprep.subr.mxu1 %v17448_v23  ;;  %14354 = vmatprep.subr.mxu0 %v17448_v23  ;;  %v4413_v63 = vadd.f32 %v18631_v37, %v4056_v28  ;;  %v5842_v20 = vadd.f32 %v18642_v6, %v18641_v13  ;;  %v5867_v34 = vadd.f32 %v17439_v7, %v5844_v17  ;;  %v15473_v16 = vld [vmem:[#allocation3 + $0x10] sm:$0xff]  ;;  %v15475_v28 = vld [vmem:[#allocation3 + $0x98] sm:$0xff]  ;;  %v15477_v8 = vld [vmem:[#allocation3 + $0x20] sm:$0xff] }
 0x608   :  { %14299 = vmatpush3.msra.mxu1 %v17448_v23  ;;  %14355 = vmatpush3.msra.mxu0 %v17448_v23  ;;  %v5845_v38 = vadd.f32 %v18633_v21, %v5488_v54  ;;  %v5486_v4 = vadd.f32 %v18635_v27, %v5129_v3  ;;  %v17549_v47 = vmax.f32 %v5870_v19, 0.0  ;;  %v17559_v48 = vmax.f32 %v5869_v59, 0.0  ;;  %v15478_v54 = vld [vmem:[#allocation3 + $0xa0] sm:$0xff]  ;;  %v15481_v33 = vld [vmem:[#allocation3 + $0x30] sm:$0xff]  ;;  %v15484_v56 = vld [vmem:[#allocation3 + $0x38] sm:$0xff] }
 0x609   :  { %14300 = vmatprep.subr.mxu1 %v17457_v53  ;;  %14356 = vmatprep.subr.mxu0 %v17457_v53  ;;  %v4770_v32 = vadd.f32 %v18634_v26, %v4413_v63  ;;  %v5865_v55 = vadd.f32 %v17439_v7, %v5842_v20  ;;  %v17574_v10 = vmax.f32 %v5867_v34, 0.0  ;;  %v15482_v37 = vld [vmem:[#allocation3 + $0xb0] sm:$0xff]  ;;  %v15483_v63 = vld [vmem:[#allocation3 + $0xb8] sm:$0xff]  ;;  %v15485_v3 = vld [vmem:[#allocation3 + $0xc0] sm:$0xff] }
 0x60a   :  { %14301 = vmatpush3.msra.mxu1 %v17457_v53  ;;  %14357 = vmatpush3.msra.mxu0 %v17457_v53  ;;  %v5843_v42 = vadd.f32 %v18639_v25, %v5486_v4  ;;  %v5868_v61 = vadd.f32 %v17439_v7, %v5845_v38  ;;  %v15486_v21 = vld [vmem:[#allocation3 + $0x40] sm:$0xff]  ;;  %v15487_v38 = vld [vmem:[#allocation3 + $0xc8] sm:$0xff]  ;;  %v15489_v26 = vld [vmem:[#allocation3 + $0xd0] sm:$0xff] }
 0x60b   :  { %14302 = vmatprep.subr.mxu1 %v17470_v40  ;;  %14358 = vmatprep.subr.mxu0 %v17470_v40  ;;  %v5127_v43 = vadd.f32 %v18638_v31, %v4770_v32  ;;  %v17587_v36 = vmax.f32 %v5865_v55, 0.0  ;;  %v15488_v19 = vld [vmem:[#allocation3 + $0x48] sm:$0xff]  ;;  %v15490_v32 = vld [vmem:[#allocation3 + $0x50] sm:$0xff]  ;;  %v15491_v27 = vld [vmem:[#allocation3 + $0xd8] sm:$0xff] }
 0x60c   :  { %14303 = vmatpush3.msra.mxu1 %v17470_v40  ;;  %14359 = vmatpush3.msra.mxu0 %v17470_v40  ;;  %v5866_v18 = vadd.f32 %v17439_v7, %v5843_v42  ;;  %v17567_v46 = vmax.f32 %v5868_v61, 0.0  ;;  %v15492_v4 = vld [vmem:[#allocation3 + $0x58] sm:$0xff]  ;;  %v15493_v2 = vld [vmem:[#allocation3 + $0xe0] sm:$0xff]  ;;  %v15495_v17 = vld [vmem:[#allocation3 + $0xe8] sm:$0xff] }
 0x60d   :  { %14304 = vmatprep.subr.mxu1 %v17483_v62  ;;  %14360 = vmatprep.subr.mxu0 %v17483_v62  ;;  %v5484_v39 = vadd.f32 %v18640_v24, %v5127_v43  ;;  %v15494_v44 = vld [vmem:[#allocation3 + $0x60] sm:$0xff]  ;;  %v15496_v59 = vld [vmem:[#allocation3 + $0x68] sm:$0xff]  ;;  %v15497_v31 = vld [vmem:[#allocation3 + $0xf0] sm:$0xff] }
 0x60e   :  { %14305 = vmatpush3.msra.mxu1 %v17483_v62  ;;  %14361 = vmatpush3.msra.mxu0 %v17483_v62  ;;  %v17581_v1 = vmax.f32 %v5866_v18, 0.0  ;;  %v15498_v43 = vld [vmem:[#allocation3 + $0x70] sm:$0xff]  ;;  %v15499_v25 = vld [vmem:[#allocation3 + $0xf8] sm:$0xff]  ;;  %v6042_v61 = vld [vmem:[#allocation5 + $0x8] sm:$0xff] }
 0x60f   :  { %14306 = vmatprep.subr.mxu1 %v17496_v51  ;;  %14362 = vmatprep.subr.mxu0 %v17496_v51  ;;  %v5841_v9 = vadd.f32 %v18643_v11, %v5484_v39  ;;  %v15500_v42 = vld [vmem:[#allocation3 + $0x78] sm:$0xff]  ;;  %v6041_v24 = vld [vmem:[#allocation5] sm:$0xff] }
 0x610   :  { %14307 = vmatpush3.msra.mxu1 %v17496_v51  ;;  %14363 = vmatpush3.msra.mxu0 %v17496_v51 }
 0x611   :  { %14308 = vmatprep.subr.mxu1 %v17507_v5  ;;  %14364 = vmatprep.subr.mxu0 %v17507_v5  ;;  %v5864_v49 = vadd.f32 %v17439_v7, %v5841_v9 }
 0x612   :  { %14309 = vmatpush3.msra.mxu1 %v17507_v5  ;;  %14365 = vmatpush3.msra.mxu0 %v17507_v5 }
 0x613   :  { %14310 = vmatprep.subr.mxu1 %v17519_v29  ;;  %14366 = vmatprep.subr.mxu0 %v17519_v29  ;;  %v17593_v7 = vmax.f32 %v5864_v49, 0.0 }
 0x614   :  { %14311 = vmatpush3.msra.mxu1 %v17519_v29  ;;  %14367 = vmatpush3.msra.mxu0 %v17519_v29 }
 0x615   :  { %14312 = vmatprep.subr.mxu1 %v17529_v41  ;;  %14368 = vmatprep.subr.mxu0 %v17529_v41 }
 0x616   :  { %14313 = vmatpush3.msra.mxu1 %v17529_v41  ;;  %14369 = vmatpush3.msra.mxu0 %v17529_v41 }
 0x617   :  { %14314 = vmatprep.subr.mxu1 %v17540_v0  ;;  %14370 = vmatprep.subr.mxu0 %v17540_v0 }
 0x618   :  { %14315 = vmatpush3.msra.mxu1 %v17540_v0  ;;  %14371 = vmatpush3.msra.mxu0 %v17540_v0 }
 0x619   :  { %14316 = vmatprep.subr.mxu1 %v17549_v47  ;;  %14372 = vmatprep.subr.mxu0 %v17549_v47 }
 0x61a   :  { %14317 = vmatpush3.msra.mxu1 %v17549_v47  ;;  %14373 = vmatpush3.msra.mxu0 %v17549_v47 }
 0x61b   :  { %14318 = vmatprep.subr.mxu1 %v17559_v48  ;;  %14374 = vmatprep.subr.mxu0 %v17559_v48 }
 0x61c   :  { %14319 = vmatpush3.msra.mxu1 %v17559_v48  ;;  %14375 = vmatpush3.msra.mxu0 %v17559_v48 }
 0x61d   :  { %14320 = vmatprep.subr.mxu1 %v17567_v46  ;;  %14376 = vmatprep.subr.mxu0 %v17567_v46 }
 0x61e   :  { %14321 = vmatpush3.msra.mxu1 %v17567_v46  ;;  %14377 = vmatpush3.msra.mxu0 %v17567_v46 }
 0x61f   :  { %14322 = vmatprep.subr.mxu1 %v17574_v10  ;;  %14378 = vmatprep.subr.mxu0 %v17574_v10 }
 0x620   :  { %14323 = vmatpush3.msra.mxu1 %v17574_v10  ;;  %14379 = vmatpush3.msra.mxu0 %v17574_v10 }
 0x621   :  { %14324 = vmatprep.subr.mxu1 %v17581_v1  ;;  %14380 = vmatprep.subr.mxu0 %v17581_v1 }
 0x622   :  { %14325 = vmatpush3.msra.mxu1 %v17581_v1  ;;  %14381 = vmatpush3.msra.mxu0 %v17581_v1 }
 0x623   :  { %14326 = vmatprep.subr.mxu1 %v17587_v36  ;;  %14382 = vmatprep.subr.mxu0 %v17587_v36 }
 0x624   :  { %14327 = vmatpush3.msra.mxu1 %v17587_v36  ;;  %14383 = vmatpush3.msra.mxu0 %v17587_v36 }
 0x625   :  { %14328 = vmatprep.subr.mxu1 %v17593_v7  ;;  %14384 = vmatprep.subr.mxu0 %v17593_v7 }
 0x626   :  { %14329 = vmatpush3.msra.mxu1 %v17593_v7  ;;  %14385 = vmatpush3.msra.mxu0 %v17593_v7 }
 0x627   :  { %14331 = vmatmul.mubr.f32.vlgmr.msra.gmra.mxu1 %v15471_v57  ;;  %14387 = vmatmul.mubr.f32.vlgmr.msra.gmra.mxu0 %v15472_v14 }
 0x628   :  { %14410 = vmatprep.subr.mxu1 %v6194_v45  ;;  %14333 = vmatprep.mubr.f32.mxu1 %v15473_v16 }
 0x629   :  { %14411 = vmatpush3.msra.mxu1 %v6194_v45  ;;  %14389 = vmatprep.mubr.f32.mxu0 %v15474_v35 }
 0x62a   :  { %14412 = vmatprep.subr.mxu1 %v6193_v60  ;;  %14442 = vmatprep.subr.mxu0 %v6044_v50 }
 0x62b   :  { %14413 = vmatpush3.msra.mxu1 %v6193_v60  ;;  %14390 = vmatmul.mubr.f32.gmra.mxu0 %v15475_v28 }
 0x62c   :  { %14334 = vmatmul.mubr.f32.gmra.mxu1 %v15476_v30  ;;  %14414 = vmatprep.subr.mxu1 %v6192_v15 }
 0x62d   :  { %14415 = vmatpush3.msra.mxu1 %v6192_v15  ;;  %14336 = vmatprep.mubr.f32.mxu1 %v15477_v8 }
 0x62e   :  { %14416 = vmatprep.subr.mxu1 %v6191_v58  ;;  %14392 = vmatprep.mubr.f32.mxu0 %v15478_v54 }
 0x62f   :  { %14417 = vmatpush3.msra.mxu1 %v6191_v58  ;;  %14393 = vmatmul.mubr.f32.gmra.mxu0 %v15479_v52 }
 0x630   :  { %14337 = vmatmul.mubr.f32.gmra.mxu1 %v15480_v12  ;;  %14474 = vmatprep.subr.mxu1 %v17448_v23 }
 0x631   :  { %14339 = vmatprep.mubr.f32.mxu1 %v15481_v33  ;;  %14395 = vmatprep.mubr.f32.mxu0 %v15482_v37 }
 0x632   :  { %14443 = vmatpush3.msra.mxu0 %v6044_v50 }
 0x633   :  { %14396 = vmatmul.mubr.f32.gmra.mxu0 %v15483_v63  ;;  %14444 = vmatprep.subr.mxu0 %v6043_v22 }
 0x634   :  { %14340 = vmatmul.mubr.f32.gmra.mxu1 %v15484_v56  ;;  %14398 = vmatprep.mubr.f32.mxu0 %v15485_v3 }
 0x635   :  { %14342 = vmatprep.mubr.f32.mxu1 %v15486_v21  ;;  %14445 = vmatpush3.msra.mxu0 %v6043_v22 }
 0x636   :  { %14446 = vmatprep.subr.mxu0 %v6042_v61 }
 0x637   :  { %14399 = vmatmul.mubr.f32.gmra.mxu0 %v15487_v38  ;;  %v15501_v38 = vld [vmem:[#allocation3 + $0x100] sm:$0xff] }
 0x638   :  { %14343 = vmatmul.mubr.f32.gmra.mxu1 %v15488_v19  ;;  %14401 = vmatprep.mubr.f32.mxu0 %v15489_v26  ;;  %v15502_v19 = vld [vmem:[#allocation3 + $0x108] sm:$0xff]  ;;  %v15503_v26 = vld [vmem:[#allocation3 + $0x110] sm:$0xff] }
 0x639   :  { %14345 = vmatprep.mubr.f32.mxu1 %v15490_v32  ;;  %14447 = vmatpush3.msra.mxu0 %v6042_v61  ;;  %v15504_v32 = vld [vmem:[#allocation3 + $0x118] sm:$0xff]  ;;  %v15515_v61 = vld [vmem:[#allocation3 + $0x170] sm:$0xff] }
 0x63a   :  { %14448 = vmatprep.subr.mxu0 %v6041_v24 }
 0x63b   :  { %14402 = vmatmul.mubr.f32.gmra.mxu0 %v15491_v27  ;;  %v15505_v27 = vld [vmem:[#allocation3 + $0x120] sm:$0xff] }
 0x63c   :  { %14346 = vmatmul.mubr.f32.gmra.mxu1 %v15492_v4  ;;  %14404 = vmatprep.mubr.f32.mxu0 %v15493_v2  ;;  %v15506_v4 = vld [vmem:[#allocation3 + $0x128] sm:$0xff]  ;;  %v15507_v2 = vld [vmem:[#allocation3 + $0x130] sm:$0xff] }
 0x63d   :  { %14348 = vmatprep.mubr.f32.mxu1 %v15494_v44  ;;  %14449 = vmatpush3.msra.mxu0 %v6041_v24  ;;  %v15508_v44 = vld [vmem:[#allocation3 + $0x138] sm:$0xff] }
 0x63e   :  { %v15516_v24 = vld [vmem:[#allocation3 + $0x178] sm:$0xff] }
 0x63f   :  { %14405 = vmatmul.mubr.f32.gmra.mxu0 %v15495_v17  ;;  %v15509_v17 = vld [vmem:[#allocation3 + $0x140] sm:$0xff] }
 0x640   :  { %14349 = vmatmul.mubr.f32.gmra.mxu1 %v15496_v59  ;;  %14407 = vmatprep.mubr.f32.mxu0 %v15497_v31  ;;  %v15510_v59 = vld [vmem:[#allocation3 + $0x148] sm:$0xff]  ;;  %v15511_v31 = vld [vmem:[#allocation3 + $0x150] sm:$0xff] }
 0x641   :  { %14351 = vmatprep.mubr.f32.mxu1 %v15498_v43  ;;  %v15512_v43 = vld [vmem:[#allocation3 + $0x158] sm:$0xff] }
 0x643   :  { %14408 = vmatmul.mubr.f32.gmra.mxu0 %v15499_v25  ;;  %v15513_v25 = vld [vmem:[#allocation3 + $0x160] sm:$0xff] }
 0x644   :  { %14352 = vmatmul.mubr.f32.gmra.mxu1 %v15500_v42  ;;  %v15514_v42 = vld [vmem:[#allocation3 + $0x168] sm:$0xff] }
 0x6e7   :  { %v14332_v39 = vpop.f32.mrf.mxu1  ;;  %v14388_v13 = vpop.f32.mrf.mxu0 }
 0x6e9   :  { %v5962_v6 = vpop.f32.mrf.mxu1  ;;  %v6111_v20 = vpop.f32.mrf.mxu0 }
 0x6ea   :  { %14418 = vmatprep.mubr.msk.f32.mxu1 %vm6195_vm1, %v6111_v20  ;;  %14450 = vmatprep.mubr.msk.f32.mxu0 %vm6195_vm1, %v5962_v6  ;;  %v15519_v6 = vld [vmem:[#allocation3 + $0x190] sm:$0xff]  ;;  %v15520_v20 = vld [vmem:[#allocation3 + $0x198] sm:$0xff] }
 0x6eb   :  { %v14391_v34 = vpop.f32.mrf.mxu0  ;;  %14419 = vmatmul.mubr.msk.f32.vlgmr.msra.gmra.mxu1 %vm6195_vm1, %v14388_v13  ;;  %14451 = vmatmul.mubr.msk.f32.vlgmr.msra.gmra.mxu0 %vm6195_vm1, %v14332_v39  ;;  %v15517_v39 = vld [vmem:[#allocation3 + $0x180] sm:$0xff]  ;;  %v15518_v13 = vld [vmem:[#allocation3 + $0x188] sm:$0xff] }
 0x6ec   :  { %v14335_v11 = vpop.f32.mrf.mxu1  ;;  %14475 = vmatpush3.msra.mxu1 %v17448_v23 }
 0x6ed   :  { %14476 = vmatprep.subr.mxu1 %v17457_v53  ;;  %v6121_v9 = vpop.f32.mrf.mxu0 }
 0x6ee   :  { %v5972_v18 = vpop.f32.mrf.mxu1  ;;  %14477 = vmatpush3.msra.mxu1 %v17457_v53  ;;  %14421 = vmatprep.mubr.msk.f32.mxu1 %vm6195_vm1, %v6121_v9  ;;  %v15522_v9 = vld [vmem:[#allocation3 + $0x1a8] sm:$0xff] }
 0x6ef   :  { %14453 = vmatprep.mubr.msk.f32.mxu0 %vm6195_vm1, %v5972_v18  ;;  %14478 = vmatprep.subr.mxu1 %v17470_v40  ;;  %v14394_v55 = vpop.f32.mrf.mxu0  ;;  %v15523_v18 = vld [vmem:[#allocation3 + $0x1b0] sm:$0xff] }
 0x6f0   :  { %v14338_v49 = vpop.f32.mrf.mxu1  ;;  %14422 = vmatmul.mubr.msk.f32.gmra.mxu1 %vm6195_vm1, %v14391_v34  ;;  %14454 = vmatmul.mubr.msk.f32.gmra.mxu0 %vm6195_vm1, %v14335_v11  ;;  %v15521_v34 = vld [vmem:[#allocation3 + $0x1a0] sm:$0xff]  ;;  %v6731_v11 = vld [vmem:[#allocation5 + $0x58] sm:$0xff] }
 0x6f1   :  { %14479 = vmatpush3.msra.mxu1 %v17470_v40  ;;  %v6131_v45 = vpop.f32.mrf.mxu0  ;;  %14530 = vmatprep.subr.mxu0 %v6731_v11 }
 0x6f2   :  { %14480 = vmatprep.subr.mxu1 %v17483_v62  ;;  %v5982_v57 = vpop.f32.mrf.mxu1  ;;  %14424 = vmatprep.mubr.msk.f32.mxu1 %vm6195_vm1, %v6131_v45  ;;  %v6730_v45 = vld [vmem:[#allocation5 + $0x50] sm:$0xff] }
 0x6f3   :  { %14481 = vmatpush3.msra.mxu1 %v17483_v62  ;;  %14456 = vmatprep.mubr.msk.f32.mxu0 %vm6195_vm1, %v5982_v57  ;;  %v14397_v14 = vpop.f32.mrf.mxu0  ;;  %v15526_v57 = vld [vmem:[#allocation3 + $0x1c8] sm:$0xff] }
 0x6f4   :  { %14482 = vmatprep.subr.mxu1 %v17496_v51  ;;  %v14341_v60 = vpop.f32.mrf.mxu1  ;;  %14425 = vmatmul.mubr.msk.f32.gmra.mxu1 %vm6195_vm1, %v14394_v55  ;;  %v15524_v55 = vld [vmem:[#allocation3 + $0x1b8] sm:$0xff] }
 0x6f5   :  { %14457 = vmatmul.mubr.msk.f32.gmra.mxu0 %vm6195_vm1, %v14338_v49  ;;  %14483 = vmatpush3.msra.mxu1 %v17496_v51  ;;  %v6141_v50 = vpop.f32.mrf.mxu0  ;;  %v15525_v49 = vld [vmem:[#allocation3 + $0x1c0] sm:$0xff] }
 0x6f6   :  { %14484 = vmatprep.subr.mxu1 %v17507_v5  ;;  %v5992_v16 = vpop.f32.mrf.mxu1  ;;  %14427 = vmatprep.mubr.msk.f32.mxu1 %vm6195_vm1, %v6141_v50  ;;  %v15529_v50 = vld [vmem:[#allocation3 + $0x1e0] sm:$0xff] }
 0x6f7   :  { %14485 = vmatpush3.msra.mxu1 %v17507_v5  ;;  %14459 = vmatprep.mubr.msk.f32.mxu0 %vm6195_vm1, %v5992_v16  ;;  %v14400_v35 = vpop.f32.mrf.mxu0  ;;  %v6729_v16 = vld [vmem:[#allocation5 + $0x48] sm:$0xff] }
 0x6f8   :  { %14486 = vmatprep.subr.mxu1 %v17519_v29  ;;  %v14344_v15 = vpop.f32.mrf.mxu1  ;;  %14428 = vmatmul.mubr.msk.f32.gmra.mxu1 %vm6195_vm1, %v14397_v14  ;;  %v15527_v14 = vld [vmem:[#allocation3 + $0x1d0] sm:$0xff] }
 0x6f9   :  { %14460 = vmatmul.mubr.msk.f32.gmra.mxu0 %vm6195_vm1, %v14341_v60  ;;  %14487 = vmatpush3.msra.mxu1 %v17519_v29  ;;  %v6151_v28 = vpop.f32.mrf.mxu0  ;;  %v15528_v60 = vld [vmem:[#allocation3 + $0x1d8] sm:$0xff] }
 0x6fa   :  { %14488 = vmatprep.subr.mxu1 %v17529_v41  ;;  %v6002_v58 = vpop.f32.mrf.mxu1  ;;  %14430 = vmatprep.mubr.msk.f32.mxu1 %vm6195_vm1, %v6151_v28  ;;  %v15532_v28 = vld [vmem:[#allocation3 + $0x1f8] sm:$0xff] }
 0x6fb   :  { %14489 = vmatpush3.msra.mxu1 %v17529_v41  ;;  %14462 = vmatprep.mubr.msk.f32.mxu0 %vm6195_vm1, %v6002_v58  ;;  %v14403_v30 = vpop.f32.mrf.mxu0  ;;  %v15533_v58 = vld [vmem:[#allocation3 + $0x200] sm:$0xff] }
 0x6fc   :  { %14490 = vmatprep.subr.mxu1 %v17540_v0  ;;  %v14347_v8 = vpop.f32.mrf.mxu1  ;;  %14431 = vmatmul.mubr.msk.f32.gmra.mxu1 %vm6195_vm1, %v14400_v35  ;;  %v15530_v35 = vld [vmem:[#allocation3 + $0x1e8] sm:$0xff] }
 0x6fd   :  { %14463 = vmatmul.mubr.msk.f32.gmra.mxu0 %vm6195_vm1, %v14344_v15  ;;  %14491 = vmatpush3.msra.mxu1 %v17540_v0  ;;  %v6161_v54 = vpop.f32.mrf.mxu0  ;;  %v15531_v15 = vld [vmem:[#allocation3 + $0x1f0] sm:$0xff] }
 0x6fe   :  { %14492 = vmatprep.subr.mxu1 %v17549_v47  ;;  %v6012_v52 = vpop.f32.mrf.mxu1  ;;  %14433 = vmatprep.mubr.msk.f32.mxu1 %vm6195_vm1, %v6161_v54  ;;  %v15535_v54 = vld [vmem:[#allocation3 + $0x210] sm:$0xff] }
 0x6ff   :  { %14493 = vmatpush3.msra.mxu1 %v17549_v47  ;;  %14465 = vmatprep.mubr.msk.f32.mxu0 %vm6195_vm1, %v6012_v52  ;;  %v14406_v12 = vpop.f32.mrf.mxu0  ;;  %v15536_v52 = vld [vmem:[#allocation3 + $0x218] sm:$0xff] }
 0x700   :  { %14494 = vmatprep.subr.mxu1 %v17559_v48  ;;  %v14350_v22 = vpop.f32.mrf.mxu1  ;;  %14434 = vmatmul.mubr.msk.f32.gmra.mxu1 %vm6195_vm1, %v14403_v30  ;;  %v6728_v30 = vld [vmem:[#allocation5 + $0x40] sm:$0xff] }
 0x701   :  { %14466 = vmatmul.mubr.msk.f32.gmra.mxu0 %vm6195_vm1, %v14347_v8  ;;  %14495 = vmatpush3.msra.mxu1 %v17559_v48  ;;  %v6171_v33 = vpop.f32.mrf.mxu0  ;;  %v15534_v8 = vld [vmem:[#allocation3 + $0x208] sm:$0xff] }
 0x702   :  { %14496 = vmatprep.subr.mxu1 %v17567_v46  ;;  %v6022_v37 = vpop.f32.mrf.mxu1  ;;  %14436 = vmatprep.mubr.msk.f32.mxu1 %vm6195_vm1, %v6171_v33  ;;  %v15538_v33 = vld [vmem:[#allocation3 + $0x228] sm:$0xff] }
 0x703   :  { %14497 = vmatpush3.msra.mxu1 %v17567_v46  ;;  %14468 = vmatprep.mubr.msk.f32.mxu0 %vm6195_vm1, %v6022_v37  ;;  %v14409_v63 = vpop.f32.mrf.mxu0  ;;  %v15539_v37 = vld [vmem:[#allocation3 + $0x230] sm:$0xff] }
 0x704   :  { %14498 = vmatprep.subr.mxu1 %v17574_v10  ;;  %v14353_v56 = vpop.f32.mrf.mxu1  ;;  %14437 = vmatmul.mubr.msk.f32.gmra.mxu1 %vm6195_vm1, %v14406_v12  ;;  %v17736_v12 = vld [vmem:[#allocation5 + $0x78] sm:$0xff] }
 0x705   :  { %14469 = vmatmul.mubr.msk.f32.gmra.mxu0 %vm6195_vm1, %v14350_v22  ;;  %14499 = vmatpush3.msra.mxu1 %v17574_v10  ;;  %v6181_v3 = vpop.f32.mrf.mxu0  ;;  %v15537_v22 = vld [vmem:[#allocation3 + $0x220] sm:$0xff] }
 0x706   :  { %14500 = vmatprep.subr.mxu1 %v17581_v1  ;;  %v6032_v21 = vpop.f32.mrf.mxu1  ;;  %14439 = vmatprep.mubr.msk.f32.mxu1 %vm6195_vm1, %v6181_v3  ;;  %v15542_v3 = vld [vmem:[#allocation3 + $0x248] sm:$0xff] }
 0x707   :  { %14501 = vmatpush3.msra.mxu1 %v17581_v1  ;;  %14471 = vmatprep.mubr.msk.f32.mxu0 %vm6195_vm1, %v6032_v21  ;;  %v15543_v21 = vld [vmem:[#allocation3 + $0x250] sm:$0xff] }
 0x708   :  { %14502 = vmatprep.subr.mxu1 %v17587_v36  ;;  %14440 = vmatmul.mubr.msk.f32.gmra.mxu1 %vm6195_vm1, %v14409_v63  ;;  %v15540_v63 = vld [vmem:[#allocation3 + $0x238] sm:$0xff] }
 0x709   :  { %14472 = vmatmul.mubr.msk.f32.gmra.mxu0 %vm6195_vm1, %v14353_v56  ;;  %14503 = vmatpush3.msra.mxu1 %v17587_v36  ;;  %v15541_v56 = vld [vmem:[#allocation3 + $0x240] sm:$0xff] }
 0x70a   :  { %14504 = vmatprep.subr.mxu1 %v17593_v7  ;;  %14506 = vmatprep.mubr.f32.mxu1 %v15501_v38  ;;  %v15544_v38 = vld [vmem:[#allocation3 + $0x258] sm:$0xff] }
 0x70b   :  { %14505 = vmatpush3.msra.mxu1 %v17593_v7  ;;  %14531 = vmatpush3.msra.mxu0 %v6731_v11  ;;  %v15565_v11 = vld [vmem:[#allocation3 + $0x300] sm:$0xff] }
 0x70c   :  { %14562 = vmatprep.subr.mxu1 %v17448_v23  ;;  %14507 = vmatmul.mubr.f32.vlgmr.msra.gmra.mxu1 %v15502_v19  ;;  %v15545_v19 = vld [vmem:[#allocation3 + $0x260] sm:$0xff] }
 0x70d   :  { %14563 = vmatpush3.msra.mxu1 %v17448_v23  ;;  %14509 = vmatprep.mubr.f32.mxu1 %v15503_v26  ;;  %v15546_v26 = vld [vmem:[#allocation3 + $0x268] sm:$0xff] }
 0x70e   :  { %14564 = vmatprep.subr.mxu1 %v17457_v53  ;;  %14532 = vmatprep.subr.mxu0 %v6730_v45 }
 0x70f   :  { %14565 = vmatpush3.msra.mxu1 %v17457_v53  ;;  %14533 = vmatpush3.msra.mxu0 %v6730_v45  ;;  %v15570_v45 = vld [vmem:[#allocation3 + $0x328] sm:$0xff] }
 0x710   :  { %14566 = vmatprep.subr.mxu1 %v17470_v40  ;;  %14510 = vmatmul.mubr.f32.gmra.mxu1 %v15504_v32  ;;  %v15547_v32 = vld [vmem:[#allocation3 + $0x270] sm:$0xff] }
 0x711   :  { %14567 = vmatpush3.msra.mxu1 %v17470_v40  ;;  %14512 = vmatprep.mubr.f32.mxu1 %v15505_v27  ;;  %v15548_v27 = vld [vmem:[#allocation3 + $0x278] sm:$0xff] }
 0x712   :  { %14568 = vmatprep.subr.mxu1 %v17483_v62  ;;  %14534 = vmatprep.subr.mxu0 %v6729_v16 }
 0x713   :  { %14569 = vmatpush3.msra.mxu1 %v17483_v62  ;;  %14535 = vmatpush3.msra.mxu0 %v6729_v16  ;;  %v15575_v16 = vld [vmem:[#allocation3 + $0x350] sm:$0xff] }
 0x714   :  { %14570 = vmatprep.subr.mxu1 %v17496_v51  ;;  %14513 = vmatmul.mubr.f32.gmra.mxu1 %v15506_v4  ;;  %v15549_v4 = vld [vmem:[#allocation3 + $0x280] sm:$0xff] }
 0x715   :  { %14571 = vmatpush3.msra.mxu1 %v17496_v51  ;;  %14515 = vmatprep.mubr.f32.mxu1 %v15507_v2  ;;  %v15550_v2 = vld [vmem:[#allocation3 + $0x288] sm:$0xff] }
 0x716   :  { %14572 = vmatprep.subr.mxu1 %v17507_v5  ;;  %14536 = vmatprep.subr.mxu0 %v6728_v30 }
 0x717   :  { %14573 = vmatpush3.msra.mxu1 %v17507_v5  ;;  %14537 = vmatpush3.msra.mxu0 %v6728_v30  ;;  %v15580_v30 = vld [vmem:[#allocation3 + $0x378] sm:$0xff] }
 0x718   :  { %14574 = vmatprep.subr.mxu1 %v17519_v29  ;;  %14516 = vmatmul.mubr.f32.gmra.mxu1 %v15508_v44  ;;  %v15551_v44 = vld [vmem:[#allocation3 + $0x290] sm:$0xff] }
 0x719   :  { %14575 = vmatpush3.msra.mxu1 %v17519_v29  ;;  %14518 = vmatprep.mubr.f32.mxu1 %v15509_v17  ;;  %v15552_v17 = vld [vmem:[#allocation3 + $0x298] sm:$0xff] }
 0x71a   :  { %14576 = vmatprep.subr.mxu1 %v17529_v41  ;;  %14618 = vmatprep.subr.mxu0 %v17736_v12 }
 0x71b   :  { %14577 = vmatpush3.msra.mxu1 %v17529_v41 }
 0x71c   :  { %14578 = vmatprep.subr.mxu1 %v17540_v0  ;;  %14519 = vmatmul.mubr.f32.gmra.mxu1 %v15510_v59  ;;  %v15553_v59 = vld [vmem:[#allocation3 + $0x2a0] sm:$0xff] }
 0x71d   :  { %14579 = vmatpush3.msra.mxu1 %v17540_v0  ;;  %14521 = vmatprep.mubr.f32.mxu1 %v15511_v31  ;;  %v15554_v31 = vld [vmem:[#allocation3 + $0x2a8] sm:$0xff] }
 0x71e   :  { %14580 = vmatprep.subr.mxu1 %v17549_v47 }
 0x71f   :  { %14581 = vmatpush3.msra.mxu1 %v17549_v47 }
 0x720   :  { %14582 = vmatprep.subr.mxu1 %v17559_v48  ;;  %14522 = vmatmul.mubr.f32.gmra.mxu1 %v15512_v43  ;;  %v15555_v43 = vld [vmem:[#allocation3 + $0x2b0] sm:$0xff] }
 0x721   :  { %14583 = vmatpush3.msra.mxu1 %v17559_v48  ;;  %14524 = vmatprep.mubr.f32.mxu1 %v15513_v25  ;;  %v15556_v25 = vld [vmem:[#allocation3 + $0x2b8] sm:$0xff] }
 0x722   :  { %14584 = vmatprep.subr.mxu1 %v17567_v46 }
 0x723   :  { %14585 = vmatpush3.msra.mxu1 %v17567_v46 }
 0x724   :  { %14586 = vmatprep.subr.mxu1 %v17574_v10  ;;  %14525 = vmatmul.mubr.f32.gmra.mxu1 %v15514_v42  ;;  %v15557_v42 = vld [vmem:[#allocation3 + $0x2c0] sm:$0xff] }
 0x725   :  { %14587 = vmatpush3.msra.mxu1 %v17574_v10  ;;  %14527 = vmatprep.mubr.f32.mxu1 %v15515_v61  ;;  %v15558_v61 = vld [vmem:[#allocation3 + $0x2c8] sm:$0xff] }
 0x726   :  { %14588 = vmatprep.subr.mxu1 %v17581_v1 }
 0x727   :  { %14589 = vmatpush3.msra.mxu1 %v17581_v1 }
 0x728   :  { %14590 = vmatprep.subr.mxu1 %v17587_v36  ;;  %14528 = vmatmul.mubr.f32.gmra.mxu1 %v15516_v24  ;;  %v15559_v24 = vld [vmem:[#allocation3 + $0x2d0] sm:$0xff] }
 0x729   :  { %14591 = vmatpush3.msra.mxu1 %v17587_v36  ;;  %14594 = vmatprep.mubr.f32.mxu1 %v15517_v39  ;;  %v15560_v39 = vld [vmem:[#allocation3 + $0x2d8] sm:$0xff] }
 0x72a   :  { %14592 = vmatprep.subr.mxu1 %v17593_v7 }
 0x72b   :  { %14593 = vmatpush3.msra.mxu1 %v17593_v7 }
 0x72c   :  { %14650 = vmatprep.subr.mxu1 %v17448_v23  ;;  %14595 = vmatmul.mubr.f32.vlgmr.msra.gmra.mxu1 %v15518_v13  ;;  %v15561_v13 = vld [vmem:[#allocation3 + $0x2e0] sm:$0xff] }
 0x72d   :  { %14651 = vmatpush3.msra.mxu1 %v17448_v23  ;;  %14597 = vmatprep.mubr.f32.mxu1 %v15519_v6  ;;  %v15562_v6 = vld [vmem:[#allocation3 + $0x2e8] sm:$0xff] }
 0x72e   :  { %14652 = vmatprep.subr.mxu1 %v17457_v53 }
 0x72f   :  { %14653 = vmatpush3.msra.mxu1 %v17457_v53 }
 0x730   :  { %14654 = vmatprep.subr.mxu1 %v17470_v40  ;;  %14598 = vmatmul.mubr.f32.gmra.mxu1 %v15520_v20  ;;  %v15563_v20 = vld [vmem:[#allocation3 + $0x2f0] sm:$0xff] }
 0x731   :  { %14655 = vmatpush3.msra.mxu1 %v17470_v40  ;;  %14600 = vmatprep.mubr.f32.mxu1 %v15521_v34  ;;  %v15564_v34 = vld [vmem:[#allocation3 + $0x2f8] sm:$0xff] }
 0x732   :  { %14656 = vmatprep.subr.mxu1 %v17483_v62 }
 0x733   :  { %14657 = vmatpush3.msra.mxu1 %v17483_v62 }
 0x734   :  { %14658 = vmatprep.subr.mxu1 %v17496_v51  ;;  %14601 = vmatmul.mubr.f32.gmra.mxu1 %v15522_v9  ;;  %v15566_v9 = vld [vmem:[#allocation3 + $0x308] sm:$0xff] }
 0x735   :  { %14659 = vmatpush3.msra.mxu1 %v17496_v51  ;;  %14603 = vmatprep.mubr.f32.mxu1 %v15523_v18  ;;  %v15567_v18 = vld [vmem:[#allocation3 + $0x310] sm:$0xff] }
 0x736   :  { %14660 = vmatprep.subr.mxu1 %v17507_v5 }
 0x737   :  { %14661 = vmatpush3.msra.mxu1 %v17507_v5 }
 0x738   :  { %14662 = vmatprep.subr.mxu1 %v17519_v29  ;;  %14604 = vmatmul.mubr.f32.gmra.mxu1 %v15524_v55  ;;  %v15568_v55 = vld [vmem:[#allocation3 + $0x318] sm:$0xff] }
 0x739   :  { %14663 = vmatpush3.msra.mxu1 %v17519_v29  ;;  %14606 = vmatprep.mubr.f32.mxu1 %v15525_v49  ;;  %v15569_v49 = vld [vmem:[#allocation3 + $0x320] sm:$0xff] }
 0x73a   :  { %14664 = vmatprep.subr.mxu1 %v17529_v41 }
 0x73b   :  { %14665 = vmatpush3.msra.mxu1 %v17529_v41 }
 0x73c   :  { %14666 = vmatprep.subr.mxu1 %v17540_v0  ;;  %14607 = vmatmul.mubr.f32.gmra.mxu1 %v15526_v57  ;;  %v15571_v57 = vld [vmem:[#allocation3 + $0x330] sm:$0xff] }
 0x73d   :  { %14667 = vmatpush3.msra.mxu1 %v17540_v0  ;;  %14609 = vmatprep.mubr.f32.mxu1 %v15527_v14  ;;  %v15572_v14 = vld [vmem:[#allocation3 + $0x338] sm:$0xff] }
 0x73e   :  { %14668 = vmatprep.subr.mxu1 %v17549_v47 }
 0x73f   :  { %14669 = vmatpush3.msra.mxu1 %v17549_v47 }
 0x740   :  { %14670 = vmatprep.subr.mxu1 %v17559_v48  ;;  %14610 = vmatmul.mubr.f32.gmra.mxu1 %v15528_v60  ;;  %v15573_v60 = vld [vmem:[#allocation3 + $0x340] sm:$0xff] }
 0x741   :  { %14671 = vmatpush3.msra.mxu1 %v17559_v48  ;;  %14612 = vmatprep.mubr.f32.mxu1 %v15529_v50  ;;  %v15574_v50 = vld [vmem:[#allocation3 + $0x348] sm:$0xff] }
 0x742   :  { %14672 = vmatprep.subr.mxu1 %v17567_v46 }
 0x743   :  { %14673 = vmatpush3.msra.mxu1 %v17567_v46 }
 0x744   :  { %14674 = vmatprep.subr.mxu1 %v17574_v10  ;;  %14613 = vmatmul.mubr.f32.gmra.mxu1 %v15530_v35  ;;  %v15576_v35 = vld [vmem:[#allocation3 + $0x358] sm:$0xff] }
 0x745   :  { %14675 = vmatpush3.msra.mxu1 %v17574_v10  ;;  %14615 = vmatprep.mubr.f32.mxu1 %v15531_v15  ;;  %v15577_v15 = vld [vmem:[#allocation3 + $0x360] sm:$0xff] }
 0x746   :  { %14676 = vmatprep.subr.mxu1 %v17581_v1 }
 0x747   :  { %14677 = vmatpush3.msra.mxu1 %v17581_v1 }
 0x748   :  { %14678 = vmatprep.subr.mxu1 %v17587_v36  ;;  %14616 = vmatmul.mubr.f32.gmra.mxu1 %v15532_v28  ;;  %v15578_v28 = vld [vmem:[#allocation3 + $0x368] sm:$0xff] }
 0x749   :  { %14679 = vmatpush3.msra.mxu1 %v17587_v36  ;;  %14682 = vmatprep.mubr.f32.mxu1 %v15533_v58  ;;  %v15579_v58 = vld [vmem:[#allocation3 + $0x370] sm:$0xff] }
 0x74a   :  { %14680 = vmatprep.subr.mxu1 %v17593_v7 }
 0x74b   :  { %14681 = vmatpush3.msra.mxu1 %v17593_v7 }
 0x74c   :  { %14738 = vmatprep.subr.mxu1 %v17448_v23  ;;  %14683 = vmatmul.mubr.f32.vlgmr.msra.gmra.mxu1 %v15534_v8  ;;  %v15581_v8 = vld [vmem:[#allocation3 + $0x380] sm:$0xff] }
 0x74d   :  { %14739 = vmatpush3.msra.mxu1 %v17448_v23  ;;  %14685 = vmatprep.mubr.f32.mxu1 %v15535_v54 }
 0x74e   :  { %14740 = vmatprep.subr.mxu1 %v17457_v53 }
 0x74f   :  { %14741 = vmatpush3.msra.mxu1 %v17457_v53 }
 0x750   :  { %14742 = vmatprep.subr.mxu1 %v17470_v40  ;;  %14686 = vmatmul.mubr.f32.gmra.mxu1 %v15536_v52 }
 0x751   :  { %14743 = vmatpush3.msra.mxu1 %v17470_v40  ;;  %14688 = vmatprep.mubr.f32.mxu1 %v15537_v22 }
 0x752   :  { %14744 = vmatprep.subr.mxu1 %v17483_v62 }
 0x753   :  { %14745 = vmatpush3.msra.mxu1 %v17483_v62 }
 0x754   :  { %14746 = vmatprep.subr.mxu1 %v17496_v51  ;;  %14689 = vmatmul.mubr.f32.gmra.mxu1 %v15538_v33  ;;  %v15582_v33 = vld [vmem:[#allocation3 + $0x388] sm:$0xff] }
 0x755   :  { %14747 = vmatpush3.msra.mxu1 %v17496_v51  ;;  %14691 = vmatprep.mubr.f32.mxu1 %v15539_v37 }
 0x756   :  { %14748 = vmatprep.subr.mxu1 %v17507_v5 }
 0x757   :  { %14749 = vmatpush3.msra.mxu1 %v17507_v5 }
 0x758   :  { %14750 = vmatprep.subr.mxu1 %v17519_v29  ;;  %14692 = vmatmul.mubr.f32.gmra.mxu1 %v15540_v63 }
 0x759   :  { %14751 = vmatpush3.msra.mxu1 %v17519_v29  ;;  %14694 = vmatprep.mubr.f32.mxu1 %v15541_v56  ;;  %v15583_v56 = vld [vmem:[#allocation3 + $0x390] sm:$0xff] }
 0x75a   :  { %14752 = vmatprep.subr.mxu1 %v17529_v41 }
 0x75b   :  { %14753 = vmatpush3.msra.mxu1 %v17529_v41 }
 0x75c   :  { %14754 = vmatprep.subr.mxu1 %v17540_v0  ;;  %14695 = vmatmul.mubr.f32.gmra.mxu1 %v15542_v3 }
 0x75d   :  { %14755 = vmatpush3.msra.mxu1 %v17540_v0  ;;  %14697 = vmatprep.mubr.f32.mxu1 %v15543_v21 }
 0x75e   :  { %14756 = vmatprep.subr.mxu1 %v17549_v47 }
 0x75f   :  { %14757 = vmatpush3.msra.mxu1 %v17549_v47 }
 0x760   :  { %14758 = vmatprep.subr.mxu1 %v17559_v48  ;;  %14698 = vmatmul.mubr.f32.gmra.mxu1 %v15544_v38  ;;  %v15584_v38 = vld [vmem:[#allocation3 + $0x398] sm:$0xff] }
 0x761   :  { %14759 = vmatpush3.msra.mxu1 %v17559_v48  ;;  %14700 = vmatprep.mubr.f32.mxu1 %v15545_v19 }
 0x762   :  { %14760 = vmatprep.subr.mxu1 %v17567_v46 }
 0x763   :  { %14761 = vmatpush3.msra.mxu1 %v17567_v46 }
 0x764   :  { %14762 = vmatprep.subr.mxu1 %v17574_v10  ;;  %14701 = vmatmul.mubr.f32.gmra.mxu1 %v15546_v26 }
 0x765   :  { %14763 = vmatpush3.msra.mxu1 %v17574_v10  ;;  %14703 = vmatprep.mubr.f32.mxu1 %v15547_v32 }
 0x766   :  { %14764 = vmatprep.subr.mxu1 %v17581_v1 }
 0x767   :  { %14765 = vmatpush3.msra.mxu1 %v17581_v1 }
 0x768   :  { %14766 = vmatprep.subr.mxu1 %v17587_v36  ;;  %14704 = vmatmul.mubr.f32.gmra.mxu1 %v15548_v27  ;;  %v15586_v27 = vld [vmem:[#allocation3 + $0x3a8] sm:$0xff] }
 0x769   :  { %14767 = vmatpush3.msra.mxu1 %v17587_v36  ;;  %14770 = vmatprep.mubr.f32.mxu1 %v15549_v4 }
 0x76a   :  { %14768 = vmatprep.subr.mxu1 %v17593_v7 }
 0x76b   :  { %14769 = vmatpush3.msra.mxu1 %v17593_v7 }
 0x76c   :  { %14826 = vmatprep.subr.mxu1 %v17448_v23  ;;  %14771 = vmatmul.mubr.f32.vlgmr.msra.gmra.mxu1 %v15550_v2  ;;  %v15587_v2 = vld [vmem:[#allocation3 + $0x3b0] sm:$0xff] }
 0x76d   :  { %14827 = vmatpush3.msra.mxu1 %v17448_v23  ;;  %14773 = vmatprep.mubr.f32.mxu1 %v15551_v44 }
 0x76e   :  { %14828 = vmatprep.subr.mxu1 %v17457_v53 }
 0x76f   :  { %14829 = vmatpush3.msra.mxu1 %v17457_v53 }
 0x770   :  { %14830 = vmatprep.subr.mxu1 %v17470_v40  ;;  %14774 = vmatmul.mubr.f32.gmra.mxu1 %v15552_v17 }
 0x771   :  { %14831 = vmatpush3.msra.mxu1 %v17470_v40  ;;  %14776 = vmatprep.mubr.f32.mxu1 %v15553_v59  ;;  %v15588_v59 = vld [vmem:[#allocation3 + $0x3b8] sm:$0xff] }
 0x772   :  { %14832 = vmatprep.subr.mxu1 %v17483_v62 }
 0x773   :  { %14833 = vmatpush3.msra.mxu1 %v17483_v62 }
 0x774   :  { %14834 = vmatprep.subr.mxu1 %v17496_v51  ;;  %14777 = vmatmul.mubr.f32.gmra.mxu1 %v15554_v31 }
 0x775   :  { %14835 = vmatpush3.msra.mxu1 %v17496_v51  ;;  %14779 = vmatprep.mubr.f32.mxu1 %v15555_v43 }
 0x776   :  { %14836 = vmatprep.subr.mxu1 %v17507_v5 }
 0x777   :  { %14837 = vmatpush3.msra.mxu1 %v17507_v5 }
 0x778   :  { %14838 = vmatprep.subr.mxu1 %v17519_v29  ;;  %14780 = vmatmul.mubr.f32.gmra.mxu1 %v15556_v25 }
 0x779   :  { %14839 = vmatpush3.msra.mxu1 %v17519_v29  ;;  %14782 = vmatprep.mubr.f32.mxu1 %v15557_v42 }
 0x77a   :  { %14840 = vmatprep.subr.mxu1 %v17529_v41 }
 0x77b   :  { %14841 = vmatpush3.msra.mxu1 %v17529_v41 }
 0x77c   :  { %14842 = vmatprep.subr.mxu1 %v17540_v0  ;;  %14783 = vmatmul.mubr.f32.gmra.mxu1 %v15558_v61  ;;  %v15590_v61 = vld [vmem:[#allocation3 + $0x3c8] sm:$0xff] }
 0x77d   :  { %14843 = vmatpush3.msra.mxu1 %v17540_v0  ;;  %14785 = vmatprep.mubr.f32.mxu1 %v15559_v24 }
 0x77e   :  { %14844 = vmatprep.subr.mxu1 %v17549_v47 }
 0x77f   :  { %14845 = vmatpush3.msra.mxu1 %v17549_v47 }
 0x780   :  { %14846 = vmatprep.subr.mxu1 %v17559_v48  ;;  %14786 = vmatmul.mubr.f32.gmra.mxu1 %v15560_v39 }
 0x781   :  { %14847 = vmatpush3.msra.mxu1 %v17559_v48  ;;  %14788 = vmatprep.mubr.f32.mxu1 %v15561_v13 }
 0x782   :  { %14848 = vmatprep.subr.mxu1 %v17567_v46 }
 0x783   :  { %14849 = vmatpush3.msra.mxu1 %v17567_v46 }
 0x784   :  { %14850 = vmatprep.subr.mxu1 %v17574_v10  ;;  %14789 = vmatmul.mubr.f32.gmra.mxu1 %v15562_v6 }
 0x785   :  { %14851 = vmatpush3.msra.mxu1 %v17574_v10  ;;  %14791 = vmatprep.mubr.f32.mxu1 %v15563_v20  ;;  %v15592_v20 = vld [vmem:[#allocation3 + $0x3d8] sm:$0xff] }
 0x786   :  { %14852 = vmatprep.subr.mxu1 %v17581_v1 }
 0x787   :  { %14853 = vmatpush3.msra.mxu1 %v17581_v1 }
 0x788   :  { %14854 = vmatprep.subr.mxu1 %v17587_v36  ;;  %14792 = vmatmul.mubr.f32.gmra.mxu1 %v15564_v34 }
 0x789   :  { %14855 = vmatpush3.msra.mxu1 %v17587_v36  ;;  %14858 = vmatprep.mubr.f32.mxu1 %v15565_v11 }
 0x78a   :  { %14856 = vmatprep.subr.mxu1 %v17593_v7 }
 0x78b   :  { %14857 = vmatpush3.msra.mxu1 %v17593_v7 }
 0x78c   :  { %14914 = vmatprep.subr.mxu1 %v17448_v23  ;;  %14859 = vmatmul.mubr.f32.vlgmr.msra.gmra.mxu1 %v15566_v9 }
 0x78d   :  { %14915 = vmatpush3.msra.mxu1 %v17448_v23  ;;  %14861 = vmatprep.mubr.f32.mxu1 %v15567_v18 }
 0x78e   :  { %14916 = vmatprep.subr.mxu1 %v17457_v53 }
 0x78f   :  { %14917 = vmatpush3.msra.mxu1 %v17457_v53 }
 0x790   :  { %14918 = vmatprep.subr.mxu1 %v17470_v40  ;;  %14862 = vmatmul.mubr.f32.gmra.mxu1 %v15568_v55  ;;  %v15594_v55 = vld [vmem:[#allocation3 + $0x3e8] sm:$0xff] }
 0x791   :  { %14919 = vmatpush3.msra.mxu1 %v17470_v40  ;;  %14864 = vmatprep.mubr.f32.mxu1 %v15569_v49 }
 0x792   :  { %14920 = vmatprep.subr.mxu1 %v17483_v62 }
 0x793   :  { %14921 = vmatpush3.msra.mxu1 %v17483_v62 }
 0x794   :  { %14922 = vmatprep.subr.mxu1 %v17496_v51  ;;  %14865 = vmatmul.mubr.f32.gmra.mxu1 %v15570_v45 }
 0x795   :  { %14923 = vmatpush3.msra.mxu1 %v17496_v51  ;;  %14867 = vmatprep.mubr.f32.mxu1 %v15571_v57 }
 0x796   :  { %14924 = vmatprep.subr.mxu1 %v17507_v5 }
 0x797   :  { %14925 = vmatpush3.msra.mxu1 %v17507_v5 }
 0x798   :  { %14926 = vmatprep.subr.mxu1 %v17519_v29  ;;  %14868 = vmatmul.mubr.f32.gmra.mxu1 %v15572_v14 }
 0x799   :  { %14927 = vmatpush3.msra.mxu1 %v17519_v29  ;;  %14870 = vmatprep.mubr.f32.mxu1 %v15573_v60  ;;  %v15596_v60 = vld [vmem:[#allocation3 + $0x3f8] sm:$0xff] }
 0x79a   :  { %14928 = vmatprep.subr.mxu1 %v17529_v41 }
 0x79b   :  { %14929 = vmatpush3.msra.mxu1 %v17529_v41 }
 0x79c   :  { %14930 = vmatprep.subr.mxu1 %v17540_v0  ;;  %14871 = vmatmul.mubr.f32.gmra.mxu1 %v15574_v50 }
 0x79d   :  { %14931 = vmatpush3.msra.mxu1 %v17540_v0  ;;  %14873 = vmatprep.mubr.f32.mxu1 %v15575_v16 }
 0x79e   :  { %14932 = vmatprep.subr.mxu1 %v17549_v47 }
 0x79f   :  { %14933 = vmatpush3.msra.mxu1 %v17549_v47 }
 0x7a0   :  { %14934 = vmatprep.subr.mxu1 %v17559_v48  ;;  %14874 = vmatmul.mubr.f32.gmra.mxu1 %v15576_v35 }
 0x7a1   :  { %14935 = vmatpush3.msra.mxu1 %v17559_v48  ;;  %14876 = vmatprep.mubr.f32.mxu1 %v15577_v15 }
 0x7a2   :  { %14936 = vmatprep.subr.mxu1 %v17567_v46 }
 0x7a3   :  { %14937 = vmatpush3.msra.mxu1 %v17567_v46 }
 0x7a4   :  { %14938 = vmatprep.subr.mxu1 %v17574_v10  ;;  %14877 = vmatmul.mubr.f32.gmra.mxu1 %v15578_v28  ;;  %v15599_v28 = vld [vmem:[#allocation3 + $0x410] sm:$0xff] }
 0x7a5   :  { %14939 = vmatpush3.msra.mxu1 %v17574_v10  ;;  %14879 = vmatprep.mubr.f32.mxu1 %v15579_v58 }
 0x7a6   :  { %14940 = vmatprep.subr.mxu1 %v17581_v1 }
 0x7a7   :  { %14941 = vmatpush3.msra.mxu1 %v17581_v1 }
 0x7a8   :  { %14942 = vmatprep.subr.mxu1 %v17587_v36  ;;  %14880 = vmatmul.mubr.f32.gmra.mxu1 %v15580_v30  ;;  %v7089_v30 = vld [vmem:[#allocation5 + $0x70] sm:$0xff] }
 0x7a9   :  { %14943 = vmatpush3.msra.mxu1 %v17587_v36  ;;  %14946 = vmatprep.mubr.f32.mxu1 %v15581_v8  ;;  %v15600_v8 = vld [vmem:[#allocation3 + $0x418] sm:$0xff] }
 0x7aa   :  { %14944 = vmatprep.subr.mxu1 %v17593_v7 }
 0x7ab   :  { %14945 = vmatpush3.msra.mxu1 %v17593_v7  ;;  %v14420_v54 = vpop.f32.mrf.mxu1  ;;  %v14452_v52 = vpop.f32.mrf.mxu0 }
 0x7ac   :  { %15002 = vmatprep.subr.mxu1 %v17448_v23  ;;  %v17831_v22 = vadd.f32 %v14452_v52, %v14420_v54  ;;  %14947 = vmatmul.mubr.f32.vlgmr.msra.gmra.mxu1 %v15582_v33  ;;  %v15601_v54 = vld [vmem:[#allocation3 + $0x420] sm:$0xff] }
 0x7ad   :  { %15003 = vmatpush3.msra.mxu1 %v17448_v23  ;;  %v17834_v37 = vpop.f32.mrf.mxu1  ;;  %v17836_v63 = vpop.f32.mrf.mxu0  ;;  %14949 = vmatprep.mubr.f32.mxu1 %v15583_v56  ;;  %v15585_v23 = vld [vmem:[#allocation3 + $0x3a0] sm:$0xff]  ;;  %v15602_v56 = vld [vmem:[#allocation3 + $0x428] sm:$0xff] }
 0x7ae   :  { %15004 = vmatprep.subr.mxu1 %v17457_v53 }
 0x7af   :  { %15005 = vmatpush3.msra.mxu1 %v17457_v53 }
 0x7b0   :  { %15006 = vmatprep.subr.mxu1 %v17470_v40  ;;  %v14423_v3 = vpop.f32.mrf.mxu1  ;;  %v14455_v21 = vpop.f32.mrf.mxu0  ;;  %14950 = vmatmul.mubr.f32.gmra.mxu1 %v15584_v38 }
 0x7b1   :  { %v17841_v19 = vadd.f32 %v14455_v21, %v14423_v3  ;;  %15007 = vmatpush3.msra.mxu1 %v17470_v40  ;;  %14952 = vmatprep.mubr.f32.mxu1 %v15585_v23  ;;  %v7087_v3 = vld [vmem:[#allocation5 + $0x60] sm:$0xff]  ;;  %v15603_v21 = vld [vmem:[#allocation3 + $0x430] sm:$0xff] }
 0x7b2   :  { %15008 = vmatprep.subr.mxu1 %v17483_v62  ;;  %v17845_v26 = vpop.f32.mrf.mxu1  ;;  %v17847_v32 = vpop.f32.mrf.mxu0 }
 0x7b3   :  { %15009 = vmatpush3.msra.mxu1 %v17483_v62 }
 0x7b4   :  { %15010 = vmatprep.subr.mxu1 %v17496_v51  ;;  %v14426_v53 = vpop.f32.mrf.mxu1  ;;  %14953 = vmatmul.mubr.f32.gmra.mxu1 %v15586_v27  ;;  %v15605_v27 = vld [vmem:[#allocation3 + $0x440] sm:$0xff] }
 0x7b5   :  { %v14458_v4 = vpop.f32.mrf.mxu0  ;;  %15011 = vmatpush3.msra.mxu1 %v17496_v51  ;;  %14955 = vmatprep.mubr.f32.mxu1 %v15587_v2  ;;  %v15589_v51 = vld [vmem:[#allocation3 + $0x3c0] sm:$0xff] }
 0x7b6   :  { %v17852_v40 = vadd.f32 %v14458_v4, %v14426_v53  ;;  %15012 = vmatprep.subr.mxu1 %v17507_v5  ;;  %v17855_v44 = vpop.f32.mrf.mxu1  ;;  %v15604_v53 = vld [vmem:[#allocation3 + $0x438] sm:$0xff] }
 0x7b7   :  { %v17857_v17 = vpop.f32.mrf.mxu0  ;;  %15013 = vmatpush3.msra.mxu1 %v17507_v5 }
 0x7b8   :  { %15014 = vmatprep.subr.mxu1 %v17519_v29  ;;  %v14429_v62 = vpop.f32.mrf.mxu1  ;;  %14956 = vmatmul.mubr.f32.gmra.mxu1 %v15588_v59  ;;  %v15607_v59 = vld [vmem:[#allocation3 + $0x450] sm:$0xff] }
 0x7b9   :  { %v14461_v31 = vpop.f32.mrf.mxu0  ;;  %15015 = vmatpush3.msra.mxu1 %v17519_v29  ;;  %14958 = vmatprep.mubr.f32.mxu1 %v15589_v51  ;;  %v15591_v29 = vld [vmem:[#allocation3 + $0x3d0] sm:$0xff] }
 0x7ba   :  { %v17862_v43 = vadd.f32 %v14461_v31, %v14429_v62  ;;  %15016 = vmatprep.subr.mxu1 %v17529_v41  ;;  %v17865_v25 = vpop.f32.mrf.mxu1  ;;  %v15606_v62 = vld [vmem:[#allocation3 + $0x448] sm:$0xff] }
 0x7bb   :  { %v17867_v42 = vpop.f32.mrf.mxu0  ;;  %15017 = vmatpush3.msra.mxu1 %v17529_v41 }
 0x7bc   :  { %15018 = vmatprep.subr.mxu1 %v17540_v0  ;;  %v14432_v5 = vpop.f32.mrf.mxu1  ;;  %14959 = vmatmul.mubr.f32.gmra.mxu1 %v15590_v61  ;;  %v15609_v61 = vld [vmem:[#allocation3 + $0x460] sm:$0xff] }
 0x7bd   :  { %v14464_v24 = vpop.f32.mrf.mxu0  ;;  %15019 = vmatpush3.msra.mxu1 %v17540_v0  ;;  %14961 = vmatprep.mubr.f32.mxu1 %v15591_v29  ;;  %v15593_v0 = vld [vmem:[#allocation3 + $0x3e0] sm:$0xff] }
 0x7be   :  { %v17872_v39 = vadd.f32 %v14464_v24, %v14432_v5  ;;  %15020 = vmatprep.subr.mxu1 %v17549_v47  ;;  %v17875_v13 = vpop.f32.mrf.mxu1  ;;  %v15608_v5 = vld [vmem:[#allocation3 + $0x458] sm:$0xff] }
 0x7bf   :  { %v17877_v6 = vpop.f32.mrf.mxu0  ;;  %15021 = vmatpush3.msra.mxu1 %v17549_v47 }
 0x7c0   :  { %15022 = vmatprep.subr.mxu1 %v17559_v48  ;;  %v14435_v41 = vpop.f32.mrf.mxu1  ;;  %14962 = vmatmul.mubr.f32.gmra.mxu1 %v15592_v20  ;;  %v15611_v20 = vld [vmem:[#allocation3 + $0x470] sm:$0xff] }
 0x7c1   :  { %v14467_v34 = vpop.f32.mrf.mxu0  ;;  %15023 = vmatpush3.msra.mxu1 %v17559_v48  ;;  %14964 = vmatprep.mubr.f32.mxu1 %v15593_v0  ;;  %v15595_v48 = vld [vmem:[#allocation3 + $0x3f0] sm:$0xff] }
 0x7c2   :  { %v17882_v11 = vadd.f32 %v14467_v34, %v14435_v41  ;;  %15024 = vmatprep.subr.mxu1 %v17567_v46  ;;  %v17885_v9 = vpop.f32.mrf.mxu1  ;;  %v15610_v41 = vld [vmem:[#allocation3 + $0x468] sm:$0xff] }
 0x7c3   :  { %v17887_v18 = vpop.f32.mrf.mxu0  ;;  %15025 = vmatpush3.msra.mxu1 %v17567_v46 }
 0x7c4   :  { %15026 = vmatprep.subr.mxu1 %v17574_v10  ;;  %v14438_v47 = vpop.f32.mrf.mxu1  ;;  %14965 = vmatmul.mubr.f32.gmra.mxu1 %v15594_v55 }
 0x7c5   :  { %v14470_v49 = vpop.f32.mrf.mxu0  ;;  %15027 = vmatpush3.msra.mxu1 %v17574_v10  ;;  %14967 = vmatprep.mubr.f32.mxu1 %v15595_v48  ;;  %v15597_v10 = vld [vmem:[#allocation3 + $0x400] sm:$0xff] }
 0x7c6   :  { %v17892_v45 = vadd.f32 %v14470_v49, %v14438_v47  ;;  %15028 = vmatprep.subr.mxu1 %v17581_v1  ;;  %v17895_v57 = vpop.f32.mrf.mxu1  ;;  %v15612_v47 = vld [vmem:[#allocation3 + $0x478] sm:$0xff] }
 0x7c7   :  { %v17897_v14 = vpop.f32.mrf.mxu0  ;;  %15029 = vmatpush3.msra.mxu1 %v17581_v1  ;;  %v15598_v1 = vld [vmem:[#allocation3 + $0x408] sm:$0xff] }
 0x7c8   :  { %15030 = vmatprep.subr.mxu1 %v17587_v36  ;;  %v14441_v46 = vpop.f32.mrf.mxu1  ;;  %14968 = vmatmul.mubr.f32.gmra.mxu1 %v15596_v60 }
 0x7c9   :  { %v14473_v50 = vpop.f32.mrf.mxu0  ;;  %15031 = vmatpush3.msra.mxu1 %v17587_v36  ;;  %15034 = vmatprep.mubr.f32.mxu1 %v15597_v10 }
 0x7ca   :  { %v17902_v16 = vadd.f32 %v14473_v50, %v14441_v46  ;;  %15032 = vmatprep.subr.mxu1 %v17593_v7  ;;  %v17905_v35 = vpop.f32.mrf.mxu1  ;;  %v7448_v46 = vld [vmem:[#allocation5 + $0x90] sm:$0xff]  ;;  %v7447_v50 = vld [vmem:[#allocation5 + $0x88] sm:$0xff] }
 0x7cb   :  { %15033 = vmatpush3.msra.mxu1 %v17593_v7  ;;  %v7088_v7 = vld [vmem:[#allocation5 + $0x68] sm:$0xff] }
 0x7cc   :  { %v14508_v15 = vpop.f32.mrf.mxu1  ;;  %15035 = vmatmul.mubr.f32.vlgmr.msra.gmra.mxu1 %v15598_v1 }
 0x7cd   :  { %15037 = vmatprep.mubr.f32.mxu1 %v15599_v28  ;;  %v7808_v28 = vld [vmem:[#allocation5 + $0xb8] sm:$0xff] }
 0x7ce   :  { %v6648_v58 = vpop.f32.mrf.mxu1 }
 0x7cf   :  { %14538 = vmatprep.mubr.msk.f32.mxu0 %vm6195_vm1, %v6648_v58 }
 0x7d0   :  { %v14511_v36 = vpop.f32.mrf.mxu1  ;;  %14539 = vmatmul.mubr.msk.f32.vlgmr.msra.gmra.mxu0 %vm6195_vm1, %v14508_v15  ;;  %15038 = vmatmul.mubr.f32.gmra.mxu1 %v15600_v8  ;;  %v7446_v15 = vld [vmem:[#allocation5 + $0x80] sm:$0xff] }
 0x7d1   :  { %14619 = vmatpush3.msra.mxu0 %v17736_v12  ;;  %15040 = vmatprep.mubr.f32.mxu1 %v15601_v54  ;;  %v7449_v12 = vld [vmem:[#allocation5 + $0x98] sm:$0xff] }
 0x7d2   :  { %v6658_v52 = vpop.f32.mrf.mxu1  ;;  %14620 = vmatprep.subr.mxu0 %v7089_v30 }
 0x7d3   :  { %14541 = vmatprep.mubr.msk.f32.mxu0 %vm6195_vm1, %v6658_v52  ;;  %14621 = vmatpush3.msra.mxu0 %v7089_v30 }
 0x7d4   :  { %v14514_v33 = vpop.f32.mrf.mxu1  ;;  %14542 = vmatmul.mubr.msk.f32.gmra.mxu0 %vm6195_vm1, %v14511_v36  ;;  %15041 = vmatmul.mubr.f32.gmra.mxu1 %v15602_v56 }
 0x7d5   :  { %15043 = vmatprep.mubr.f32.mxu1 %v15603_v21  ;;  %14622 = vmatprep.subr.mxu0 %v7088_v7 }
 0x7d6   :  { %v6668_v38 = vpop.f32.mrf.mxu1  ;;  %14623 = vmatpush3.msra.mxu0 %v7088_v7 }
 0x7d7   :  { %14544 = vmatprep.mubr.msk.f32.mxu0 %vm6195_vm1, %v6668_v38  ;;  %14624 = vmatprep.subr.mxu0 %v7087_v3 }
 0x7d8   :  { %v14517_v23 = vpop.f32.mrf.mxu1  ;;  %14545 = vmatmul.mubr.msk.f32.gmra.mxu0 %vm6195_vm1, %v14514_v33  ;;  %15044 = vmatmul.mubr.f32.gmra.mxu1 %v15604_v53 }
 0x7d9   :  { %15046 = vmatprep.mubr.f32.mxu1 %v15605_v27  ;;  %14625 = vmatpush3.msra.mxu0 %v7087_v3  ;;  %v7806_v27 = vld [vmem:[#allocation5 + $0xa8] sm:$0xff] }
 0x7da   :  { %v6678_v4 = vpop.f32.mrf.mxu1  ;;  %14706 = vmatprep.subr.mxu0 %v7449_v12 }
 0x7db   :  { %14547 = vmatprep.mubr.msk.f32.mxu0 %vm6195_vm1, %v6678_v4 }
 0x7dc   :  { %v14520_v2 = vpop.f32.mrf.mxu1  ;;  %14548 = vmatmul.mubr.msk.f32.gmra.mxu0 %vm6195_vm1, %v14517_v23  ;;  %15047 = vmatmul.mubr.f32.gmra.mxu1 %v15606_v62  ;;  %v7807_v23 = vld [vmem:[#allocation5 + $0xb0] sm:$0xff] }
 0x7dd   :  { %15049 = vmatprep.mubr.f32.mxu1 %v15607_v59  ;;  %v8167_v59 = vld [vmem:[#allocation5 + $0xd8] sm:$0xff] }
 0x7de   :  { %v6688_v31 = vpop.f32.mrf.mxu1 }
 0x7df   :  { %14550 = vmatprep.mubr.msk.f32.mxu0 %vm6195_vm1, %v6688_v31 }
 0x7e0   :  { %v14523_v51 = vpop.f32.mrf.mxu1  ;;  %14551 = vmatmul.mubr.msk.f32.gmra.mxu0 %vm6195_vm1, %v14520_v2  ;;  %15050 = vmatmul.mubr.f32.gmra.mxu1 %v15608_v5  ;;  %v7805_v2 = vld [vmem:[#allocation5 + $0xa0] sm:$0xff] }
 0x7e1   :  { %15052 = vmatprep.mubr.f32.mxu1 %v15609_v61 }
 0x7e2   :  { %v6698_v24 = vpop.f32.mrf.mxu1 }
 0x7e3   :  { %14553 = vmatprep.mubr.msk.f32.mxu0 %vm6195_vm1, %v6698_v24 }
 0x7e4   :  { %v14526_v29 = vpop.f32.mrf.mxu1  ;;  %14554 = vmatmul.mubr.msk.f32.gmra.mxu0 %vm6195_vm1, %v14523_v51  ;;  %15053 = vmatmul.mubr.f32.gmra.mxu1 %v15610_v41 }
 0x7e5   :  { %15055 = vmatprep.mubr.f32.mxu1 %v15611_v20 }
 0x7e6   :  { %v6708_v34 = vpop.f32.mrf.mxu1 }
 0x7e7   :  { %14556 = vmatprep.mubr.msk.f32.mxu0 %vm6195_vm1, %v6708_v34 }
 0x7e8   :  { %v14529_v0 = vpop.f32.mrf.mxu1  ;;  %14557 = vmatmul.mubr.msk.f32.gmra.mxu0 %vm6195_vm1, %v14526_v29  ;;  %15056 = vmatmul.mubr.f32.gmra.mxu1 %v15612_v47 }
 0x7ea   :  { %v6718_v55 = vpop.f32.mrf.mxu1 }
 0x7eb   :  { %14559 = vmatprep.mubr.msk.f32.mxu0 %vm6195_vm1, %v6718_v55 }
 0x7ec   :  { %14560 = vmatmul.mubr.msk.f32.gmra.mxu0 %vm6195_vm1, %v14529_v0  ;;  %v14596_v49 = vpop.f32.mrf.mxu1 }
 0x7ee   :  { %v7007_v48 = vpop.f32.mrf.mxu1 }
 0x7ef   :  { %14626 = vmatprep.mubr.msk.f32.mxu0 %vm6195_vm1, %v7007_v48  ;;  %v8166_v48 = vld [vmem:[#allocation5 + $0xd0] sm:$0xff] }
 0x7f0   :  { %v14599_v60 = vpop.f32.mrf.mxu1  ;;  %14627 = vmatmul.mubr.msk.f32.vlgmr.msra.gmra.mxu0 %vm6195_vm1, %v14596_v49 }
 0x7f1   :  { %14707 = vmatpush3.msra.mxu0 %v7449_v12 }
 0x7f2   :  { %v7017_v10 = vpop.f32.mrf.mxu1  ;;  %14708 = vmatprep.subr.mxu0 %v7448_v46 }
 0x7f3   :  { %14629 = vmatprep.mubr.msk.f32.mxu0 %vm6195_vm1, %v7017_v10  ;;  %14709 = vmatpush3.msra.mxu0 %v7448_v46  ;;  %v8164_v10 = vld [vmem:[#allocation5 + $0xc0] sm:$0xff] }
 0x7f4   :  { %v14602_v1 = vpop.f32.mrf.mxu1  ;;  %14630 = vmatmul.mubr.msk.f32.gmra.mxu0 %vm6195_vm1, %v14599_v60  ;;  %14710 = vmatprep.subr.mxu0 %v7447_v50  ;;  %v8165_v60 = vld [vmem:[#allocation5 + $0xc8] sm:$0xff] }
 0x7f5   :  { %14711 = vmatpush3.msra.mxu0 %v7447_v50 }
 0x7f6   :  { %v7027_v58 = vpop.f32.mrf.mxu1  ;;  %14712 = vmatprep.subr.mxu0 %v7446_v15 }
 0x7f7   :  { %14632 = vmatprep.mubr.msk.f32.mxu0 %vm6195_vm1, %v7027_v58  ;;  %14713 = vmatpush3.msra.mxu0 %v7446_v15 }
 0x7f8   :  { %v14605_v30 = vpop.f32.mrf.mxu1  ;;  %14633 = vmatmul.mubr.msk.f32.gmra.mxu0 %vm6195_vm1, %v14602_v1  ;;  %14794 = vmatprep.subr.mxu0 %v7808_v28  ;;  %v8526_v1 = vld [vmem:[#allocation5 + $0xf8] sm:$0xff] }
 0x7fa   :  { %v7037_v36 = vpop.f32.mrf.mxu1 }
 0x7fb   :  { %14635 = vmatprep.mubr.msk.f32.mxu0 %vm6195_vm1, %v7037_v36 }
 0x7fc   :  { %v14608_v8 = vpop.f32.mrf.mxu1  ;;  %14636 = vmatmul.mubr.msk.f32.gmra.mxu0 %vm6195_vm1, %v14605_v30 }
 0x7fe   :  { %v7047_v54 = vpop.f32.mrf.mxu1 }
 0x7ff   :  { %14638 = vmatprep.mubr.msk.f32.mxu0 %vm6195_vm1, %v7047_v54 }
 0x800   :  { %v14611_v52 = vpop.f32.mrf.mxu1  ;;  %14639 = vmatmul.mubr.msk.f32.gmra.mxu0 %vm6195_vm1, %v14608_v8 }
 0x802   :  { %v7057_v7 = vpop.f32.mrf.mxu1 }
 0x803   :  { %14641 = vmatprep.mubr.msk.f32.mxu0 %vm6195_vm1, %v7057_v7 }
 0x804   :  { %v14614_v33 = vpop.f32.mrf.mxu1  ;;  %14642 = vmatmul.mubr.msk.f32.gmra.mxu0 %vm6195_vm1, %v14611_v52 }
 0x806   :  { %v7067_v56 = vpop.f32.mrf.mxu1 }
 0x807   :  { %14644 = vmatprep.mubr.msk.f32.mxu0 %vm6195_vm1, %v7067_v56 }
 0x808   :  { %v14617_v3 = vpop.f32.mrf.mxu1  ;;  %14645 = vmatmul.mubr.msk.f32.gmra.mxu0 %vm6195_vm1, %v14614_v33 }
 0x80a   :  { %v7077_v21 = vpop.f32.mrf.mxu1 }
 0x80b   :  { %14647 = vmatprep.mubr.msk.f32.mxu0 %vm6195_vm1, %v7077_v21 }
 0x80c   :  { %14648 = vmatmul.mubr.msk.f32.gmra.mxu0 %vm6195_vm1, %v14617_v3  ;;  %v14684_v38 = vpop.f32.mrf.mxu1 }
 0x80e   :  { %v7366_v12 = vpop.f32.mrf.mxu1 }
 0x80f   :  { %14714 = vmatprep.mubr.msk.f32.mxu0 %vm6195_vm1, %v7366_v12  ;;  %v8525_v12 = vld [vmem:[#allocation5 + $0xf0] sm:$0xff] }
 0x810   :  { %v14687_v53 = vpop.f32.mrf.mxu1  ;;  %14715 = vmatmul.mubr.msk.f32.vlgmr.msra.gmra.mxu0 %vm6195_vm1, %v14684_v38 }
 0x811   :  { %14795 = vmatpush3.msra.mxu0 %v7808_v28 }
 0x812   :  { %v7376_v4 = vpop.f32.mrf.mxu1  ;;  %14796 = vmatprep.subr.mxu0 %v7807_v23 }
 0x813   :  { %14717 = vmatprep.mubr.msk.f32.mxu0 %vm6195_vm1, %v7376_v4  ;;  %14797 = vmatpush3.msra.mxu0 %v7807_v23  ;;  %v8523_v4 = vld [vmem:[#allocation5 + $0xe0] sm:$0xff] }
 0x814   :  { %v14690_v62 = vpop.f32.mrf.mxu1  ;;  %14718 = vmatmul.mubr.msk.f32.gmra.mxu0 %vm6195_vm1, %v14687_v53  ;;  %14798 = vmatprep.subr.mxu0 %v7806_v27  ;;  %v8524_v53 = vld [vmem:[#allocation5 + $0xe8] sm:$0xff] }
 0x815   :  { %14799 = vmatpush3.msra.mxu0 %v7806_v27 }
 0x816   :  { %v7386_v31 = vpop.f32.mrf.mxu1  ;;  %14800 = vmatprep.subr.mxu0 %v7805_v2 }
 0x817   :  { %14720 = vmatprep.mubr.msk.f32.mxu0 %vm6195_vm1, %v7386_v31  ;;  %14801 = vmatpush3.msra.mxu0 %v7805_v2 }
 0x818   :  { %v14693_v51 = vpop.f32.mrf.mxu1  ;;  %14721 = vmatmul.mubr.msk.f32.gmra.mxu0 %vm6195_vm1, %v14690_v62  ;;  %14882 = vmatprep.subr.mxu0 %v8167_v59  ;;  %v8885_v62 = vld [vmem:[#allocation5 + $0x118] sm:$0xff] }
 0x81a   :  { %v7396_v5 = vpop.f32.mrf.mxu1 }
 0x81b   :  { %14723 = vmatprep.mubr.msk.f32.mxu0 %vm6195_vm1, %v7396_v5 }
 0x81c   :  { %v14696_v61 = vpop.f32.mrf.mxu1  ;;  %14724 = vmatmul.mubr.msk.f32.gmra.mxu0 %vm6195_vm1, %v14693_v51 }
 0x81e   :  { %v7406_v24 = vpop.f32.mrf.mxu1 }
 0x81f   :  { %14726 = vmatprep.mubr.msk.f32.mxu0 %vm6195_vm1, %v7406_v24 }
 0x820   :  { %v14699_v29 = vpop.f32.mrf.mxu1  ;;  %14727 = vmatmul.mubr.msk.f32.gmra.mxu0 %vm6195_vm1, %v14696_v61 }
 0x822   :  { %v7416_v41 = vpop.f32.mrf.mxu1 }
 0x823   :  { %14729 = vmatprep.mubr.msk.f32.mxu0 %vm6195_vm1, %v7416_v41 }
 0x824   :  { %v14702_v20 = vpop.f32.mrf.mxu1  ;;  %14730 = vmatmul.mubr.msk.f32.gmra.mxu0 %vm6195_vm1, %v14699_v29 }
 0x826   :  { %v7426_v34 = vpop.f32.mrf.mxu1 }
 0x827   :  { %14732 = vmatprep.mubr.msk.f32.mxu0 %vm6195_vm1, %v7426_v34 }
 0x828   :  { %v14705_v0 = vpop.f32.mrf.mxu1  ;;  %14733 = vmatmul.mubr.msk.f32.gmra.mxu0 %vm6195_vm1, %v14702_v20 }
 0x82a   :  { %v7436_v47 = vpop.f32.mrf.mxu1 }
 0x82b   :  { %14735 = vmatprep.mubr.msk.f32.mxu0 %vm6195_vm1, %v7436_v47 }
 0x82c   :  { %14736 = vmatmul.mubr.msk.f32.gmra.mxu0 %vm6195_vm1, %v14705_v0  ;;  %v14772_v55 = vpop.f32.mrf.mxu1 }
 0x82e   :  { %v7725_v49 = vpop.f32.mrf.mxu1 }
 0x82f   :  { %14802 = vmatprep.mubr.msk.f32.mxu0 %vm6195_vm1, %v7725_v49  ;;  %v8884_v49 = vld [vmem:[#allocation5 + $0x110] sm:$0xff] }
 0x830   :  { %v14775_v46 = vpop.f32.mrf.mxu1  ;;  %14803 = vmatmul.mubr.msk.f32.vlgmr.msra.gmra.mxu0 %vm6195_vm1, %v14772_v55 }
 0x831   :  { %14883 = vmatpush3.msra.mxu0 %v8167_v59 }
 0x832   :  { %v7735_v50 = vpop.f32.mrf.mxu1  ;;  %14884 = vmatprep.subr.mxu0 %v8166_v48 }
 0x833   :  { %14805 = vmatprep.mubr.msk.f32.mxu0 %vm6195_vm1, %v7735_v50  ;;  %14885 = vmatpush3.msra.mxu0 %v8166_v48  ;;  %v8882_v50 = vld [vmem:[#allocation5 + $0x100] sm:$0xff] }
 0x834   :  { %v14778_v15 = vpop.f32.mrf.mxu1  ;;  %14806 = vmatmul.mubr.msk.f32.gmra.mxu0 %vm6195_vm1, %v14775_v46  ;;  %14886 = vmatprep.subr.mxu0 %v8165_v60  ;;  %v8883_v46 = vld [vmem:[#allocation5 + $0x108] sm:$0xff] }
 0x835   :  { %14887 = vmatpush3.msra.mxu0 %v8165_v60 }
 0x836   :  { %v7745_v28 = vpop.f32.mrf.mxu1  ;;  %14888 = vmatprep.subr.mxu0 %v8164_v10 }
 0x837   :  { %14808 = vmatprep.mubr.msk.f32.mxu0 %vm6195_vm1, %v7745_v28  ;;  %14889 = vmatpush3.msra.mxu0 %v8164_v10 }
 0x838   :  { %v14781_v58 = vpop.f32.mrf.mxu1  ;;  %14809 = vmatmul.mubr.msk.f32.gmra.mxu0 %vm6195_vm1, %v14778_v15  ;;  %14970 = vmatprep.subr.mxu0 %v8526_v1 }
 0x83a   :  { %v7755_v30 = vpop.f32.mrf.mxu1 }
 0x83b   :  { %14811 = vmatprep.mubr.msk.f32.mxu0 %vm6195_vm1, %v7755_v30 }
 0x83c   :  { %v14784_v36 = vpop.f32.mrf.mxu1  ;;  %14812 = vmatmul.mubr.msk.f32.gmra.mxu0 %vm6195_vm1, %v14781_v58 }
 0x83e   :  { %v7765_v8 = vpop.f32.mrf.mxu1 }
 0x83f   :  { %14814 = vmatprep.mubr.msk.f32.mxu0 %vm6195_vm1, %v7765_v8 }
 0x840   :  { %v14787_v54 = vpop.f32.mrf.mxu1  ;;  %14815 = vmatmul.mubr.msk.f32.gmra.mxu0 %vm6195_vm1, %v14784_v36 }
 0x842   :  { %v7775_v52 = vpop.f32.mrf.mxu1 }
 0x843   :  { %14817 = vmatprep.mubr.msk.f32.mxu0 %vm6195_vm1, %v7775_v52 }
 0x844   :  { %v14790_v7 = vpop.f32.mrf.mxu1  ;;  %14818 = vmatmul.mubr.msk.f32.gmra.mxu0 %vm6195_vm1, %v14787_v54 }
 0x846   :  { %v7785_v33 = vpop.f32.mrf.mxu1 }
 0x847   :  { %14820 = vmatprep.mubr.msk.f32.mxu0 %vm6195_vm1, %v7785_v33 }
 0x848   :  { %v14793_v56 = vpop.f32.mrf.mxu1  ;;  %14821 = vmatmul.mubr.msk.f32.gmra.mxu0 %vm6195_vm1, %v14790_v7 }
 0x84a   :  { %v7795_v3 = vpop.f32.mrf.mxu1 }
 0x84b   :  { %14823 = vmatprep.mubr.msk.f32.mxu0 %vm6195_vm1, %v7795_v3  ;;  %v18005_v3 = vpop.f32.mrf.mxu0 }
 0x84c   :  { %14824 = vmatmul.mubr.msk.f32.gmra.mxu0 %vm6195_vm1, %v14793_v56  ;;  %v14860_v21 = vpop.f32.mrf.mxu1 }
 0x84e   :  { %v8084_v38 = vpop.f32.mrf.mxu1 }
 0x84f   :  { %14890 = vmatprep.mubr.msk.f32.mxu0 %vm6195_vm1, %v8084_v38 }
 0x850   :  { %v14863_v23 = vpop.f32.mrf.mxu1  ;;  %14891 = vmatmul.mubr.msk.f32.vlgmr.msra.gmra.mxu0 %vm6195_vm1, %v14860_v21 }
 0x851   :  { %14971 = vmatpush3.msra.mxu0 %v8526_v1 }
 0x852   :  { %v8094_v27 = vpop.f32.mrf.mxu1  ;;  %14972 = vmatprep.subr.mxu0 %v8525_v12 }
 0x853   :  { %14893 = vmatprep.mubr.msk.f32.mxu0 %vm6195_vm1, %v8094_v27  ;;  %14973 = vmatpush3.msra.mxu0 %v8525_v12 }
 0x854   :  { %v14866_v2 = vpop.f32.mrf.mxu1  ;;  %14894 = vmatmul.mubr.msk.f32.gmra.mxu0 %vm6195_vm1, %v14863_v23  ;;  %14974 = vmatprep.subr.mxu0 %v8524_v53 }
 0x855   :  { %14975 = vmatpush3.msra.mxu0 %v8524_v53 }
 0x856   :  { %v8104_v59 = vpop.f32.mrf.mxu1  ;;  %14976 = vmatprep.subr.mxu0 %v8523_v4 }
 0x857   :  { %14896 = vmatprep.mubr.msk.f32.mxu0 %vm6195_vm1, %v8104_v59  ;;  %14977 = vmatpush3.msra.mxu0 %v8523_v4 }
 0x858   :  { %v14869_v31 = vpop.f32.mrf.mxu1  ;;  %14897 = vmatmul.mubr.msk.f32.gmra.mxu0 %vm6195_vm1, %v14866_v2  ;;  %15058 = vmatprep.subr.mxu0 %v8885_v62 }
 0x85a   :  { %v8114_v51 = vpop.f32.mrf.mxu1 }
 0x85b   :  { %14899 = vmatprep.mubr.msk.f32.mxu0 %vm6195_vm1, %v8114_v51 }
 0x85c   :  { %v14872_v5 = vpop.f32.mrf.mxu1  ;;  %14900 = vmatmul.mubr.msk.f32.gmra.mxu0 %vm6195_vm1, %v14869_v31 }
 0x85e   :  { %v8124_v61 = vpop.f32.mrf.mxu1 }
 0x85f   :  { %14902 = vmatprep.mubr.msk.f32.mxu0 %vm6195_vm1, %v8124_v61 }
 0x860   :  { %v14875_v24 = vpop.f32.mrf.mxu1  ;;  %14903 = vmatmul.mubr.msk.f32.gmra.mxu0 %vm6195_vm1, %v14872_v5 }
 0x862   :  { %v8134_v29 = vpop.f32.mrf.mxu1 }
 0x863   :  { %14905 = vmatprep.mubr.msk.f32.mxu0 %vm6195_vm1, %v8134_v29 }
 0x864   :  { %v14878_v41 = vpop.f32.mrf.mxu1  ;;  %14906 = vmatmul.mubr.msk.f32.gmra.mxu0 %vm6195_vm1, %v14875_v24 }
 0x866   :  { %v8144_v20 = vpop.f32.mrf.mxu1 }
 0x867   :  { %14908 = vmatprep.mubr.msk.f32.mxu0 %vm6195_vm1, %v8144_v20 }
 0x868   :  { %v14881_v34 = vpop.f32.mrf.mxu1  ;;  %14909 = vmatmul.mubr.msk.f32.gmra.mxu0 %vm6195_vm1, %v14878_v41 }
 0x86a   :  { %v8154_v0 = vpop.f32.mrf.mxu1 }
 0x86b   :  { %14911 = vmatprep.mubr.msk.f32.mxu0 %vm6195_vm1, %v8154_v0 }
 0x86c   :  { %14912 = vmatmul.mubr.msk.f32.gmra.mxu0 %vm6195_vm1, %v14881_v34  ;;  %v14948_v47 = vpop.f32.mrf.mxu1 }
 0x86e   :  { %v8443_v55 = vpop.f32.mrf.mxu1 }
 0x86f   :  { %14978 = vmatprep.mubr.msk.f32.mxu0 %vm6195_vm1, %v8443_v55 }
 0x870   :  { %v14951_v48 = vpop.f32.mrf.mxu1  ;;  %14979 = vmatmul.mubr.msk.f32.vlgmr.msra.gmra.mxu0 %vm6195_vm1, %v14948_v47 }
 0x871   :  { %15059 = vmatpush3.msra.mxu0 %v8885_v62 }
 0x872   :  { %v8453_v60 = vpop.f32.mrf.mxu1  ;;  %15060 = vmatprep.subr.mxu0 %v8884_v49 }
 0x873   :  { %14981 = vmatprep.mubr.msk.f32.mxu0 %vm6195_vm1, %v8453_v60  ;;  %15061 = vmatpush3.msra.mxu0 %v8884_v49 }
 0x874   :  { %v14954_v10 = vpop.f32.mrf.mxu1  ;;  %14982 = vmatmul.mubr.msk.f32.gmra.mxu0 %vm6195_vm1, %v14951_v48  ;;  %15062 = vmatprep.subr.mxu0 %v8883_v46 }
 0x875   :  { %15063 = vmatpush3.msra.mxu0 %v8883_v46 }
 0x876   :  { %v8463_v15 = vpop.f32.mrf.mxu1  ;;  %15064 = vmatprep.subr.mxu0 %v8882_v50 }
 0x877   :  { %14984 = vmatprep.mubr.msk.f32.mxu0 %vm6195_vm1, %v8463_v15  ;;  %15065 = vmatpush3.msra.mxu0 %v8882_v50 }
 0x878   :  { %v14957_v1 = vpop.f32.mrf.mxu1  ;;  %14985 = vmatmul.mubr.msk.f32.gmra.mxu0 %vm6195_vm1, %v14954_v10 }
 0x87a   :  { %v8473_v28 = vpop.f32.mrf.mxu1 }
 0x87b   :  { %14987 = vmatprep.mubr.msk.f32.mxu0 %vm6195_vm1, %v8473_v28 }
 0x87c   :  { %v14960_v58 = vpop.f32.mrf.mxu1  ;;  %14988 = vmatmul.mubr.msk.f32.gmra.mxu0 %vm6195_vm1, %v14957_v1 }
 0x87e   :  { %v8483_v30 = vpop.f32.mrf.mxu1 }
 0x87f   :  { %14990 = vmatprep.mubr.msk.f32.mxu0 %vm6195_vm1, %v8483_v30 }
 0x880   :  { %v14963_v36 = vpop.f32.mrf.mxu1  ;;  %14991 = vmatmul.mubr.msk.f32.gmra.mxu0 %vm6195_vm1, %v14960_v58 }
 0x882   :  { %v8493_v8 = vpop.f32.mrf.mxu1 }
 0x883   :  { %14993 = vmatprep.mubr.msk.f32.mxu0 %vm6195_vm1, %v8493_v8 }
 0x884   :  { %v14966_v54 = vpop.f32.mrf.mxu1  ;;  %14994 = vmatmul.mubr.msk.f32.gmra.mxu0 %vm6195_vm1, %v14963_v36 }
 0x886   :  { %v8503_v52 = vpop.f32.mrf.mxu1 }
 0x887   :  { %14996 = vmatprep.mubr.msk.f32.mxu0 %vm6195_vm1, %v8503_v52 }
 0x888   :  { %v14969_v7 = vpop.f32.mrf.mxu1  ;;  %14997 = vmatmul.mubr.msk.f32.gmra.mxu0 %vm6195_vm1, %v14966_v54 }
 0x88a   :  { %v8513_v33 = vpop.f32.mrf.mxu1 }
 0x88b   :  { %14999 = vmatprep.mubr.msk.f32.mxu0 %vm6195_vm1, %v8513_v33 }
 0x88c   :  { %15000 = vmatmul.mubr.msk.f32.gmra.mxu0 %vm6195_vm1, %v14969_v7  ;;  %v15036_v56 = vpop.f32.mrf.mxu1 }
 0x88e   :  { %v8802_v21 = vpop.f32.mrf.mxu1 }
 0x88f   :  { %15066 = vmatprep.mubr.msk.f32.mxu0 %vm6195_vm1, %v8802_v21 }
 0x890   :  { %v14540_v38 = vpop.f32.mrf.mxu0  ;;  %v15039_v12 = vpop.f32.mrf.mxu1  ;;  %15067 = vmatmul.mubr.msk.f32.vlgmr.msra.gmra.mxu0 %vm6195_vm1, %v15036_v56 }
 0x891   :  { %v6926_v23 = vadd.f32 %v14540_v38, %v17831_v22 }
 0x892   :  { %v18010_v53 = vpop.f32.mrf.mxu0  ;;  %v8812_v27 = vpop.f32.mrf.mxu1 }
 0x893   :  { %15069 = vmatprep.mubr.msk.f32.mxu0 %vm6195_vm1, %v8812_v27 }
 0x894   :  { %v14543_v4 = vpop.f32.mrf.mxu0  ;;  %v15042_v2 = vpop.f32.mrf.mxu1  ;;  %15070 = vmatmul.mubr.msk.f32.gmra.mxu0 %vm6195_vm1, %v15039_v12 }
 0x895   :  { %v6928_v62 = vadd.f32 %v14543_v4, %v17841_v19 }
 0x896   :  { %v18015_v59 = vpop.f32.mrf.mxu0  ;;  %v8822_v31 = vpop.f32.mrf.mxu1 }
 0x897   :  { %15072 = vmatprep.mubr.msk.f32.mxu0 %vm6195_vm1, %v8822_v31 }
 0x898   :  { %v14546_v51 = vpop.f32.mrf.mxu0  ;;  %v15045_v5 = vpop.f32.mrf.mxu1  ;;  %15073 = vmatmul.mubr.msk.f32.gmra.mxu0 %vm6195_vm1, %v15042_v2 }
 0x899   :  { %v6930_v22 = vadd.f32 %v14546_v51, %v17852_v40 }
 0x89a   :  { %v18020_v61 = vpop.f32.mrf.mxu0  ;;  %v8832_v24 = vpop.f32.mrf.mxu1 }
 0x89b   :  { %15075 = vmatprep.mubr.msk.f32.mxu0 %vm6195_vm1, %v8832_v24 }
 0x89c   :  { %v14549_v29 = vpop.f32.mrf.mxu0  ;;  %v15048_v41 = vpop.f32.mrf.mxu1  ;;  %15076 = vmatmul.mubr.msk.f32.gmra.mxu0 %vm6195_vm1, %v15045_v5 }
 0x89d   :  { %v6932_v19 = vadd.f32 %v14549_v29, %v17862_v43 }
 0x89e   :  { %v18025_v20 = vpop.f32.mrf.mxu0  ;;  %v8842_v34 = vpop.f32.mrf.mxu1 }
 0x89f   :  { %15078 = vmatprep.mubr.msk.f32.mxu0 %vm6195_vm1, %v8842_v34 }
 0x8a0   :  { %v14552_v0 = vpop.f32.mrf.mxu0  ;;  %v15051_v47 = vpop.f32.mrf.mxu1  ;;  %15079 = vmatmul.mubr.msk.f32.gmra.mxu0 %vm6195_vm1, %v15048_v41 }
 0x8a1   :  { %v6934_v40 = vadd.f32 %v14552_v0, %v17872_v39 }
 0x8a2   :  { %v18030_v55 = vpop.f32.mrf.mxu0  ;;  %v8852_v49 = vpop.f32.mrf.mxu1 }
 0x8a3   :  { %15081 = vmatprep.mubr.msk.f32.mxu0 %vm6195_vm1, %v8852_v49 }
 0x8a4   :  { %v14555_v48 = vpop.f32.mrf.mxu0  ;;  %v15054_v46 = vpop.f32.mrf.mxu1  ;;  %15082 = vmatmul.mubr.msk.f32.gmra.mxu0 %vm6195_vm1, %v15051_v47 }
 0x8a5   :  { %v6936_v43 = vadd.f32 %v14555_v48, %v17882_v11 }
 0x8a6   :  { %v18035_v60 = vpop.f32.mrf.mxu0  ;;  %v8862_v50 = vpop.f32.mrf.mxu1 }
 0x8a7   :  { %15084 = vmatprep.mubr.msk.f32.mxu0 %vm6195_vm1, %v8862_v50 }
 0x8a8   :  { %v14558_v10 = vpop.f32.mrf.mxu0  ;;  %v15057_v15 = vpop.f32.mrf.mxu1  ;;  %15085 = vmatmul.mubr.msk.f32.gmra.mxu0 %vm6195_vm1, %v15054_v46 }
 0x8a9   :  { %v6938_v39 = vadd.f32 %v14558_v10, %v17892_v45 }
 0x8aa   :  { %v18040_v1 = vpop.f32.mrf.mxu0  ;;  %v8872_v28 = vpop.f32.mrf.mxu1 }
 0x8ab   :  { %15087 = vmatprep.mubr.msk.f32.mxu0 %vm6195_vm1, %v8872_v28 }
 0x8ac   :  { %v14561_v58 = vpop.f32.mrf.mxu0  ;;  %15088 = vmatmul.mubr.msk.f32.gmra.mxu0 %vm6195_vm1, %v15057_v15 }
 0x8ad   :  { %v6940_v11 = vadd.f32 %v14561_v58, %v17902_v16 }
 0x8ae   :  { %v6916_v30 = vpop.f32.mrf.mxu0 }
 0x8b0   :  { %v14628_v36 = vpop.f32.mrf.mxu0 }
 0x8b1   :  { %v7285_v8 = vadd.f32 %v14628_v36, %v6926_v23 }
 0x8b2   :  { %v7205_v54 = vpop.f32.mrf.mxu0 }
 0x8b4   :  { %v14631_v52 = vpop.f32.mrf.mxu0 }
 0x8b5   :  { %v7287_v7 = vadd.f32 %v14631_v52, %v6928_v62 }
 0x8b6   :  { %v7215_v33 = vpop.f32.mrf.mxu0 }
 0x8b8   :  { %v14634_v56 = vpop.f32.mrf.mxu0 }
 0x8b9   :  { %v7289_v21 = vadd.f32 %v14634_v56, %v6930_v22 }
 0x8ba   :  { %v7225_v45 = vpop.f32.mrf.mxu0 }
 0x8bc   :  { %v14637_v38 = vpop.f32.mrf.mxu0 }
 0x8bd   :  { %v7291_v12 = vadd.f32 %v14637_v38, %v6932_v19 }
 0x8be   :  { %v18045_v27 = vpop.f32.mrf.mxu0 }
 0x8c0   :  { %v14640_v4 = vpop.f32.mrf.mxu0 }
 0x8c1   :  { %v7293_v2 = vadd.f32 %v14640_v4, %v6934_v40 }
 0x8c2   :  { %v18047_v31 = vpop.f32.mrf.mxu0 }
 0x8c4   :  { %v14643_v51 = vpop.f32.mrf.mxu0 }
 0x8c5   :  { %v7295_v16 = vadd.f32 %v14643_v51, %v6936_v43 }
 0x8c6   :  { %v18049_v5 = vpop.f32.mrf.mxu0 }
 0x8c8   :  { %v14646_v23 = vpop.f32.mrf.mxu0 }
 0x8c9   :  { %v7297_v24 = vadd.f32 %v14646_v23, %v6938_v39 }
 0x8ca   :  { %v18051_v29 = vpop.f32.mrf.mxu0 }
 0x8cc   :  { %v14649_v62 = vpop.f32.mrf.mxu0 }
 0x8cd   :  { %v7299_v41 = vadd.f32 %v14649_v62, %v6940_v11 }
 0x8ce   :  { %v7275_v22 = vpop.f32.mrf.mxu0 }
 0x8d0   :  { %v14716_v34 = vpop.f32.mrf.mxu0 }
 0x8d1   :  { %v7644_v0 = vadd.f32 %v14716_v34, %v7285_v8  ;;  %v6574_v8 = vadd.f32 %v18005_v3, %v17905_v35 }
 0x8d2   :  { %v7564_v19 = vpop.f32.mrf.mxu0 }
 0x8d4   :  { %v14719_v47 = vpop.f32.mrf.mxu0 }
 0x8d5   :  { %v7646_v49 = vadd.f32 %v14719_v47, %v7287_v7  ;;  %v6504_v7 = vadd.f32 %v17836_v63, %v17834_v37  ;;  %v6524_v37 = vadd.f32 %v17857_v17, %v17855_v44  ;;  %v6544_v44 = vadd.f32 %v17877_v6, %v17875_v13 }
 0x8d6   :  { %v7574_v48 = vpop.f32.mrf.mxu0 }
 0x8d8   :  { %v14722_v40 = vpop.f32.mrf.mxu0 }
 0x8d9   :  { %v7648_v46 = vadd.f32 %v14722_v40, %v7289_v21  ;;  %v6939_v21 = vadd.f32 %v6916_v30, %v6574_v8 }
 0x8da   :  { %v7584_v50 = vpop.f32.mrf.mxu0 }
 0x8db   :  { %v7298_v23 = vadd.f32 %v7275_v22, %v6939_v21 }
 0x8dc   :  { %v14725_v10 = vpop.f32.mrf.mxu0 }
 0x8dd   :  { %v7650_v43 = vadd.f32 %v14725_v10, %v7291_v12  ;;  %v6925_v12 = vadd.f32 %v18010_v53, %v6504_v7 }
 0x8de   :  { %v7594_v15 = vpop.f32.mrf.mxu0 }
 0x8df   :  { %v7284_v34 = vadd.f32 %v7205_v54, %v6925_v12 }
 0x8e0   :  { %v14728_v28 = vpop.f32.mrf.mxu0 }
 0x8e1   :  { %v7652_v58 = vadd.f32 %v14728_v28, %v7293_v2  ;;  %v7643_v3 = vadd.f32 %v7564_v19, %v7284_v34 }
 0x8e2   :  { %v7604_v39 = vpop.f32.mrf.mxu0 }
 0x8e4   :  { %v14731_v36 = vpop.f32.mrf.mxu0 }
 0x8e5   :  { %v7654_v52 = vadd.f32 %v14731_v36, %v7295_v16  ;;  %v6514_v16 = vadd.f32 %v17847_v32, %v17845_v26  ;;  %v6534_v26 = vadd.f32 %v17867_v42, %v17865_v25  ;;  %v6554_v42 = vadd.f32 %v17887_v18, %v17885_v9 }
 0x8e6   :  { %v7614_v56 = vpop.f32.mrf.mxu0 }
 0x8e7   :  { %v6927_v35 = vadd.f32 %v18015_v59, %v6514_v16 }
 0x8e8   :  { %v14734_v11 = vpop.f32.mrf.mxu0 }
 0x8e9   :  { %v7656_v38 = vadd.f32 %v14734_v11, %v7297_v24  ;;  %v7286_v63 = vadd.f32 %v7215_v33, %v6927_v35 }
 0x8ea   :  { %v7624_v4 = vpop.f32.mrf.mxu0 }
 0x8eb   :  { %v7645_v22 = vadd.f32 %v7574_v48, %v7286_v63 }
 0x8ec   :  { %v14737_v51 = vpop.f32.mrf.mxu0 }
 0x8ed   :  { %v7658_v62 = vadd.f32 %v14737_v51, %v7299_v41  ;;  %v6929_v41 = vadd.f32 %v18020_v61, %v6524_v37 }
 0x8ee   :  { %v7634_v2 = vpop.f32.mrf.mxu0 }
 0x8ef   :  { %v7657_v47 = vadd.f32 %v7634_v2, %v7298_v23  ;;  %v7288_v32 = vadd.f32 %v7225_v45, %v6929_v41 }
 0x8f0   :  { %v14804_v40 = vpop.f32.mrf.mxu0 }
 0x8f1   :  { %v8003_v24 = vadd.f32 %v14804_v40, %v7644_v0  ;;  %v6931_v0 = vadd.f32 %v18025_v20, %v6534_v26  ;;  %v7647_v19 = vadd.f32 %v7584_v50, %v7288_v32  ;;  %v6935_v50 = vadd.f32 %v18035_v60, %v6554_v42 }
 0x8f2   :  { %v7923_v10 = vpop.f32.mrf.mxu0 }
 0x8f3   :  { %v8002_v30 = vadd.f32 %v7923_v10, %v7643_v3  ;;  %v7290_v17 = vadd.f32 %v18045_v27, %v6931_v0  ;;  %v6564_v27 = vadd.f32 %v17897_v14, %v17895_v57 }
 0x8f4   :  { %v14807_v53 = vpop.f32.mrf.mxu0 }
 0x8f5   :  { %v8005_v28 = vadd.f32 %v14807_v53, %v7646_v49  ;;  %v6933_v49 = vadd.f32 %v18030_v55, %v6544_v44  ;;  %v7649_v48 = vadd.f32 %v7594_v15, %v7290_v17  ;;  %v7294_v55 = vadd.f32 %v18049_v5, %v6935_v50 }
 0x8f6   :  { %v7933_v36 = vpop.f32.mrf.mxu0  ;;  %v6937_v51 = vadd.f32 %v18040_v1, %v6564_v27 }
 0x8f7   :  { %v8004_v54 = vadd.f32 %v7933_v36, %v7645_v22  ;;  %v7292_v20 = vadd.f32 %v18047_v31, %v6933_v49  ;;  %v7653_v12 = vadd.f32 %v7614_v56, %v7294_v55  ;;  %v9134_v56 = vld [vmem:[#allocation7] sm:$0xff] }
 0x8f8   :  { %v14810_v59 = vpop.f32.mrf.mxu0  ;;  %v7296_v31 = vadd.f32 %v18051_v29, %v6937_v51  ;;  %15122 = vmatprep.mubr.f32.mxu1 %v9134_v56 }
 0x8f9   :  { %v8007_v11 = vadd.f32 %v14810_v59, %v7648_v46  ;;  %v7651_v21 = vadd.f32 %v7604_v39, %v7292_v20 }
 0x8fa   :  { %v7943_v8 = vpop.f32.mrf.mxu0  ;;  %v7655_v60 = vadd.f32 %v7624_v4, %v7296_v31 }
 0x8fb   :  { %v8006_v61 = vadd.f32 %v7943_v8, %v7647_v19 }
 0x8fc   :  { %v14813_v33 = vpop.f32.mrf.mxu0 }
 0x8fd   :  { %v8009_v7 = vadd.f32 %v14813_v33, %v7650_v43 }
 0x8fe   :  { %v7953_v25 = vpop.f32.mrf.mxu0 }
 0x8ff   :  { %v8008_v45 = vadd.f32 %v7953_v25, %v7649_v48 }
 0x900   :  { %v14816_v46 = vpop.f32.mrf.mxu0 }
 0x901   :  { %v8011_v13 = vadd.f32 %v14816_v46, %v7652_v58 }
 0x902   :  { %v7963_v6 = vpop.f32.mrf.mxu0 }
 0x903   :  { %v8010_v15 = vadd.f32 %v7963_v6, %v7651_v21 }
 0x904   :  { %v14819_v43 = vpop.f32.mrf.mxu0 }
 0x905   :  { %v8013_v9 = vadd.f32 %v14819_v43, %v7654_v52  ;;  %v9296_v52 = vld [vmem:[#allocation7 + $0x80] sm:$0xff] }
 0x906   :  { %v7973_v18 = vpop.f32.mrf.mxu0  ;;  %15178 = vmatprep.mubr.f32.mxu0 %v9296_v52 }
 0x907   :  { %v8012_v23 = vadd.f32 %v7973_v18, %v7653_v12 }
 0x908   :  { %v14822_v2 = vpop.f32.mrf.mxu0 }
 0x909   :  { %v8015_v39 = vadd.f32 %v14822_v2, %v7656_v38 }
 0x90a   :  { %v7983_v58 = vpop.f32.mrf.mxu0 }
 0x90b   :  { %v8014_v16 = vadd.f32 %v7983_v58, %v7655_v60 }
 0x90c   :  { %v14825_v34 = vpop.f32.mrf.mxu0 }
 0x90d   :  { %v18080_v40 = vadd.f32 %v14825_v34, %v7658_v62 }
 0x90e   :  { %v7993_v57 = vpop.f32.mrf.mxu0 }
 0x90f   :  { %v18082_v14 = vadd.f32 %v7993_v57, %v7657_v47 }
 0x910   :  { %v14892_v5 = vpop.f32.mrf.mxu0 }
 0x911   :  { %v8362_v35 = vadd.f32 %v14892_v5, %v8003_v24 }
 0x912   :  { %v8282_v1 = vpop.f32.mrf.mxu0 }
 0x913   :  { %v8361_v3 = vadd.f32 %v8282_v1, %v8002_v30 }
 0x914   :  { %v14895_v29 = vpop.f32.mrf.mxu0 }
 0x915   :  { %v8364_v10 = vadd.f32 %v14895_v29, %v8005_v28 }
 0x916   :  { %v8292_v4 = vpop.f32.mrf.mxu0 }
 0x917   :  { %v8363_v38 = vadd.f32 %v8292_v4, %v8004_v54 }
 0x918   :  { %v14898_v37 = vpop.f32.mrf.mxu0 }
 0x919   :  { %v8366_v63 = vadd.f32 %v14898_v37, %v8007_v11 }
 0x91a   :  { %v8302_v53 = vpop.f32.mrf.mxu0 }
 0x91b   :  { %v8365_v62 = vadd.f32 %v8302_v53, %v8006_v61 }
 0x91c   :  { %v14901_v41 = vpop.f32.mrf.mxu0 }
 0x91d   :  { %v18084_v22 = vadd.f32 %v14901_v41, %v8009_v7 }
 0x91e   :  { %v8312_v47 = vpop.f32.mrf.mxu0 }
 0x91f   :  { %v18086_v36 = vadd.f32 %v8312_v47, %v8008_v45  ;;  %v18123_v47 = vld [vmem:[%s18525_s7] ss:$0 sm:$0xff] }
 0x920   :  { %v14904_v24 = vpop.f32.mrf.mxu0 }
 0x921   :  { %v18088_v26 = vadd.f32 %v14904_v24, %v8011_v13 }
 0x922   :  { %v8322_v30 = vpop.f32.mrf.mxu0 }
 0x923   :  { %v18090_v32 = vadd.f32 %v8322_v30, %v8010_v15 }
 0x924   :  { %v14907_v59 = vpop.f32.mrf.mxu0 }
 0x925   :  { %v8372_v28 = vadd.f32 %v14907_v59, %v8013_v9 }
 0x926   :  { %v8332_v0 = vpop.f32.mrf.mxu0 }
 0x927   :  { %v8371_v54 = vadd.f32 %v8332_v0, %v8012_v23 }
 0x928   :  { %v14910_v19 = vpop.f32.mrf.mxu0 }
 0x929   :  { %v8374_v11 = vadd.f32 %v14910_v19, %v8015_v39 }
 0x92a   :  { %v8342_v8 = vpop.f32.mrf.mxu0 }
 0x92b   :  { %v8373_v44 = vadd.f32 %v8342_v8, %v8014_v16 }
 0x92c   :  { %v14913_v17 = vpop.f32.mrf.mxu0 }
 0x92e   :  { %v8352_v61 = vpop.f32.mrf.mxu0 }
 0x930   :  { %v14980_v33 = vpop.f32.mrf.mxu0 }
 0x931   :  { %v18092_v49 = vadd.f32 %v14980_v33, %v8362_v35 }
 0x932   :  { %v8641_v48 = vpop.f32.mrf.mxu0 }
 0x933   :  { %v18094_v7 = vadd.f32 %v8641_v48, %v8361_v3  ;;  %v8376_v3 = vadd.f32 %v14913_v17, %v18080_v40 }
 0x934   :  { %v14983_v25 = vpop.f32.mrf.mxu0 }
 0x935   :  { %v18096_v42 = vadd.f32 %v14983_v25, %v8364_v10  ;;  %v8375_v10 = vadd.f32 %v8352_v61, %v18082_v14 }
 0x936   :  { %v8651_v20 = vpop.f32.mrf.mxu0 }
 0x937   :  { %v18098_v45 = vadd.f32 %v8651_v20, %v8363_v38 }
 0x938   :  { %v14986_v46 = vpop.f32.mrf.mxu0 }
 0x939   :  { %v18100_v50 = vadd.f32 %v14986_v46, %v8366_v63 }
 0x93a   :  { %v8661_v21 = vpop.f32.mrf.mxu0 }
 0x93b   :  { %v18102_v13 = vadd.f32 %v8661_v21, %v8365_v62 }
 0x93c   :  { %v14989_v6 = vpop.f32.mrf.mxu0 }
 0x93e   :  { %v18104_v27 = vpop.f32.mrf.mxu0 }
 0x940   :  { %v14992_v55 = vpop.f32.mrf.mxu0 }
 0x941   :  { %v8729_v17 = vadd.f32 %v14992_v55, %v18088_v26  ;;  %v8727_v26 = vadd.f32 %v14989_v6, %v18084_v22 }
 0x942   :  { %v8681_v15 = vpop.f32.mrf.mxu0 }
 0x944   :  { %v14995_v43 = vpop.f32.mrf.mxu0 }
 0x945   :  { %v8731_v30 = vadd.f32 %v14995_v43, %v8372_v28  ;;  %v8728_v28 = vadd.f32 %v8681_v15, %v18090_v32  ;;  %v8726_v32 = vadd.f32 %v18104_v27, %v18086_v36 }
 0x946   :  { %v8691_v51 = vpop.f32.mrf.mxu0 }
 0x947   :  { %v8730_v19 = vadd.f32 %v8691_v51, %v8371_v54 }
 0x948   :  { %v14998_v12 = vpop.f32.mrf.mxu0 }
 0x949   :  { %v8733_v4 = vadd.f32 %v14998_v12, %v8374_v11 }
 0x94a   :  { %v8701_v9 = vpop.f32.mrf.mxu0 }
 0x94b   :  { %v8732_v63 = vadd.f32 %v8701_v9, %v8373_v44 }
 0x94c   :  { %v15001_v18 = vpop.f32.mrf.mxu0 }
 0x94d   :  { %v8735_v38 = vadd.f32 %v15001_v18, %v8376_v3  ;;  %v9135_v3 = vld [vmem:[#allocation7 + $0x8] sm:$0xff] }
 0x94e   :  { %v8711_v31 = vpop.f32.mrf.mxu0 }
 0x94f   :  { %v8734_v53 = vadd.f32 %v8711_v31, %v8375_v10  ;;  %v9136_v10 = vld [vmem:[#allocation7 + $0x10] sm:$0xff] }
 0x950   :  { %v18106_v23 = vpop.f32.mrf.mxu0 }
 0x952   :  { %v18108_v2 = vpop.f32.mrf.mxu0 }
 0x954   :  { %v18110_v60 = vpop.f32.mrf.mxu0 }
 0x956   :  { %v18112_v39 = vpop.f32.mrf.mxu0 }
 0x958   :  { %v18114_v58 = vpop.f32.mrf.mxu0 }
 0x959   :  { %v9084_v36 = vadd.f32 %v18114_v58, %v18100_v50  ;;  %v9082_v50 = vadd.f32 %v18110_v60, %v18096_v42  ;;  %v9080_v42 = vadd.f32 %v18106_v23, %v18092_v49 }
 0x95a   :  { %v18116_v16 = vpop.f32.mrf.mxu0 }
 0x95b   :  { %v9083_v18 = vadd.f32 %v18116_v16, %v18102_v13  ;;  %v9107_v58 = vadd.f32 %v18123_v47, %v9084_v36  ;;  %v9081_v13 = vadd.f32 %v18112_v39, %v18098_v45  ;;  %v9105_v60 = vadd.f32 %v18123_v47, %v9082_v50  ;;  %v9479_v36 = vld [vmem:[#allocation7 + $0x128] sm:$0xff]  ;;  %v9659_v50 = vld [vmem:[#allocation7 + $0x1b8] sm:$0xff] }
 0x95c   :  { %v15077_v34 = vpop.f32.mrf.mxu0  ;;  %v9079_v45 = vadd.f32 %v18108_v2, %v18094_v7  ;;  %v9103_v49 = vadd.f32 %v18123_v47, %v9080_v42  ;;  %v9485_v42 = vld [vmem:[#allocation7 + $0x158] sm:$0xff] }
 0x95d   :  { %v9086_v15 = vadd.f32 %v15077_v34, %v8727_v26  ;;  %v9106_v16 = vadd.f32 %v18123_v47, %v9083_v18  ;;  %v9104_v39 = vadd.f32 %v18123_v47, %v9081_v13  ;;  %v18225_v23 = vmax.f32 %v9105_v60, 0.0  ;;  %v9311_v26 = vld [vmem:[#allocation7 + $0xf8] sm:$0xff]  ;;  %v9658_v18 = vld [vmem:[#allocation7 + $0x1b0] sm:$0xff]  ;;  %v9486_v60 = vld [vmem:[#allocation7 + $0x160] sm:$0xff] }
 0x95e   :  { %v9030_v57 = vpop.f32.mrf.mxu0  ;;  %v9102_v7 = vadd.f32 %v18123_v47, %v9079_v45  ;;  %v9484_v13 = vld [vmem:[#allocation7 + $0x150] sm:$0xff]  ;;  %v9664_v45 = vld [vmem:[#allocation7 + $0x1e0] sm:$0xff] }
 0x95f   :  { %v9085_v6 = vadd.f32 %v9030_v57, %v8726_v32  ;;  %v9109_v27 = vadd.f32 %v18123_v47, %v9086_v15  ;;  %v18232_v2 = vmax.f32 %v9104_v39, 0.0  ;;  %v9476_v32 = vld [vmem:[#allocation7 + $0x110] sm:$0xff]  ;;  %v9653_v15 = vld [vmem:[#allocation7 + $0x188] sm:$0xff] }
 0x960   :  { %v15080_v5 = vpop.f32.mrf.mxu0  ;;  %v9487_v39 = vld [vmem:[#allocation7 + $0x168] sm:$0xff] }
 0x961   :  { %v9088_v54 = vadd.f32 %v15080_v5, %v8729_v17  ;;  %v9108_v31 = vadd.f32 %v18123_v47, %v9085_v6  ;;  %v18191_v57 = vmax.f32 %v9109_v27, 0.0  ;;  %v9307_v17 = vld [vmem:[#allocation7 + $0xd8] sm:$0xff]  ;;  %v9478_v6 = vld [vmem:[#allocation7 + $0x120] sm:$0xff]  ;;  %v9480_v27 = vld [vmem:[#allocation7 + $0x130] sm:$0xff] }
 0x962   :  { %v9040_v35 = vpop.f32.mrf.mxu0 }
 0x963   :  { %v9087_v46 = vadd.f32 %v9040_v35, %v8728_v28  ;;  %v9111_v43 = vadd.f32 %v18123_v47, %v9088_v54  ;;  %v18200_v5 = vmax.f32 %v9108_v31, 0.0  ;;  %v18209_v35 = vmax.f32 %v9107_v58, 0.0  ;;  %v9309_v28 = vld [vmem:[#allocation7 + $0xe8] sm:$0xff]  ;;  %v9148_v54 = vld [vmem:[#allocation7 + $0x70] sm:$0xff]  ;;  %v9481_v31 = vld [vmem:[#allocation7 + $0x138] sm:$0xff] }
 0x964   :  { %v15083_v1 = vpop.f32.mrf.mxu0  ;;  %v9660_v58 = vld [vmem:[#allocation7 + $0x1c0] sm:$0xff] }
 0x965   :  { %v9090_v14 = vadd.f32 %v15083_v1, %v8731_v30  ;;  %v9110_v51 = vadd.f32 %v18123_v47, %v9087_v46  ;;  %v18173_v9 = vmax.f32 %v9111_v43, 0.0  ;;  %v18218_v1 = vmax.f32 %v9106_v16, 0.0  ;;  %v9141_v30 = vld [vmem:[#allocation7 + $0x38] sm:$0xff]  ;;  %v9474_v46 = vld [vmem:[#allocation7 + $0x100] sm:$0xff]  ;;  %v9654_v43 = vld [vmem:[#allocation7 + $0x190] sm:$0xff] }
 0x966   :  { %v9050_v56 = vpop.f32.mrf.mxu0  ;;  %v9661_v16 = vld [vmem:[#allocation7 + $0x1c8] sm:$0xff] }
 0x967   :  { %v9089_v61 = vadd.f32 %v9050_v56, %v8730_v19  ;;  %v9113_v25 = vadd.f32 %v18123_v47, %v9090_v14  ;;  %v18182_v34 = vmax.f32 %v9110_v51, 0.0  ;;  %v18238_v56 = vmax.f32 %v9103_v49, 0.0  ;;  %v9143_v19 = vld [vmem:[#allocation7 + $0x48] sm:$0xff]  ;;  %v9655_v51 = vld [vmem:[#allocation7 + $0x198] sm:$0xff] }
 0x968   :  { %v15086_v52 = vpop.f32.mrf.mxu0  ;;  %v9305_v14 = vld [vmem:[#allocation7 + $0xc8] sm:$0xff] }
 0x969   :  { %v9092_v62 = vadd.f32 %v15086_v52, %v8733_v4  ;;  %v9112_v21 = vadd.f32 %v18123_v47, %v9089_v61  ;;  %v18157_v22 = vmax.f32 %v9113_v25, 0.0  ;;  %v18244_v52 = vmax.f32 %v9102_v7, 0.0  ;;  %v9298_v4 = vld [vmem:[#allocation7 + $0x90] sm:$0xff]  ;;  %v9146_v61 = vld [vmem:[#allocation7 + $0x60] sm:$0xff]  ;;  %v9665_v49 = vld [vmem:[#allocation7 + $0x1e8] sm:$0xff] }
 0x96a   :  { %v9060_v29 = vpop.f32.mrf.mxu0  ;;  %v9310_v25 = vld [vmem:[#allocation7 + $0xf0] sm:$0xff]  ;;  %v9861_v7 = vld [vmem:[#allocation8 + $0xf8] sm:$0xff] }
 0x96b   :  { %v9091_v59 = vadd.f32 %v9060_v29, %v8732_v63  ;;  %v9115_v11 = vadd.f32 %v18123_v47, %v9092_v62  ;;  %v18164_v12 = vmax.f32 %v9112_v21, 0.0  ;;  %v9297_v29 = vld [vmem:[#allocation7 + $0x88] sm:$0xff]  ;;  %v9138_v63 = vld [vmem:[#allocation7 + $0x20] sm:$0xff] }
 0x96c   :  { %v15089_v37 = vpop.f32.mrf.mxu0  ;;  %v9139_v62 = vld [vmem:[#allocation7 + $0x28] sm:$0xff] }
 0x96d   :  { %v9094_v41 = vadd.f32 %v15089_v37, %v8735_v38  ;;  %v9114_v33 = vadd.f32 %v18123_v47, %v9091_v59  ;;  %v18140_v20 = vmax.f32 %v9115_v11, 0.0  ;;  %v9137_v38 = vld [vmem:[#allocation7 + $0x18] sm:$0xff]  ;;  %v9144_v11 = vld [vmem:[#allocation7 + $0x50] sm:$0xff]  ;;  %v9475_v21 = vld [vmem:[#allocation7 + $0x108] sm:$0xff] }
 0x96e   :  { %v9070_v24 = vpop.f32.mrf.mxu0  ;;  %v9299_v37 = vld [vmem:[#allocation7 + $0x98] sm:$0xff] }
 0x96f   :  { %v9117_v40 = vadd.f32 %v18123_v47, %v9094_v41  ;;  %v9093_v0 = vadd.f32 %v9070_v24, %v8734_v53  ;;  %v18148_v55 = vmax.f32 %v9114_v33, 0.0  ;;  %v9300_v53 = vld [vmem:[#allocation7 + $0xa0] sm:$0xff]  ;;  %v9301_v41 = vld [vmem:[#allocation7 + $0xa8] sm:$0xff]  ;;  %v9302_v24 = vld [vmem:[#allocation7 + $0xb0] sm:$0xff] }
 0x970   :  { %v9303_v59 = vld [vmem:[#allocation7 + $0xb8] sm:$0xff]  ;;  %v9308_v33 = vld [vmem:[#allocation7 + $0xe0] sm:$0xff] }
 0x971   :  { %v18127_v8 = vmax.f32 %v9117_v40, 0.0  ;;  %v9116_v44 = vadd.f32 %v18123_v47, %v9093_v0  ;;  %v9140_v47 = vld [vmem:[#allocation7 + $0x30] sm:$0xff]  ;;  %v9142_v40 = vld [vmem:[#allocation7 + $0x40] sm:$0xff] }
 0x972   :  { %v9304_v0 = vld [vmem:[#allocation7 + $0xc0] sm:$0xff] }
 0x973   :  { %v18132_v48 = vmax.f32 %v9116_v44, 0.0  ;;  %15090 = vmatprep.subr.mxu1 %v18127_v8  ;;  %15146 = vmatprep.subr.mxu0 %v18127_v8  ;;  %v9145_v44 = vld [vmem:[#allocation7 + $0x58] sm:$0xff] }
 0x974   :  { %15091 = vmatpush3.msra.mxu1 %v18127_v8  ;;  %15147 = vmatpush3.msra.mxu0 %v18127_v8 }
 0x975   :  { %15092 = vmatprep.subr.mxu1 %v18132_v48  ;;  %15148 = vmatprep.subr.mxu0 %v18132_v48 }
 0x976   :  { %15093 = vmatpush3.msra.mxu1 %v18132_v48  ;;  %15149 = vmatpush3.msra.mxu0 %v18132_v48 }
 0x977   :  { %15094 = vmatprep.subr.mxu1 %v18140_v20  ;;  %15150 = vmatprep.subr.mxu0 %v18140_v20 }
 0x978   :  { %15095 = vmatpush3.msra.mxu1 %v18140_v20  ;;  %15151 = vmatpush3.msra.mxu0 %v18140_v20 }
 0x979   :  { %15096 = vmatprep.subr.mxu1 %v18148_v55  ;;  %15152 = vmatprep.subr.mxu0 %v18148_v55 }
 0x97a   :  { %15097 = vmatpush3.msra.mxu1 %v18148_v55  ;;  %15153 = vmatpush3.msra.mxu0 %v18148_v55 }
 0x97b   :  { %15098 = vmatprep.subr.mxu1 %v18157_v22  ;;  %15154 = vmatprep.subr.mxu0 %v18157_v22 }
 0x97c   :  { %15099 = vmatpush3.msra.mxu1 %v18157_v22  ;;  %15155 = vmatpush3.msra.mxu0 %v18157_v22 }
 0x97d   :  { %15100 = vmatprep.subr.mxu1 %v18164_v12  ;;  %15156 = vmatprep.subr.mxu0 %v18164_v12 }
 0x97e   :  { %15101 = vmatpush3.msra.mxu1 %v18164_v12  ;;  %15157 = vmatpush3.msra.mxu0 %v18164_v12 }
 0x97f   :  { %15102 = vmatprep.subr.mxu1 %v18173_v9  ;;  %15158 = vmatprep.subr.mxu0 %v18173_v9 }
 0x980   :  { %15103 = vmatpush3.msra.mxu1 %v18173_v9  ;;  %15159 = vmatpush3.msra.mxu0 %v18173_v9 }
 0x981   :  { %15104 = vmatprep.subr.mxu1 %v18182_v34  ;;  %15160 = vmatprep.subr.mxu0 %v18182_v34 }
 0x982   :  { %15105 = vmatpush3.msra.mxu1 %v18182_v34  ;;  %15161 = vmatpush3.msra.mxu0 %v18182_v34 }
 0x983   :  { %15106 = vmatprep.subr.mxu1 %v18191_v57  ;;  %15162 = vmatprep.subr.mxu0 %v18191_v57 }
 0x984   :  { %15107 = vmatpush3.msra.mxu1 %v18191_v57  ;;  %15163 = vmatpush3.msra.mxu0 %v18191_v57 }
 0x985   :  { %15108 = vmatprep.subr.mxu1 %v18200_v5  ;;  %15164 = vmatprep.subr.mxu0 %v18200_v5 }
 0x986   :  { %15109 = vmatpush3.msra.mxu1 %v18200_v5  ;;  %15165 = vmatpush3.msra.mxu0 %v18200_v5 }
 0x987   :  { %15110 = vmatprep.subr.mxu1 %v18209_v35  ;;  %15166 = vmatprep.subr.mxu0 %v18209_v35 }
 0x988   :  { %15111 = vmatpush3.msra.mxu1 %v18209_v35  ;;  %15167 = vmatpush3.msra.mxu0 %v18209_v35 }
 0x989   :  { %15112 = vmatprep.subr.mxu1 %v18218_v1  ;;  %15168 = vmatprep.subr.mxu0 %v18218_v1 }
 0x98a   :  { %15113 = vmatpush3.msra.mxu1 %v18218_v1  ;;  %15169 = vmatpush3.msra.mxu0 %v18218_v1 }
 0x98b   :  { %15114 = vmatprep.subr.mxu1 %v18225_v23  ;;  %15170 = vmatprep.subr.mxu0 %v18225_v23 }
 0x98c   :  { %15115 = vmatpush3.msra.mxu1 %v18225_v23  ;;  %15171 = vmatpush3.msra.mxu0 %v18225_v23 }
 0x98d   :  { %15116 = vmatprep.subr.mxu1 %v18232_v2  ;;  %15172 = vmatprep.subr.mxu0 %v18232_v2 }
 0x98e   :  { %15117 = vmatpush3.msra.mxu1 %v18232_v2  ;;  %15173 = vmatpush3.msra.mxu0 %v18232_v2 }
 0x98f   :  { %15118 = vmatprep.subr.mxu1 %v18238_v56  ;;  %15174 = vmatprep.subr.mxu0 %v18238_v56 }
 0x990   :  { %15119 = vmatpush3.msra.mxu1 %v18238_v56  ;;  %15175 = vmatpush3.msra.mxu0 %v18238_v56 }
 0x991   :  { %15120 = vmatprep.subr.mxu1 %v18244_v52  ;;  %15176 = vmatprep.subr.mxu0 %v18244_v52 }
 0x992   :  { %15121 = vmatpush3.msra.mxu1 %v18244_v52  ;;  %15177 = vmatpush3.msra.mxu0 %v18244_v52 }
 0x993   :  { %15123 = vmatmul.mubr.f32.vlgmr.msra.gmra.mxu1 %v9135_v3  ;;  %15179 = vmatmul.mubr.f32.vlgmr.msra.gmra.mxu0 %v9297_v29  ;;  %v9859_v3 = vld [vmem:[#allocation8 + $0xe8] sm:$0xff]  ;;  %v9858_v29 = vld [vmem:[#allocation8 + $0xe0] sm:$0xff] }
 0x994   :  { %15202 = vmatprep.subr.mxu1 %v18127_v8  ;;  %15258 = vmatprep.subr.mxu0 %v18127_v8 }
 0x995   :  { %15203 = vmatpush3.msra.mxu1 %v18127_v8  ;;  %15259 = vmatpush3.msra.mxu0 %v18127_v8  ;;  %v9306_v8 = vld [vmem:[#allocation7 + $0xd0] sm:$0xff] }
 0x996   :  { %15204 = vmatprep.subr.mxu1 %v18132_v48  ;;  %15260 = vmatprep.subr.mxu0 %v18132_v48 }
 0x997   :  { %15125 = vmatprep.mubr.f32.mxu1 %v9136_v10  ;;  %15181 = vmatprep.mubr.f32.mxu0 %v9298_v4  ;;  %v9857_v10 = vld [vmem:[#allocation8 + $0xd8] sm:$0xff]  ;;  %v9856_v4 = vld [vmem:[#allocation8 + $0xd0] sm:$0xff] }
 0x998   :  { %15205 = vmatpush3.msra.mxu1 %v18132_v48  ;;  %15261 = vmatpush3.msra.mxu0 %v18132_v48  ;;  %v9147_v48 = vld [vmem:[#allocation7 + $0x68] sm:$0xff] }
 0x999   :  { %15126 = vmatmul.mubr.f32.gmra.mxu1 %v9137_v38  ;;  %15182 = vmatmul.mubr.f32.gmra.mxu0 %v9299_v37  ;;  %v9855_v38 = vld [vmem:[#allocation8 + $0xc8] sm:$0xff]  ;;  %v9854_v37 = vld [vmem:[#allocation8 + $0xc0] sm:$0xff] }
 0x99a   :  { %15206 = vmatprep.subr.mxu1 %v18140_v20  ;;  %15262 = vmatprep.subr.mxu0 %v18140_v20 }
 0x99b   :  { %15207 = vmatpush3.msra.mxu1 %v18140_v20  ;;  %15263 = vmatpush3.msra.mxu0 %v18140_v20  ;;  %v9149_v20 = vld [vmem:[#allocation7 + $0x78] sm:$0xff] }
 0x99c   :  { %15208 = vmatprep.subr.mxu1 %v18148_v55  ;;  %15264 = vmatprep.subr.mxu0 %v18148_v55 }
 0x99d   :  { %15128 = vmatprep.mubr.f32.mxu1 %v9138_v63  ;;  %15184 = vmatprep.mubr.f32.mxu0 %v9300_v53  ;;  %v9853_v63 = vld [vmem:[#allocation8 + $0xb8] sm:$0xff]  ;;  %v9852_v53 = vld [vmem:[#allocation8 + $0xb0] sm:$0xff] }
 0x99e   :  { %15209 = vmatpush3.msra.mxu1 %v18148_v55  ;;  %15265 = vmatpush3.msra.mxu0 %v18148_v55  ;;  %v9652_v55 = vld [vmem:[#allocation7 + $0x180] sm:$0xff] }
 0x99f   :  { %15129 = vmatmul.mubr.f32.gmra.mxu1 %v9139_v62  ;;  %15185 = vmatmul.mubr.f32.gmra.mxu0 %v9301_v41  ;;  %v9851_v62 = vld [vmem:[#allocation8 + $0xa8] sm:$0xff]  ;;  %v9850_v41 = vld [vmem:[#allocation8 + $0xa0] sm:$0xff] }
 0x9a0   :  { %15210 = vmatprep.subr.mxu1 %v18157_v22  ;;  %15266 = vmatprep.subr.mxu0 %v18157_v22 }
 0x9a1   :  { %15211 = vmatpush3.msra.mxu1 %v18157_v22  ;;  %15267 = vmatpush3.msra.mxu0 %v18157_v22  ;;  %v9477_v22 = vld [vmem:[#allocation7 + $0x118] sm:$0xff] }
 0x9a2   :  { %15212 = vmatprep.subr.mxu1 %v18164_v12  ;;  %15268 = vmatprep.subr.mxu0 %v18164_v12 }
 0x9a3   :  { %15131 = vmatprep.mubr.f32.mxu1 %v9140_v47  ;;  %15187 = vmatprep.mubr.f32.mxu0 %v9302_v24  ;;  %v10027_v47 = vld [vmem:[#allocation8 + $0x178] sm:$0xff]  ;;  %v10026_v24 = vld [vmem:[#allocation8 + $0x170] sm:$0xff] }
 0x9a4   :  { %15213 = vmatpush3.msra.mxu1 %v18164_v12  ;;  %15269 = vmatpush3.msra.mxu0 %v18164_v12  ;;  %v9656_v12 = vld [vmem:[#allocation7 + $0x1a0] sm:$0xff] }
 0x9a5   :  { %15132 = vmatmul.mubr.f32.gmra.mxu1 %v9141_v30  ;;  %15188 = vmatmul.mubr.f32.gmra.mxu0 %v9303_v59  ;;  %v10025_v30 = vld [vmem:[#allocation8 + $0x168] sm:$0xff]  ;;  %v9849_v59 = vld [vmem:[#allocation8 + $0x98] sm:$0xff] }
 0x9a6   :  { %15214 = vmatprep.subr.mxu1 %v18173_v9  ;;  %15270 = vmatprep.subr.mxu0 %v18173_v9 }
 0x9a7   :  { %15215 = vmatpush3.msra.mxu1 %v18173_v9  ;;  %15271 = vmatpush3.msra.mxu0 %v18173_v9  ;;  %v9657_v9 = vld [vmem:[#allocation7 + $0x1a8] sm:$0xff] }
 0x9a8   :  { %15216 = vmatprep.subr.mxu1 %v18182_v34  ;;  %15272 = vmatprep.subr.mxu0 %v18182_v34 }
 0x9a9   :  { %15134 = vmatprep.mubr.f32.mxu1 %v9142_v40  ;;  %15190 = vmatprep.mubr.f32.mxu0 %v9304_v0  ;;  %v10024_v40 = vld [vmem:[#allocation8 + $0x160] sm:$0xff]  ;;  %v9848_v0 = vld [vmem:[#allocation8 + $0x90] sm:$0xff] }
 0x9aa   :  { %15217 = vmatpush3.msra.mxu1 %v18182_v34  ;;  %15273 = vmatpush3.msra.mxu0 %v18182_v34  ;;  %v9482_v34 = vld [vmem:[#allocation7 + $0x140] sm:$0xff] }
 0x9ab   :  { %15135 = vmatmul.mubr.f32.gmra.mxu1 %v9143_v19  ;;  %15191 = vmatmul.mubr.f32.gmra.mxu0 %v9305_v14  ;;  %v10023_v19 = vld [vmem:[#allocation8 + $0x158] sm:$0xff]  ;;  %v10022_v14 = vld [vmem:[#allocation8 + $0x150] sm:$0xff] }
 0x9ac   :  { %15218 = vmatprep.subr.mxu1 %v18191_v57  ;;  %15274 = vmatprep.subr.mxu0 %v18191_v57 }
 0x9ad   :  { %15219 = vmatpush3.msra.mxu1 %v18191_v57  ;;  %15275 = vmatpush3.msra.mxu0 %v18191_v57  ;;  %v9483_v57 = vld [vmem:[#allocation7 + $0x148] sm:$0xff] }
 0x9ae   :  { %15220 = vmatprep.subr.mxu1 %v18200_v5  ;;  %15276 = vmatprep.subr.mxu0 %v18200_v5 }
 0x9af   :  { %15137 = vmatprep.mubr.f32.mxu1 %v9144_v11  ;;  %15193 = vmatprep.mubr.f32.mxu0 %v9306_v8  ;;  %v10021_v11 = vld [vmem:[#allocation8 + $0x148] sm:$0xff]  ;;  %v10020_v8 = vld [vmem:[#allocation8 + $0x140] sm:$0xff] }
 0x9b0   :  { %15221 = vmatpush3.msra.mxu1 %v18200_v5  ;;  %15277 = vmatpush3.msra.mxu0 %v18200_v5  ;;  %v9662_v5 = vld [vmem:[#allocation7 + $0x1d0] sm:$0xff] }
 0x9b1   :  { %15138 = vmatmul.mubr.f32.gmra.mxu1 %v9145_v44  ;;  %15194 = vmatmul.mubr.f32.gmra.mxu0 %v9307_v17  ;;  %v9847_v44 = vld [vmem:[#allocation8 + $0x88] sm:$0xff]  ;;  %v9846_v17 = vld [vmem:[#allocation8 + $0x80] sm:$0xff] }
 0x9b2   :  { %15222 = vmatprep.subr.mxu1 %v18209_v35  ;;  %15278 = vmatprep.subr.mxu0 %v18209_v35 }
 0x9b3   :  { %15223 = vmatpush3.msra.mxu1 %v18209_v35  ;;  %15279 = vmatpush3.msra.mxu0 %v18209_v35  ;;  %v9663_v35 = vld [vmem:[#allocation7 + $0x1d8] sm:$0xff] }
 0x9b4   :  { %15224 = vmatprep.subr.mxu1 %v18218_v1  ;;  %15280 = vmatprep.subr.mxu0 %v18218_v1 }
 0x9b5   :  { %15140 = vmatprep.mubr.f32.mxu1 %v9146_v61  ;;  %15196 = vmatprep.mubr.f32.mxu0 %v9308_v33  ;;  %v10019_v61 = vld [vmem:[#allocation8 + $0x138] sm:$0xff]  ;;  %v10018_v33 = vld [vmem:[#allocation8 + $0x130] sm:$0xff] }
 0x9b6   :  { %15225 = vmatpush3.msra.mxu1 %v18218_v1  ;;  %15281 = vmatpush3.msra.mxu0 %v18218_v1  ;;  %v9488_v1 = vld [vmem:[#allocation7 + $0x170] sm:$0xff] }
 0x9b7   :  { %15141 = vmatmul.mubr.f32.gmra.mxu1 %v9147_v48  ;;  %15197 = vmatmul.mubr.f32.gmra.mxu0 %v9309_v28  ;;  %v9844_v48 = vld [vmem:[#allocation8 + $0x78] sm:$0xff]  ;;  %v10017_v28 = vld [vmem:[#allocation8 + $0x128] sm:$0xff] }
 0x9b8   :  { %15226 = vmatprep.subr.mxu1 %v18225_v23  ;;  %15282 = vmatprep.subr.mxu0 %v18225_v23 }
 0x9b9   :  { %15227 = vmatpush3.msra.mxu1 %v18225_v23  ;;  %15283 = vmatpush3.msra.mxu0 %v18225_v23  ;;  %v9666_v23 = vld [vmem:[#allocation7 + $0x1f0] sm:$0xff] }
 0x9ba   :  { %15228 = vmatprep.subr.mxu1 %v18232_v2  ;;  %15284 = vmatprep.subr.mxu0 %v18232_v2 }
 0x9bb   :  { %15143 = vmatprep.mubr.f32.mxu1 %v9148_v54  ;;  %15199 = vmatprep.mubr.f32.mxu0 %v9310_v25  ;;  %v15708_v54 = vmov 0.0   ;;  %v10016_v25 = vld [vmem:[#allocation8 + $0x120] sm:$0xff] }
 0x9bc   :  { %15229 = vmatpush3.msra.mxu1 %v18232_v2  ;;  %15285 = vmatpush3.msra.mxu0 %v18232_v2  ;;  %v9489_v2 = vld [vmem:[#allocation7 + $0x178] sm:$0xff] }
 0x9bd   :  { %15144 = vmatmul.mubr.f32.gmra.mxu1 %v9149_v20  ;;  %15200 = vmatmul.mubr.f32.gmra.mxu0 %v9311_v26  ;;  %v10015_v20 = vld [vmem:[#allocation8 + $0x118] sm:$0xff]  ;;  %v10014_v26 = vld [vmem:[#allocation8 + $0x110] sm:$0xff] }
 0x9be   :  { %15230 = vmatprep.subr.mxu1 %v18238_v56  ;;  %15286 = vmatprep.subr.mxu0 %v18238_v56 }
 0x9bf   :  { %15231 = vmatpush3.msra.mxu1 %v18238_v56  ;;  %15287 = vmatpush3.msra.mxu0 %v18238_v56  ;;  %v9860_v56 = vld [vmem:[#allocation8 + $0xf0] sm:$0xff] }
 0x9c0   :  { %15232 = vmatprep.subr.mxu1 %v18244_v52  ;;  %15288 = vmatprep.subr.mxu0 %v18244_v52 }
 0x9c1   :  { %15233 = vmatpush3.msra.mxu1 %v18244_v52  ;;  %15234 = vmatprep.mubr.f32.mxu1 %v9474_v46  ;;  %v10013_v46 = vld [vmem:[#allocation8 + $0x108] sm:$0xff] }
 0x9c2   :  { %15289 = vmatpush3.msra.mxu0 %v18244_v52  ;;  %15235 = vmatmul.mubr.f32.vlgmr.msra.gmra.mxu1 %v9475_v21  ;;  %v9667_v52 = vld [vmem:[#allocation7 + $0x1f8] sm:$0xff]  ;;  %v10012_v21 = vld [vmem:[#allocation8 + $0x100] sm:$0xff] }
 0x9c3   :  { %15290 = vmatprep.mubr.f32.mxu0 %v9652_v55  ;;  %15237 = vmatprep.mubr.f32.mxu1 %v9476_v32  ;;  %v10213_v55 = vld [vmem:[#allocation8 + $0x278] sm:$0xff] }
 0x9c4   :  { %15291 = vmatmul.mubr.f32.vlgmr.msra.gmra.mxu0 %v9653_v15  ;;  %9882 = vmatprep.subr.mxu1 %v9861_v7 }
 0x9c5   :  { %15293 = vmatprep.mubr.f32.mxu0 %v9654_v43  ;;  %9883 = vmatpush1.msra.mxu1 %v9860_v56 }
 0x9c6   :  { %15238 = vmatmul.mubr.f32.gmra.mxu1 %v9477_v22  ;;  %9884 = vmatprep.subr.mxu1 %v9859_v3 }
 0x9c7   :  { %15240 = vmatprep.mubr.f32.mxu1 %v9478_v6  ;;  %9885 = vmatpush1.msra.mxu1 %v9858_v29 }
 0x9c8   :  { %15294 = vmatmul.mubr.f32.gmra.mxu0 %v9655_v51  ;;  %9886 = vmatprep.subr.mxu1 %v9857_v10 }
 0x9c9   :  { %15296 = vmatprep.mubr.f32.mxu0 %v9656_v12  ;;  %9887 = vmatpush1.msra.mxu1 %v9856_v4 }
 0x9ca   :  { %15241 = vmatmul.mubr.f32.gmra.mxu1 %v9479_v36  ;;  %9888 = vmatprep.subr.mxu1 %v9855_v38 }
 0x9cb   :  { %15243 = vmatprep.mubr.f32.mxu1 %v9480_v27  ;;  %9889 = vmatpush1.msra.mxu1 %v9854_v37 }
 0x9cc   :  { %15297 = vmatmul.mubr.f32.gmra.mxu0 %v9657_v9  ;;  %9890 = vmatprep.subr.mxu1 %v9853_v63 }
 0x9cd   :  { %15299 = vmatprep.mubr.f32.mxu0 %v9658_v18  ;;  %9891 = vmatpush1.msra.mxu1 %v9852_v53 }
 0x9ce   :  { %15244 = vmatmul.mubr.f32.gmra.mxu1 %v9481_v31  ;;  %9892 = vmatprep.subr.mxu1 %v9851_v62 }
 0x9cf   :  { %15246 = vmatprep.mubr.f32.mxu1 %v9482_v34  ;;  %9893 = vmatpush1.msra.mxu1 %v9850_v41 }
 0x9d0   :  { %15300 = vmatmul.mubr.f32.gmra.mxu0 %v9659_v50  ;;  %10047 = vmatprep.subr.mxu0 %v10027_v47 }
 0x9d1   :  { %15302 = vmatprep.mubr.f32.mxu0 %v9660_v58  ;;  %10048 = vmatpush1.msra.mxu0 %v10026_v24 }
 0x9d2   :  { %15247 = vmatmul.mubr.f32.gmra.mxu1 %v9483_v57  ;;  %10049 = vmatprep.subr.mxu0 %v10025_v30 }
 0x9d3   :  { %15249 = vmatprep.mubr.f32.mxu1 %v9484_v13  ;;  %9894 = vmatprep.subr.mxu1 %v9849_v59 }
 0x9d4   :  { %15303 = vmatmul.mubr.f32.gmra.mxu0 %v9661_v16  ;;  %9895 = vmatpush1.msra.mxu1 %v9848_v0 }
 0x9d5   :  { %15305 = vmatprep.mubr.f32.mxu0 %v9662_v5  ;;  %10050 = vmatpush1.msra.mxu0 %v10024_v40 }
 0x9d6   :  { %15250 = vmatmul.mubr.f32.gmra.mxu1 %v9485_v42  ;;  %10051 = vmatprep.subr.mxu0 %v10023_v19 }
 0x9d7   :  { %15252 = vmatprep.mubr.f32.mxu1 %v9486_v60  ;;  %10052 = vmatpush1.msra.mxu0 %v10022_v14  ;;  %v9843_v14 = vld [vmem:[#allocation8 + $0x70] sm:$0xff] }
 0x9d8   :  { %15306 = vmatmul.mubr.f32.gmra.mxu0 %v9663_v35  ;;  %10053 = vmatprep.subr.mxu0 %v10021_v11 }
 0x9d9   :  { %15308 = vmatprep.mubr.f32.mxu0 %v9664_v45  ;;  %10054 = vmatpush1.msra.mxu0 %v10020_v8 }
 0x9da   :  { %15253 = vmatmul.mubr.f32.gmra.mxu1 %v9487_v39  ;;  %9896 = vmatprep.subr.mxu1 %v9847_v44  ;;  %v9842_v44 = vld [vmem:[#allocation8 + $0x68] sm:$0xff] }
 0x9db   :  { %15255 = vmatprep.mubr.f32.mxu1 %v9488_v1  ;;  %10055 = vmatprep.subr.mxu0 %v10019_v61  ;;  %v9841_v61 = vld [vmem:[#allocation8 + $0x60] sm:$0xff] }
 0x9dc   :  { %15309 = vmatmul.mubr.f32.gmra.mxu0 %v9665_v49  ;;  %9897 = vmatpush1.msra.mxu1 %v9846_v17 }
 0x9dd   :  { %15311 = vmatprep.mubr.f32.mxu0 %v9666_v23  ;;  %10056 = vmatpush1.msra.mxu0 %v10018_v33 }
 0x9de   :  { %15256 = vmatmul.mubr.f32.gmra.mxu1 %v9489_v2  ;;  %9956 = vmatprep.subr.mxu1 %v9844_v48 }
 0x9df   :  { %9930 = vmatprep.mubr.f32.mxu1 %v15708_v54  ;;  %10057 = vmatprep.subr.mxu0 %v10017_v28  ;;  %v9840_v28 = vld [vmem:[#allocation8 + $0x58] sm:$0xff] }
 0x9e0   :  { %15312 = vmatmul.mubr.f32.gmra.mxu0 %v9667_v52 }
 0x9e1   :  { %10095 = vmatprep.mubr.f32.mxu0 %v15708_v54  ;;  %10058 = vmatpush1.msra.mxu0 %v10016_v25 }
 0x9e2   :  { %10059 = vmatprep.subr.mxu0 %v10015_v20  ;;  %v9839_v20 = vld [vmem:[#allocation8 + $0x50] sm:$0xff] }
 0x9e3   :  { %10060 = vmatpush1.msra.mxu0 %v10014_v26 }
 0x9e4   :  { %10061 = vmatprep.subr.mxu0 %v10013_v46  ;;  %v9838_v46 = vld [vmem:[#allocation8 + $0x48] sm:$0xff] }
 0x9e5   :  { %10062 = vmatpush1.msra.mxu0 %v10012_v21 }
 0x9e6   :  { %10233 = vmatprep.subr.mxu0 %v10213_v55  ;;  %v9837_v55 = vld [vmem:[#allocation8 + $0x40] sm:$0xff] }
 0xa53   :  { %v15124_v32 = vpop.f32.mrf.mxu1  ;;  %v15180_v15 = vpop.f32.mrf.mxu0 }
 0xa54   :  { %v9458_v24 = vmax.f32 %v15124_v32, %v15180_v15  ;;  %v10212_v32 = vld [vmem:[#allocation8 + $0x270] sm:$0xff]  ;;  %v9836_v15 = vld [vmem:[#allocation8 + $0x38] sm:$0xff] }
 0xa55   :  { %v18320_v43 = vpop.f32.mrf.mxu1  ;;  %v18322_v22 = vpop.f32.mrf.mxu0 }
 0xa59   :  { %v18324_v6 = vpop.f32.mrf.mxu1  ;;  %v18326_v51 = vpop.f32.mrf.mxu0 }
 0xa5b   :  { %v9226_v12 = vpop.f32.mrf.mxu1  ;;  %v9388_v36 = vpop.f32.mrf.mxu0 }
 0xa5c   :  { %v9459_v17 = vmax.f32 %v9226_v12, %v9388_v36  ;;  %v10211_v12 = vld [vmem:[#allocation8 + $0x268] sm:$0xff]  ;;  %v9835_v36 = vld [vmem:[#allocation8 + $0x30] sm:$0xff] }
 0xa5f   :  { %v18328_v27 = vpop.f32.mrf.mxu1  ;;  %v18330_v9 = vpop.f32.mrf.mxu0 }
 0xa60   :  { %v9462_v18 = vmax.f32 %v18328_v27, %v18330_v9 }
 0xa61   :  { %v18334_v31 = vpop.f32.mrf.mxu1  ;;  %v18336_v34 = vpop.f32.mrf.mxu0 }
 0xa65   :  { %v18338_v50 = vpop.f32.mrf.mxu1  ;;  %v18340_v58 = vpop.f32.mrf.mxu0 }
 0xa66   :  { %v9464_v57 = vmax.f32 %v18338_v50, %v18340_v58 }
 0xa67   :  { %v18344_v13 = vpop.f32.mrf.mxu1  ;;  %v18346_v16 = vpop.f32.mrf.mxu0 }
 0xa6b   :  { %v18348_v5 = vpop.f32.mrf.mxu1  ;;  %v18350_v42 = vpop.f32.mrf.mxu0 }
 0xa6c   :  { %v9466_v60 = vmax.f32 %v18348_v5, %v18350_v42 }
 0xa6d   :  { %v18354_v35 = vpop.f32.mrf.mxu1  ;;  %v18356_v45 = vpop.f32.mrf.mxu0 }
 0xa6e   :  { %v9465_v39 = vmax.f32 %v18354_v35, %v18356_v45  ;;  %v10771_v35 = vld [vmem:[#allocation8 + $0x578] sm:$0xff]  ;;  %v10485_v45 = vld [vmem:[#allocation8 + $0x3c0] sm:$0xff] }
 0xa71   :  { %v18360_v1 = vpop.f32.mrf.mxu1  ;;  %v18362_v49 = vpop.f32.mrf.mxu0 }
 0xa72   :  { %v9468_v23 = vmax.f32 %v18360_v1, %v18362_v49 }
 0xa73   :  { %v18366_v7 = vpop.f32.mrf.mxu1  ;;  %v18368_v2 = vpop.f32.mrf.mxu0 }
 0xa74   :  { %v9467_v56 = vmax.f32 %v18366_v7, %v18368_v2  ;;  %v10957_v7 = vld [vmem:[#allocation8 + $0x678] sm:$0xff]  ;;  %v10671_v2 = vld [vmem:[#allocation8 + $0x4c0] sm:$0xff] }
 0xa77   :  { %v18372_v52 = vpop.f32.mrf.mxu1  ;;  %v18374_v3 = vpop.f32.mrf.mxu0 }
 0xa78   :  { %v9470_v29 = vmax.f32 %v18372_v52, %v18374_v3  ;;  %v11232_v52 = vld [vmem:[#allocation8 + $0x7d8] sm:$0xff]  ;;  %v11231_v3 = vld [vmem:[#allocation8 + $0x7d0] sm:$0xff] }
 0xa79   :  { %v18378_v10 = vpop.f32.mrf.mxu1  ;;  %v18380_v4 = vpop.f32.mrf.mxu0 }
 0xa7a   :  { %v9469_v38 = vmax.f32 %v18378_v10, %v18380_v4  ;;  %v11143_v10 = vld [vmem:[#allocation8 + $0x778] sm:$0xff]  ;;  %v10857_v4 = vld [vmem:[#allocation8 + $0x5c0] sm:$0xff] }
 0xa7d   :  { %v18384_v37 = vpop.f32.mrf.mxu1  ;;  %v18386_v63 = vpop.f32.mrf.mxu0 }
 0xa7e   :  { %v9472_v53 = vmax.f32 %v18384_v37, %v18386_v63 }
 0xa7f   :  { %v18390_v62 = vpop.f32.mrf.mxu1  ;;  %v18392_v41 = vpop.f32.mrf.mxu0 }
 0xa80   :  { %v9471_v47 = vmax.f32 %v18390_v62, %v18392_v41  ;;  %v11043_v62 = vld [vmem:[#allocation8 + $0x6c0] sm:$0xff]  ;;  %v11042_v41 = vld [vmem:[#allocation8 + $0x6b8] sm:$0xff] }
 0xa82   :  { %v15236_v30 = vpop.f32.mrf.mxu1 }
 0xa83   :  { %v9636_v59 = vmax.f32 %v9458_v24, %v15236_v30  ;;  %v10210_v24 = vld [vmem:[#allocation8 + $0x260] sm:$0xff]  ;;  %v9834_v30 = vld [vmem:[#allocation8 + $0x28] sm:$0xff] }
 0xa84   :  { %v15292_v40 = vpop.f32.mrf.mxu0  ;;  %v9556_v0 = vpop.f32.mrf.mxu1 }
 0xa85   :  { %v9814_v19 = vmax.f32 %v9636_v59, %v15292_v40  ;;  %v10209_v59 = vld [vmem:[#allocation8 + $0x258] sm:$0xff]  ;;  %v9457_v40 = vmax.f32 %v18320_v43, %v18322_v22  ;;  %v9829_v43 = vld [vmem:[#allocation8] sm:$0xff]  ;;  %v10204_v22 = vld [vmem:[#allocation8 + $0x230] sm:$0xff] }
 0xa86   :  { %v18396_v11 = vpop.f32.mrf.mxu0  ;;  %v18398_v8 = vpop.f32.mrf.mxu1 }
 0xa87   :  { %11687 = vmatmul.mubr.msk.f32.vlgmr.msra.gmra.mxu1 %vm9862_vm2, %v9814_v19  ;;  %v9833_v19 = vld [vmem:[#allocation8 + $0x20] sm:$0xff] }
 0xa88   :  { %9957 = vmatpush1.msra.mxu1 %v9843_v14  ;;  %v9566_v33 = vpop.f32.mrf.mxu1  ;;  %v18401_v48 = vpop.f32.mrf.mxu0  ;;  %10004 = vmatprep.mubr.f32.mxu1 %v15708_v54  ;;  %v10208_v14 = vld [vmem:[#allocation8 + $0x250] sm:$0xff] }
 0xa89   :  { %v9637_v25 = vmax.f32 %v9459_v17, %v9566_v33  ;;  %9958 = vmatprep.subr.mxu1 %v9842_v44  ;;  %v9832_v44 = vld [vmem:[#allocation8 + $0x18] sm:$0xff]  ;;  %v10207_v17 = vld [vmem:[#allocation8 + $0x248] sm:$0xff] }
 0xa8a   :  { %9959 = vmatpush1.msra.mxu1 %v9841_v61  ;;  %v9744_v26 = vpop.f32.mrf.mxu0  ;;  %v9635_v61 = vmax.f32 %v9457_v40, %v9556_v0  ;;  %v18407_v33 = vpop.f32.mrf.mxu1  ;;  %v10200_v40 = vld [vmem:[#allocation8 + $0x210] sm:$0xff] }
 0xa8b   :  { %v9815_v21 = vmax.f32 %v9637_v25, %v9744_v26  ;;  %9960 = vmatprep.subr.mxu1 %v9840_v28  ;;  %v9831_v28 = vld [vmem:[#allocation8 + $0x10] sm:$0xff]  ;;  %v10206_v25 = vld [vmem:[#allocation8 + $0x240] sm:$0xff]  ;;  %v10205_v26 = vld [vmem:[#allocation8 + $0x238] sm:$0xff] }
 0xa8c   :  { %9961 = vmatpush1.msra.mxu1 %v9839_v20  ;;  %v9830_v20 = vld [vmem:[#allocation8 + $0x8] sm:$0xff]  ;;  %v9576_v0 = vpop.f32.mrf.mxu1 }
 0xa8d   :  { %9962 = vmatprep.subr.mxu1 %v9838_v46  ;;  %11689 = vmatmul.mubr.msk.f32.vlgmr.msra.gmra.mxu0 %vm9862_vm2, %v9815_v21  ;;  %v10120_v46 = vld [vmem:[#allocation8 + $0x1f8] sm:$0xff]  ;;  %v9813_v21 = vmax.f32 %v9635_v61, %v18396_v11 }
 0xa8e   :  { %9963 = vmatpush1.msra.mxu1 %v9837_v55  ;;  %10234 = vmatpush1.msra.mxu0 %v10212_v32  ;;  %v18410_v55 = vpop.f32.mrf.mxu0  ;;  %v10203_v32 = vld [vmem:[#allocation8 + $0x228] sm:$0xff] }
 0xa8f   :  { %9964 = vmatprep.subr.mxu1 %v9836_v15  ;;  %10235 = vmatprep.subr.mxu0 %v10211_v12  ;;  %v10119_v15 = vld [vmem:[#allocation8 + $0x1f0] sm:$0xff]  ;;  %v9461_v12 = vmax.f32 %v18334_v31, %v18336_v34  ;;  %v10198_v31 = vld [vmem:[#allocation8 + $0x200] sm:$0xff]  ;;  %v10114_v34 = vld [vmem:[#allocation8 + $0x1c8] sm:$0xff] }
 0xa90   :  { %9965 = vmatpush1.msra.mxu1 %v9835_v36  ;;  %10236 = vmatpush1.msra.mxu0 %v10210_v24  ;;  %v10202_v36 = vld [vmem:[#allocation8 + $0x220] sm:$0xff]  ;;  %v10118_v24 = vld [vmem:[#allocation8 + $0x1e8] sm:$0xff] }
 0xa91   :  { %9966 = vmatprep.subr.mxu1 %v9834_v30  ;;  %10237 = vmatprep.subr.mxu0 %v10209_v59  ;;  %v10201_v30 = vld [vmem:[#allocation8 + $0x218] sm:$0xff]  ;;  %v10117_v59 = vld [vmem:[#allocation8 + $0x1e0] sm:$0xff]  ;;  %v9639_v11 = vmax.f32 %v9461_v12, %v9576_v0  ;;  %v10394_v12 = vld [vmem:[#allocation8 + $0x350] sm:$0xff] }
 0xa92   :  { %9967 = vmatpush1.msra.mxu1 %v9833_v19  ;;  %10238 = vmatpush1.msra.mxu0 %v10208_v14  ;;  %v10116_v19 = vld [vmem:[#allocation8 + $0x1d8] sm:$0xff]  ;;  %v9754_v14 = vpop.f32.mrf.mxu0 }
 0xa93   :  { %9968 = vmatprep.subr.mxu1 %v9832_v44  ;;  %10239 = vmatprep.subr.mxu0 %v10207_v17  ;;  %v10199_v44 = vld [vmem:[#allocation8 + $0x208] sm:$0xff]  ;;  %v10115_v17 = vld [vmem:[#allocation8 + $0x1d0] sm:$0xff]  ;;  %v9817_v61 = vmax.f32 %v9639_v11, %v9754_v14  ;;  %v10395_v0 = vld [vmem:[#allocation8 + $0x358] sm:$0xff]  ;;  %v18420_v11 = vpop.f32.mrf.mxu1 }
 0xa94   :  { %9969 = vmatpush1.msra.mxu1 %v9831_v28  ;;  %10240 = vmatpush1.msra.mxu0 %v10206_v25  ;;  %v10399_v28 = vld [vmem:[#allocation8 + $0x378] sm:$0xff]  ;;  %v10113_v25 = vld [vmem:[#allocation8 + $0x1c0] sm:$0xff] }
 0xa95   :  { %9970 = vmatprep.subr.mxu1 %v9830_v20  ;;  %10241 = vmatprep.subr.mxu0 %v10205_v26  ;;  %v10398_v20 = vld [vmem:[#allocation8 + $0x370] sm:$0xff]  ;;  %v10112_v26 = vld [vmem:[#allocation8 + $0x1b8] sm:$0xff] }
 0xa96   :  { %9971 = vmatpush1.msra.mxu1 %v9829_v43  ;;  %10242 = vmatpush1.msra.mxu0 %v10204_v22  ;;  %v10397_v43 = vld [vmem:[#allocation8 + $0x368] sm:$0xff]  ;;  %v10111_v22 = vld [vmem:[#allocation8 + $0x1b0] sm:$0xff]  ;;  %v10391_v14 = vld [vmem:[#allocation8 + $0x338] sm:$0xff] }
 0xa97   :  { %11688 = vmatmul.mubr.msk.f32.vlgmr.msra.gmra.mxu1 %vm9862_vm2, %v9813_v21  ;;  %10140 = vmatprep.subr.mxu1 %v10120_v46  ;;  %v10396_v46 = vld [vmem:[#allocation8 + $0x360] sm:$0xff]  ;;  %v10110_v21 = vld [vmem:[#allocation8 + $0x1a8] sm:$0xff] }
 0xa98   :  { %10243 = vmatprep.subr.mxu0 %v10203_v32  ;;  %10141 = vmatpush1.msra.mxu1 %v10119_v15  ;;  %v10109_v32 = vld [vmem:[#allocation8 + $0x1a0] sm:$0xff]  ;;  %v9460_v15 = vmax.f32 %v18324_v6, %v18326_v51  ;;  %v10390_v51 = vld [vmem:[#allocation8 + $0x330] sm:$0xff] }
 0xa99   :  { %10244 = vmatpush1.msra.mxu0 %v10202_v36  ;;  %10142 = vmatprep.subr.mxu1 %v10118_v24  ;;  %v10108_v36 = vld [vmem:[#allocation8 + $0x198] sm:$0xff]  ;;  %v10393_v24 = vld [vmem:[#allocation8 + $0x348] sm:$0xff]  ;;  %v10105_v6 = vld [vmem:[#allocation8 + $0x180] sm:$0xff] }
 0xa9a   :  { %10245 = vmatprep.subr.mxu0 %v10201_v30  ;;  %10143 = vmatpush1.msra.mxu1 %v10117_v59  ;;  %v10107_v30 = vld [vmem:[#allocation8 + $0x190] sm:$0xff]  ;;  %v9638_v59 = vmax.f32 %v9460_v15, %v18398_v8  ;;  %v18423_v8 = vpop.f32.mrf.mxu0 }
 0xa9b   :  { %10246 = vmatpush1.msra.mxu0 %v10200_v40  ;;  %10144 = vmatprep.subr.mxu1 %v10116_v19  ;;  %v10392_v40 = vld [vmem:[#allocation8 + $0x340] sm:$0xff]  ;;  %v10106_v19 = vld [vmem:[#allocation8 + $0x188] sm:$0xff] }
 0xa9c   :  { %10247 = vmatprep.subr.mxu0 %v10199_v44  ;;  %10145 = vmatpush1.msra.mxu1 %v10115_v17  ;;  %v10306_v44 = vld [vmem:[#allocation8 + $0x2f8] sm:$0xff]  ;;  %v9816_v17 = vmax.f32 %v9638_v59, %v18401_v48  ;;  %v10303_v48 = vld [vmem:[#allocation8 + $0x2e0] sm:$0xff]  ;;  %v10583_v59 = vld [vmem:[#allocation8 + $0x468] sm:$0xff] }
 0xa9d   :  { %10248 = vmatpush1.msra.mxu0 %v10198_v31  ;;  %10281 = vmatprep.mubr.f32.mxu0 %v15708_v54  ;;  %v9586_v31 = vpop.f32.mrf.mxu1 }
 0xa9e   :  { %10146 = vmatprep.subr.mxu1 %v10114_v34  ;;  %11691 = vmatmul.mubr.msk.f32.vlgmr.msra.gmra.mxu0 %vm9862_vm2, %v9817_v61  ;;  %v10389_v34 = vld [vmem:[#allocation8 + $0x328] sm:$0xff]  ;;  %v10305_v61 = vld [vmem:[#allocation8 + $0x2f0] sm:$0xff] }
 0xa9f   :  { %10419 = vmatprep.subr.mxu0 %v10399_v28  ;;  %10147 = vmatpush1.msra.mxu1 %v10113_v25  ;;  %v9463_v28 = vmax.f32 %v18344_v13, %v18346_v16  ;;  %v10388_v25 = vld [vmem:[#allocation8 + $0x320] sm:$0xff]  ;;  %v10301_v13 = vld [vmem:[#allocation8 + $0x2d0] sm:$0xff] }
 0xaa0   :  { %10420 = vmatpush1.msra.mxu0 %v10398_v20  ;;  %10148 = vmatprep.subr.mxu1 %v10112_v26  ;;  %v10304_v20 = vld [vmem:[#allocation8 + $0x2e8] sm:$0xff]  ;;  %v10387_v26 = vld [vmem:[#allocation8 + $0x318] sm:$0xff]  ;;  %v10384_v16 = vld [vmem:[#allocation8 + $0x300] sm:$0xff] }
 0xaa1   :  { %10421 = vmatprep.subr.mxu0 %v10397_v43  ;;  %10149 = vmatpush1.msra.mxu1 %v10111_v22  ;;  %v9641_v43 = vmax.f32 %v9463_v28, %v9586_v31  ;;  %v10386_v22 = vld [vmem:[#allocation8 + $0x310] sm:$0xff]  ;;  %v10579_v31 = vld [vmem:[#allocation8 + $0x448] sm:$0xff]  ;;  %v18435_v28 = vpop.f32.mrf.mxu1 }
 0xaa2   :  { %10422 = vmatpush1.msra.mxu0 %v10396_v46  ;;  %10150 = vmatprep.subr.mxu1 %v10110_v21  ;;  %v10302_v46 = vld [vmem:[#allocation8 + $0x2d8] sm:$0xff]  ;;  %v9764_v21 = vpop.f32.mrf.mxu0 }
 0xaa3   :  { %10423 = vmatprep.subr.mxu0 %v10395_v0  ;;  %10151 = vmatpush1.msra.mxu1 %v10109_v32  ;;  %v10385_v0 = vld [vmem:[#allocation8 + $0x308] sm:$0xff]  ;;  %v9819_v15 = vmax.f32 %v9641_v43, %v9764_v21  ;;  %v10576_v43 = vld [vmem:[#allocation8 + $0x430] sm:$0xff]  ;;  %v9596_v27 = vpop.f32.mrf.mxu1  ;;  %v10574_v21 = vld [vmem:[#allocation8 + $0x420] sm:$0xff] }
 0xaa4   :  { %10424 = vmatpush1.msra.mxu0 %v10394_v12  ;;  %10152 = vmatprep.subr.mxu1 %v10108_v36  ;;  %v10300_v32 = vld [vmem:[#allocation8 + $0x2c8] sm:$0xff]  ;;  %v10585_v12 = vld [vmem:[#allocation8 + $0x478] sm:$0xff]  ;;  %v10299_v36 = vld [vmem:[#allocation8 + $0x2c0] sm:$0xff]  ;;  %v18438_v9 = vpop.f32.mrf.mxu0 }
 0xaa5   :  { %10425 = vmatprep.subr.mxu0 %v10393_v24  ;;  %10153 = vmatpush1.msra.mxu1 %v10107_v30  ;;  %v10584_v24 = vld [vmem:[#allocation8 + $0x470] sm:$0xff]  ;;  %v10298_v30 = vld [vmem:[#allocation8 + $0x2b8] sm:$0xff] }
 0xaa6   :  { %10426 = vmatpush1.msra.mxu0 %v10392_v40  ;;  %10154 = vmatprep.subr.mxu1 %v10106_v19  ;;  %v10297_v40 = vld [vmem:[#allocation8 + $0x2b0] sm:$0xff]  ;;  %v10582_v19 = vld [vmem:[#allocation8 + $0x460] sm:$0xff] }
 0xaa7   :  { %10427 = vmatprep.subr.mxu0 %v10391_v14  ;;  %10155 = vmatpush1.msra.mxu1 %v10105_v6  ;;  %v10296_v14 = vld [vmem:[#allocation8 + $0x2a8] sm:$0xff]  ;;  %v10581_v6 = vld [vmem:[#allocation8 + $0x458] sm:$0xff] }
 0xaa8   :  { %10188 = vmatprep.mubr.f32.mxu1 %v15708_v54  ;;  %10428 = vmatpush1.msra.mxu0 %v10390_v51  ;;  %v10295_v51 = vld [vmem:[#allocation8 + $0x2a0] sm:$0xff] }
 0xaa9   :  { %11690 = vmatmul.mubr.msk.f32.vlgmr.msra.gmra.mxu1 %vm9862_vm2, %v9816_v17  ;;  %10326 = vmatprep.subr.mxu1 %v10306_v44  ;;  %v10580_v44 = vld [vmem:[#allocation8 + $0x450] sm:$0xff]  ;;  %v10294_v17 = vld [vmem:[#allocation8 + $0x298] sm:$0xff] }
 0xaaa   :  { %10429 = vmatprep.subr.mxu0 %v10389_v34  ;;  %10327 = vmatpush1.msra.mxu1 %v10305_v61  ;;  %v10293_v34 = vld [vmem:[#allocation8 + $0x290] sm:$0xff]  ;;  %v9640_v61 = vmax.f32 %v9462_v18, %v18407_v33  ;;  %v10575_v18 = vld [vmem:[#allocation8 + $0x428] sm:$0xff] }
 0xaab   :  { %10430 = vmatpush1.msra.mxu0 %v10388_v25  ;;  %10328 = vmatprep.subr.mxu1 %v10304_v20  ;;  %v10578_v25 = vld [vmem:[#allocation8 + $0x440] sm:$0xff]  ;;  %v10292_v20 = vld [vmem:[#allocation8 + $0x288] sm:$0xff]  ;;  %v10491_v33 = vld [vmem:[#allocation8 + $0x3f0] sm:$0xff] }
 0xaac   :  { %10431 = vmatprep.subr.mxu0 %v10387_v26  ;;  %10329 = vmatpush1.msra.mxu1 %v10303_v48  ;;  %v10577_v26 = vld [vmem:[#allocation8 + $0x438] sm:$0xff]  ;;  %v10291_v48 = vld [vmem:[#allocation8 + $0x280] sm:$0xff] }
 0xaad   :  { %10432 = vmatpush1.msra.mxu0 %v10386_v22  ;;  %10330 = vmatprep.subr.mxu1 %v10302_v46  ;;  %v10492_v22 = vld [vmem:[#allocation8 + $0x3f8] sm:$0xff]  ;;  %v9818_v46 = vmax.f32 %v9640_v61, %v18410_v55  ;;  %v9643_v55 = vmax.f32 %v9465_v39, %v9596_v27  ;;  %v10770_v39 = vld [vmem:[#allocation8 + $0x570] sm:$0xff]  ;;  %v10477_v27 = vld [vmem:[#allocation8 + $0x380] sm:$0xff] }
 0xaae   :  { %10433 = vmatprep.subr.mxu0 %v10385_v0  ;;  %10331 = vmatpush1.msra.mxu1 %v10301_v13  ;;  %v10490_v0 = vld [vmem:[#allocation8 + $0x3e8] sm:$0xff]  ;;  %v10573_v13 = vld [vmem:[#allocation8 + $0x418] sm:$0xff] }
 0xaaf   :  { %10434 = vmatpush1.msra.mxu0 %v10384_v16  ;;  %10467 = vmatprep.mubr.f32.mxu0 %v15708_v54  ;;  %v10489_v16 = vld [vmem:[#allocation8 + $0x3e0] sm:$0xff]  ;;  %v10480_v61 = vld [vmem:[#allocation8 + $0x398] sm:$0xff] }
 0xab0   :  { %10332 = vmatprep.subr.mxu1 %v10300_v32  ;;  %11693 = vmatmul.mubr.msk.f32.vlgmr.msra.gmra.mxu0 %vm9862_vm2, %v9819_v15  ;;  %v10572_v32 = vld [vmem:[#allocation8 + $0x410] sm:$0xff]  ;;  %v10488_v15 = vld [vmem:[#allocation8 + $0x3d8] sm:$0xff] }
 0xab1   :  { %10605 = vmatprep.subr.mxu0 %v10585_v12  ;;  %10333 = vmatpush1.msra.mxu1 %v10299_v36  ;;  %v9774_v12 = vpop.f32.mrf.mxu0  ;;  %v10571_v36 = vld [vmem:[#allocation8 + $0x408] sm:$0xff] }
 0xab2   :  { %10606 = vmatpush1.msra.mxu0 %v10584_v24  ;;  %10334 = vmatprep.subr.mxu1 %v10298_v30  ;;  %v10487_v24 = vld [vmem:[#allocation8 + $0x3d0] sm:$0xff]  ;;  %v10570_v30 = vld [vmem:[#allocation8 + $0x400] sm:$0xff] }
 0xab3   :  { %10607 = vmatprep.subr.mxu0 %v10583_v59  ;;  %10335 = vmatpush1.msra.mxu1 %v10297_v40  ;;  %v10486_v59 = vld [vmem:[#allocation8 + $0x3c8] sm:$0xff]  ;;  %v9821_v40 = vmax.f32 %v9643_v55, %v9774_v12  ;;  %v18454_v58 = vpop.f32.mrf.mxu0  ;;  %v10675_v55 = vld [vmem:[#allocation8 + $0x4e0] sm:$0xff] }
 0xab4   :  { %10608 = vmatpush1.msra.mxu0 %v10582_v19  ;;  %10336 = vmatprep.subr.mxu1 %v10296_v14  ;;  %v10484_v19 = vld [vmem:[#allocation8 + $0x3b8] sm:$0xff]  ;;  %v10769_v14 = vld [vmem:[#allocation8 + $0x568] sm:$0xff] }
 0xab5   :  { %10609 = vmatprep.subr.mxu0 %v10581_v6  ;;  %10337 = vmatpush1.msra.mxu1 %v10295_v51  ;;  %v10483_v6 = vld [vmem:[#allocation8 + $0x3b0] sm:$0xff]  ;;  %v10768_v51 = vld [vmem:[#allocation8 + $0x560] sm:$0xff]  ;;  %v9784_v12 = vpop.f32.mrf.mxu0 }
 0xab6   :  { %10610 = vmatpush1.msra.mxu0 %v10580_v44  ;;  %10338 = vmatprep.subr.mxu1 %v10294_v17  ;;  %v10482_v44 = vld [vmem:[#allocation8 + $0x3a8] sm:$0xff]  ;;  %v10767_v17 = vld [vmem:[#allocation8 + $0x558] sm:$0xff] }
 0xab7   :  { %10611 = vmatprep.subr.mxu0 %v10579_v31  ;;  %10339 = vmatpush1.msra.mxu1 %v10293_v34  ;;  %v10481_v31 = vld [vmem:[#allocation8 + $0x3a0] sm:$0xff]  ;;  %v10766_v34 = vld [vmem:[#allocation8 + $0x550] sm:$0xff]  ;;  %v18470_v42 = vpop.f32.mrf.mxu0 }
 0xab8   :  { %10612 = vmatpush1.msra.mxu0 %v10578_v25  ;;  %10340 = vmatprep.subr.mxu1 %v10292_v20  ;;  %v10765_v25 = vld [vmem:[#allocation8 + $0x548] sm:$0xff]  ;;  %v10479_v20 = vld [vmem:[#allocation8 + $0x390] sm:$0xff] }
 0xab9   :  { %10613 = vmatprep.subr.mxu0 %v10577_v26  ;;  %10341 = vmatpush1.msra.mxu1 %v10291_v48  ;;  %v9642_v26 = vmax.f32 %v9464_v57, %v18420_v11  ;;  %v18451_v48 = vpop.f32.mrf.mxu1  ;;  %v10761_v57 = vld [vmem:[#allocation8 + $0x528] sm:$0xff]  ;;  %v10677_v11 = vld [vmem:[#allocation8 + $0x4f0] sm:$0xff] }
 0xaba   :  { %10374 = vmatprep.mubr.f32.mxu1 %v15708_v54  ;;  %10614 = vmatpush1.msra.mxu0 %v10576_v43  ;;  %v10764_v43 = vld [vmem:[#allocation8 + $0x540] sm:$0xff] }
 0xabb   :  { %11692 = vmatmul.mubr.msk.f32.vlgmr.msra.gmra.mxu1 %vm9862_vm2, %v9818_v46  ;;  %10512 = vmatprep.subr.mxu1 %v10492_v22  ;;  %v10478_v22 = vld [vmem:[#allocation8 + $0x388] sm:$0xff]  ;;  %v10763_v46 = vld [vmem:[#allocation8 + $0x538] sm:$0xff]  ;;  %v9606_v50 = vpop.f32.mrf.mxu1 }
 0xabc   :  { %10615 = vmatprep.subr.mxu0 %v10575_v18  ;;  %10513 = vmatpush1.msra.mxu1 %v10491_v33  ;;  %v10762_v18 = vld [vmem:[#allocation8 + $0x530] sm:$0xff]  ;;  %v10678_v33 = vld [vmem:[#allocation8 + $0x4f8] sm:$0xff] }
 0xabd   :  { %10616 = vmatpush1.msra.mxu0 %v10574_v21  ;;  %10514 = vmatprep.subr.mxu1 %v10490_v0  ;;  %v9820_v21 = vmax.f32 %v9642_v26, %v18423_v8  ;;  %v10760_v0 = vld [vmem:[#allocation8 + $0x520] sm:$0xff]  ;;  %v9645_v8 = vmax.f32 %v9467_v56, %v9606_v50  ;;  %v10956_v56 = vld [vmem:[#allocation8 + $0x670] sm:$0xff]  ;;  %v10664_v26 = vld [vmem:[#allocation8 + $0x488] sm:$0xff] }
 0xabe   :  { %10617 = vmatprep.subr.mxu0 %v10573_v13  ;;  %10515 = vmatpush1.msra.mxu1 %v10489_v16  ;;  %v10676_v13 = vld [vmem:[#allocation8 + $0x4e8] sm:$0xff]  ;;  %v10759_v16 = vld [vmem:[#allocation8 + $0x518] sm:$0xff] }
 0xabf   :  { %10618 = vmatpush1.msra.mxu0 %v10572_v32  ;;  %10516 = vmatprep.subr.mxu1 %v10488_v15  ;;  %v10758_v32 = vld [vmem:[#allocation8 + $0x510] sm:$0xff]  ;;  %v10674_v15 = vld [vmem:[#allocation8 + $0x4d8] sm:$0xff] }
 0xac0   :  { %10619 = vmatprep.subr.mxu0 %v10571_v36  ;;  %10517 = vmatpush1.msra.mxu1 %v10487_v24  ;;  %v10757_v36 = vld [vmem:[#allocation8 + $0x508] sm:$0xff]  ;;  %v10673_v24 = vld [vmem:[#allocation8 + $0x4d0] sm:$0xff]  ;;  %v10945_v50 = vld [vmem:[#allocation8 + $0x618] sm:$0xff] }
 0xac1   :  { %10620 = vmatpush1.msra.mxu0 %v10570_v30  ;;  %10653 = vmatprep.mubr.f32.mxu0 %v15708_v54  ;;  %v10756_v30 = vld [vmem:[#allocation8 + $0x500] sm:$0xff] }
 0xac2   :  { %10518 = vmatprep.subr.mxu1 %v10486_v59  ;;  %11695 = vmatmul.mubr.msk.f32.vlgmr.msra.gmra.mxu0 %vm9862_vm2, %v9821_v40  ;;  %v10672_v59 = vld [vmem:[#allocation8 + $0x4c8] sm:$0xff]  ;;  %v9823_v40 = vmax.f32 %v9645_v8, %v9784_v12  ;;  %v10942_v8 = vld [vmem:[#allocation8 + $0x600] sm:$0xff]  ;;  %v10856_v12 = vld [vmem:[#allocation8 + $0x5b8] sm:$0xff] }
 0xac3   :  { %10791 = vmatprep.subr.mxu0 %v10771_v35  ;;  %10519 = vmatpush1.msra.mxu1 %v10485_v45  ;;  %v10670_v35 = vld [vmem:[#allocation8 + $0x4b8] sm:$0xff]  ;;  %v10955_v45 = vld [vmem:[#allocation8 + $0x668] sm:$0xff] }
 0xac4   :  { %10792 = vmatpush1.msra.mxu0 %v10770_v39  ;;  %10520 = vmatprep.subr.mxu1 %v10484_v19  ;;  %v10669_v39 = vld [vmem:[#allocation8 + $0x4b0] sm:$0xff]  ;;  %v10954_v19 = vld [vmem:[#allocation8 + $0x660] sm:$0xff] }
 0xac5   :  { %10793 = vmatprep.subr.mxu0 %v10769_v14  ;;  %10521 = vmatpush1.msra.mxu1 %v10483_v6  ;;  %v10668_v14 = vld [vmem:[#allocation8 + $0x4a8] sm:$0xff]  ;;  %v10953_v6 = vld [vmem:[#allocation8 + $0x658] sm:$0xff] }
 0xac6   :  { %10794 = vmatpush1.msra.mxu0 %v10768_v51  ;;  %10522 = vmatprep.subr.mxu1 %v10482_v44  ;;  %v10667_v51 = vld [vmem:[#allocation8 + $0x4a0] sm:$0xff]  ;;  %v10952_v44 = vld [vmem:[#allocation8 + $0x650] sm:$0xff] }
 0xac7   :  { %10795 = vmatprep.subr.mxu0 %v10767_v17  ;;  %10523 = vmatpush1.msra.mxu1 %v10481_v31  ;;  %v10666_v17 = vld [vmem:[#allocation8 + $0x498] sm:$0xff]  ;;  %v10951_v31 = vld [vmem:[#allocation8 + $0x648] sm:$0xff] }
 0xac8   :  { %10796 = vmatpush1.msra.mxu0 %v10766_v34  ;;  %10524 = vmatprep.subr.mxu1 %v10480_v61  ;;  %v10665_v34 = vld [vmem:[#allocation8 + $0x490] sm:$0xff]  ;;  %v9644_v61 = vmax.f32 %v9466_v60, %v18435_v28  ;;  %v10947_v60 = vld [vmem:[#allocation8 + $0x628] sm:$0xff] }
 0xac9   :  { %10797 = vmatprep.subr.mxu0 %v10765_v25  ;;  %10525 = vmatpush1.msra.mxu1 %v10479_v20  ;;  %v18467_v25 = vpop.f32.mrf.mxu1  ;;  %v10950_v20 = vld [vmem:[#allocation8 + $0x640] sm:$0xff]  ;;  %v10863_v28 = vld [vmem:[#allocation8 + $0x5f0] sm:$0xff] }
 0xaca   :  { %10798 = vmatpush1.msra.mxu0 %v10764_v43  ;;  %10526 = vmatprep.subr.mxu1 %v10478_v22  ;;  %v10949_v43 = vld [vmem:[#allocation8 + $0x638] sm:$0xff]  ;;  %v10663_v22 = vld [vmem:[#allocation8 + $0x480] sm:$0xff] }
 0xacb   :  { %10799 = vmatprep.subr.mxu0 %v10763_v46  ;;  %10527 = vmatpush1.msra.mxu1 %v10477_v27  ;;  %v10948_v46 = vld [vmem:[#allocation8 + $0x630] sm:$0xff]  ;;  %v10864_v27 = vld [vmem:[#allocation8 + $0x5f8] sm:$0xff]  ;;  %v9616_v5 = vpop.f32.mrf.mxu1 }
 0xacc   :  { %10560 = vmatprep.mubr.f32.mxu1 %v15708_v54  ;;  %10800 = vmatpush1.msra.mxu0 %v10762_v18  ;;  %v9822_v18 = vmax.f32 %v9644_v61, %v18438_v9  ;;  %v9647_v9 = vmax.f32 %v9469_v38, %v9616_v5  ;;  %v11142_v38 = vld [vmem:[#allocation8 + $0x770] sm:$0xff]  ;;  %v11132_v61 = vld [vmem:[#allocation8 + $0x720] sm:$0xff] }
 0xacd   :  { %11694 = vmatmul.mubr.msk.f32.vlgmr.msra.gmra.mxu1 %vm9862_vm2, %v9820_v21  ;;  %10698 = vmatprep.subr.mxu1 %v10678_v33  ;;  %v10946_v33 = vld [vmem:[#allocation8 + $0x620] sm:$0xff]  ;;  %v10862_v21 = vld [vmem:[#allocation8 + $0x5e8] sm:$0xff]  ;;  %v11045_v5 = vld [vmem:[#allocation8 + $0x6d0] sm:$0xff] }
 0xace   :  { %10801 = vmatprep.subr.mxu0 %v10761_v57  ;;  %10699 = vmatpush1.msra.mxu1 %v10677_v11  ;;  %v10861_v57 = vld [vmem:[#allocation8 + $0x5e0] sm:$0xff]  ;;  %v10944_v11 = vld [vmem:[#allocation8 + $0x610] sm:$0xff] }
 0xacf   :  { %10802 = vmatpush1.msra.mxu0 %v10760_v0  ;;  %10700 = vmatprep.subr.mxu1 %v10676_v13  ;;  %v10860_v0 = vld [vmem:[#allocation8 + $0x5d8] sm:$0xff]  ;;  %v9794_v13 = vpop.f32.mrf.mxu0 }
 0xad0   :  { %10803 = vmatprep.subr.mxu0 %v10759_v16  ;;  %10701 = vmatpush1.msra.mxu1 %v10675_v55  ;;  %v10943_v16 = vld [vmem:[#allocation8 + $0x608] sm:$0xff]  ;;  %v10859_v55 = vld [vmem:[#allocation8 + $0x5d0] sm:$0xff] }
 0xad1   :  { %10804 = vmatpush1.msra.mxu0 %v10758_v32  ;;  %10702 = vmatprep.subr.mxu1 %v10674_v15  ;;  %v10858_v32 = vld [vmem:[#allocation8 + $0x5c8] sm:$0xff]  ;;  %v9825_v15 = vmax.f32 %v9647_v9, %v9794_v13  ;;  %v18486_v49 = vpop.f32.mrf.mxu0  ;;  %v9648_v9 = vmax.f32 %v9470_v29, %v18467_v25  ;;  %v11035_v13 = vld [vmem:[#allocation8 + $0x680] sm:$0xff] }
 0xad2   :  { %10805 = vmatprep.subr.mxu0 %v10757_v36  ;;  %10703 = vmatpush1.msra.mxu1 %v10673_v24  ;;  %v11141_v36 = vld [vmem:[#allocation8 + $0x768] sm:$0xff]  ;;  %v10855_v24 = vld [vmem:[#allocation8 + $0x5b0] sm:$0xff]  ;;  %v11229_v25 = vld [vmem:[#allocation8 + $0x7c0] sm:$0xff] }
 0xad3   :  { %10806 = vmatpush1.msra.mxu0 %v10756_v30  ;;  %10839 = vmatprep.mubr.f32.mxu0 %v15708_v54  ;;  %v11140_v30 = vld [vmem:[#allocation8 + $0x760] sm:$0xff]  ;;  %v11230_v29 = vld [vmem:[#allocation8 + $0x7c8] sm:$0xff] }
 0xad4   :  { %10704 = vmatprep.subr.mxu1 %v10672_v59  ;;  %11697 = vmatmul.mubr.msk.f32.vlgmr.msra.gmra.mxu0 %vm9862_vm2, %v9823_v40  ;;  %v10854_v59 = vld [vmem:[#allocation8 + $0x5a8] sm:$0xff]  ;;  %v11139_v40 = vld [vmem:[#allocation8 + $0x758] sm:$0xff] }
 0xad5   :  { %10977 = vmatprep.subr.mxu0 %v10957_v7  ;;  %10705 = vmatpush1.msra.mxu1 %v10671_v2  ;;  %v10853_v7 = vld [vmem:[#allocation8 + $0x5a0] sm:$0xff]  ;;  %v11138_v2 = vld [vmem:[#allocation8 + $0x750] sm:$0xff] }
 0xad6   :  { %10978 = vmatpush1.msra.mxu0 %v10956_v56  ;;  %10706 = vmatprep.subr.mxu1 %v10670_v35  ;;  %v10852_v56 = vld [vmem:[#allocation8 + $0x598] sm:$0xff]  ;;  %v11137_v35 = vld [vmem:[#allocation8 + $0x748] sm:$0xff] }
 0xad7   :  { %10979 = vmatprep.subr.mxu0 %v10955_v45  ;;  %10707 = vmatpush1.msra.mxu1 %v10669_v39  ;;  %v10851_v45 = vld [vmem:[#allocation8 + $0x590] sm:$0xff]  ;;  %v9646_v39 = vmax.f32 %v9468_v23, %v18451_v48  ;;  %v11133_v23 = vld [vmem:[#allocation8 + $0x728] sm:$0xff] }
 0xad8   :  { %10980 = vmatpush1.msra.mxu0 %v10954_v19  ;;  %10708 = vmatprep.subr.mxu1 %v10668_v14  ;;  %v18483_v19 = vpop.f32.mrf.mxu1  ;;  %v11136_v14 = vld [vmem:[#allocation8 + $0x740] sm:$0xff]  ;;  %v11049_v48 = vld [vmem:[#allocation8 + $0x6f0] sm:$0xff] }
 0xad9   :  { %10981 = vmatprep.subr.mxu0 %v10953_v6  ;;  %10709 = vmatpush1.msra.mxu1 %v10667_v51  ;;  %v10850_v6 = vld [vmem:[#allocation8 + $0x588] sm:$0xff]  ;;  %v11135_v51 = vld [vmem:[#allocation8 + $0x738] sm:$0xff] }
 0xada   :  { %10982 = vmatpush1.msra.mxu0 %v10952_v44  ;;  %10710 = vmatprep.subr.mxu1 %v10666_v17  ;;  %v10849_v44 = vld [vmem:[#allocation8 + $0x580] sm:$0xff]  ;;  %v11134_v17 = vld [vmem:[#allocation8 + $0x730] sm:$0xff]  ;;  %v9626_v1 = vpop.f32.mrf.mxu1 }
 0xadb   :  { %10983 = vmatprep.subr.mxu0 %v10951_v31  ;;  %10711 = vmatpush1.msra.mxu1 %v10665_v34  ;;  %v11050_v31 = vld [vmem:[#allocation8 + $0x6f8] sm:$0xff]  ;;  %v9824_v34 = vmax.f32 %v9646_v39, %v18454_v58  ;;  %v9649_v58 = vmax.f32 %v9471_v47, %v9626_v1  ;;  %v11041_v47 = vld [vmem:[#allocation8 + $0x6b0] sm:$0xff] }
 0xadc   :  { %10984 = vmatpush1.msra.mxu0 %v10950_v20  ;;  %10712 = vmatprep.subr.mxu1 %v10664_v26  ;;  %v11048_v20 = vld [vmem:[#allocation8 + $0x6e8] sm:$0xff]  ;;  %v11131_v26 = vld [vmem:[#allocation8 + $0x718] sm:$0xff] }
 0xadd   :  { %10985 = vmatprep.subr.mxu0 %v10949_v43  ;;  %10713 = vmatpush1.msra.mxu1 %v10663_v22  ;;  %v11047_v43 = vld [vmem:[#allocation8 + $0x6e0] sm:$0xff]  ;;  %v11130_v22 = vld [vmem:[#allocation8 + $0x710] sm:$0xff] }
 0xade   :  { %10746 = vmatprep.mubr.f32.mxu1 %v15708_v54  ;;  %10986 = vmatpush1.msra.mxu0 %v10948_v46  ;;  %v11046_v46 = vld [vmem:[#allocation8 + $0x6d8] sm:$0xff] }
 0xadf   :  { %11696 = vmatmul.mubr.msk.f32.vlgmr.msra.gmra.mxu1 %vm9862_vm2, %v9822_v18  ;;  %10884 = vmatprep.subr.mxu1 %v10864_v27  ;;  %v9804_v27 = vpop.f32.mrf.mxu0  ;;  %v11129_v18 = vld [vmem:[#allocation8 + $0x708] sm:$0xff] }
 0xae0   :  { %10987 = vmatprep.subr.mxu0 %v10947_v60  ;;  %10885 = vmatpush1.msra.mxu1 %v10863_v28  ;;  %v11128_v60 = vld [vmem:[#allocation8 + $0x700] sm:$0xff]  ;;  %v11044_v28 = vld [vmem:[#allocation8 + $0x6c8] sm:$0xff] }
 0xae1   :  { %10988 = vmatpush1.msra.mxu0 %v10946_v33  ;;  %10886 = vmatprep.subr.mxu1 %v10862_v21  ;;  %v9827_v33 = vmax.f32 %v9649_v58, %v9804_v27  ;;  %v11040_v21 = vld [vmem:[#allocation8 + $0x6a8] sm:$0xff] }
 0xae2   :  { %10989 = vmatprep.subr.mxu0 %v10945_v50  ;;  %10887 = vmatpush1.msra.mxu1 %v10861_v57  ;;  %v11039_v50 = vld [vmem:[#allocation8 + $0x6a0] sm:$0xff]  ;;  %v11038_v57 = vld [vmem:[#allocation8 + $0x698] sm:$0xff] }
 0xae3   :  { %10990 = vmatpush1.msra.mxu0 %v10944_v11  ;;  %10888 = vmatprep.subr.mxu1 %v10860_v0  ;;  %v11037_v11 = vld [vmem:[#allocation8 + $0x690] sm:$0xff]  ;;  %v11036_v0 = vld [vmem:[#allocation8 + $0x688] sm:$0xff] }
 0xae4   :  { %10991 = vmatprep.subr.mxu0 %v10943_v16  ;;  %10889 = vmatpush1.msra.mxu1 %v10859_v55  ;;  %v11236_v16 = vld [vmem:[#allocation8 + $0x7f8] sm:$0xff]  ;;  %v9826_v55 = vmax.f32 %v9648_v9, %v18470_v42  ;;  %v11315_v9 = vlaneseq }
 0xae5   :  { %10992 = vmatpush1.msra.mxu0 %v10942_v8  ;;  %11025 = vmatprep.mubr.f32.mxu0 %v15708_v54  ;;  %v11235_v8 = vld [vmem:[#allocation8 + $0x7f0] sm:$0xff]  ;;  %v11228_v42 = vld [vmem:[#allocation8 + $0x7b8] sm:$0xff] }
 0xae6   :  { %10890 = vmatprep.subr.mxu1 %v10858_v32  ;;  %11699 = vmatmul.mubr.msk.f32.vlgmr.msra.gmra.mxu0 %vm9862_vm2, %v9825_v15  ;;  %v11234_v32 = vld [vmem:[#allocation8 + $0x7e8] sm:$0xff]  ;;  %v11233_v15 = vld [vmem:[#allocation8 + $0x7e0] sm:$0xff] }
 0xae7   :  { %11163 = vmatprep.subr.mxu0 %v11143_v10  ;;  %10891 = vmatpush1.msra.mxu1 %v10857_v4  ;;  %v11227_v10 = vld [vmem:[#allocation8 + $0x7b0] sm:$0xff]  ;;  %v11226_v4 = vld [vmem:[#allocation8 + $0x7a8] sm:$0xff] }
 0xae8   :  { %11164 = vmatpush1.msra.mxu0 %v11142_v38  ;;  %10892 = vmatprep.subr.mxu1 %v10856_v12  ;;  %v11225_v38 = vld [vmem:[#allocation8 + $0x7a0] sm:$0xff]  ;;  %v11224_v12 = vld [vmem:[#allocation8 + $0x798] sm:$0xff] }
 0xae9   :  { %11165 = vmatprep.subr.mxu0 %v11141_v36  ;;  %10893 = vmatpush1.msra.mxu1 %v10855_v24  ;;  %v11223_v36 = vld [vmem:[#allocation8 + $0x790] sm:$0xff]  ;;  %v11222_v24 = vld [vmem:[#allocation8 + $0x788] sm:$0xff] }
 0xaea   :  { %11166 = vmatpush1.msra.mxu0 %v11140_v30  ;;  %10894 = vmatprep.subr.mxu1 %v10854_v59  ;;  %v11221_v30 = vld [vmem:[#allocation8 + $0x780] sm:$0xff] }
 0xaeb   :  { %11167 = vmatprep.subr.mxu0 %v11139_v40  ;;  %10895 = vmatpush1.msra.mxu1 %v10853_v7 }
 0xaec   :  { %11168 = vmatpush1.msra.mxu0 %v11138_v2  ;;  %10896 = vmatprep.subr.mxu1 %v10852_v56 }
 0xaed   :  { %11169 = vmatprep.subr.mxu0 %v11137_v35  ;;  %10897 = vmatpush1.msra.mxu1 %v10851_v45 }
 0xaee   :  { %11170 = vmatpush1.msra.mxu0 %v11136_v14  ;;  %10898 = vmatprep.subr.mxu1 %v10850_v6 }
 0xaef   :  { %11171 = vmatprep.subr.mxu0 %v11135_v51  ;;  %10899 = vmatpush1.msra.mxu1 %v10849_v44 }
 0xaf0   :  { %10932 = vmatprep.mubr.f32.mxu1 %v15708_v54  ;;  %11172 = vmatpush1.msra.mxu0 %v11134_v17 }
 0xaf1   :  { %11698 = vmatmul.mubr.msk.f32.vlgmr.msra.gmra.mxu1 %vm9862_vm2, %v9824_v34  ;;  %11070 = vmatprep.subr.mxu1 %v11050_v31 }
 0xaf2   :  { %11173 = vmatprep.subr.mxu0 %v11133_v23  ;;  %11071 = vmatpush1.msra.mxu1 %v11049_v48 }
 0xaf3   :  { %11174 = vmatpush1.msra.mxu0 %v11132_v61  ;;  %11072 = vmatprep.subr.mxu1 %v11048_v20 }
 0xaf4   :  { %11175 = vmatprep.subr.mxu0 %v11131_v26  ;;  %11073 = vmatpush1.msra.mxu1 %v11047_v43 }
 0xaf5   :  { %11176 = vmatpush1.msra.mxu0 %v11130_v22  ;;  %11074 = vmatprep.subr.mxu1 %v11046_v46 }
 0xaf6   :  { %11177 = vmatprep.subr.mxu0 %v11129_v18  ;;  %11075 = vmatpush1.msra.mxu1 %v11045_v5 }
 0xaf7   :  { %11178 = vmatpush1.msra.mxu0 %v11128_v60  ;;  %11211 = vmatprep.mubr.f32.mxu0 %v15708_v54 }
 0xaf8   :  { %11076 = vmatprep.subr.mxu1 %v11044_v28  ;;  %11701 = vmatmul.mubr.msk.f32.vlgmr.msra.gmra.mxu0 %vm9862_vm2, %v9827_v33 }
 0xaf9   :  { %11077 = vmatpush1.msra.mxu1 %v11043_v62  ;;  %11118 = vmatprep.mubr.f32.mxu1 %v15708_v54 }
 0xafa   :  { %11078 = vmatprep.subr.mxu1 %v11042_v41 }
 0xafb   :  { %11079 = vmatpush1.msra.mxu1 %v11041_v47 }
 0xafc   :  { %11080 = vmatprep.subr.mxu1 %v11040_v21 }
 0xafd   :  { %11081 = vmatpush1.msra.mxu1 %v11039_v50 }
 0xafe   :  { %11082 = vmatprep.subr.mxu1 %v11038_v57 }
 0xaff   :  { %11083 = vmatpush1.msra.mxu1 %v11037_v11 }
 0xb00   :  { %11084 = vmatprep.subr.mxu1 %v11036_v0 }
 0xb01   :  { %11085 = vmatpush1.msra.mxu1 %v11035_v13 }
 0xb02   :  { %11700 = vmatmul.mubr.msk.f32.vlgmr.msra.gmra.mxu1 %vm9862_vm2, %v9826_v55  ;;  %11256 = vmatprep.subr.mxu1 %v11236_v16 }
 0xb03   :  { %11257 = vmatpush1.msra.mxu1 %v11235_v8  ;;  %11304 = vmatprep.mubr.f32.mxu1 %v15708_v54  ;;  %v9650_v54 = vmax.f32 %v9472_v53, %v18483_v19 }
 0xb04   :  { %11258 = vmatprep.subr.mxu1 %v11234_v32 }
 0xb05   :  { %11259 = vmatpush1.msra.mxu1 %v11233_v15  ;;  %v9828_v59 = vmax.f32 %v9650_v54, %v18486_v49  ;;  %v11316_v15 = vshrl.u32 %v11315_v9, 7 }
 0xb06   :  { %11260 = vmatprep.subr.mxu1 %v11232_v52 }
 0xb07   :  { %11261 = vmatpush1.msra.mxu1 %v11231_v3  ;;  %v11321_v54 = vsub.s32 1, %v11316_v15 }
 0xb08   :  { %11262 = vmatprep.subr.mxu1 %v11230_v29 }
 0xb09   :  { %11263 = vmatpush1.msra.mxu1 %v11229_v25 }
 0xb0a   :  { %11264 = vmatprep.subr.mxu1 %v11228_v42 }
 0xb0b   :  { %11265 = vmatpush1.msra.mxu1 %v11227_v10  ;;  %v11317_v10 = vsub.s32 0, %v11316_v15 }
 0xb0c   :  { %11266 = vmatprep.subr.mxu1 %v11226_v4 }
 0xb0d   :  { %11267 = vmatpush1.msra.mxu1 %v11225_v38  ;;  %v11313_v38 = vld [vmem:[%s18528_s10] sm:$0x3] }
 0xb0e   :  { %11268 = vmatprep.subr.mxu1 %v11224_v12 }
 0xb0f   :  { %11269 = vmatpush1.msra.mxu1 %v11223_v36 }
 0xb10   :  { %11270 = vmatprep.subr.mxu1 %v11222_v24  ;;  %v11318_v24 = vrot.slane %v11313_v38, %v11317_v10 }
 0xb11   :  { %11271 = vmatpush1.msra.mxu1 %v11221_v30 }
 0xb12   :  { %11702 = vmatmul.mubr.msk.f32.vlgmr.msra.gmra.mxu1 %vm9862_vm2, %v9828_v59 }
 0xb47   :  { %v9932_v40 = vpop.f32.mrf.mxu1 }
 0xb49   :  { %v9934_v7 = vpop.f32.mrf.mxu1 }
 0xb4d   :  { %v10097_v37 = vpop.f32.mrf.mxu0 }
 0xb4f   :  { %v10099_v39 = vpop.f32.mrf.mxu0 }
 0xb57   :  { %v10006_v2 = vpop.f32.mrf.mxu1 }
 0xb58   :  { %v10007_v35 = vadd.f32 %v10006_v2, %v9932_v40  ;;  %v11322_v2 = vrot.slane %v11313_v38, %v11321_v54 }
 0xb59   :  { %v10008_v56 = vpop.f32.mrf.mxu1 }
 0xb5a   :  { %v10009_v53 = vadd.f32 %v10008_v56, %v9934_v7  ;;  %v10102_v45 = vadd.f32 %v10097_v37, %v10007_v35  ;;  %v11329_v56 = vld [vmem:[%s18529_s11] sm:$0x3] }
 0xb5c   :  { %v10103_v6 = vadd.f32 %v10099_v39, %v10009_v53 }
 0xb5e   :  { %v10283_v51 = vpop.f32.mrf.mxu0 }
 0xb60   :  { %v10285_v34 = vpop.f32.mrf.mxu0 }
 0xb69   :  { %v10190_v63 = vpop.f32.mrf.mxu1 }
 0xb6a   :  { %v10195_v14 = vadd.f32 %v10190_v63, %v10102_v45  ;;  %v11334_v45 = vrot.slane %v11329_v56, %v11317_v10 }
 0xb6b   :  { %v10192_v19 = vpop.f32.mrf.mxu1 }
 0xb6c   :  { %v10196_v17 = vadd.f32 %v10192_v19, %v10103_v6  ;;  %v10288_v31 = vadd.f32 %v10283_v51, %v10195_v14  ;;  %v11338_v19 = vrot.slane %v11329_v56, %v11321_v54 }
 0xb6e   :  { %v10289_v23 = vadd.f32 %v10285_v34, %v10196_v17  ;;  %v11703_v17 = vld [vmem:[#allocation2] ss:$0 sm:$0xff] }
 0xb70   :  { %v10469_v48 = vpop.f32.mrf.mxu0 }
 0xb72   :  { %v10471_v43 = vpop.f32.mrf.mxu0 }
 0xb7b   :  { %v10376_v44 = vpop.f32.mrf.mxu1 }
 0xb7c   :  { %v10381_v49 = vadd.f32 %v10376_v44, %v10288_v31 }
 0xb7d   :  { %v10378_v1 = vpop.f32.mrf.mxu1 }
 0xb7e   :  { %v10382_v20 = vadd.f32 %v10378_v1, %v10289_v23  ;;  %v10474_v26 = vadd.f32 %v10469_v48, %v10381_v49 }
 0xb80   :  { %v10475_v46 = vadd.f32 %v10471_v43, %v10382_v20 }
 0xb82   :  { %v10655_v27 = vpop.f32.mrf.mxu0 }
 0xb84   :  { %v10657_v28 = vpop.f32.mrf.mxu0 }
 0xb8d   :  { %v10562_v61 = vpop.f32.mrf.mxu1 }
 0xb8e   :  { %v10567_v22 = vadd.f32 %v10562_v61, %v10474_v26 }
 0xb8f   :  { %v10564_v58 = vpop.f32.mrf.mxu1 }
 0xb90   :  { %v10568_v5 = vadd.f32 %v10564_v58, %v10475_v46  ;;  %v10660_v60 = vadd.f32 %v10655_v27, %v10567_v22 }
 0xb92   :  { %v10661_v41 = vadd.f32 %v10657_v28, %v10568_v5 }
 0xb94   :  { %v10841_v47 = vpop.f32.mrf.mxu0 }
 0xb96   :  { %v10843_v11 = vpop.f32.mrf.mxu0 }
 0xb9f   :  { %v10748_v18 = vpop.f32.mrf.mxu1 }
 0xba0   :  { %v10753_v62 = vadd.f32 %v10748_v18, %v10660_v60 }
 0xba1   :  { %v10750_v33 = vpop.f32.mrf.mxu1 }
 0xba2   :  { %v10754_v50 = vadd.f32 %v10750_v33, %v10661_v41  ;;  %v10846_v57 = vadd.f32 %v10841_v47, %v10753_v62 }
 0xba4   :  { %v10847_v16 = vadd.f32 %v10843_v11, %v10754_v50 }
 0xba6   :  { %v11027_v55 = vpop.f32.mrf.mxu0 }
 0xba8   :  { %v11029_v3 = vpop.f32.mrf.mxu0 }
 0xbb1   :  { %v10934_v21 = vpop.f32.mrf.mxu1 }
 0xbb2   :  { %v10939_v13 = vadd.f32 %v10934_v21, %v10846_v57 }
 0xbb3   :  { %v10936_v0 = vpop.f32.mrf.mxu1 }
 0xbb4   :  { %v10940_v32 = vadd.f32 %v10936_v0, %v10847_v16  ;;  %v11032_v52 = vadd.f32 %v11027_v55, %v10939_v13 }
 0xbb6   :  { %v11033_v42 = vadd.f32 %v11029_v3, %v10940_v32 }
 0xbb8   :  { %v11213_v4 = vpop.f32.mrf.mxu0 }
 0xbba   :  { %v11215_v30 = vpop.f32.mrf.mxu0 }
 0xbc2   :  { %v11120_v8 = vpop.f32.mrf.mxu1 }
 0xbc3   :  { %v11125_v25 = vadd.f32 %v11120_v8, %v11032_v52 }
 0xbc4   :  { %v11122_v29 = vpop.f32.mrf.mxu1 }
 0xbc5   :  { %v11126_v12 = vadd.f32 %v11122_v29, %v11033_v42  ;;  %v11218_v36 = vadd.f32 %v11213_v4, %v11125_v25 }
 0xbc7   :  { %v11219_v7 = vadd.f32 %v11215_v30, %v11126_v12 }
 0xbd2   :  { %v11306_v59 = vpop.f32.mrf.mxu1 }
 0xbd3   :  { %v11311_v40 = vadd.f32 %v11306_v59, %v11218_v36 }
 0xbd4   :  { %v11308_v35 = vpop.f32.mrf.mxu1 }
 0xbd5   :  { %v11325_v37 = vadd.f32 %v11318_v24, %v11311_v40  ;;  %v11312_v63 = vadd.f32 %v11308_v35, %v11219_v7 }
 0xbd7   :  { %v11327_v53 = vmax.f32 %v11325_v37, 0.0  ;;  %v11326_v39 = vadd.f32 %v11322_v2, %v11312_v63 }
 0xbd9   :  { %v11328_v14 = vmax.f32 %v11326_v39, 0.0  ;;  %v11341_v6 = vmul.f32 %v11334_v45, %v11327_v53 }
 0xbdb   :  { %v11342_v51 = vmul.f32 %v11338_v19, %v11328_v14 }
 0xbdd   :  { %v11343_v44 = vadd.f32 %v11342_v51, %v11341_v6 }
 0xbdf   :  { %11344 = vadd.xlane.f32.xlu0 %v11343_v44 }
 0xc68   :  { %v11345_v31 = vpop.xlane.xlu0 %11344 }
 0xc69   :  { %v11353_v34 = vadd.f32 %v11703_v17, %v11345_v31 }
 0xc6b   :  { %11355 = vst.msk [vmem:[%s18531_s13] sm:$0x3] %vm11354_vm3, %v11353_v34 }
 0xc6c   :  { %11360 = vsyncpa [#allocation4], 1 }
 0xc6d   :  { %11361 = vsyncpa [#allocation6], 1 }
 0xc6e   :  { %11362 = vsyncpa [#allocation9], 1 }

</bundles_post_ra>
